<compile_context>
chip_gen: v7x
topology: tpu7x:2x2x1
jax: 0.10.0
libtpu: 0.0.40
codegen_flags: <defaults>
</compile_context>

<pallas_src>
import jax
import jax.numpy as jnp
from jax.experimental import pallas as pl
from jax.experimental.pallas import tpu as pltpu

# ---- model dims (scaled down from 714000 -> 8192) ----
B = 2                 # batch
L = 8192              # sequence length (module hard-codes 714000)
C = 8                 # conv1 out channels
KSZ = 3               # conv kernel size
Lh = L // 2           # after maxpool(k=2, s=2)           -> 4096
SR = Lh // 128        # spatial rows of 128 lanes / batch -> 32
T = 32                # spatial rows per conv tile (whole batch element per grid step)
K = C * Lh            # fc1 input features                -> 32768
H = 256               # fc1 out features
NCLS = 2              # fc2 out features
TK = 16384            # fc1 K-tile (bf16: 4 MiB weight block per H-tile, 8 MiB double-buffered)
TH = 128              # fc1 H-tile (2 blocks -> "parallel" axis for v7x megacore)

VMEM_LIMIT = 32 * 1024 * 1024   # explicit scoped-VMEM budget; ample headroom on v7x (64 MiB)


# --------------------------------------------------------------------------
# Kernel 1: Conv1d(1->8,k=3,p=1) + folded BatchNorm + ReLU + MaxPool1d(2,2)
#   xs_ref : (4, 1, T, 128) f32  four even/odd phase planes of one batch's spatial tile
#   cw_ref : (C, 4) f32 SMEM     per channel [w0*bn_scale, w1*bn_scale, w2*bn_scale, bn_shift]
#   out_ref: (1, C, T, 128) bf16 pooled features, already in (B, C, Lh) order
# --------------------------------------------------------------------------
def conv_bn_relu_pool_kernel(xs_ref, cw_ref, out_ref):
    x0 = xs_ref[0, 0]   # x_pad[2p]
    x1 = xs_ref[1, 0]   # x_pad[2p+1]
    x2 = xs_ref[2, 0]   # x_pad[2p+2]
    x3 = xs_ref[3, 0]   # x_pad[2p+3]
    for c in range(C):  # static unroll over 8 output channels
        w0 = cw_ref[c, 0]
        w1 = cw_ref[c, 1]
        w2 = cw_ref[c, 2]
        t = cw_ref[c, 3]
        # conv+BN output at even / odd positions (padding=1 already applied in glue)
        y_even = w0 * x0 + w1 * x1 + w2 * x2 + t
        y_odd = w0 * x1 + w1 * x2 + w2 * x3 + t
        # MaxPool1d(2,2) then ReLU (== ReLU then MaxPool, monotone)
        y = jnp.maximum(jnp.maximum(y_even, y_odd), 0.0)
        out_ref[0, c] = y.astype(out_ref.dtype)


# --------------------------------------------------------------------------
# Kernel 2: fc1 (K-tiled reduction, f32 accumulation directly in the output block)
#           + bias + ReLU + fused fc2 partial logits in the last-K epilogue.
#   grid = (H // TH  [parallel], K // TK  [arbitrary])
#   x_ref : (B, TK)  bf16   w1_ref : (TK, TH) bf16   b1_ref : (1, TH) f32
#   w2_ref: (TH, NCLS) f32
#   h_ref : (B, TH)  f32    (VMEM-resident accumulator; block index ignores k)
#   po_ref: (1, B, NCLS) f32 partial fc2 logits for this H-block
# --------------------------------------------------------------------------
def fc_kernel(x_ref, w1_ref, b1_ref, w2_ref, h_ref, po_ref):
    k = pl.program_id(1)

    @pl.when(k == 0)
    def _():
        h_ref[...] = jnp.zeros_like(h_ref)

    h_ref[...] += jnp.dot(x_ref[...], w1_ref[...],
                          preferred_element_type=jnp.float32)

    @pl.when(k == pl.num_programs(1) - 1)
    def _():
        # dropout1: identity in inference mode
        h = jnp.maximum(h_ref[...] + b1_ref[...], 0.0)
        h_ref[...] = h
        po_ref[0] = jnp.dot(h, w2_ref[...], preferred_element_type=jnp.float32)


def prepare_params(params):
    """One-time parameter preparation (BN folding, weight transpose/cast).

    Hoisted out of the per-call forward path so the jitted forward only streams
    already-laid-out weights (no per-call 32 MiB transpose+cast in XLA)."""
    (w_conv, b_conv, gamma, beta, run_mean, run_var, w1, b1, w2, b2) = params
    eps = 1e-5
    scale = gamma / jnp.sqrt(run_var + eps)                    # (C,)
    shift = scale * (b_conv - run_mean) + beta                 # (C,)
    cw = jnp.concatenate(
        [w_conv.reshape(C, KSZ) * scale[:, None], shift[:, None]], axis=1)  # (C, 4)
    return dict(
        cw=cw.astype(jnp.float32),
        w1t=w1.T.astype(jnp.bfloat16),                         # (K, H) bf16, streamed
        b1=b1.reshape(1, H).astype(jnp.float32),
        w2t=w2.T.astype(jnp.float32),                          # (H, NCLS)
        b2=b2.reshape(1, NCLS).astype(jnp.float32),
    )


def cnn_classifier_forward(x, prep):
    """Forward pass equivalent to CNNClassifier.forward (eval mode)."""
    # x.view(-1, 1, L) -> work on (B, L) since in_channels == 1  (glue)
    x2d = x.reshape(-1, L).astype(jnp.float32)
    nb = x2d.shape[0]

    # padding=1 + even/odd phase deinterleave, then pack spatial dim as (SR, 128)  (glue)
    # TODO(synk): at the real L=714000 scale, move this deinterleave into the conv kernel
    # (strided loads / XLU lane split) to avoid an extra HBM pass; negligible at L=8192.
    xp = jnp.pad(x2d, ((0, 0), (1, 1)))
    xs = jnp.stack(
        [xp[:, 0:L:2], xp[:, 1:L + 1:2], xp[:, 2:L + 2:2], xp[:, 3:L + 2:2]],
        axis=0,
    ).reshape(4, nb, SR, 128)

    pooled = pl.pallas_call(
        conv_bn_relu_pool_kernel,
        out_shape=jax.ShapeDtypeStruct((nb, C, SR, 128), jnp.bfloat16),
        grid_spec=pltpu.PrefetchScalarGridSpec(
            num_scalar_prefetch=0,
            grid=(nb, SR // T),
            in_specs=[
                pl.BlockSpec((4, 1, T, 128), lambda b, s: (0, b, s, 0)),
                pl.BlockSpec(memory_space=pltpu.MemorySpace.SMEM),
            ],
            out_specs=pl.BlockSpec((1, C, T, 128), lambda b, s: (b, 0, s, 0)),
        ),
        compiler_params=pltpu.CompilerParams(
            dimension_semantics=("parallel", "parallel"),
            vmem_limit_bytes=VMEM_LIMIT),
    )(xs, prep["cw"])

    # x.view(-1, 8*Lh): (B, C, SR, 128) -> (B, C*Lh) is a contiguous (free) reshape
    flat = pooled.reshape(nb, K)                 # bf16

    h, partial = pl.pallas_call(
        fc_kernel,
        out_shape=(jax.ShapeDtypeStruct((nb, H), jnp.float32),
                   jax.ShapeDtypeStruct((H // TH, nb, NCLS), jnp.float32)),
        grid_spec=pltpu.PrefetchScalarGridSpec(
            num_scalar_prefetch=0,
            grid=(H // TH, K // TK),
            in_specs=[
                pl.BlockSpec((nb, TK), lambda hh, k: (0, k)),
                pl.BlockSpec((TK, TH), lambda hh, k: (k, hh)),
                pl.BlockSpec((1, TH), lambda hh, k: (0, hh)),
                pl.BlockSpec((TH, NCLS), lambda hh, k: (hh, 0)),
            ],
            out_specs=(pl.BlockSpec((nb, TH), lambda hh, k: (0, hh)),
                       pl.BlockSpec((1, nb, NCLS), lambda hh, k: (hh, 0, 0))),
        ),
        compiler_params=pltpu.CompilerParams(
            dimension_semantics=("parallel", "arbitrary"),
            vmem_limit_bytes=VMEM_LIMIT),
    )(flat, prep["w1t"], prep["b1"], prep["w2t"])
    del h  # hidden activations only needed as the in-kernel accumulator

    # fc2: sum the two per-H-block partial logits + bias (a few bytes; fused by XLA).
    return partial.sum(axis=0) + prep["b2"]


def init_params(key):
    keys = jax.random.split(key, 10)
    w_conv = jax.random.normal(keys[0], (C, 1, KSZ), jnp.float32) * 0.5
    b_conv = jax.random.normal(keys[1], (C,), jnp.float32) * 0.1
    gamma = 1.0 + 0.1 * jax.random.normal(keys[2], (C,), jnp.float32)
    beta = 0.1 * jax.random.normal(keys[3], (C,), jnp.float32)
    run_mean = 0.1 * jax.random.normal(keys[4], (C,), jnp.float32)
    run_var = jnp.abs(jax.random.normal(keys[5], (C,), jnp.float32)) + 0.5
    w1 = jax.random.normal(keys[6], (H, K), jnp.float32) * (1.0 / jnp.sqrt(K))
    b1 = 0.01 * jax.random.normal(keys[7], (H,), jnp.float32)
    w2 = jax.random.normal(keys[8], (NCLS, H), jnp.float32) * (1.0 / jnp.sqrt(H))
    b2 = 0.01 * jax.random.normal(keys[9], (NCLS,), jnp.float32)
    return (w_conv, b_conv, gamma, beta, run_mean, run_var, w1, b1, w2, b2)


if __name__ == "__main__":
    key = jax.random.PRNGKey(0)
    pkey, xkey = jax.random.split(key)
    params = init_params(pkey)
    x = jax.random.normal(xkey, (B, 1, L), jnp.float32)

    # One-time weight preparation (outside the per-call forward path).
    prep = jax.block_until_ready(prepare_params(params))

    fwd = jax.jit(cnn_classifier_forward)
    out = jax.block_until_ready(fwd(x, prep))
    assert out.shape == (B, NCLS), out.shape
    print("KERNEL_OK")
</pallas_src>

<mosaic_0001>
module attributes {stable_mosaic.version = 11 : i64} {
  func.func @conv_bn_relu_pool_kernel(%arg0: i32, %arg1: i32, %arg2: memref<4x1x32x128xf32, #tpu.memory_space<vmem>>, %arg3: memref<8x4xf32, #tpu.memory_space<smem>>, %arg4: memref<1x8x32x128xbf16, #tpu.memory_space<vmem>>) attributes {dimension_semantics = [#tpu.dimension_semantics<parallel>, #tpu.dimension_semantics<parallel>], iteration_bounds = array<i64: 2, 1>, scalar_prefetch = 0 : i64, scratch_operands = 0 : i64, tpu.core_type = #tpu.core_type<tc>, window_params = [{transform_indices = @transform_0, window_bounds = array<i64: 4, 1, 32, 128>}, {transform_indices = @transform_1, window_bounds = array<i64: 8, 4>}, {transform_indices = @transform_2, window_bounds = array<i64: 1, 8, 32, 128>}]} {
    %c0 = arith.constant 0 : index
    %c0_0 = arith.constant 0 : index
    %c0_1 = arith.constant 0 : index
    %c0_2 = arith.constant 0 : index
    %0 = vector.load %arg2[%c0, %c0_0, %c0_1, %c0_2] : memref<4x1x32x128xf32, #tpu.memory_space<vmem>>, vector<1x1x32x128xf32>
    %1 = vector.shape_cast %0 : vector<1x1x32x128xf32> to vector<32x128xf32>
    %c1 = arith.constant 1 : index
    %c0_3 = arith.constant 0 : index
    %c0_4 = arith.constant 0 : index
    %c0_5 = arith.constant 0 : index
    %2 = vector.load %arg2[%c1, %c0_3, %c0_4, %c0_5] : memref<4x1x32x128xf32, #tpu.memory_space<vmem>>, vector<1x1x32x128xf32>
    %3 = vector.shape_cast %2 : vector<1x1x32x128xf32> to vector<32x128xf32>
    %c2 = arith.constant 2 : index
    %c0_6 = arith.constant 0 : index
    %c0_7 = arith.constant 0 : index
    %c0_8 = arith.constant 0 : index
    %4 = vector.load %arg2[%c2, %c0_6, %c0_7, %c0_8] : memref<4x1x32x128xf32, #tpu.memory_space<vmem>>, vector<1x1x32x128xf32>
    %5 = vector.shape_cast %4 : vector<1x1x32x128xf32> to vector<32x128xf32>
    %c3 = arith.constant 3 : index
    %c0_9 = arith.constant 0 : index
    %c0_10 = arith.constant 0 : index
    %c0_11 = arith.constant 0 : index
    %6 = vector.load %arg2[%c3, %c0_9, %c0_10, %c0_11] : memref<4x1x32x128xf32, #tpu.memory_space<vmem>>, vector<1x1x32x128xf32>
    %7 = vector.shape_cast %6 : vector<1x1x32x128xf32> to vector<32x128xf32>
    %c0_12 = arith.constant 0 : index
    %c0_13 = arith.constant 0 : index
    %8 = memref.load %arg3[%c0_12, %c0_13] : memref<8x4xf32, #tpu.memory_space<smem>>
    %c0_14 = arith.constant 0 : index
    %c1_15 = arith.constant 1 : index
    %9 = memref.load %arg3[%c0_14, %c1_15] : memref<8x4xf32, #tpu.memory_space<smem>>
    %c0_16 = arith.constant 0 : index
    %c2_17 = arith.constant 2 : index
    %10 = memref.load %arg3[%c0_16, %c2_17] : memref<8x4xf32, #tpu.memory_space<smem>>
    %c0_18 = arith.constant 0 : index
    %c3_19 = arith.constant 3 : index
    %11 = memref.load %arg3[%c0_18, %c3_19] : memref<8x4xf32, #tpu.memory_space<smem>>
    %12 = vector.broadcast %8 : f32 to vector<32x128xf32>
    %13 = arith.mulf %12, %1 : vector<32x128xf32>
    %14 = vector.broadcast %9 : f32 to vector<32x128xf32>
    %15 = arith.mulf %14, %3 : vector<32x128xf32>
    %16 = arith.addf %13, %15 : vector<32x128xf32>
    %17 = vector.broadcast %10 : f32 to vector<32x128xf32>
    %18 = arith.mulf %17, %5 : vector<32x128xf32>
    %19 = arith.addf %16, %18 : vector<32x128xf32>
    %20 = vector.broadcast %11 : f32 to vector<32x128xf32>
    %21 = arith.addf %19, %20 : vector<32x128xf32>
    %22 = vector.broadcast %8 : f32 to vector<32x128xf32>
    %23 = arith.mulf %22, %3 : vector<32x128xf32>
    %24 = vector.broadcast %9 : f32 to vector<32x128xf32>
    %25 = arith.mulf %24, %5 : vector<32x128xf32>
    %26 = arith.addf %23, %25 : vector<32x128xf32>
    %27 = vector.broadcast %10 : f32 to vector<32x128xf32>
    %28 = arith.mulf %27, %7 : vector<32x128xf32>
    %29 = arith.addf %26, %28 : vector<32x128xf32>
    %30 = vector.broadcast %11 : f32 to vector<32x128xf32>
    %31 = arith.addf %29, %30 : vector<32x128xf32>
    %32 = arith.maximumf %21, %31 : vector<32x128xf32>
    %cst = arith.constant 0.000000e+00 : f32
    %33 = vector.broadcast %cst : f32 to vector<32x128xf32>
    %34 = arith.maximumf %32, %33 : vector<32x128xf32>
    %35 = arith.truncf %34 : vector<32x128xf32> to vector<32x128xbf16>
    %c0_20 = arith.constant 0 : index
    %c0_21 = arith.constant 0 : index
    %c0_22 = arith.constant 0 : index
    %c0_23 = arith.constant 0 : index
    %36 = vector.load %arg4[%c0_20, %c0_21, %c0_22, %c0_23] : memref<1x8x32x128xbf16, #tpu.memory_space<vmem>>, vector<1x1x32x128xbf16>
    %37 = vector.shape_cast %36 : vector<1x1x32x128xbf16> to vector<32x128xbf16>
    %38 = vector.shape_cast %35 : vector<32x128xbf16> to vector<1x1x32x128xbf16>
    tpu.vector_store %arg4[%c0_20, %c0_21, %c0_22, %c0_23], %38 {strides = array<i32>} : memref<1x8x32x128xbf16, #tpu.memory_space<vmem>>, vector<1x1x32x128xbf16>,
    %c1_24 = arith.constant 1 : index
    %c0_25 = arith.constant 0 : index
    %39 = memref.load %arg3[%c1_24, %c0_25] : memref<8x4xf32, #tpu.memory_space<smem>>
    %c1_26 = arith.constant 1 : index
    %c1_27 = arith.constant 1 : index
    %40 = memref.load %arg3[%c1_26, %c1_27] : memref<8x4xf32, #tpu.memory_space<smem>>
    %c1_28 = arith.constant 1 : index
    %c2_29 = arith.constant 2 : index
    %41 = memref.load %arg3[%c1_28, %c2_29] : memref<8x4xf32, #tpu.memory_space<smem>>
    %c1_30 = arith.constant 1 : index
    %c3_31 = arith.constant 3 : index
    %42 = memref.load %arg3[%c1_30, %c3_31] : memref<8x4xf32, #tpu.memory_space<smem>>
    %43 = vector.broadcast %39 : f32 to vector<32x128xf32>
    %44 = arith.mulf %43, %1 : vector<32x128xf32>
    %45 = vector.broadcast %40 : f32 to vector<32x128xf32>
    %46 = arith.mulf %45, %3 : vector<32x128xf32>
    %47 = arith.addf %44, %46 : vector<32x128xf32>
    %48 = vector.broadcast %41 : f32 to vector<32x128xf32>
    %49 = arith.mulf %48, %5 : vector<32x128xf32>
    %50 = arith.addf %47, %49 : vector<32x128xf32>
    %51 = vector.broadcast %42 : f32 to vector<32x128xf32>
    %52 = arith.addf %50, %51 : vector<32x128xf32>
    %53 = vector.broadcast %39 : f32 to vector<32x128xf32>
    %54 = arith.mulf %53, %3 : vector<32x128xf32>
    %55 = vector.broadcast %40 : f32 to vector<32x128xf32>
    %56 = arith.mulf %55, %5 : vector<32x128xf32>
    %57 = arith.addf %54, %56 : vector<32x128xf32>
    %58 = vector.broadcast %41 : f32 to vector<32x128xf32>
    %59 = arith.mulf %58, %7 : vector<32x128xf32>
    %60 = arith.addf %57, %59 : vector<32x128xf32>
    %61 = vector.broadcast %42 : f32 to vector<32x128xf32>
    %62 = arith.addf %60, %61 : vector<32x128xf32>
    %63 = arith.maximumf %52, %62 : vector<32x128xf32>
    %cst_32 = arith.constant 0.000000e+00 : f32
    %64 = vector.broadcast %cst_32 : f32 to vector<32x128xf32>
    %65 = arith.maximumf %63, %64 : vector<32x128xf32>
    %66 = arith.truncf %65 : vector<32x128xf32> to vector<32x128xbf16>
    %c0_33 = arith.constant 0 : index
    %c1_34 = arith.constant 1 : index
    %c0_35 = arith.constant 0 : index
    %c0_36 = arith.constant 0 : index
    %67 = vector.load %arg4[%c0_33, %c1_34, %c0_35, %c0_36] : memref<1x8x32x128xbf16, #tpu.memory_space<vmem>>, vector<1x1x32x128xbf16>
    %68 = vector.shape_cast %67 : vector<1x1x32x128xbf16> to vector<32x128xbf16>
    %69 = vector.shape_cast %66 : vector<32x128xbf16> to vector<1x1x32x128xbf16>
    tpu.vector_store %arg4[%c0_33, %c1_34, %c0_35, %c0_36], %69 {strides = array<i32>} : memref<1x8x32x128xbf16, #tpu.memory_space<vmem>>, vector<1x1x32x128xbf16>,
    %c2_37 = arith.constant 2 : index
    %c0_38 = arith.constant 0 : index
    %70 = memref.load %arg3[%c2_37, %c0_38] : memref<8x4xf32, #tpu.memory_space<smem>>
    %c2_39 = arith.constant 2 : index
    %c1_40 = arith.constant 1 : index
    %71 = memref.load %arg3[%c2_39, %c1_40] : memref<8x4xf32, #tpu.memory_space<smem>>
    %c2_41 = arith.constant 2 : index
    %c2_42 = arith.constant 2 : index
    %72 = memref.load %arg3[%c2_41, %c2_42] : memref<8x4xf32, #tpu.memory_space<smem>>
    %c2_43 = arith.constant 2 : index
    %c3_44 = arith.constant 3 : index
    %73 = memref.load %arg3[%c2_43, %c3_44] : memref<8x4xf32, #tpu.memory_space<smem>>
    %74 = vector.broadcast %70 : f32 to vector<32x128xf32>
    %75 = arith.mulf %74, %1 : vector<32x128xf32>
    %76 = vector.broadcast %71 : f32 to vector<32x128xf32>
    %77 = arith.mulf %76, %3 : vector<32x128xf32>
    %78 = arith.addf %75, %77 : vector<32x128xf32>
    %79 = vector.broadcast %72 : f32 to vector<32x128xf32>
    %80 = arith.mulf %79, %5 : vector<32x128xf32>
    %81 = arith.addf %78, %80 : vector<32x128xf32>
    %82 = vector.broadcast %73 : f32 to vector<32x128xf32>
    %83 = arith.addf %81, %82 : vector<32x128xf32>
    %84 = vector.broadcast %70 : f32 to vector<32x128xf32>
    %85 = arith.mulf %84, %3 : vector<32x128xf32>
    %86 = vector.broadcast %71 : f32 to vector<32x128xf32>
    %87 = arith.mulf %86, %5 : vector<32x128xf32>
    %88 = arith.addf %85, %87 : vector<32x128xf32>
    %89 = vector.broadcast %72 : f32 to vector<32x128xf32>
    %90 = arith.mulf %89, %7 : vector<32x128xf32>
    %91 = arith.addf %88, %90 : vector<32x128xf32>
    %92 = vector.broadcast %73 : f32 to vector<32x128xf32>
    %93 = arith.addf %91, %92 : vector<32x128xf32>
    %94 = arith.maximumf %83, %93 : vector<32x128xf32>
    %cst_45 = arith.constant 0.000000e+00 : f32
    %95 = vector.broadcast %cst_45 : f32 to vector<32x128xf32>
    %96 = arith.maximumf %94, %95 : vector<32x128xf32>
    %97 = arith.truncf %96 : vector<32x128xf32> to vector<32x128xbf16>
    %c0_46 = arith.constant 0 : index
    %c2_47 = arith.constant 2 : index
    %c0_48 = arith.constant 0 : index
    %c0_49 = arith.constant 0 : index
    %98 = vector.load %arg4[%c0_46, %c2_47, %c0_48, %c0_49] : memref<1x8x32x128xbf16, #tpu.memory_space<vmem>>, vector<1x1x32x128xbf16>
    %99 = vector.shape_cast %98 : vector<1x1x32x128xbf16> to vector<32x128xbf16>
    %100 = vector.shape_cast %97 : vector<32x128xbf16> to vector<1x1x32x128xbf16>
    tpu.vector_store %arg4[%c0_46, %c2_47, %c0_48, %c0_49], %100 {strides = array<i32>} : memref<1x8x32x128xbf16, #tpu.memory_space<vmem>>, vector<1x1x32x128xbf16>,
    %c3_50 = arith.constant 3 : index
    %c0_51 = arith.constant 0 : index
    %101 = memref.load %arg3[%c3_50, %c0_51] : memref<8x4xf32, #tpu.memory_space<smem>>
    %c3_52 = arith.constant 3 : index
    %c1_53 = arith.constant 1 : index
    %102 = memref.load %arg3[%c3_52, %c1_53] : memref<8x4xf32, #tpu.memory_space<smem>>
    %c3_54 = arith.constant 3 : index
    %c2_55 = arith.constant 2 : index
    %103 = memref.load %arg3[%c3_54, %c2_55] : memref<8x4xf32, #tpu.memory_space<smem>>
    %c3_56 = arith.constant 3 : index
    %c3_57 = arith.constant 3 : index
    %104 = memref.load %arg3[%c3_56, %c3_57] : memref<8x4xf32, #tpu.memory_space<smem>>
    %105 = vector.broadcast %101 : f32 to vector<32x128xf32>
    %106 = arith.mulf %105, %1 : vector<32x128xf32>
    %107 = vector.broadcast %102 : f32 to vector<32x128xf32>
    %108 = arith.mulf %107, %3 : vector<32x128xf32>
    %109 = arith.addf %106, %108 : vector<32x128xf32>
    %110 = vector.broadcast %103 : f32 to vector<32x128xf32>
    %111 = arith.mulf %110, %5 : vector<32x128xf32>
    %112 = arith.addf %109, %111 : vector<32x128xf32>
    %113 = vector.broadcast %104 : f32 to vector<32x128xf32>
    %114 = arith.addf %112, %113 : vector<32x128xf32>
    %115 = vector.broadcast %101 : f32 to vector<32x128xf32>
    %116 = arith.mulf %115, %3 : vector<32x128xf32>
    %117 = vector.broadcast %102 : f32 to vector<32x128xf32>
    %118 = arith.mulf %117, %5 : vector<32x128xf32>
    %119 = arith.addf %116, %118 : vector<32x128xf32>
    %120 = vector.broadcast %103 : f32 to vector<32x128xf32>
    %121 = arith.mulf %120, %7 : vector<32x128xf32>
    %122 = arith.addf %119, %121 : vector<32x128xf32>
    %123 = vector.broadcast %104 : f32 to vector<32x128xf32>
    %124 = arith.addf %122, %123 : vector<32x128xf32>
    %125 = arith.maximumf %114, %124 : vector<32x128xf32>
    %cst_58 = arith.constant 0.000000e+00 : f32
    %126 = vector.broadcast %cst_58 : f32 to vector<32x128xf32>
    %127 = arith.maximumf %125, %126 : vector<32x128xf32>
    %128 = arith.truncf %127 : vector<32x128xf32> to vector<32x128xbf16>
    %c0_59 = arith.constant 0 : index
    %c3_60 = arith.constant 3 : index
    %c0_61 = arith.constant 0 : index
    %c0_62 = arith.constant 0 : index
    %129 = vector.load %arg4[%c0_59, %c3_60, %c0_61, %c0_62] : memref<1x8x32x128xbf16, #tpu.memory_space<vmem>>, vector<1x1x32x128xbf16>
    %130 = vector.shape_cast %129 : vector<1x1x32x128xbf16> to vector<32x128xbf16>
    %131 = vector.shape_cast %128 : vector<32x128xbf16> to vector<1x1x32x128xbf16>
    tpu.vector_store %arg4[%c0_59, %c3_60, %c0_61, %c0_62], %131 {strides = array<i32>} : memref<1x8x32x128xbf16, #tpu.memory_space<vmem>>, vector<1x1x32x128xbf16>,
    %c4 = arith.constant 4 : index
    %c0_63 = arith.constant 0 : index
    %132 = memref.load %arg3[%c4, %c0_63] : memref<8x4xf32, #tpu.memory_space<smem>>
    %c4_64 = arith.constant 4 : index
    %c1_65 = arith.constant 1 : index
    %133 = memref.load %arg3[%c4_64, %c1_65] : memref<8x4xf32, #tpu.memory_space<smem>>
    %c4_66 = arith.constant 4 : index
    %c2_67 = arith.constant 2 : index
    %134 = memref.load %arg3[%c4_66, %c2_67] : memref<8x4xf32, #tpu.memory_space<smem>>
    %c4_68 = arith.constant 4 : index
    %c3_69 = arith.constant 3 : index
    %135 = memref.load %arg3[%c4_68, %c3_69] : memref<8x4xf32, #tpu.memory_space<smem>>
    %136 = vector.broadcast %132 : f32 to vector<32x128xf32>
    %137 = arith.mulf %136, %1 : vector<32x128xf32>
    %138 = vector.broadcast %133 : f32 to vector<32x128xf32>
    %139 = arith.mulf %138, %3 : vector<32x128xf32>
    %140 = arith.addf %137, %139 : vector<32x128xf32>
    %141 = vector.broadcast %134 : f32 to vector<32x128xf32>
    %142 = arith.mulf %141, %5 : vector<32x128xf32>
    %143 = arith.addf %140, %142 : vector<32x128xf32>
    %144 = vector.broadcast %135 : f32 to vector<32x128xf32>
    %145 = arith.addf %143, %144 : vector<32x128xf32>
    %146 = vector.broadcast %132 : f32 to vector<32x128xf32>
    %147 = arith.mulf %146, %3 : vector<32x128xf32>
    %148 = vector.broadcast %133 : f32 to vector<32x128xf32>
    %149 = arith.mulf %148, %5 : vector<32x128xf32>
    %150 = arith.addf %147, %149 : vector<32x128xf32>
    %151 = vector.broadcast %134 : f32 to vector<32x128xf32>
    %152 = arith.mulf %151, %7 : vector<32x128xf32>
    %153 = arith.addf %150, %152 : vector<32x128xf32>
    %154 = vector.broadcast %135 : f32 to vector<32x128xf32>
    %155 = arith.addf %153, %154 : vector<32x128xf32>
    %156 = arith.maximumf %145, %155 : vector<32x128xf32>
    %cst_70 = arith.constant 0.000000e+00 : f32
    %157 = vector.broadcast %cst_70 : f32 to vector<32x128xf32>
    %158 = arith.maximumf %156, %157 : vector<32x128xf32>
    %159 = arith.truncf %158 : vector<32x128xf32> to vector<32x128xbf16>
    %c0_71 = arith.constant 0 : index
    %c4_72 = arith.constant 4 : index
    %c0_73 = arith.constant 0 : index
    %c0_74 = arith.constant 0 : index
    %160 = vector.load %arg4[%c0_71, %c4_72, %c0_73, %c0_74] : memref<1x8x32x128xbf16, #tpu.memory_space<vmem>>, vector<1x1x32x128xbf16>
    %161 = vector.shape_cast %160 : vector<1x1x32x128xbf16> to vector<32x128xbf16>
    %162 = vector.shape_cast %159 : vector<32x128xbf16> to vector<1x1x32x128xbf16>
    tpu.vector_store %arg4[%c0_71, %c4_72, %c0_73, %c0_74], %162 {strides = array<i32>} : memref<1x8x32x128xbf16, #tpu.memory_space<vmem>>, vector<1x1x32x128xbf16>,
    %c5 = arith.constant 5 : index
    %c0_75 = arith.constant 0 : index
    %163 = memref.load %arg3[%c5, %c0_75] : memref<8x4xf32, #tpu.memory_space<smem>>
    %c5_76 = arith.constant 5 : index
    %c1_77 = arith.constant 1 : index
    %164 = memref.load %arg3[%c5_76, %c1_77] : memref<8x4xf32, #tpu.memory_space<smem>>
    %c5_78 = arith.constant 5 : index
    %c2_79 = arith.constant 2 : index
    %165 = memref.load %arg3[%c5_78, %c2_79] : memref<8x4xf32, #tpu.memory_space<smem>>
    %c5_80 = arith.constant 5 : index
    %c3_81 = arith.constant 3 : index
    %166 = memref.load %arg3[%c5_80, %c3_81] : memref<8x4xf32, #tpu.memory_space<smem>>
    %167 = vector.broadcast %163 : f32 to vector<32x128xf32>
    %168 = arith.mulf %167, %1 : vector<32x128xf32>
    %169 = vector.broadcast %164 : f32 to vector<32x128xf32>
    %170 = arith.mulf %169, %3 : vector<32x128xf32>
    %171 = arith.addf %168, %170 : vector<32x128xf32>
    %172 = vector.broadcast %165 : f32 to vector<32x128xf32>
    %173 = arith.mulf %172, %5 : vector<32x128xf32>
    %174 = arith.addf %171, %173 : vector<32x128xf32>
    %175 = vector.broadcast %166 : f32 to vector<32x128xf32>
    %176 = arith.addf %174, %175 : vector<32x128xf32>
    %177 = vector.broadcast %163 : f32 to vector<32x128xf32>
    %178 = arith.mulf %177, %3 : vector<32x128xf32>
    %179 = vector.broadcast %164 : f32 to vector<32x128xf32>
    %180 = arith.mulf %179, %5 : vector<32x128xf32>
    %181 = arith.addf %178, %180 : vector<32x128xf32>
    %182 = vector.broadcast %165 : f32 to vector<32x128xf32>
    %183 = arith.mulf %182, %7 : vector<32x128xf32>
    %184 = arith.addf %181, %183 : vector<32x128xf32>
    %185 = vector.broadcast %166 : f32 to vector<32x128xf32>
    %186 = arith.addf %184, %185 : vector<32x128xf32>
    %187 = arith.maximumf %176, %186 : vector<32x128xf32>
    %cst_82 = arith.constant 0.000000e+00 : f32
    %188 = vector.broadcast %cst_82 : f32 to vector<32x128xf32>
    %189 = arith.maximumf %187, %188 : vector<32x128xf32>
    %190 = arith.truncf %189 : vector<32x128xf32> to vector<32x128xbf16>
    %c0_83 = arith.constant 0 : index
    %c5_84 = arith.constant 5 : index
    %c0_85 = arith.constant 0 : index
    %c0_86 = arith.constant 0 : index
    %191 = vector.load %arg4[%c0_83, %c5_84, %c0_85, %c0_86] : memref<1x8x32x128xbf16, #tpu.memory_space<vmem>>, vector<1x1x32x128xbf16>
    %192 = vector.shape_cast %191 : vector<1x1x32x128xbf16> to vector<32x128xbf16>
    %193 = vector.shape_cast %190 : vector<32x128xbf16> to vector<1x1x32x128xbf16>
    tpu.vector_store %arg4[%c0_83, %c5_84, %c0_85, %c0_86], %193 {strides = array<i32>} : memref<1x8x32x128xbf16, #tpu.memory_space<vmem>>, vector<1x1x32x128xbf16>,
    %c6 = arith.constant 6 : index
    %c0_87 = arith.constant 0 : index
    %194 = memref.load %arg3[%c6, %c0_87] : memref<8x4xf32, #tpu.memory_space<smem>>
    %c6_88 = arith.constant 6 : index
    %c1_89 = arith.constant 1 : index
    %195 = memref.load %arg3[%c6_88, %c1_89] : memref<8x4xf32, #tpu.memory_space<smem>>
    %c6_90 = arith.constant 6 : index
    %c2_91 = arith.constant 2 : index
    %196 = memref.load %arg3[%c6_90, %c2_91] : memref<8x4xf32, #tpu.memory_space<smem>>
    %c6_92 = arith.constant 6 : index
    %c3_93 = arith.constant 3 : index
    %197 = memref.load %arg3[%c6_92, %c3_93] : memref<8x4xf32, #tpu.memory_space<smem>>
    %198 = vector.broadcast %194 : f32 to vector<32x128xf32>
    %199 = arith.mulf %198, %1 : vector<32x128xf32>
    %200 = vector.broadcast %195 : f32 to vector<32x128xf32>
    %201 = arith.mulf %200, %3 : vector<32x128xf32>
    %202 = arith.addf %199, %201 : vector<32x128xf32>
    %203 = vector.broadcast %196 : f32 to vector<32x128xf32>
    %204 = arith.mulf %203, %5 : vector<32x128xf32>
    %205 = arith.addf %202, %204 : vector<32x128xf32>
    %206 = vector.broadcast %197 : f32 to vector<32x128xf32>
    %207 = arith.addf %205, %206 : vector<32x128xf32>
    %208 = vector.broadcast %194 : f32 to vector<32x128xf32>
    %209 = arith.mulf %208, %3 : vector<32x128xf32>
    %210 = vector.broadcast %195 : f32 to vector<32x128xf32>
    %211 = arith.mulf %210, %5 : vector<32x128xf32>
    %212 = arith.addf %209, %211 : vector<32x128xf32>
    %213 = vector.broadcast %196 : f32 to vector<32x128xf32>
    %214 = arith.mulf %213, %7 : vector<32x128xf32>
    %215 = arith.addf %212, %214 : vector<32x128xf32>
    %216 = vector.broadcast %197 : f32 to vector<32x128xf32>
    %217 = arith.addf %215, %216 : vector<32x128xf32>
    %218 = arith.maximumf %207, %217 : vector<32x128xf32>
    %cst_94 = arith.constant 0.000000e+00 : f32
    %219 = vector.broadcast %cst_94 : f32 to vector<32x128xf32>
    %220 = arith.maximumf %218, %219 : vector<32x128xf32>
    %221 = arith.truncf %220 : vector<32x128xf32> to vector<32x128xbf16>
    %c0_95 = arith.constant 0 : index
    %c6_96 = arith.constant 6 : index
    %c0_97 = arith.constant 0 : index
    %c0_98 = arith.constant 0 : index
    %222 = vector.load %arg4[%c0_95, %c6_96, %c0_97, %c0_98] : memref<1x8x32x128xbf16, #tpu.memory_space<vmem>>, vector<1x1x32x128xbf16>
    %223 = vector.shape_cast %222 : vector<1x1x32x128xbf16> to vector<32x128xbf16>
    %224 = vector.shape_cast %221 : vector<32x128xbf16> to vector<1x1x32x128xbf16>
    tpu.vector_store %arg4[%c0_95, %c6_96, %c0_97, %c0_98], %224 {strides = array<i32>} : memref<1x8x32x128xbf16, #tpu.memory_space<vmem>>, vector<1x1x32x128xbf16>,
    %c7 = arith.constant 7 : index
    %c0_99 = arith.constant 0 : index
    %225 = memref.load %arg3[%c7, %c0_99] : memref<8x4xf32, #tpu.memory_space<smem>>
    %c7_100 = arith.constant 7 : index
    %c1_101 = arith.constant 1 : index
    %226 = memref.load %arg3[%c7_100, %c1_101] : memref<8x4xf32, #tpu.memory_space<smem>>
    %c7_102 = arith.constant 7 : index
    %c2_103 = arith.constant 2 : index
    %227 = memref.load %arg3[%c7_102, %c2_103] : memref<8x4xf32, #tpu.memory_space<smem>>
    %c7_104 = arith.constant 7 : index
    %c3_105 = arith.constant 3 : index
    %228 = memref.load %arg3[%c7_104, %c3_105] : memref<8x4xf32, #tpu.memory_space<smem>>
    %229 = vector.broadcast %225 : f32 to vector<32x128xf32>
    %230 = arith.mulf %229, %1 : vector<32x128xf32>
    %231 = vector.broadcast %226 : f32 to vector<32x128xf32>
    %232 = arith.mulf %231, %3 : vector<32x128xf32>
    %233 = arith.addf %230, %232 : vector<32x128xf32>
    %234 = vector.broadcast %227 : f32 to vector<32x128xf32>
    %235 = arith.mulf %234, %5 : vector<32x128xf32>
    %236 = arith.addf %233, %235 : vector<32x128xf32>
    %237 = vector.broadcast %228 : f32 to vector<32x128xf32>
    %238 = arith.addf %236, %237 : vector<32x128xf32>
    %239 = vector.broadcast %225 : f32 to vector<32x128xf32>
    %240 = arith.mulf %239, %3 : vector<32x128xf32>
    %241 = vector.broadcast %226 : f32 to vector<32x128xf32>
    %242 = arith.mulf %241, %5 : vector<32x128xf32>
    %243 = arith.addf %240, %242 : vector<32x128xf32>
    %244 = vector.broadcast %227 : f32 to vector<32x128xf32>
    %245 = arith.mulf %244, %7 : vector<32x128xf32>
    %246 = arith.addf %243, %245 : vector<32x128xf32>
    %247 = vector.broadcast %228 : f32 to vector<32x128xf32>
    %248 = arith.addf %246, %247 : vector<32x128xf32>
    %249 = arith.maximumf %238, %248 : vector<32x128xf32>
    %cst_106 = arith.constant 0.000000e+00 : f32
    %250 = vector.broadcast %cst_106 : f32 to vector<32x128xf32>
    %251 = arith.maximumf %249, %250 : vector<32x128xf32>
    %252 = arith.truncf %251 : vector<32x128xf32> to vector<32x128xbf16>
    %c0_107 = arith.constant 0 : index
    %c7_108 = arith.constant 7 : index
    %c0_109 = arith.constant 0 : index
    %c0_110 = arith.constant 0 : index
    %253 = vector.load %arg4[%c0_107, %c7_108, %c0_109, %c0_110] : memref<1x8x32x128xbf16, #tpu.memory_space<vmem>>, vector<1x1x32x128xbf16>
    %254 = vector.shape_cast %253 : vector<1x1x32x128xbf16> to vector<32x128xbf16>
    %255 = vector.shape_cast %252 : vector<32x128xbf16> to vector<1x1x32x128xbf16>
    tpu.vector_store %arg4[%c0_107, %c7_108, %c0_109, %c0_110], %255 {strides = array<i32>} : memref<1x8x32x128xbf16, #tpu.memory_space<vmem>>, vector<1x1x32x128xbf16>,
    return
  }
  func.func @transform_0(%arg0: i32, %arg1: i32) -> (i32, i32, i32, i32) {
    %c0_i32 = arith.constant 0 : i32
    %c0_i32_0 = arith.constant 0 : i32
    %c0_i32_1 = arith.constant 0 : i32
    return %c0_i32, %arg0, %arg1, %c0_i32_0 : i32, i32, i32, i32
  }
  func.func @transform_1(%arg0: i32, %arg1: i32) -> (i32, i32) {
    %c0_i32 = arith.constant 0 : i32
    %c0_i32_0 = arith.constant 0 : i32
    %c0_i32_1 = arith.constant 0 : i32
    return %c0_i32, %c0_i32_0 : i32, i32
  }
  func.func @transform_2(%arg0: i32, %arg1: i32) -> (i32, i32, i32, i32) {
    %c0_i32 = arith.constant 0 : i32
    %c0_i32_0 = arith.constant 0 : i32
    %c0_i32_1 = arith.constant 0 : i32
    return %arg0, %c0_i32, %arg1, %c0_i32_0 : i32, i32, i32, i32
  }
}

module attributes {stable_mosaic.version = 11 : i64} {
  func.func @fc_kernel(%arg0: i32, %arg1: i32, %arg2: memref<2x16384xbf16, #tpu.memory_space<vmem>>, %arg3: memref<16384x128xbf16, #tpu.memory_space<vmem>>, %arg4: memref<1x128xf32, #tpu.memory_space<vmem>>, %arg5: memref<128x2xf32, #tpu.memory_space<vmem>>, %arg6: memref<2x128xf32, #tpu.memory_space<vmem>>, %arg7: memref<1x2x2xf32, #tpu.memory_space<vmem>>) attributes {dimension_semantics = [#tpu.dimension_semantics<parallel>, #tpu.dimension_semantics<arbitrary>], iteration_bounds = array<i64: 2, 2>, scalar_prefetch = 0 : i64, scratch_operands = 0 : i64, tpu.core_type = #tpu.core_type<tc>, window_params = [{transform_indices = @transform_0, window_bounds = array<i64: 2, 16384>}, {transform_indices = @transform_1, window_bounds = array<i64: 16384, 128>}, {transform_indices = @transform_2, window_bounds = array<i64: 1, 128>}, {transform_indices = @transform_3, window_bounds = array<i64: 128, 2>}, {transform_indices = @transform_4, window_bounds = array<i64: 2, 128>}, {transform_indices = @transform_5, window_bounds = array<i64: 1, 2, 2>}]} {
    %c0_i32 = arith.constant 0 : i32
    %0 = arith.cmpi eq, %arg1, %c0_i32 : i32
    %1 = arith.extui %0 : i1 to i32
    %c0_i32_0 = arith.constant 0 : i32
    %2 = arith.cmpi ne, %1, %c0_i32_0 : i32
    scf.if %2 {
      %cst_9 = arith.constant 0.000000e+00 : f32
      %12 = vector.broadcast %cst_9 : f32 to vector<2x128xf32>
      %c0_10 = arith.constant 0 : index
      %c0_11 = arith.constant 0 : index
      %13 = vector.load %arg6[%c0_10, %c0_11] : memref<2x128xf32, #tpu.memory_space<vmem>>, vector<2x128xf32>
      tpu.vector_store %arg6[%c0_10, %c0_11], %12 {strides = array<i32>} : memref<2x128xf32, #tpu.memory_space<vmem>>, vector<2x128xf32>,
    } else {
    }
    %c0 = arith.constant 0 : index
    %c0_1 = arith.constant 0 : index
    %3 = vector.load %arg6[%c0, %c0_1] : memref<2x128xf32, #tpu.memory_space<vmem>>, vector<2x128xf32>
    %c0_2 = arith.constant 0 : index
    %c0_3 = arith.constant 0 : index
    %4 = vector.load %arg2[%c0_2, %c0_3] : memref<2x16384xbf16, #tpu.memory_space<vmem>>, vector<2x16384xbf16>
    %c0_4 = arith.constant 0 : index
    %c0_5 = arith.constant 0 : index
    %5 = vector.load %arg3[%c0_4, %c0_5] : memref<16384x128xbf16, #tpu.memory_space<vmem>>, vector<16384x128xbf16>
    %cst = arith.constant dense<0.000000e+00> : vector<2x128xf32>
    %6 = tpu.matmul %4, %5, %cst {dimension_numbers = #tpu.dot_dimension_numbers<[1], [0], [0], [1], [0, 0, 1, 1], [], []>} : vector<2x16384xbf16>, vector<16384x128xbf16>, vector<2x128xf32> -> vector<2x128xf32>
    %7 = arith.addf %3, %6 : vector<2x128xf32>
    %c0_6 = arith.constant 0 : index
    %c0_7 = arith.constant 0 : index
    %8 = vector.load %arg6[%c0_6, %c0_7] : memref<2x128xf32, #tpu.memory_space<vmem>>, vector<2x128xf32>
    tpu.vector_store %arg6[%c0_6, %c0_7], %7 {strides = array<i32>} : memref<2x128xf32, #tpu.memory_space<vmem>>, vector<2x128xf32>,
    %c1_i32 = arith.constant 1 : i32
    %9 = arith.cmpi eq, %arg1, %c1_i32 : i32
    %10 = arith.extui %9 : i1 to i32
    %c0_i32_8 = arith.constant 0 : i32
    %11 = arith.cmpi ne, %10, %c0_i32_8 : i32
    scf.if %11 {
      %c0_9 = arith.constant 0 : index
      %c0_10 = arith.constant 0 : index
      %12 = vector.load %arg6[%c0_9, %c0_10] : memref<2x128xf32, #tpu.memory_space<vmem>>, vector<2x128xf32>
      %c0_11 = arith.constant 0 : index
      %c0_12 = arith.constant 0 : index
      %13 = vector.load %arg4[%c0_11, %c0_12] : memref<1x128xf32, #tpu.memory_space<vmem>>, vector<1x128xf32>
      %14 = vector.broadcast %13 : vector<1x128xf32> to vector<2x128xf32>
      %15 = arith.addf %12, %14 : vector<2x128xf32>
      %cst_13 = arith.constant 0.000000e+00 : f32
      %16 = vector.broadcast %cst_13 : f32 to vector<2x128xf32>
      %17 = arith.maximumf %15, %16 : vector<2x128xf32>
      %c0_14 = arith.constant 0 : index
      %c0_15 = arith.constant 0 : index
      %18 = vector.load %arg6[%c0_14, %c0_15] : memref<2x128xf32, #tpu.memory_space<vmem>>, vector<2x128xf32>
      tpu.vector_store %arg6[%c0_14, %c0_15], %17 {strides = array<i32>} : memref<2x128xf32, #tpu.memory_space<vmem>>, vector<2x128xf32>,
      %c0_16 = arith.constant 0 : index
      %c0_17 = arith.constant 0 : index
      %19 = vector.load %arg5[%c0_16, %c0_17] : memref<128x2xf32, #tpu.memory_space<vmem>>, vector<128x2xf32>
      %cst_18 = arith.constant dense<0.000000e+00> : vector<2x2xf32>
      %20 = tpu.matmul %17, %19, %cst_18 {dimension_numbers = #tpu.dot_dimension_numbers<[1], [0], [0], [1], [0, 0, 1, 1], [], []>} : vector<2x128xf32>, vector<128x2xf32>, vector<2x2xf32> -> vector<2x2xf32>
      %c0_19 = arith.constant 0 : index
      %c0_20 = arith.constant 0 : index
      %c0_21 = arith.constant 0 : index
      %21 = vector.load %arg7[%c0_19, %c0_20, %c0_21] : memref<1x2x2xf32, #tpu.memory_space<vmem>>, vector<1x2x2xf32>
      %22 = vector.shape_cast %21 : vector<1x2x2xf32> to vector<2x2xf32>
      %23 = vector.shape_cast %20 : vector<2x2xf32> to vector<1x2x2xf32>
      tpu.vector_store %arg7[%c0_19, %c0_20, %c0_21], %23 {strides = array<i32>} : memref<1x2x2xf32, #tpu.memory_space<vmem>>, vector<1x2x2xf32>,
    } else {
    }
    return
  }
  func.func @transform_0(%arg0: i32, %arg1: i32) -> (i32, i32) {
    %c0_i32 = arith.constant 0 : i32
    %c0_i32_0 = arith.constant 0 : i32
    return %c0_i32, %arg1 : i32, i32
  }
  func.func @transform_1(%arg0: i32, %arg1: i32) -> (i32, i32) {
    %c0_i32 = arith.constant 0 : i32
    return %arg1, %arg0 : i32, i32
  }
  func.func @transform_2(%arg0: i32, %arg1: i32) -> (i32, i32) {
    %c0_i32 = arith.constant 0 : i32
    %c0_i32_0 = arith.constant 0 : i32
    return %c0_i32, %arg0 : i32, i32
  }
  func.func @transform_3(%arg0: i32, %arg1: i32) -> (i32, i32) {
    %c0_i32 = arith.constant 0 : i32
    %c0_i32_0 = arith.constant 0 : i32
    return %arg0, %c0_i32 : i32, i32
  }
  func.func @transform_4(%arg0: i32, %arg1: i32) -> (i32, i32) {
    %c0_i32 = arith.constant 0 : i32
    %c0_i32_0 = arith.constant 0 : i32
    return %c0_i32, %arg0 : i32, i32
  }
  func.func @transform_5(%arg0: i32, %arg1: i32) -> (i32, i32, i32) {
    %c0_i32 = arith.constant 0 : i32
    %c0_i32_0 = arith.constant 0 : i32
    %c0_i32_1 = arith.constant 0 : i32
    return %arg0, %c0_i32, %c0_i32_0 : i32, i32, i32
  }
}

</mosaic_0001>

<bundles_post_ra>
// kernel: cnn_classifier_forward.2
= control target key start
LH: loop header
LB: loop body
LE: loop exit
PB: predicated region body
PF: predicated region fallthrough
CT: control target
= control target key end

     0   :  { %7 = vsyncpa [#allocation4], 0  ;;  %s1454_s9 = smov 0   ;;  %s1456_s10 = smov 0   ;;  %s1965_s0 = inlined_call_operand.vmem [shape: f32[4,2,32,128], index: 0, kind: input, shape index: {}]   ;;  %s1966_s1 = inlined_call_operand.vmem [shape: f32[8,4], index: 1, kind: input, shape index: {}]   ;;  %s1967_s2 = inlined_call_operand.vmem [shape: bf16[2,8,32,128], index: 2, kind: output, shape index: {}]  }
   0x1   :  { %s1458_s11 = smov 0   ;;  %s1460_s12 = smov 0  }
   0x2   :  { %s1462_s13 = smov 0  }
   0x3 LB: > { %s1081_s14 = sadd.s32 4294967295, %s1436_s13   ;;  %s25_s15 = sadd.s32 1, %s1432_s12  ;;  %s1436_s13 = sphi %s1462_s13, %s13_s13   ;;  %s1432_s12 = sphi %s1460_s12, %s1974_s12   ;;  %s1428_s11 = sphi %s1458_s11, %s1973_s11   ;;  %s1424_s10 = sphi %s1456_s10, %s1972_s10   ;;  %s1420_s9 = sphi %s1454_s9, %s1971_s9  }
   0x4   : > { %p27_p0 = scmp.ge.s32.totalorder %s25_s15, 2  ;;  %s34_s16 = sadd.s32 1, %s1424_s10 }
   0x5   : > { %p41_p1 = scmp.ne.s32.totalorder %s1424_s10, %s1420_s9  ;;  %p42_p2 = scmp.eq.s32.totalorder %s1436_s13, 0 }
   0x6   : > { %s1976_s15 = smov (%p27_p0, %s25_s15), 0  ;;  %p1083_p4 = scmp.ge.s32.totalorder %s1436_s13, 1 }
   0x7   : > { %p1487_p3 = por %p42_p2, %p41_p1  ;;  %s29_s18 = ssub.s32 %s1432_s12, %s1976_s15 }
   0x8   : > { %p107_p5 = scmp.lt.s32.totalorder %s1436_s13, 3  ;;  %p32_p6 = scmp.eq.s32.totalorder %s29_s18, 0 }
   0x9   : > { %p1499_p8 = scmp.eq.s32.totalorder %s1081_s14, 0  ;;  %s120_s24 = sshll.u32 %s1966_s1, 4  ;;  %s121_s24 = int_to_ptr.vmem [resolvable:$true] %s120_s24 }
   0xa   : > { %p1495_p7 = pnand %p1083_p4, %p107_p5  ;;  %s1379_s25 = scalar_lea.vmem %s121_s24, 128 }
   0xb   : > { %s1504_s21 = scalar_select %p32_p6, %s1424_s10, %s34_s16  }
   0xc   : > { %p1332_p9 = pneg %p1495_p7  ;;  %p1380_p11 = scmp.ne.s32.totalorder %s121_s24, %s1379_s25 }
   0xd   : > { %p1387_p1 = scmp.lt.s32.totalorder %s121_s24, %s121_s24  ;;  %p1388_p2 = scmp.lt.s32.totalorder %s1379_s25, %s1379_s25 }
   0xe   : > { %p1333_p10 = pnand %p1499_p8, %p1332_p9 }
   0xf   : > { %p1389_p4 = por %p1388_p2, %p1387_p1 }
  0x10   : > { %p1381_p12 = pneg %p1333_p10 }
  0x12   : > { %p1382_p13 = pnand %p1381_p12, %p1380_p11 }
  0x14   : > { %p1383_p0 = pneg %p1382_p13 }
  0x16   : > { %p1390_p5 = pnand %p1389_p4, %p1383_p0 }
  0x18   : > { %1393 = shalt.err (!%p1390_p5)
}
  0x19   : > { %s1438_s26 = smov [#allocation3]   ;;  %p1085_p6 = scmp.ge.s32.totalorder %s1436_s13, 2 }
  0x1a   : > { %1335 = dma.vmem_to_smem (!%p1333_p10), %s121_s24, 128, %s1438_s26, [#allocation4]  }
  0x1b   : > { %127 = sbr.rel (%p1085_p6) target bundleno = 46 (0x2e), region = 20 }
  0x22   : > { %130 = sbr.rel (!%p1487_p3) target bundleno = 46 (0x2e), region = 24  ;;  %s132_s27 = sand.u32 (%p1487_p3), 1, %s1424_s10  }
  0x23   : > { %s1199_s28 = sshll.u32 (%p1487_p3), %s1432_s12, 5  ;;  %s1086_s29 = sshll.u32 (%p1487_p3), %s132_s27, 7 }
  0x24   : > { %s1521_s4 = scalar_lea.vmem (%p1487_p3), %s1965_s0, %s1199_s28  ;;  %s134_s5 = scalar_lea.vmem (%p1487_p3), [#allocation2], %s1086_s29 }
  0x25   : > { %v197_v0 = vld [vmem:[%s1521_s4] sm:$0xff] (%p1487_p3)  ;;  %v199_v1 = vld [vmem:[%s1521_s4 + $0x8] sm:$0xff] (%p1487_p3)  ;;  %v201_v2 = vld [vmem:[%s1521_s4 + $0x10] sm:$0xff] (%p1487_p3) }
  0x26   : > { %198 = vst [vmem:[%s134_s5] sm:$0xff] (%p1487_p3), %v197_v0  ;;  %200 = vst [vmem:[%s134_s5 + $0x8] sm:$0xff] (%p1487_p3), %v199_v1  ;;  %v203_v3 = vld [vmem:[%s1521_s4 + $0x18] sm:$0xff] (%p1487_p3)  ;;  %v205_v4 = vld [vmem:[%s1521_s4 + $0x40] sm:$0xff] (%p1487_p3) }
  0x27   : > { %202 = vst [vmem:[%s134_s5 + $0x10] sm:$0xff] (%p1487_p3), %v201_v2  ;;  %v207_v5 = vld [vmem:[%s1521_s4 + $0x48] sm:$0xff] (%p1487_p3)  ;;  %204 = vst [vmem:[%s134_s5 + $0x18] sm:$0xff] (%p1487_p3), %v203_v3  ;;  %v209_v6 = vld [vmem:[%s1521_s4 + $0x50] sm:$0xff] (%p1487_p3) }
  0x28   : > { %206 = vst [vmem:[%s134_s5 + $0x20] sm:$0xff] (%p1487_p3), %v205_v4  ;;  %208 = vst [vmem:[%s134_s5 + $0x28] sm:$0xff] (%p1487_p3), %v207_v5  ;;  %v211_v7 = vld [vmem:[%s1521_s4 + $0x58] sm:$0xff] (%p1487_p3)  ;;  %v213_v8 = vld [vmem:[%s1521_s4 + $0x80] sm:$0xff] (%p1487_p3) }
  0x29   : > { %210 = vst [vmem:[%s134_s5 + $0x30] sm:$0xff] %v209_v6  ;;  %212 = vst [vmem:[%s134_s5 + $0x38] sm:$0xff] %v211_v7  ;;  %v215_v9 = vld [vmem:[%s1521_s4 + $0x88] sm:$0xff]  ;;  %v217_v10 = vld [vmem:[%s1521_s4 + $0x90] sm:$0xff] }
  0x2a   : > { %214 = vst [vmem:[%s134_s5 + $0x40] sm:$0xff] %v213_v8  ;;  %v219_v11 = vld [vmem:[%s1521_s4 + $0x98] sm:$0xff]  ;;  %216 = vst [vmem:[%s134_s5 + $0x48] sm:$0xff] %v215_v9  ;;  %v221_v12 = vld [vmem:[%s1521_s4 + $0xc0] sm:$0xff] }
  0x2b   : > { %218 = vst [vmem:[%s134_s5 + $0x50] sm:$0xff] %v217_v10  ;;  %220 = vst [vmem:[%s134_s5 + $0x58] sm:$0xff] %v219_v11  ;;  %v223_v13 = vld [vmem:[%s1521_s4 + $0xc8] sm:$0xff]  ;;  %v225_v14 = vld [vmem:[%s1521_s4 + $0xd0] sm:$0xff] }
  0x2c   : > { %222 = vst [vmem:[%s134_s5 + $0x60] sm:$0xff] %v221_v12  ;;  %224 = vst [vmem:[%s134_s5 + $0x68] sm:$0xff] %v223_v13  ;;  %v227_v15 = vld [vmem:[%s1521_s4 + $0xd8] sm:$0xff] }
  0x2d   : > { %226 = vst [vmem:[%s134_s5 + $0x70] sm:$0xff] %v225_v14  ;;  %228 = vst [vmem:[%s134_s5 + $0x78] sm:$0xff] %v227_v15 }
  0x2e PF: > { %237 = sbr.rel (%p1495_p7) target bundleno = 195 (0xc3), region = 62  ;;  %s240_s6 = sand.u32 (!%p1495_p7), 1, %s1420_s9  }
  0x2f   : > { %s1090_s7 = sshll.u32 (!%p1495_p7), %s240_s6, 7 }
  0x30   : > { %s1542_s8 = scalar_lea.vmem (!%p1495_p7), [#allocation2], %s1090_s7 }
  0x35   : > { %1415 = dma.done.wait (%p1499_p8), [#allocation4], 128  }
  0x36   : > { %1417 = vsyncadd (%p1499_p8), [#allocation4], 4294967168 }
  0x37   : > { %250 = sfence }
  0x38   : > { %s300_s14 = sld [smem:[#allocation3]]  ;;  %s1106_s16 = sld [smem:[#allocation3 + $0x1]]  ;;  %v1549_v16 = vld [vmem:[%s1542_s8] sm:$0xff]  ;;  %v1552_v17 = vld [vmem:[%s1542_s8 + $0x8] sm:$0xff]  ;;  %v1568_v23 = vld [vmem:[%s1542_s8 + $0x10] sm:$0xff] }
  0x39   : > { %s1107_s9 = sld [smem:[#allocation3 + $0x2]]  ;;  %s1108_s17 = sld [smem:[#allocation3 + $0x3]]  ;;  %v1555_v18 = vld [vmem:[%s1542_s8 + $0x20] sm:$0xff]  ;;  %v1558_v19 = vld [vmem:[%s1542_s8 + $0x28] sm:$0xff]  ;;  %v1587_v37 = vld [vmem:[%s1542_s8 + $0x18] sm:$0xff] }
  0x3a   : > { %v1561_v20 = vld [vmem:[%s1542_s8 + $0x40] sm:$0xff]  ;;  %p272_p3 = scmp.lt.s32.totalorder %s1428_s11, 1  ;;  %v1565_v21 = vld [vmem:[%s1542_s8 + $0x48] sm:$0xff]  ;;  %v1590_v38 = vld [vmem:[%s1542_s8 + $0x30] sm:$0xff]  ;;  %s1605_s18 = sld [smem:[#allocation3 + $0x80]] }
  0x3b   : > { %v1574_v28 = vld [vmem:[%s1542_s8 + $0x60] sm:$0xff]  ;;  %v1577_v29 = vld [vmem:[%s1542_s8 + $0x68] sm:$0xff]  ;;  %v1601_v44 = vld [vmem:[%s1542_s8 + $0x38] sm:$0xff]  ;;  %s1612_s19 = sld [smem:[#allocation3 + $0x81]]  ;;  %s1619_s20 = sld [smem:[#allocation3 + $0x82]] }
  0x3c   : > { %s1978_s11 = smov (!%p272_p3, %s1428_s11), 1  ;;  %v1608_v51 = vld [vmem:[%s1542_s8 + $0x50] sm:$0xff]  ;;  %v1615_v56 = vld [vmem:[%s1542_s8 + $0x58] sm:$0xff]  ;;  %s1621_s22 = sld [smem:[#allocation3 + $0x83]] }
  0x3d   : > { %v1626_v61 = vld [vmem:[%s1542_s8 + $0x70] sm:$0xff]  ;;  %v1632_v2 = vld [vmem:[%s1542_s8 + $0x78] sm:$0xff]  ;;  %s1200_s23 = sshll.u32 %s1978_s11, 7  ;;  %s1669_s26 = sld [smem:[#allocation3 + $0x100]] }
  0x3e   : > { %v304_v22 = vstv %s300_s14  ;;  %v309_v26 = vstv %s1106_s16  ;;  %s1647_s25 = scalar_lea.vmem %s1967_s2, %s1200_s23  ;;  %s1671_s27 = sld [smem:[#allocation3 + $0x101]] }
  0x3f   : > { %v305_v24 = vmul.f32 %v304_v22, %v1549_v16  ;;  %v306_v25 = vmul.f32 %v304_v22, %v1552_v17  ;;  %v332_v27 = vmul.f32 %v1555_v18, %v304_v22  ;;  %v310_v30 = vmul.f32 %v1555_v18, %v309_v26  ;;  %s1680_s28 = sld [smem:[#allocation3 + $0x102]]  ;;  %s1689_s29 = sld [smem:[#allocation3 + $0x103]] }
  0x40   : > { %v311_v31 = vmul.f32 %v1558_v19, %v309_v26  ;;  %v333_v32 = vmul.f32 %v1558_v19, %v304_v22  ;;  %v336_v33 = vmul.f32 %v1561_v20, %v309_v26  ;;  %v318_v34 = vstv %s1107_s9  ;;  %s1714_s30 = sld [smem:[#allocation3 + $0x180]]  ;;  %s1719_s3 = sld [smem:[#allocation3 + $0x181]] }
  0x41   : > { %v1583_v35 = vstv %s1108_s17  ;;  %v337_v36 = vmul.f32 %v1565_v21, %v309_v26  ;;  %v307_v39 = vmul.f32 %v304_v22, %v1568_v23  ;;  %v314_v40 = vadd.f32 %v310_v30, %v305_v24  ;;  %s1723_s4 = sld [smem:[#allocation3 + $0x182]]  ;;  %s1725_s5 = sld [smem:[#allocation3 + $0x183]] }
  0x42   : > { %v315_v41 = vadd.f32 %v311_v31, %v306_v25  ;;  %v319_v42 = vmul.f32 %v1561_v20, %v318_v34  ;;  %v320_v43 = vmul.f32 %v1565_v21, %v318_v34  ;;  %v340_v45 = vadd.f32 %v336_v33, %v332_v27  ;;  %s1755_s6 = sld [smem:[#allocation3 + $0x200]]  ;;  %s1761_s7 = sld [smem:[#allocation3 + $0x201]] }
  0x43   : > { %v341_v46 = vadd.f32 %v337_v36, %v333_v32  ;;  %v344_v47 = vmul.f32 %v1574_v28, %v318_v34  ;;  %v345_v48 = vmul.f32 %v1577_v29, %v318_v34  ;;  %v308_v52 = vmul.f32 %v304_v22, %v1587_v37  ;;  %s1763_s8 = sld [smem:[#allocation3 + $0x202]]  ;;  %s1772_s14 = sld [smem:[#allocation3 + $0x203]] }
  0x44   : > { %v323_v49 = vadd.f32 %v319_v42, %v314_v40  ;;  %v324_v50 = vadd.f32 %v320_v43, %v315_v41  ;;  %v312_v53 = vmul.f32 %v1590_v38, %v309_v26  ;;  %v313_v57 = vmul.f32 %v1601_v44, %v309_v26  ;;  %s1802_s16 = sld [smem:[#allocation3 + $0x280]]  ;;  %s1809_s9 = sld [smem:[#allocation3 + $0x281]] }
  0x45   : > { %v348_v54 = vadd.f32 %v344_v47, %v340_v45  ;;  %v349_v55 = vadd.f32 %v345_v48, %v341_v46  ;;  %v321_v58 = vmul.f32 %v1608_v51, %v318_v34  ;;  %v322_v63 = vmul.f32 %v1615_v56, %v318_v34  ;;  %s1812_s17 = sld [smem:[#allocation3 + $0x282]]  ;;  %s1871_s23 = sld [smem:[#allocation3 + $0x303]] }
  0x46   : > { %v328_v59 = vadd.f32 %v1583_v35, %v323_v49  ;;  %v329_v60 = vadd.f32 %v1583_v35, %v324_v50  ;;  %v316_v62 = vadd.f32 %v312_v53, %v307_v39  ;;  %v317_v3 = vadd.f32 %v313_v57, %v308_v52  ;;  %s1896_s11 = sld [smem:[#allocation3 + $0x380]]  ;;  %s1901_s24 = sld [smem:[#allocation3 + $0x381]] }
  0x47   : > { %v352_v0 = vadd.f32 %v348_v54, %v1583_v35  ;;  %v353_v1 = vadd.f32 %v349_v55, %v1583_v35  ;;  %v334_v4 = vmul.f32 %v1590_v38, %v304_v22  ;;  %v335_v6 = vmul.f32 %v1601_v44, %v304_v22 }
  0x48   : > { %v325_v5 = vadd.f32 %v321_v58, %v316_v62  ;;  %v338_v7 = vmul.f32 %v1608_v51, %v309_v26  ;;  %v339_v8 = vmul.f32 %v1615_v56, %v309_v26  ;;  %v326_v11 = vadd.f32 %v322_v63, %v317_v3 }
  0x49   : > { %v356_v9 = vmax.f32 %v328_v59, %v352_v0  ;;  %v357_v10 = vmax.f32 %v329_v60, %v353_v1  ;;  %v346_v12 = vmul.f32 %v1626_v61, %v318_v34  ;;  %v347_v24 = vmul.f32 %v1632_v2, %v318_v34 }
  0x4a   : > { %v330_v13 = vadd.f32 %v1583_v35, %v325_v5  ;;  %v342_v14 = vadd.f32 %v338_v7, %v334_v4  ;;  %v343_v15 = vadd.f32 %v339_v8, %v335_v6  ;;  %v331_v27 = vadd.f32 %v1583_v35, %v326_v11 }
  0x4b   : > { %v360_v22 = vmax.f32 %v356_v9, 0.0  ;;  %v361_v25 = vmax.f32 %v357_v10, 0.0  ;;  %v388_v26 = vstv %s1605_s18  ;;  %v393_v39 = vstv %s1612_s19  ;;  %s1814_s18 = sld [smem:[#allocation3 + $0x283]]  ;;  %s1851_s19 = sld [smem:[#allocation3 + $0x300]] }
  0x4c   : > { %v350_v30 = vadd.f32 %v346_v12, %v342_v14  ;;  %v351_v31 = vadd.f32 %v347_v24, %v343_v15  ;;  %v389_v32 = vmul.f32 %v388_v26, %v1549_v16  ;;  %v390_v33 = vmul.f32 %v388_v26, %v1552_v17 }
  0x4d   : > { %v1236_v36 = vpack.c.bf16 %v361_v25, %v360_v22  ;;  %v402_v34 = vstv %s1619_s20  ;;  %v1654_v40 = vstv %s1621_s22  ;;  %v394_v43 = vmul.f32 %v1555_v18, %v393_v39  ;;  %s1853_s20 = sld [smem:[#allocation3 + $0x301]]  ;;  %s1862_s22 = sld [smem:[#allocation3 + $0x302]] }
  0x4e   : > { %v354_v41 = vadd.f32 %v350_v30, %v1583_v35  ;;  %v355_v42 = vadd.f32 %v351_v31, %v1583_v35  ;;  %v395_v45 = vmul.f32 %v1558_v19, %v393_v39  ;;  %v403_v46 = vmul.f32 %v1561_v20, %v402_v34 }
  0x4f   : > { %1237 = vst [vmem:[%s1647_s25] sm:$0xff] %v1236_v36   ;;  %v404_v47 = vmul.f32 %v1565_v21, %v402_v34  ;;  %v416_v48 = vmul.f32 %v1555_v18, %v388_v26  ;;  %v417_v49 = vmul.f32 %v1558_v19, %v388_v26  ;;  %v398_v53 = vadd.f32 %v394_v43, %v389_v32 }
  0x50   : > { %v358_v50 = vmax.f32 %v330_v13, %v354_v41  ;;  %v359_v52 = vmax.f32 %v331_v27, %v355_v42  ;;  %v399_v54 = vadd.f32 %v395_v45, %v390_v33  ;;  %v420_v55 = vmul.f32 %v1561_v20, %v393_v39 }
  0x51   : > { %v421_v35 = vmul.f32 %v1565_v21, %v393_v39  ;;  %v428_v57 = vmul.f32 %v1574_v28, %v402_v34  ;;  %v429_v58 = vmul.f32 %v1577_v29, %v402_v34  ;;  %v407_v62 = vadd.f32 %v403_v46, %v398_v53 }
  0x52   : > { %v362_v59 = vmax.f32 %v358_v50, 0.0  ;;  %v363_v60 = vmax.f32 %v359_v52, 0.0  ;;  %v408_v63 = vadd.f32 %v404_v47, %v399_v54  ;;  %v424_v0 = vadd.f32 %v420_v55, %v416_v48 }
  0x53   : > { %v425_v1 = vadd.f32 %v421_v35, %v417_v49  ;;  %v391_v3 = vmul.f32 %v388_v26, %v1568_v23  ;;  %v392_v4 = vmul.f32 %v388_v26, %v1587_v37  ;;  %v412_v6 = vadd.f32 %v1654_v40, %v407_v62 }
  0x54   : > { %v1241_v5 = vpack.c.bf16 %v363_v60, %v362_v59  ;;  %v413_v7 = vadd.f32 %v1654_v40, %v408_v63  ;;  %v396_v8 = vmul.f32 %v1590_v38, %v393_v39  ;;  %v432_v9 = vadd.f32 %v428_v57, %v424_v0 }
  0x55   : > { %v433_v10 = vadd.f32 %v429_v58, %v425_v1  ;;  %v397_v11 = vmul.f32 %v1601_v44, %v393_v39  ;;  %v405_v12 = vmul.f32 %v1608_v51, %v402_v34  ;;  %v406_v14 = vmul.f32 %v1615_v56, %v402_v34 }
  0x56   : > { %1313 = vst [vmem:[%s1647_s25 + $0x8] sm:$0xff] %v1241_v5   ;;  %v400_v13 = vadd.f32 %v396_v8, %v391_v3  ;;  %v418_v15 = vmul.f32 %v1590_v38, %v388_v26  ;;  %v419_v24 = vmul.f32 %v1601_v44, %v388_v26  ;;  %v436_v22 = vadd.f32 %v432_v9, %v1654_v40 }
  0x57   : > { %v437_v25 = vadd.f32 %v433_v10, %v1654_v40  ;;  %v401_v27 = vadd.f32 %v397_v11, %v392_v4  ;;  %v422_v30 = vmul.f32 %v1608_v51, %v393_v39  ;;  %v423_v32 = vmul.f32 %v1615_v56, %v393_v39 }
  0x58   : > { %v409_v31 = vadd.f32 %v405_v12, %v400_v13  ;;  %v430_v33 = vmul.f32 %v1626_v61, %v402_v34  ;;  %v431_v36 = vmul.f32 %v1632_v2, %v402_v34  ;;  %v440_v41 = vmax.f32 %v412_v6, %v436_v22 }
  0x59   : > { %v441_v26 = vmax.f32 %v413_v7, %v437_v25  ;;  %v410_v42 = vadd.f32 %v406_v14, %v401_v27  ;;  %v426_v43 = vadd.f32 %v422_v30, %v418_v15  ;;  %v427_v46 = vadd.f32 %v423_v32, %v419_v24 }
  0x5a   : > { %v414_v45 = vadd.f32 %v1654_v40, %v409_v31  ;;  %v473_v47 = vstv %s1669_s26  ;;  %v478_v48 = vstv %s1671_s27  ;;  %v444_v49 = vmax.f32 %v440_v41, 0.0  ;;  %s1905_s26 = sld [smem:[#allocation3 + $0x382]]  ;;  %s1907_s27 = sld [smem:[#allocation3 + $0x383]] }
  0x5b   : > { %v445_v50 = vmax.f32 %v441_v26, 0.0  ;;  %v415_v52 = vadd.f32 %v1654_v40, %v410_v42  ;;  %v434_v39 = vadd.f32 %v430_v33, %v426_v43  ;;  %v435_v53 = vadd.f32 %v431_v36, %v427_v46 }
  0x5c   : > { %v474_v34 = vmul.f32 %v473_v47, %v1549_v16  ;;  %v475_v54 = vmul.f32 %v473_v47, %v1552_v17  ;;  %v479_v55 = vmul.f32 %v1555_v18, %v478_v48  ;;  %v480_v58 = vmul.f32 %v1558_v19, %v478_v48 }
  0x5d   : > { %v1246_v35 = vpack.c.bf16 %v445_v50, %v444_v49  ;;  %v438_v57 = vadd.f32 %v434_v39, %v1654_v40  ;;  %v487_v59 = vstv %s1680_s28  ;;  %v439_v60 = vadd.f32 %v435_v53, %v1654_v40 }
  0x5e   : > { %v483_v62 = vadd.f32 %v479_v55, %v474_v34  ;;  %v488_v63 = vmul.f32 %v1561_v20, %v487_v59  ;;  %v489_v0 = vmul.f32 %v1565_v21, %v487_v59  ;;  %v484_v3 = vadd.f32 %v480_v58, %v475_v54 }
  0x5f   : > { %1314 = vst [vmem:[%s1647_s25 + $0x10] sm:$0xff] %v1246_v35   ;;  %v442_v1 = vmax.f32 %v414_v45, %v438_v57  ;;  %v496_v4 = vstv %s1689_s29  ;;  %v501_v5 = vmul.f32 %v1555_v18, %v473_v47  ;;  %v443_v6 = vmax.f32 %v415_v52, %v439_v60 }
  0x60   : > { %v492_v7 = vadd.f32 %v488_v63, %v483_v62  ;;  %v502_v8 = vmul.f32 %v1558_v19, %v473_v47  ;;  %v505_v9 = vmul.f32 %v1561_v20, %v478_v48  ;;  %v493_v11 = vadd.f32 %v489_v0, %v484_v3 }
  0x61   : > { %v446_v10 = vmax.f32 %v442_v1, 0.0  ;;  %v506_v40 = vmul.f32 %v1565_v21, %v478_v48  ;;  %v513_v12 = vmul.f32 %v1574_v28, %v487_v59  ;;  %v447_v13 = vmax.f32 %v443_v6, 0.0 }
  0x62   : > { %v497_v14 = vadd.f32 %v496_v4, %v492_v7  ;;  %v509_v15 = vadd.f32 %v505_v9, %v501_v5  ;;  %v514_v24 = vmul.f32 %v1577_v29, %v487_v59  ;;  %v498_v22 = vadd.f32 %v496_v4, %v493_v11 }
  0x63   : > { %v510_v25 = vadd.f32 %v506_v40, %v502_v8  ;;  %v476_v27 = vmul.f32 %v473_v47, %v1568_v23  ;;  %v477_v30 = vmul.f32 %v473_v47, %v1587_v37  ;;  %v1251_v31 = vpack.c.bf16 %v447_v13, %v446_v10 }
  0x64   : > { %v517_v32 = vadd.f32 %v513_v12, %v509_v15  ;;  %v481_v33 = vmul.f32 %v1590_v38, %v478_v48  ;;  %v482_v36 = vmul.f32 %v1601_v44, %v478_v48  ;;  %v490_v26 = vmul.f32 %v1608_v51, %v487_v59 }
  0x65   : > { %v518_v41 = vadd.f32 %v514_v24, %v510_v25  ;;  %v491_v42 = vmul.f32 %v1615_v56, %v487_v59  ;;  %v503_v43 = vmul.f32 %v1590_v38, %v473_v47  ;;  %1315 = vst [vmem:[%s1647_s25 + $0x18] sm:$0xff] %v1251_v31   ;;  %v504_v50 = vmul.f32 %v1601_v44, %v473_v47 }
  0x66   : > { %v521_v45 = vadd.f32 %v517_v32, %v496_v4  ;;  %v485_v46 = vadd.f32 %v481_v33, %v476_v27  ;;  %v486_v49 = vadd.f32 %v482_v36, %v477_v30  ;;  %v507_v39 = vmul.f32 %v1608_v51, %v478_v48 }
  0x67   : > { %v522_v52 = vadd.f32 %v518_v41, %v496_v4  ;;  %v508_v53 = vmul.f32 %v1615_v56, %v478_v48  ;;  %v515_v34 = vmul.f32 %v1626_v61, %v487_v59  ;;  %v516_v57 = vmul.f32 %v1632_v2, %v487_v59 }
  0x68   : > { %v525_v54 = vmax.f32 %v497_v14, %v521_v45  ;;  %v494_v55 = vadd.f32 %v490_v26, %v485_v46  ;;  %v495_v35 = vadd.f32 %v491_v42, %v486_v49  ;;  %v511_v60 = vadd.f32 %v507_v39, %v503_v43 }
  0x69   : > { %v526_v58 = vmax.f32 %v498_v22, %v522_v52  ;;  %v512_v62 = vadd.f32 %v508_v53, %v504_v50  ;;  %v558_v63 = vstv %s1714_s30  ;;  %v563_v8 = vstv %s1719_s3 }
  0x6a   : > { %v529_v47 = vmax.f32 %v525_v54, 0.0  ;;  %v499_v0 = vadd.f32 %v496_v4, %v494_v55  ;;  %v500_v1 = vadd.f32 %v496_v4, %v495_v35  ;;  %v559_v3 = vmul.f32 %v558_v63, %v1549_v16 }
  0x6b   : > { %v530_v48 = vmax.f32 %v526_v58, 0.0  ;;  %v519_v5 = vadd.f32 %v515_v34, %v511_v60  ;;  %v520_v6 = vadd.f32 %v516_v57, %v512_v62  ;;  %v560_v7 = vmul.f32 %v558_v63, %v1552_v17 }
  0x6c   : > { %v572_v9 = vstv %s1723_s4  ;;  %v1742_v10 = vstv %s1725_s5  ;;  %v586_v59 = vmul.f32 %v1555_v18, %v558_v63  ;;  %v564_v13 = vmul.f32 %v1555_v18, %v563_v8 }
  0x6d   : > { %v1256_v11 = vpack.c.bf16 %v530_v48, %v529_v47  ;;  %v523_v40 = vadd.f32 %v519_v5, %v496_v4  ;;  %v524_v12 = vadd.f32 %v520_v6, %v496_v4  ;;  %v565_v14 = vmul.f32 %v1558_v19, %v563_v8 }
  0x6e   : > { %v573_v15 = vmul.f32 %v1561_v20, %v572_v9  ;;  %v574_v24 = vmul.f32 %v1565_v21, %v572_v9  ;;  %v587_v22 = vmul.f32 %v1558_v19, %v558_v63  ;;  %v568_v30 = vadd.f32 %v564_v13, %v559_v3 }
  0x6f   : > { %1316 = vst [vmem:[%s1647_s25 + $0x20] sm:$0xff] %v1256_v11   ;;  %v527_v25 = vmax.f32 %v499_v0, %v523_v40  ;;  %v528_v27 = vmax.f32 %v500_v1, %v524_v12  ;;  %v590_v31 = vmul.f32 %v1561_v20, %v563_v8  ;;  %v569_v32 = vadd.f32 %v565_v14, %v560_v7 }
  0x70   : > { %v591_v33 = vmul.f32 %v1565_v21, %v563_v8  ;;  %v598_v4 = vmul.f32 %v1574_v28, %v572_v9  ;;  %v599_v36 = vmul.f32 %v1577_v29, %v572_v9  ;;  %v577_v42 = vadd.f32 %v573_v15, %v568_v30 }
  0x71   : > { %v531_v41 = vmax.f32 %v527_v25, 0.0  ;;  %v532_v26 = vmax.f32 %v528_v27, 0.0  ;;  %v594_v43 = vadd.f32 %v590_v31, %v586_v59  ;;  %v578_v45 = vadd.f32 %v574_v24, %v569_v32 }
  0x72   : > { %v595_v46 = vadd.f32 %v591_v33, %v587_v22  ;;  %v561_v49 = vmul.f32 %v558_v63, %v1568_v23  ;;  %v562_v50 = vmul.f32 %v558_v63, %v1587_v37  ;;  %v582_v39 = vadd.f32 %v1742_v10, %v577_v42 }
  0x73   : > { %v1261_v52 = vpack.c.bf16 %v532_v26, %v531_v41  ;;  %v602_v53 = vadd.f32 %v598_v4, %v594_v43  ;;  %v566_v34 = vmul.f32 %v1590_v38, %v563_v8  ;;  %v583_v54 = vadd.f32 %v1742_v10, %v578_v45 }
  0x74   : > { %v603_v55 = vadd.f32 %v599_v36, %v595_v46  ;;  %v567_v35 = vmul.f32 %v1601_v44, %v563_v8  ;;  %v575_v57 = vmul.f32 %v1608_v51, %v572_v9  ;;  %v576_v62 = vmul.f32 %v1615_v56, %v572_v9 }
  0x75   : > { %1317 = vst [vmem:[%s1647_s25 + $0x28] sm:$0xff] %v1261_v52   ;;  %v606_v58 = vadd.f32 %v602_v53, %v1742_v10  ;;  %v570_v60 = vadd.f32 %v566_v34, %v561_v49  ;;  %v588_v47 = vmul.f32 %v1590_v38, %v558_v63  ;;  %v589_v3 = vmul.f32 %v1601_v44, %v558_v63 }
  0x76   : > { %v607_v0 = vadd.f32 %v603_v55, %v1742_v10  ;;  %v571_v1 = vadd.f32 %v567_v35, %v562_v50  ;;  %v592_v48 = vmul.f32 %v1608_v51, %v563_v8  ;;  %v593_v7 = vmul.f32 %v1615_v56, %v563_v8 }
  0x77   : > { %v610_v5 = vmax.f32 %v582_v39, %v606_v58  ;;  %v579_v6 = vadd.f32 %v575_v57, %v570_v60  ;;  %v600_v59 = vmul.f32 %v1626_v61, %v572_v9  ;;  %v601_v13 = vmul.f32 %v1632_v2, %v572_v9 }
  0x78   : > { %v611_v11 = vmax.f32 %v583_v54, %v607_v0  ;;  %v580_v40 = vadd.f32 %v576_v62, %v571_v1  ;;  %v596_v12 = vadd.f32 %v592_v48, %v588_v47  ;;  %v597_v24 = vadd.f32 %v593_v7, %v589_v3 }
  0x79   : > { %v614_v14 = vmax.f32 %v610_v5, 0.0  ;;  %v584_v15 = vadd.f32 %v1742_v10, %v579_v6  ;;  %v643_v63 = vstv %s1755_s6  ;;  %v648_v32 = vstv %s1761_s7 }
  0x7a   : > { %v615_v22 = vmax.f32 %v611_v11, 0.0  ;;  %v585_v25 = vadd.f32 %v1742_v10, %v580_v40  ;;  %v604_v8 = vadd.f32 %v600_v59, %v596_v12  ;;  %v644_v27 = vmul.f32 %v643_v63, %v1549_v16 }
  0x7b   : > { %v605_v30 = vadd.f32 %v601_v13, %v597_v24  ;;  %v645_v31 = vmul.f32 %v643_v63, %v1552_v17  ;;  %v657_v33 = vstv %s1763_s8  ;;  %v649_v36 = vmul.f32 %v1555_v18, %v648_v32 }
  0x7c   : > { %v1266_v4 = vpack.c.bf16 %v615_v22, %v614_v14  ;;  %v608_v9 = vadd.f32 %v604_v8, %v1742_v10  ;;  %v650_v41 = vmul.f32 %v1558_v19, %v648_v32  ;;  %v658_v42 = vmul.f32 %v1561_v20, %v657_v33 }
  0x7d   : > { %v609_v26 = vadd.f32 %v605_v30, %v1742_v10  ;;  %v659_v43 = vmul.f32 %v1565_v21, %v657_v33  ;;  %v1794_v45 = vstv %s1772_s14  ;;  %v653_v49 = vadd.f32 %v649_v36, %v644_v27 }
  0x7e   : > { %1318 = vst [vmem:[%s1647_s25 + $0x30] sm:$0xff] %v1266_v4   ;;  %v612_v46 = vmax.f32 %v584_v15, %v608_v9  ;;  %v654_v50 = vadd.f32 %v650_v41, %v645_v31  ;;  %v671_v52 = vmul.f32 %v1555_v18, %v643_v63  ;;  %v672_v53 = vmul.f32 %v1558_v19, %v643_v63 }
  0x7f   : > { %v613_v39 = vmax.f32 %v585_v25, %v609_v26  ;;  %v675_v34 = vmul.f32 %v1561_v20, %v648_v32  ;;  %v676_v54 = vmul.f32 %v1565_v21, %v648_v32  ;;  %v662_v55 = vadd.f32 %v658_v42, %v653_v49 }
  0x80   : > { %v616_v10 = vmax.f32 %v612_v46, 0.0  ;;  %v663_v35 = vadd.f32 %v659_v43, %v654_v50  ;;  %v683_v57 = vmul.f32 %v1574_v28, %v657_v33  ;;  %v684_v47 = vmul.f32 %v1577_v29, %v657_v33 }
  0x81   : > { %v617_v58 = vmax.f32 %v613_v39, 0.0  ;;  %v679_v60 = vadd.f32 %v675_v34, %v671_v52  ;;  %v680_v62 = vadd.f32 %v676_v54, %v672_v53  ;;  %v667_v0 = vadd.f32 %v1794_v45, %v662_v55 }
  0x82   : > { %v668_v1 = vadd.f32 %v1794_v45, %v663_v35  ;;  %v646_v3 = vmul.f32 %v643_v63, %v1568_v23  ;;  %v647_v48 = vmul.f32 %v643_v63, %v1587_v37  ;;  %v651_v59 = vmul.f32 %v1590_v38, %v648_v32 }
  0x83   : > { %v1271_v5 = vpack.c.bf16 %v617_v58, %v616_v10  ;;  %v687_v6 = vadd.f32 %v683_v57, %v679_v60  ;;  %v688_v7 = vadd.f32 %v684_v47, %v680_v62  ;;  %v652_v11 = vmul.f32 %v1601_v44, %v648_v32 }
  0x84   : > { %v660_v40 = vmul.f32 %v1608_v51, %v657_v33  ;;  %v661_v12 = vmul.f32 %v1615_v56, %v657_v33  ;;  %v673_v13 = vmul.f32 %v1590_v38, %v643_v63  ;;  %v655_v24 = vadd.f32 %v651_v59, %v646_v3 }
  0x85   : > { %1319 = vst [vmem:[%s1647_s25 + $0x38] sm:$0xff] %v1271_v5   ;;  %v691_v14 = vadd.f32 %v687_v6, %v1794_v45  ;;  %v692_v15 = vadd.f32 %v688_v7, %v1794_v45  ;;  %v674_v22 = vmul.f32 %v1601_v44, %v643_v63  ;;  %v656_v25 = vadd.f32 %v652_v11, %v647_v48 }
  0x86   : > { %v677_v8 = vmul.f32 %v1608_v51, %v648_v32  ;;  %v678_v27 = vmul.f32 %v1615_v56, %v648_v32  ;;  %v685_v30 = vmul.f32 %v1626_v61, %v657_v33  ;;  %v664_v9 = vadd.f32 %v660_v40, %v655_v24 }
  0x87   : > { %v695_v31 = vmax.f32 %v667_v0, %v691_v14  ;;  %v696_v4 = vmax.f32 %v668_v1, %v692_v15  ;;  %v686_v36 = vmul.f32 %v1632_v2, %v657_v33  ;;  %v665_v41 = vadd.f32 %v661_v12, %v656_v25 }
  0x88   : > { %v681_v26 = vadd.f32 %v677_v8, %v673_v13  ;;  %v682_v42 = vadd.f32 %v678_v27, %v674_v22  ;;  %v728_v43 = vstv %s1802_s16  ;;  %v669_v49 = vadd.f32 %v1794_v45, %v664_v9 }
  0x89   : > { %v699_v63 = vmax.f32 %v695_v31, 0.0  ;;  %v700_v46 = vmax.f32 %v696_v4, 0.0  ;;  %v729_v32 = vmul.f32 %v728_v43, %v1549_v16  ;;  %v670_v50 = vadd.f32 %v1794_v45, %v665_v41 }
  0x8a   : > { %v689_v52 = vadd.f32 %v685_v30, %v681_v26  ;;  %v690_v39 = vadd.f32 %v686_v36, %v682_v42  ;;  %v730_v53 = vmul.f32 %v728_v43, %v1552_v17  ;;  %v733_v33 = vstv %s1809_s9 }
  0x8b   : > { %v1276_v34 = vpack.c.bf16 %v700_v46, %v699_v63  ;;  %v742_v54 = vstv %s1812_s17  ;;  %v1836_v10 = vstv %s1814_s18  ;;  %v734_v57 = vmul.f32 %v1555_v18, %v733_v33 }
  0x8c   : > { %v693_v55 = vadd.f32 %v689_v52, %v1794_v45  ;;  %v694_v35 = vadd.f32 %v690_v39, %v1794_v45  ;;  %v735_v58 = vmul.f32 %v1558_v19, %v733_v33  ;;  %v743_v60 = vmul.f32 %v1561_v20, %v742_v54 }
  0x8d   : > { %1320 = vst [vmem:[%s1647_s25 + $0x40] sm:$0xff] %v1276_v34   ;;  %v744_v62 = vmul.f32 %v1565_v21, %v742_v54  ;;  %v756_v47 = vmul.f32 %v1555_v18, %v728_v43  ;;  %v757_v0 = vmul.f32 %v1558_v19, %v728_v43  ;;  %v738_v48 = vadd.f32 %v734_v57, %v729_v32 }
  0x8e   : > { %v697_v1 = vmax.f32 %v669_v49, %v693_v55  ;;  %v698_v3 = vmax.f32 %v670_v50, %v694_v35  ;;  %v739_v5 = vadd.f32 %v735_v58, %v730_v53  ;;  %v760_v6 = vmul.f32 %v1561_v20, %v733_v33 }
  0x8f   : > { %v761_v45 = vmul.f32 %v1565_v21, %v733_v33  ;;  %v768_v7 = vmul.f32 %v1574_v28, %v742_v54  ;;  %v769_v59 = vmul.f32 %v1577_v29, %v742_v54  ;;  %v747_v12 = vadd.f32 %v743_v60, %v738_v48 }
  0x90   : > { %v701_v11 = vmax.f32 %v697_v1, 0.0  ;;  %v702_v40 = vmax.f32 %v698_v3, 0.0  ;;  %v748_v13 = vadd.f32 %v744_v62, %v739_v5  ;;  %v764_v14 = vadd.f32 %v760_v6, %v756_v47 }
  0x91   : > { %v765_v15 = vadd.f32 %v761_v45, %v757_v0  ;;  %v731_v24 = vmul.f32 %v728_v43, %v1568_v23  ;;  %v732_v22 = vmul.f32 %v728_v43, %v1587_v37  ;;  %v752_v8 = vadd.f32 %v1836_v10, %v747_v12 }
  0x92   : > { %v1281_v25 = vpack.c.bf16 %v702_v40, %v701_v11  ;;  %v753_v27 = vadd.f32 %v1836_v10, %v748_v13  ;;  %v736_v30 = vmul.f32 %v1590_v38, %v733_v33  ;;  %v772_v31 = vadd.f32 %v768_v7, %v764_v14 }
  0x93   : > { %v773_v4 = vadd.f32 %v769_v59, %v765_v15  ;;  %v737_v9 = vmul.f32 %v1601_v44, %v733_v33  ;;  %v745_v36 = vmul.f32 %v1608_v51, %v742_v54  ;;  %v746_v26 = vmul.f32 %v1615_v56, %v742_v54 }
  0x94   : > { %1321 = vst [vmem:[%s1647_s25 + $0x48] sm:$0xff] %v1281_v25   ;;  %v740_v41 = vadd.f32 %v736_v30, %v731_v24  ;;  %v758_v42 = vmul.f32 %v1590_v38, %v728_v43  ;;  %v759_v63 = vmul.f32 %v1601_v44, %v728_v43  ;;  %v776_v46 = vadd.f32 %v772_v31, %v1836_v10 }
  0x95   : > { %v777_v49 = vadd.f32 %v773_v4, %v1836_v10  ;;  %v741_v32 = vadd.f32 %v737_v9, %v732_v22  ;;  %v762_v50 = vmul.f32 %v1608_v51, %v733_v33  ;;  %v763_v39 = vmul.f32 %v1615_v56, %v733_v33 }
  0x96   : > { %v749_v52 = vadd.f32 %v745_v36, %v740_v41  ;;  %v770_v53 = vmul.f32 %v1626_v61, %v742_v54  ;;  %v771_v34 = vmul.f32 %v1632_v2, %v742_v54  ;;  %v780_v55 = vmax.f32 %v752_v8, %v776_v46 }
  0x97   : > { %v781_v43 = vmax.f32 %v753_v27, %v777_v49  ;;  %v750_v35 = vadd.f32 %v746_v26, %v741_v32  ;;  %v766_v57 = vadd.f32 %v762_v50, %v758_v42  ;;  %v767_v60 = vadd.f32 %v763_v39, %v759_v63 }
  0x98   : > { %v754_v58 = vadd.f32 %v1836_v10, %v749_v52  ;;  %v813_v62 = vstv %s1851_s19  ;;  %v818_v47 = vstv %s1853_s20  ;;  %v784_v0 = vmax.f32 %v780_v55, 0.0 }
  0x99   : > { %v785_v1 = vmax.f32 %v781_v43, 0.0  ;;  %v755_v3 = vadd.f32 %v1836_v10, %v750_v35  ;;  %v774_v33 = vadd.f32 %v770_v53, %v766_v57  ;;  %v775_v48 = vadd.f32 %v771_v34, %v767_v60 }
  0x9a   : > { %v814_v54 = vmul.f32 %v813_v62, %v1549_v16  ;;  %v815_v5 = vmul.f32 %v813_v62, %v1552_v17  ;;  %v819_v6 = vmul.f32 %v1555_v18, %v818_v47  ;;  %v820_v59 = vmul.f32 %v1558_v19, %v818_v47 }
  0x9b   : > { %v1286_v45 = vpack.c.bf16 %v785_v1, %v784_v0  ;;  %v778_v7 = vadd.f32 %v774_v33, %v1836_v10  ;;  %v827_v11 = vstv %s1862_s22  ;;  %v779_v40 = vadd.f32 %v775_v48, %v1836_v10 }
  0x9c   : > { %v823_v12 = vadd.f32 %v819_v6, %v814_v54  ;;  %v828_v13 = vmul.f32 %v1561_v20, %v827_v11  ;;  %v829_v14 = vmul.f32 %v1565_v21, %v827_v11  ;;  %v824_v24 = vadd.f32 %v820_v59, %v815_v5 }
  0x9d   : > { %1322 = vst [vmem:[%s1647_s25 + $0x50] sm:$0xff] %v1286_v45   ;;  %v782_v15 = vmax.f32 %v754_v58, %v778_v7  ;;  %v836_v22 = vstv %s1871_s23  ;;  %v841_v25 = vmul.f32 %v1555_v18, %v813_v62  ;;  %v783_v8 = vmax.f32 %v755_v3, %v779_v40 }
  0x9e   : > { %v832_v27 = vadd.f32 %v828_v13, %v823_v12  ;;  %v842_v30 = vmul.f32 %v1558_v19, %v813_v62  ;;  %v845_v31 = vmul.f32 %v1561_v20, %v818_v47  ;;  %v833_v9 = vadd.f32 %v829_v14, %v824_v24 }
  0x9f   : > { %v786_v4 = vmax.f32 %v782_v15, 0.0  ;;  %v846_v10 = vmul.f32 %v1565_v21, %v818_v47  ;;  %v853_v36 = vmul.f32 %v1574_v28, %v827_v11  ;;  %v787_v41 = vmax.f32 %v783_v8, 0.0 }
  0xa0   : > { %v837_v26 = vadd.f32 %v836_v22, %v832_v27  ;;  %v849_v42 = vadd.f32 %v845_v31, %v841_v25  ;;  %v854_v63 = vmul.f32 %v1577_v29, %v827_v11  ;;  %v838_v46 = vadd.f32 %v836_v22, %v833_v9 }
  0xa1   : > { %v850_v49 = vadd.f32 %v846_v10, %v842_v30  ;;  %v816_v32 = vmul.f32 %v813_v62, %v1568_v23  ;;  %v817_v50 = vmul.f32 %v813_v62, %v1587_v37  ;;  %v1291_v52 = vpack.c.bf16 %v787_v41, %v786_v4 }
  0xa2   : > { %v857_v39 = vadd.f32 %v853_v36, %v849_v42  ;;  %v821_v53 = vmul.f32 %v1590_v38, %v818_v47  ;;  %v822_v34 = vmul.f32 %v1601_v44, %v818_v47  ;;  %v830_v43 = vmul.f32 %v1608_v51, %v827_v11 }
  0xa3   : > { %v858_v55 = vadd.f32 %v854_v63, %v850_v49  ;;  %v831_v35 = vmul.f32 %v1615_v56, %v827_v11  ;;  %v843_v57 = vmul.f32 %v1590_v38, %v813_v62  ;;  %1323 = vst [vmem:[%s1647_s25 + $0x58] sm:$0xff] %v1291_v52   ;;  %v844_v1 = vmul.f32 %v1601_v44, %v813_v62 }
  0xa4   : > { %v861_v58 = vadd.f32 %v857_v39, %v836_v22  ;;  %v825_v60 = vadd.f32 %v821_v53, %v816_v32  ;;  %v826_v0 = vadd.f32 %v822_v34, %v817_v50  ;;  %v847_v33 = vmul.f32 %v1608_v51, %v818_v47 }
  0xa5   : > { %v862_v3 = vadd.f32 %v858_v55, %v836_v22  ;;  %v848_v48 = vmul.f32 %v1615_v56, %v818_v47  ;;  %v855_v54 = vmul.f32 %v1626_v61, %v827_v11  ;;  %v856_v7 = vmul.f32 %v1632_v2, %v827_v11 }
  0xa6   : > { %v865_v5 = vmax.f32 %v837_v26, %v861_v58  ;;  %v834_v6 = vadd.f32 %v830_v43, %v825_v60  ;;  %v835_v45 = vadd.f32 %v831_v35, %v826_v0  ;;  %v851_v40 = vadd.f32 %v847_v33, %v843_v57 }
  0xa7   : > { %v866_v59 = vmax.f32 %v838_v46, %v862_v3  ;;  %v852_v12 = vadd.f32 %v848_v48, %v844_v1  ;;  %v898_v13 = vstv %s1896_s11  ;;  %v903_v30 = vstv %s1901_s24 }
  0xa8   : > { %v869_v62 = vmax.f32 %v865_v5, 0.0  ;;  %v839_v14 = vadd.f32 %v836_v22, %v834_v6  ;;  %v840_v15 = vadd.f32 %v836_v22, %v835_v45  ;;  %v899_v24 = vmul.f32 %v898_v13, %v1549_v16 }
  0xa9   : > { %v870_v47 = vmax.f32 %v866_v59, 0.0  ;;  %v859_v25 = vadd.f32 %v855_v54, %v851_v40  ;;  %v860_v8 = vadd.f32 %v856_v7, %v852_v12  ;;  %v900_v27 = vmul.f32 %v898_v13, %v1552_v17 }
  0xaa   : > { %v912_v31 = vstv %s1905_s26  ;;  %v921_v4 = vstv %s1907_s27  ;;  %v926_v11 = vmul.f32 %v1555_v18, %v898_v13  ;;  %v904_v41 = vmul.f32 %v1555_v18, %v903_v30 }
  0xab   : > { %v1296_v9 = vpack.c.bf16 %v870_v47, %v869_v62  ;;  %v863_v10 = vadd.f32 %v859_v25, %v836_v22  ;;  %v864_v36 = vadd.f32 %v860_v8, %v836_v22  ;;  %v905_v26 = vmul.f32 %v1558_v19, %v903_v30 }
  0xac   : > { %v913_v16 = vmul.f32 %v1561_v20, %v912_v31  ;;  %v914_v42 = vmul.f32 %v1565_v21, %v912_v31  ;;  %v927_v63 = vmul.f32 %v1558_v19, %v898_v13  ;;  %v908_v49 = vadd.f32 %v904_v41, %v899_v24 }
  0xad   : > { %1324 = vst [vmem:[%s1647_s25 + $0x60] sm:$0xff] %v1296_v9   ;;  %v867_v17 = vmax.f32 %v839_v14, %v863_v10  ;;  %v868_v46 = vmax.f32 %v840_v15, %v864_v36  ;;  %v930_v32 = vmul.f32 %v1561_v20, %v903_v30  ;;  %v909_v50 = vadd.f32 %v905_v26, %v900_v27 }
  0xae   : > { %v931_v52 = vmul.f32 %v1565_v21, %v903_v30  ;;  %v938_v22 = vmul.f32 %v1574_v28, %v912_v31  ;;  %v939_v18 = vmul.f32 %v1577_v29, %v912_v31  ;;  %v917_v34 = vadd.f32 %v913_v16, %v908_v49 }
  0xaf   : > { %v871_v39 = vmax.f32 %v867_v17, 0.0  ;;  %v872_v53 = vmax.f32 %v868_v46, 0.0  ;;  %v934_v55 = vadd.f32 %v930_v32, %v926_v11  ;;  %v918_v43 = vadd.f32 %v914_v42, %v909_v50 }
  0xb0   : > { %v935_v19 = vadd.f32 %v931_v52, %v927_v63  ;;  %v901_v35 = vmul.f32 %v898_v13, %v1568_v23  ;;  %v902_v57 = vmul.f32 %v898_v13, %v1587_v37  ;;  %v922_v20 = vadd.f32 %v921_v4, %v917_v34 }
  0xb1   : > { %v1301_v58 = vpack.c.bf16 %v872_v53, %v871_v39  ;;  %v942_v60 = vadd.f32 %v938_v22, %v934_v55  ;;  %v906_v21 = vmul.f32 %v1590_v38, %v903_v30  ;;  %v923_v0 = vadd.f32 %v921_v4, %v918_v43 }
  0xb2   : > { %v943_v28 = vadd.f32 %v939_v18, %v935_v19  ;;  %v907_v29 = vmul.f32 %v1601_v44, %v903_v30  ;;  %v915_v1 = vmul.f32 %v1608_v51, %v912_v31  ;;  %v916_v48 = vmul.f32 %v1615_v56, %v912_v31 }
  0xb3   : > { %1325 = vst [vmem:[%s1647_s25 + $0x68] sm:$0xff] %v1301_v58   ;;  %v946_v3 = vadd.f32 %v942_v60, %v921_v4  ;;  %v910_v33 = vadd.f32 %v906_v21, %v901_v35  ;;  %v928_v23 = vmul.f32 %v1590_v38, %v898_v13  ;;  %v929_v5 = vmul.f32 %v1601_v44, %v898_v13 }
  0xb4   : > { %v947_v54 = vadd.f32 %v943_v28, %v921_v4  ;;  %v911_v37 = vadd.f32 %v907_v29, %v902_v57  ;;  %v932_v6 = vmul.f32 %v1608_v51, %v903_v30  ;;  %v933_v59 = vmul.f32 %v1615_v56, %v903_v30 }
  0xb5   : > { %v950_v45 = vmax.f32 %v922_v20, %v946_v3  ;;  %v919_v7 = vadd.f32 %v915_v1, %v910_v33  ;;  %v940_v40 = vmul.f32 %v1626_v61, %v912_v31  ;;  %v941_v15 = vmul.f32 %v1632_v2, %v912_v31 }
  0xb6   : > { %v951_v12 = vmax.f32 %v923_v0, %v947_v54  ;;  %v920_v62 = vadd.f32 %v916_v48, %v911_v37  ;;  %v936_v14 = vadd.f32 %v932_v6, %v928_v23  ;;  %v937_v38 = vadd.f32 %v933_v59, %v929_v5 }
  0xb7   : > { %v954_v24 = vmax.f32 %v950_v45, 0.0  ;;  %v924_v25 = vadd.f32 %v921_v4, %v919_v7 }
  0xb8   : > { %v955_v47 = vmax.f32 %v951_v12, 0.0  ;;  %v944_v44 = vadd.f32 %v940_v40, %v936_v14  ;;  %v925_v13 = vadd.f32 %v921_v4, %v920_v62  ;;  %v945_v51 = vadd.f32 %v941_v15, %v937_v38 }
  0xba   : > { %v1306_v8 = vpack.c.bf16 %v955_v47, %v954_v24  ;;  %v948_v27 = vadd.f32 %v944_v44, %v921_v4  ;;  %v949_v11 = vadd.f32 %v945_v51, %v921_v4 }
  0xbc   : > { %1326 = vst [vmem:[%s1647_s25 + $0x70] sm:$0xff] %v1306_v8   ;;  %v952_v56 = vmax.f32 %v924_v25, %v948_v27  ;;  %v953_v30 = vmax.f32 %v925_v13, %v949_v11 }
  0xbe   : > { %v956_v61 = vmax.f32 %v952_v56, 0.0  ;;  %v957_v9 = vmax.f32 %v953_v30, 0.0 }
  0xc0   : > { %v1311_v10 = vpack.c.bf16 %v957_v9, %v956_v61 }
  0xc2   : > { %1327 = vst [vmem:[%s1647_s25 + $0x78] sm:$0xff] %v1311_v10  }
  0xc3 PF: > { %s13_s13 = sadd.s32 1, %s1436_s13   ;;  %s1971_s9 = smov %s1424_s10 }
  0xc4   : > { %p10_p7 = scmp.ge.s32.totalorder %s13_s13, 4   ;;  %s1972_s10 = smov %s1504_s21 }
  0xc5   : > { %s1973_s11 = smov %s1432_s12  ;;  %s1974_s12 = smov %s1976_s15 }
  0xc6   :  { %12 = sbr.rel (!%p10_p7) target bundleno = 3 (0x3), region = 116 }
  0xcd   :  { %1009 = vsyncpa [#allocation4], 1 }
  0xce   :  { %1011 = vsyncpa [#allocation4 + $0x1], 1 }

// kernel: cnn_classifier_forward.3
= control target key start
LH: loop header
LB: loop body
LE: loop exit
PB: predicated region body
PF: predicated region fallthrough
CT: control target
= control target key end

     0   :  { %s17886_s0 = inlined_call_operand.vmem [shape: bf16[2,32768], index: 0, kind: input, shape index: {}]   ;;  %s17887_s1 = inlined_call_operand.hbm [shape: bf16[32768,256], index: 1, kind: input, shape index: {}]   ;;  %s17888_s2 = inlined_call_operand.hbm [shape: f32[1,256], index: 2, kind: input, shape index: {}]   ;;  %s17889_s3 = inlined_call_operand.vmem [shape: f32[256,2], index: 3, kind: input, shape index: {}]   ;;  %s17890_s4 = inlined_call_operand.hbm [shape: f32[2,256], index: 4, kind: output, shape index: {0}]   ;;  %s17891_s5 = inlined_call_operand.vmem [shape: f32[2,2,2], index: 5, kind: output, shape index: {1}]  }
   0x1   :  { %17903 = sst [smem:[#allocation18_spill]] %s17887_s1 }
   0x2   :  { %17904 = sst [smem:[#allocation19_spill]] %s17888_s2 }
   0x3   :  { %11 = vsyncpa [#allocation3], 0 }
   0x4   :  { %13 = vsyncpa [#allocation3 + $0x1], 0 }
   0x5   :  { %14 = vsyncpa [#allocation6], 0 }
   0x6   :  { %16 = vsyncpa [#allocation6 + $0x1], 0 }
   0x7   :  { %17 = vsyncpa [#allocation4], 0 }
   0x8   :  { %19 = vsyncpa [#allocation4 + $0x1], 0  ;;  %s16239_s18 = smov 0   ;;  %s16241_s19 = smov 0  }
   0x9   :  { %s16243_s20 = smov 0   ;;  %s16245_s21 = smov 0  }
   0xa   :  { %s16247_s22 = smov 0   ;;  %s16249_s23 = smov 0  }
   0xb   :  { %s16251_s24 = smov 0   ;;  %s16253_s25 = smov 0  }
   0xc   :  { %s16255_s26 = smov 0   ;;  %s16257_s27 = smov 0  }
   0xd   :  { %s16259_s28 = smov 0  }
   0xe LB: > { %17905 = sst [smem:[#allocation11_spill]] %s16172_s22  ;;  %s34_s29 = sadd.s32 1, %s16188_s26  ;;  %s16196_s28 = sphi %s16259_s28, %s25_s28   ;;  %s16192_s27 = sphi %s16257_s27, %s17938_s27   ;;  %s16188_s26 = sphi %s16255_s26, %s17937_s26   ;;  %s16184_s25 = sphi %s16253_s25, %s17936_s25   ;;  %s16180_s24 = sphi %s16251_s24, %s17935_s24   ;;  %s16176_s23 = sphi %s16249_s23, %s17934_s23   ;;  %s16172_s22 = sphi %s16247_s22, %s17933_s22   ;;  %s16168_s21 = sphi %s16245_s21, %s17932_s21   ;;  %s16164_s20 = sphi %s16243_s20, %s17941_s20   ;;  %s16160_s19 = sphi %s16241_s19, %s17940_s19   ;;  %s16156_s18 = sphi %s16239_s18, %s17939_s18  }
   0xf   : > { %17906 = sst [smem:[#allocation12_spill]] %s16176_s23  ;;  %p16296_p0 = scmp.ge.s32.totalorder %s34_s29, 2 }
  0x10   : > { %17907 = sst [smem:[#allocation13_spill]] %s16188_s26  ;;  %p79_p1 = scmp.ne.s32.totalorder %s16176_s23, %s16172_s22 }
  0x11   : > { %17908 = sst [smem:[#allocation14_spill]] %s16192_s27  ;;  %p17893_p2 = scmp.eq.s32.totalorder %s16196_s28, 0 }
  0x12   : > { %s17943_s29 = smov (%p16296_p0, %s34_s29), 0  ;;  %p17892_p4 = scmp.lt.s32.totalorder %s16196_s28, 4 }
  0x13   : > { %17910 = sst [smem:[#allocation15_spill]] %s17943_s29  ;;  %p81_p3 = por %p17893_p2, %p79_p1 }
  0x14   : > { %s67_s7 = ssub.s32 %s16188_s26, %s17943_s29  ;;  %s221_s8 = sand.u32 1, %s16176_s23  }
  0x15   : > { %s12327_s9 = sshll.u32 %s221_s8, 13  ;;  %s13370_s10 = sshll.u32 %s16188_s26, 12 }
  0x16   : > { %s231_s11 = sadd.s32 %s16192_s27, %s13370_s10  ;;  %s225_s12 = scalar_lea.vmem [#allocation2], %s12327_s9 }
  0x17   : > { %s234_s13 = sshll.u32 %s225_s12, 4  ;;  %s12330_s14 = sshll.u32 %s231_s11, 6  ;;  %s16315_s13 = int_to_ptr.vmem [resolvable:$true] %s234_s13 }
  0x18   : > { %s17911_s1 = sld [smem:[#allocation18_spill]]  ;;  %p16324_p5 = pnand %p17892_p4, %p81_p3 }
  0x19   : > { %s16328_s9 = scalar_lea.sflag [#allocation3], %s221_s8 }
  0x1a   : > { %p16012_p7 = pneg %p16324_p5 }
  0x1e   : > { %s16320_s17 = scalar_lea.hbm %s17911_s1, %s12330_s14  ;;  %s16015_s14 = scalar_lea.hbm %s17911_s1, 524288 }
  0x1f   : > { %s16010_s10 = scalar_lea.hbm %s16320_s17, 131072  ;;  %p16016_p10 = scmp.lt.u32.totalorder %s16320_s17, %s17911_s1 }
  0x20   : > { %p16011_p6 = scmp.ne.s32.totalorder %s16320_s17, %s16010_s10  ;;  %p16017_p11 = scmp.lt.u32.totalorder %s16015_s14, %s16010_s10 }
  0x21   : > { %p16019_p13 = scmp.lt.u32.totalorder %s16010_s10, %s16320_s17 }
  0x22   : > { %p16013_p8 = pnand %p16012_p7, %p16011_p6  ;;  %p16018_p12 = por %p16017_p11, %p16016_p10 }
  0x24   : > { %p16014_p9 = pneg %p16013_p8  ;;  %p16020_p1 = por %p16019_p13, %p16018_p12 }
  0x26   : > { %p16021_p3 = pnand %p16020_p1, %p16014_p9 }
  0x28   : > { %16024 = shalt.err (!%p16021_p3)
}
  0x29   : > { %s16025_s8 = scalar_lea.vmem %s16315_s13, 131072  ;;  %s16198_s11 = smov [#allocation2]  }
  0x2a   : > { %p16026_p6 = scmp.ne.s32.totalorder %s16315_s13, %s16025_s8  ;;  %s16030_s12 = sshll.u32 %s16198_s11, 4  ;;  %s16031_s12 = int_to_ptr.vmem [resolvable:$false] %s16030_s12 }
  0x2b   : > { %s16032_s15 = scalar_lea.vmem %s16031_s12, 262144  ;;  %p16033_p2 = scmp.lt.s32.totalorder %s16315_s13, %s16031_s12 }
  0x2c   : > { %p16028_p8 = pnand %p16026_p6, %p16012_p7  ;;  %p16034_p10 = scmp.lt.s32.totalorder %s16032_s15, %s16025_s8 }
  0x2e   : > { %p16029_p4 = pneg %p16028_p8  ;;  %p16035_p11 = por %p16034_p10, %p16033_p2 }
  0x30   : > { %p16036_p12 = pnand %p16035_p11, %p16029_p4 }
  0x32   : > { %16039 = shalt.err (!%p16036_p12)
}
  0x33   : > { %s16199_s10 = smov 128   ;;  %s16200_s14 = smov 64  }
  0x34   : > { %s16201_s16 = smov 4   ;;  %p12332_p2 = scmp.ge.s32.totalorder %s16196_s28, 1 }
  0x35   : > { %14864 = dma.hbm_to_vmem [thread:$0]  (!%p16324_p5), %s16320_s17, 131072, %s16315_s13, %s16328_s9, %s16199_s10, %s16200_s14, %s16201_s16  }
  0x36   : > { %p268_p4 = scmp.lt.s32.totalorder %s16196_s28, 5  ;;  %s12323_s11 = sadd.s32 4294967295, %s16196_s28  }
  0x37   : > { %s12324_s12 = sadd.s32 4294967294, %s16196_s28   ;;  %s37_s15 = sadd.s32 1, %s16192_s27 }
  0x38   : > { %p16358_p7 = pnand %p12332_p2, %p268_p4  ;;  %s17945_s15 = smov (!%p16296_p0, %s37_s15), %s16192_s27 }
  0x39   : > { %p85_p5 = scmp.ne.s32.totalorder %s16172_s22, %s16168_s21  ;;  %p16370_p9 = scmp.eq.s32.totalorder %s12323_s11, 0 }
  0x3a   : > { %p39_p13 = scmp.ge.s32.totalorder %s17945_s15, 2  ;;  %s98_s13 = sadd.s32 1, %s16164_s20 }
  0x3b   : > { %p16377_p1 = por %p16370_p9, %p85_p5  ;;  %p105_p0 = scmp.ne.s32.totalorder %s16164_s20, %s16160_s19 }
  0x3c   : > { %s17947_s15 = smov (%p39_p13, %s17945_s15), 0  ;;  %p17917_p3 = scmp.eq.s32.totalorder %s16196_s28, 0 }
  0x3d   : > { %s17915_s17 = scalar_select %p16377_p1, 1, 0 }
  0x3e   : > { %17916 = sst [smem:[#allocation16_spill]] %s17947_s15  ;;  %p16387_p6 = por %p105_p0, %p17917_p3 }
  0x3f   : > { %p111_p8 = scmp.ne.s32.totalorder %s16160_s19, %s16156_s18  ;;  %s68_s6 = ssub.s32 %s16192_s27, %s17947_s15 }
  0x40   : > { %p161_p10 = scmp.eq.s32.totalorder %s12323_s11, 3  ;;  %s69_s9 = sor.u32 %s68_s6, %s67_s7 }
  0x41   : > { %p96_p11 = scmp.eq.s32.totalorder %s68_s6, 0  ;;  %p70_p12 = scmp.eq.s32.totalorder %s69_s9, 0 }
  0x42   : > { %p16403_p2 = por %p111_p8, %p16370_p9  ;;  %s17920_s16 = sadd.s32 1, %s16176_s23 }
  0x43   : > { %s16408_s14 = scalar_select %p96_p11, %s16164_s20, %s98_s13  }
  0x44   : > { %s17919_s10 = scalar_select %p16403_p2, 1, 0 }
  0x45   : > { %s16413_s1 = scalar_select %p70_p12, %s16176_s23, %s17920_s16  }
  0x46   : > { %p16415_p4 = por %p161_p10, %p105_p0  ;;  %p167_p5 = scmp.eq.s32.totalorder %s12324_s12, 3 }
  0x47   : > { %17921 = sst [smem:[#allocation17_spill]] %s16413_s1  ;;  %s244_s11 = sand.u32 1, %s16164_s20  }
  0x48   : > { %s17922_s15 = scalar_select %p16415_p4, 1, 0 }
  0x49   : > { %s12331_s7 = sshll.u32 %s16192_s27, 4  ;;  %p16424_p13 = por %p167_p5, %p111_p8 }
  0x4a   : > { %s17924_s2 = sld [smem:[#allocation19_spill]]  ;;  %s247_s16 = scalar_lea.vmem [#allocation5], %s244_s11 }
  0x4b   : > { %s17923_s30 = scalar_select %p16424_p13, 1, 0 }
  0x4c   : > { %s254_s29 = sshll.u32 %s247_s16, 4  ;;  %p17925_p9 = scmp.lt.s32.totalorder %s16196_s28, 4  ;;  %s16441_s29 = int_to_ptr.vmem [resolvable:$true] %s254_s29 }
  0x4d   : > { %s245_s27 = scalar_lea.sflag [#allocation6], %s244_s11 }
  0x4e   : > { %p16437_p0 = pnand %p17925_p9, %p16387_p6 }
  0x50   : > { %s16431_s13 = scalar_lea.hbm %s17924_s2, %s12331_s7  ;;  %p16042_p8 = pneg %p16437_p0 }
  0x51   : > { %s16040_s6 = scalar_lea.hbm %s16431_s13, 16  ;;  %s16045_s9 = scalar_lea.hbm %s17924_s2, 32 }
  0x52   : > { %p16041_p3 = scmp.ne.s32.totalorder %s16431_s13, %s16040_s6  ;;  %p16046_p6 = scmp.lt.u32.totalorder %s16431_s13, %s17924_s2 }
  0x53   : > { %p16047_p12 = scmp.lt.u32.totalorder %s16045_s9, %s16040_s6  ;;  %p16049_p9 = scmp.lt.u32.totalorder %s16040_s6, %s16431_s13 }
  0x54   : > { %p16043_p10 = pnand %p16042_p8, %p16041_p3 }
  0x55   : > { %p16048_p5 = por %p16047_p12, %p16046_p6 }
  0x56   : > { %p16044_p11 = pneg %p16043_p10 }
  0x57   : > { %p16050_p13 = por %p16049_p9, %p16048_p5 }
  0x59   : > { %p16051_p4 = pnand %p16050_p13, %p16044_p11 }
  0x5b   : > { %16054 = shalt.err (!%p16051_p4)
}
  0x5c   : > { %s16055_s11 = scalar_lea.vmem %s16441_s29, 16  ;;  %s16202_s7 = smov [#allocation5]  }
  0x5d   : > { %p16056_p3 = scmp.ne.s32.totalorder %s16441_s29, %s16055_s11  ;;  %s16060_s21 = sshll.u32 %s16202_s7, 4  ;;  %s16061_s21 = int_to_ptr.vmem [resolvable:$false] %s16060_s21 }
  0x5e   : > { %s16062_s26 = scalar_lea.vmem %s16061_s21, 32  ;;  %p16063_p1 = scmp.lt.s32.totalorder %s16441_s29, %s16061_s21 }
  0x5f   : > { %p16058_p10 = pnand %p16056_p3, %p16042_p8  ;;  %p16064_p6 = scmp.lt.s32.totalorder %s16062_s26, %s16055_s11 }
  0x61   : > { %p16059_p2 = pneg %p16058_p10  ;;  %p16065_p12 = por %p16064_p6, %p16063_p1 }
  0x63   : > { %p16066_p5 = pnand %p16065_p12, %p16059_p2 }
  0x65   : > { %16069 = shalt.err (!%p16066_p5)
}
  0x66   : > { %14867 = dma.hbm_to_vmem [thread:$0]  (!%p16437_p0), %s16431_s13, 16, %s16441_s29, %s245_s27  }
  0x67   : > { %272 = sbr.rel (%p16358_p7) target bundleno = 1626 (0x65a), region = 36  ;;  %s274_s6 = sand.u32 (!%p16358_p7), 1, %s16172_s22  }
  0x68   : > { %s12333_s9 = sshll.u32 (!%p16358_p7), %s274_s6, 13  ;;  %s275_s16 = scalar_lea.sflag (!%p16358_p7), [#allocation3], %s274_s6 }
  0x69   : > { %s16471_s7 = scalar_lea.vmem (!%p16358_p7), [#allocation2], %s12333_s9  ;;  %p17927_p4 = scmp.ne.s32.totalorder (!%p16358_p7), %s17915_s17, 0 }
  0x6e   : > { %16143 = dma.done.wait (%p17927_p4), %s275_s16, 131072  }
  0x6f   : > { %16145 = vsyncadd (%p17927_p4), %s275_s16, 4294836224  ;;  %s16478_s12 = sand.u32 1, %s16160_s19   ;;  %p17928_p7 = scmp.ne.s32.totalorder %s17919_s10, 0 }
  0x70   : > { %s284_s27 = scalar_lea.sflag [#allocation6], %s16478_s12 }
  0x71   : > { %16147 = dma.done.wait (%p17928_p7), %s284_s27, 16  }
  0x72   : > { %16149 = vsyncadd (%p17928_p7), %s284_s27, 4294967280  ;;  %s12334_s8 = sshll.u32 %s16478_s12, 1  ;;  %s12335_s17 = sshll.u32 %s16180_s24, 7 }
  0x73   : > { %p331_p1 = scmp.lt.s32.totalorder %s12335_s17, 255  ;;  %s12336_s13 = sshll.u32 %s16184_s25, 4 }
  0x74   : > { %p342_p2 = scmp.lt.s32.totalorder %s16184_s25, 1  ;;  %p337_p13 = scmp.lt.s32.totalorder %s12336_s13, 31 }
  0x75   : > { %s17949_s17 = smov (!%p331_p1, %s12335_s17), 255  ;;  %s16506_s22 = scalar_lea.vmem [#allocation7], %s12334_s8 }
  0x76   : > { %s16493_s26 = scalar_lea.vmem %s17886_s0, %s17949_s17  ;;  %s17951_s13 = smov (!%p337_p13, %s12336_s13), 31 }
  0x77   : > { %s343_s10 = scalar_select %p342_p2, %s16184_s25, 1 }
  0x78   : > { %s12337_s6 = sshll.u32 %s17951_s13, 3  ;;  %p12339_p0 = scmp.ne.s32.totalorder %s16180_s24, 0 }
  0x79   : > { %s16499_s27 = scalar_lea.vmem %s17889_s3, %s12337_s6  ;;  %s12338_s29 = sshll.u32 %s343_s10, 1  ;;  %v16203_v0 = vmov (!%p12339_p0), 0.0  }
  0x7a   : > { %s16504_s23 = scalar_lea.vmem %s17891_s5, %s12338_s29  ;;  %350 = sbr.rel (%p12339_p0) target bundleno = 129 (0x81), region = 48  ;;  %351 = vst [vmem:[%s16506_s22] sm:$0x3] (!%p12339_p0), %v16203_v0 }
  0x81 PF: > { %v14970_v1 = vld [vmem:[%s16471_s7 + $0x40] sm:$0xff]   ;;  %v14974_v5 = vld [vmem:[%s16471_s7 + $0x48] sm:$0xff]   ;;  %v14978_v9 = vld [vmem:[%s16471_s7 + $0x50] sm:$0xff]   ;;  %v2437_v29 = vlaneseq  ;;  %v16204_v37 = vmov 1966171168   ;;  %p13364_p8 = scmp.ne.s32.totalorder %s16180_s24, 1 }
  0x82   : > { %v14971_v2 = vld [vmem:[%s16471_s7 + $0xc0] sm:$0xff]   ;;  %13371 = vmatprep.subr.bf16.mxu0 %v14970_v1  ;;  %v14975_v6 = vld [vmem:[%s16471_s7 + $0xc8] sm:$0xff]   ;;  %v14979_v10 = vld [vmem:[%s16471_s7 + $0xd0] sm:$0xff]   ;;  %v2435_v38 = vunpack.c.l.s4 %v16204_v37  ;;  %vm16206_vm0 = vmmov (!%p13364_p8), 0   ;;  %s17929_s1 = scalar_lea.vmem (!%p13364_p8), [#allocation5], %s16478_s12  ;;  %vm12152_vm1 = vcmask (!%p13364_p8), 9216  }
  0x83   : > { %v14972_v3 = vld [vmem:[%s16471_s7] sm:$0xff]   ;;  %13393 = vmatprep.subr.bf16.mxu1 %v14971_v2  ;;  %v14976_v7 = vld [vmem:[%s16471_s7 + $0x8] sm:$0xff]   ;;  %v14980_v11 = vld [vmem:[%s16471_s7 + $0x10] sm:$0xff]   ;;  %v2438_v34 = vshrl.u32 %v2437_v29, 7 }
  0x84   : > { %v14973_v4 = vld [vmem:[%s16471_s7 + $0x80] sm:$0xff]   ;;  %13372 = vmatpush3.bf16.msra.mxu0 %v14972_v3  ;;  %v14977_v8 = vld [vmem:[%s16471_s7 + $0x88] sm:$0xff]   ;;  %v14981_v12 = vld [vmem:[%s16471_s7 + $0x90] sm:$0xff]   ;;  %v2436_v41 = vunpack.c.0.s8 %v2435_v38 }
  0x85   : > { %13394 = vmatpush3.bf16.msra.mxu1 %v14973_v4  ;;  %13373 = vmatprep.subr.bf16.mxu0 %v14974_v5  ;;  %v14982_v13 = vld [vmem:[%s16471_s7 + $0x58] sm:$0xff]   ;;  %v14986_v17 = vld [vmem:[%s16471_s7 + $0x60] sm:$0xff]   ;;  %v14990_v21 = vld [vmem:[%s16471_s7 + $0x68] sm:$0xff]  }
  0x86   : > { %13395 = vmatprep.subr.bf16.mxu1 %v14975_v6  ;;  %v14983_v14 = vld [vmem:[%s16471_s7 + $0xd8] sm:$0xff]   ;;  %v14987_v18 = vld [vmem:[%s16471_s7 + $0xe0] sm:$0xff]   ;;  %v14991_v22 = vld [vmem:[%s16471_s7 + $0xe8] sm:$0xff]   ;;  %v16545_v42 = vsub.s32 %v2436_v41, %v2438_v34 }
  0x87   : > { %v14984_v15 = vld [vmem:[%s16471_s7 + $0x18] sm:$0xff]   ;;  %v14988_v19 = vld [vmem:[%s16471_s7 + $0x20] sm:$0xff]   ;;  %v14992_v23 = vld [vmem:[%s16471_s7 + $0x28] sm:$0xff]  }
  0x88   : > { %13374 = vmatpush3.bf16.msra.mxu0 %v14976_v7  ;;  %v14985_v16 = vld [vmem:[%s16471_s7 + $0x98] sm:$0xff]   ;;  %v14989_v20 = vld [vmem:[%s16471_s7 + $0xa0] sm:$0xff]   ;;  %v14993_v24 = vld [vmem:[%s16471_s7 + $0xa8] sm:$0xff]  }
  0x89   : > { %13396 = vmatpush3.bf16.msra.mxu1 %v14977_v8  ;;  %13375 = vmatprep.subr.bf16.mxu0 %v14978_v9  ;;  %v14994_v25 = vld [vmem:[%s16471_s7 + $0x70] sm:$0xff]   ;;  %v14998_v30 = vld [vmem:[%s16471_s7 + $0x78] sm:$0xff]   ;;  %v353_v35 = vld [vmem:[%s16493_s26] sm:$0xff] }
  0x8a   : > { %13397 = vmatprep.subr.bf16.mxu1 %v14979_v10  ;;  %v14995_v26 = vld [vmem:[%s16471_s7 + $0xf0] sm:$0xff]   ;;  %v14999_v31 = vld [vmem:[%s16471_s7 + $0xf8] sm:$0xff]   ;;  %v15003_v36 = vld [vmem:[%s16471_s7 + $0x140] sm:$0xff]   ;;  %v2433_v40 = vcombine.high %v353_v35, %v353_v35  ;;  %v2440_v43 = vrot.slane %v353_v35, %v16545_v42 }
  0x8b   : > { %v14996_v27 = vld [vmem:[%s16471_s7 + $0x30] sm:$0xff]   ;;  %v15000_v32 = vld [vmem:[%s16471_s7 + $0x38] sm:$0xff]   ;;  %v15004_v39 = vld [vmem:[%s16471_s7 + $0x1c0] sm:$0xff]  }
  0x8c   : > { %13376 = vmatpush3.bf16.msra.mxu0 %v14980_v11  ;;  %v14997_v28 = vld [vmem:[%s16471_s7 + $0xb0] sm:$0xff]   ;;  %v15001_v33 = vld [vmem:[%s16471_s7 + $0xb8] sm:$0xff]   ;;  %v16549_v44 = vrot.slane %v2433_v40, %v16545_v42  ;;  %v2448_v45 = vcombine.high %v2440_v43, %v2440_v43  ;;  %v2456_v46 = vrot.slane %v2440_v43, %v16545_v42  ;;  %v15005_v48 = vld [vmem:[%s16471_s7 + $0x100] sm:$0xff]  }
  0x8d   : > { %13398 = vmatpush3.bf16.msra.mxu1 %v14981_v12  ;;  %13377 = vmatprep.subr.bf16.mxu0 %v14982_v13  ;;  %v15006_v50 = vld [vmem:[%s16471_s7 + $0x180] sm:$0xff]   ;;  %v15007_v53 = vld [vmem:[%s16471_s7 + $0x148] sm:$0xff]   ;;  %v15011_v59 = vld [vmem:[%s16471_s7 + $0x150] sm:$0xff]  }
  0x8e   : > { %13399 = vmatprep.subr.bf16.mxu1 %v14983_v14  ;;  %v2449_v47 = vcombine.high %v16549_v44, %v16549_v44  ;;  %v2470_v49 = vrot.slane %v2448_v45, %v16545_v42  ;;  %v2478_v52 = vcombine.high %v2456_v46, %v2456_v46  ;;  %v15008_v55 = vld [vmem:[%s16471_s7 + $0x1c8] sm:$0xff]   ;;  %v15012_v60 = vld [vmem:[%s16471_s7 + $0x1d0] sm:$0xff]   ;;  %v15015_v63 = vld [vmem:[%s16471_s7 + $0x158] sm:$0xff]  }
  0x8f   : > { %v15009_v56 = vld [vmem:[%s16471_s7 + $0x108] sm:$0xff]   ;;  %v15013_v61 = vld [vmem:[%s16471_s7 + $0x110] sm:$0xff]   ;;  %v15016_v0 = vld [vmem:[%s16471_s7 + $0x1d8] sm:$0xff]  }
  0x90   : > { %13378 = vmatpush3.bf16.msra.mxu0 %v14984_v15  ;;  %v2477_v51 = vrot.slane %v2449_v47, %v16545_v42  ;;  %9521 = vmatprep.mubr.bf16.mxu0 %v2470_v49  ;;  %v2480_v54 = vcombine.high %v2470_v49, %v2470_v49  ;;  %v15010_v58 = vld [vmem:[%s16471_s7 + $0x188] sm:$0xff]   ;;  %v15014_v62 = vld [vmem:[%s16471_s7 + $0x190] sm:$0xff]   ;;  %v15017_v1 = vld [vmem:[%s16471_s7 + $0x118] sm:$0xff]  }
  0x91   : > { %13400 = vmatpush3.bf16.msra.mxu1 %v14985_v16  ;;  %13379 = vmatprep.subr.bf16.mxu0 %v14986_v17  ;;  %v15018_v2 = vld [vmem:[%s16471_s7 + $0x198] sm:$0xff]   ;;  %v15019_v3 = vld [vmem:[%s16471_s7 + $0x160] sm:$0xff]   ;;  %v15023_v7 = vld [vmem:[%s16471_s7 + $0x168] sm:$0xff]  }
  0x92   : > { %13401 = vmatprep.subr.bf16.mxu1 %v14987_v18  ;;  %v2481_v57 = vcombine.high %v2477_v51, %v2477_v51  ;;  %9561 = vmatprep.mubr.bf16.mxu1 %v2480_v54  ;;  %v15020_v4 = vld [vmem:[%s16471_s7 + $0x1e0] sm:$0xff]   ;;  %v15024_v8 = vld [vmem:[%s16471_s7 + $0x1e8] sm:$0xff]   ;;  %v15027_v11 = vld [vmem:[%s16471_s7 + $0x170] sm:$0xff]  }
  0x93   : > { %v15021_v5 = vld [vmem:[%s16471_s7 + $0x120] sm:$0xff]   ;;  %v15025_v9 = vld [vmem:[%s16471_s7 + $0x128] sm:$0xff]   ;;  %v15028_v12 = vld [vmem:[%s16471_s7 + $0x1f0] sm:$0xff]  }
  0x94   : > { %13380 = vmatpush3.bf16.msra.mxu0 %v14988_v19  ;;  %v15022_v6 = vld [vmem:[%s16471_s7 + $0x1a0] sm:$0xff]   ;;  %v15026_v10 = vld [vmem:[%s16471_s7 + $0x1a8] sm:$0xff]   ;;  %v15029_v13 = vld [vmem:[%s16471_s7 + $0x130] sm:$0xff]   ;;  %v2463_v19 = vrot.slane %v16549_v44, %v16545_v42 }
  0x95   : > { %13402 = vmatpush3.bf16.msra.mxu1 %v14989_v20  ;;  %13381 = vmatprep.subr.bf16.mxu0 %v14990_v21  ;;  %v15030_v14 = vld [vmem:[%s16471_s7 + $0x1b0] sm:$0xff]   ;;  %v15031_v15 = vld [vmem:[%s16471_s7 + $0x178] sm:$0xff]   ;;  %v15035_v20 = vld [vmem:[%s16471_s7 + $0x240] sm:$0xff]  }
  0x96   : > { %13403 = vmatprep.subr.bf16.mxu1 %v14991_v22  ;;  %v15032_v16 = vld [vmem:[%s16471_s7 + $0x1f8] sm:$0xff]   ;;  %v15036_v21 = vld [vmem:[%s16471_s7 + $0x2c0] sm:$0xff]   ;;  %v15043_v29 = vld [vmem:[%s16471_s7 + $0x250] sm:$0xff]  }
  0x97   : > { %v15033_v17 = vld [vmem:[%s16471_s7 + $0x138] sm:$0xff]   ;;  %v15037_v22 = vld [vmem:[%s16471_s7 + $0x200] sm:$0xff]   ;;  %v15055_v41 = vld [vmem:[%s16471_s7 + $0x268] sm:$0xff]  }
  0x98   : > { %13382 = vmatpush3.bf16.msra.mxu0 %v14992_v23  ;;  %v15034_v18 = vld [vmem:[%s16471_s7 + $0x1b8] sm:$0xff]   ;;  %v15038_v23 = vld [vmem:[%s16471_s7 + $0x280] sm:$0xff]   ;;  %v15056_v43 = vld [vmem:[%s16471_s7 + $0x2e8] sm:$0xff]  }
  0x99   : > { %13404 = vmatpush3.bf16.msra.mxu1 %v14993_v24  ;;  %13383 = vmatprep.subr.bf16.mxu0 %v14994_v25  ;;  %v2479_v24 = vcombine.high %v2463_v19, %v2463_v19  ;;  %v15039_v25 = vld [vmem:[%s16471_s7 + $0x248] sm:$0xff]   ;;  %v15048_v34 = vld [vmem:[%s16471_s7 + $0x2d8] sm:$0xff]   ;;  %v15051_v37 = vld [vmem:[%s16471_s7 + $0x260] sm:$0xff]  }
  0x9a   : > { %13405 = vmatprep.subr.bf16.mxu1 %v14995_v26  ;;  %v15040_v26 = vld [vmem:[%s16471_s7 + $0x2c8] sm:$0xff]   ;;  %v15049_v35 = vld [vmem:[%s16471_s7 + $0x218] sm:$0xff]   ;;  %v15052_v38 = vld [vmem:[%s16471_s7 + $0x2e0] sm:$0xff]  }
  0x9b   : > { %v15054_v40 = vld [vmem:[%s16471_s7 + $0x2a0] sm:$0xff]   ;;  %v15057_v44 = vld [vmem:[%s16471_s7 + $0x228] sm:$0xff]  }
  0x9c   : > { %13384 = vmatpush3.bf16.msra.mxu0 %v14996_v27  ;;  %v15041_v27 = vld [vmem:[%s16471_s7 + $0x208] sm:$0xff]  }
  0x9d   : > { %13406 = vmatpush3.bf16.msra.mxu1 %v14997_v28  ;;  %13385 = vmatprep.subr.bf16.mxu0 %v14998_v30  ;;  %v15042_v28 = vld [vmem:[%s16471_s7 + $0x288] sm:$0xff]   ;;  %v15044_v30 = vld [vmem:[%s16471_s7 + $0x2d0] sm:$0xff]  }
  0x9e   : > { %13407 = vmatprep.subr.bf16.mxu1 %v14999_v31  ;;  %v15045_v31 = vld [vmem:[%s16471_s7 + $0x210] sm:$0xff]   ;;  %v15058_v45 = vld [vmem:[%s16471_s7 + $0x2a8] sm:$0xff]  }
  0x9f   : > { %v354_v47 = vld [vmem:[%s16493_s26 + $0x8] sm:$0xff] }
  0xa0   : > { %13386 = vmatpush3.bf16.msra.mxu0 %v15000_v32  ;;  %v15046_v32 = vld [vmem:[%s16471_s7 + $0x290] sm:$0xff]   ;;  %v2489_v49 = vrot.slane %v354_v47, %v16545_v42 }
  0xa1   : > { %13408 = vmatpush3.bf16.msra.mxu1 %v15001_v33  ;;  %13415 = vmatprep.subr.bf16.mxu0 %v15003_v36  ;;  %v15047_v33 = vld [vmem:[%s16471_s7 + $0x258] sm:$0xff]  }
  0xa2   : > { %13437 = vmatprep.subr.bf16.mxu1 %v15004_v39  ;;  %v15050_v36 = vld [vmem:[%s16471_s7 + $0x298] sm:$0xff]   ;;  %v15053_v39 = vld [vmem:[%s16471_s7 + $0x220] sm:$0xff]  }
  0xa3   : > { %9522 = vmatmul.mubr.bf16.vlgmr.msra.gmra.mrb[0].mxu0 %v2456_v46  ;;  %v15059_v46 = vld [vmem:[%s16471_s7 + $0x270] sm:$0xff]  }
  0xa4   : > { %13416 = vmatpush3.bf16.msra.mxu0 %v15005_v48  ;;  %9562 = vmatmul.mubr.bf16.vlgmr.msra.gmra.mrb[0].mxu1 %v2478_v52  ;;  %v15060_v48 = vld [vmem:[%s16471_s7 + $0x2f0] sm:$0xff]  }
  0xa5   : > { %13417 = vmatprep.subr.bf16.mxu0 %v15007_v53  ;;  %13438 = vmatpush3.bf16.msra.mxu1 %v15006_v50  ;;  %v2482_v50 = vcombine.high %v354_v47, %v354_v47  ;;  %v15062_v52 = vld [vmem:[%s16471_s7 + $0x2b0] sm:$0xff]   ;;  %v2497_v53 = vcombine.high %v2489_v49, %v2489_v49 }
  0xa6   : > { %9601 = vmatprep.mubr.bf16.mxu0 %v2477_v51  ;;  %13439 = vmatprep.subr.bf16.mxu1 %v15008_v55  ;;  %v15061_v51 = vld [vmem:[%s16471_s7 + $0x230] sm:$0xff]   ;;  %v15063_v55 = vld [vmem:[%s16471_s7 + $0x278] sm:$0xff]  }
  0xa7   : > { %9641 = vmatprep.mubr.bf16.mxu1 %v2481_v57  ;;  %v16619_v54 = vrot.slane %v2482_v50, %v16545_v42  ;;  %v2519_v57 = vrot.slane %v2497_v53, %v16545_v42  ;;  %v15110_v47 = vld [vmem:[%s16471_s7 + $0x410] sm:$0xff]   ;;  %v15113_v50 = vld [vmem:[%s16471_s7 + $0x4d8] sm:$0xff]   ;;  %v15116_v53 = vld [vmem:[%s16471_s7 + $0x460] sm:$0xff]  }
  0xa8   : > { %13418 = vmatpush3.bf16.msra.mxu0 %v15009_v56  ;;  %v15064_v56 = vld [vmem:[%s16471_s7 + $0x2f8] sm:$0xff]  }
  0xa9   : > { %13419 = vmatprep.subr.bf16.mxu0 %v15011_v59  ;;  %13440 = vmatpush3.bf16.msra.mxu1 %v15010_v58  ;;  %v2498_v58 = vcombine.high %v16619_v54, %v16619_v54  ;;  %v15065_v59 = vld [vmem:[%s16471_s7 + $0x238] sm:$0xff]  }
  0xaa   : > { %13441 = vmatprep.subr.bf16.mxu1 %v15012_v60  ;;  %v15066_v60 = vld [vmem:[%s16471_s7 + $0x2b8] sm:$0xff]  }
  0xac   : > { %13420 = vmatpush3.bf16.msra.mxu0 %v15013_v61  ;;  %v2529_v61 = vcombine.high %v2519_v57, %v2519_v57 }
  0xad   : > { %13421 = vmatprep.subr.bf16.mxu0 %v15015_v63  ;;  %13442 = vmatpush3.bf16.msra.mxu1 %v15014_v62  ;;  %v2505_v62 = vrot.slane %v2489_v49, %v16545_v42  ;;  %v15067_v63 = vld [vmem:[%s16471_s7 + $0x340] sm:$0xff]   ;;  %v15112_v49 = vld [vmem:[%s16471_s7 + $0x458] sm:$0xff]  }
  0xae   : > { %13443 = vmatprep.subr.bf16.mxu1 %v15016_v0  ;;  %v15068_v0 = vld [vmem:[%s16471_s7 + $0x3c0] sm:$0xff]  }
  0xb0   : > { %13422 = vmatpush3.bf16.msra.mxu0 %v15017_v1  ;;  %v2526_v1 = vrot.slane %v2498_v58, %v16545_v42  ;;  %v15121_v58 = vld [vmem:[%s16471_s7 + $0x4e8] sm:$0xff]  }
  0xb1   : > { %13423 = vmatprep.subr.bf16.mxu0 %v15019_v3  ;;  %13444 = vmatpush3.bf16.msra.mxu1 %v15018_v2  ;;  %v15069_v2 = vld [vmem:[%s16471_s7 + $0x300] sm:$0xff]  }
  0xb2   : > { %13445 = vmatprep.subr.bf16.mxu1 %v15020_v4  ;;  %v15070_v3 = vld [vmem:[%s16471_s7 + $0x380] sm:$0xff]   ;;  %v2527_v4 = vcombine.high %v2505_v62, %v2505_v62 }
  0xb4   : > { %13424 = vmatpush3.bf16.msra.mxu0 %v15021_v5  ;;  %v15071_v5 = vld [vmem:[%s16471_s7 + $0x348] sm:$0xff]  }
  0xb5   : > { %13425 = vmatprep.subr.bf16.mxu0 %v15023_v7  ;;  %13446 = vmatpush3.bf16.msra.mxu1 %v15022_v6  ;;  %v15072_v6 = vld [vmem:[%s16471_s7 + $0x3c8] sm:$0xff]   ;;  %v2530_v7 = vcombine.high %v2526_v1, %v2526_v1 }
  0xb6   : > { %13447 = vmatprep.subr.bf16.mxu1 %v15024_v8  ;;  %v15073_v8 = vld [vmem:[%s16471_s7 + $0x308] sm:$0xff]  }
  0xb8   : > { %13426 = vmatpush3.bf16.msra.mxu0 %v15025_v9  ;;  %v15074_v9 = vld [vmem:[%s16471_s7 + $0x388] sm:$0xff]  }
  0xb9   : > { %13427 = vmatprep.subr.bf16.mxu0 %v15027_v11  ;;  %13448 = vmatpush3.bf16.msra.mxu1 %v15026_v10  ;;  %v15075_v10 = vld [vmem:[%s16471_s7 + $0x350] sm:$0xff]  }
  0xba   : > { %13449 = vmatprep.subr.bf16.mxu1 %v15028_v12  ;;  %v15076_v11 = vld [vmem:[%s16471_s7 + $0x3d0] sm:$0xff]  }
  0xbb   : > { %v15077_v12 = vld [vmem:[%s16471_s7 + $0x310] sm:$0xff]  }
  0xbc   : > { %13428 = vmatpush3.bf16.msra.mxu0 %v15029_v13  ;;  %v15078_v13 = vld [vmem:[%s16471_s7 + $0x390] sm:$0xff]  }
  0xbd   : > { %13429 = vmatprep.subr.bf16.mxu0 %v15031_v15  ;;  %13450 = vmatpush3.bf16.msra.mxu1 %v15030_v14  ;;  %v15079_v14 = vld [vmem:[%s16471_s7 + $0x358] sm:$0xff]  }
  0xbe   : > { %13451 = vmatprep.subr.bf16.mxu1 %v15032_v16  ;;  %v15080_v15 = vld [vmem:[%s16471_s7 + $0x3d8] sm:$0xff]  }
  0xbf   : > { %v15081_v16 = vld [vmem:[%s16471_s7 + $0x318] sm:$0xff]  }
  0xc0   : > { %13430 = vmatpush3.bf16.msra.mxu0 %v15033_v17  ;;  %v15082_v17 = vld [vmem:[%s16471_s7 + $0x398] sm:$0xff]  }
  0xc1   : > { %13459 = vmatprep.subr.bf16.mxu0 %v15035_v20  ;;  %13452 = vmatpush3.bf16.msra.mxu1 %v15034_v18  ;;  %v15083_v18 = vld [vmem:[%s16471_s7 + $0x360] sm:$0xff]  }
  0xc2   : > { %13481 = vmatprep.subr.bf16.mxu1 %v15036_v21  ;;  %v15085_v20 = vld [vmem:[%s16471_s7 + $0x320] sm:$0xff]  }
  0xc3   : > { %9602 = vmatmul.mubr.bf16.vlgmr.msra.gmra.mrb[4].mxu0 %v2463_v19  ;;  %v15084_v19 = vld [vmem:[%s16471_s7 + $0x3e0] sm:$0xff]  }
  0xc4   : > { %13460 = vmatpush3.bf16.msra.mxu0 %v15037_v22  ;;  %9642 = vmatmul.mubr.bf16.vlgmr.msra.gmra.mrb[4].mxu1 %v2479_v24  ;;  %v15086_v21 = vld [vmem:[%s16471_s7 + $0x3a0] sm:$0xff]   ;;  %v15087_v22 = vld [vmem:[%s16471_s7 + $0x368] sm:$0xff]  }
  0xc5   : > { %13461 = vmatprep.subr.bf16.mxu0 %v15039_v25  ;;  %13482 = vmatpush3.bf16.msra.mxu1 %v15038_v23  ;;  %v15088_v23 = vld [vmem:[%s16471_s7 + $0x3e8] sm:$0xff]  }
  0xc6   : > { %13483 = vmatprep.subr.bf16.mxu1 %v15040_v26  ;;  %9681 = vmatprep.mubr.bf16.mxu0 %v2519_v57  ;;  %v15089_v24 = vld [vmem:[%s16471_s7 + $0x328] sm:$0xff]   ;;  %v15091_v26 = vld [vmem:[%s16471_s7 + $0x370] sm:$0xff]  }
  0xc7   : > { %9721 = vmatprep.mubr.bf16.mxu1 %v2529_v61  ;;  %v15090_v25 = vld [vmem:[%s16471_s7 + $0x3a8] sm:$0xff]   ;;  %v15124_v61 = vld [vmem:[%s16471_s7 + $0x470] sm:$0xff]  }
  0xc8   : > { %13462 = vmatpush3.bf16.msra.mxu0 %v15041_v27  ;;  %v15092_v27 = vld [vmem:[%s16471_s7 + $0x3f0] sm:$0xff]   ;;  %v15120_v57 = vld [vmem:[%s16471_s7 + $0x468] sm:$0xff]  }
  0xc9   : > { %13463 = vmatprep.subr.bf16.mxu0 %v15043_v29  ;;  %13484 = vmatpush3.bf16.msra.mxu1 %v15042_v28  ;;  %v15093_v28 = vld [vmem:[%s16471_s7 + $0x330] sm:$0xff]  }
  0xca   : > { %13485 = vmatprep.subr.bf16.mxu1 %v15044_v30  ;;  %v15094_v29 = vld [vmem:[%s16471_s7 + $0x3b0] sm:$0xff]   ;;  %v15095_v30 = vld [vmem:[%s16471_s7 + $0x378] sm:$0xff]  }
  0xcc   : > { %13464 = vmatpush3.bf16.msra.mxu0 %v15045_v31  ;;  %v15096_v31 = vld [vmem:[%s16471_s7 + $0x3f8] sm:$0xff]  }
  0xcd   : > { %13465 = vmatprep.subr.bf16.mxu0 %v15047_v33  ;;  %13486 = vmatpush3.bf16.msra.mxu1 %v15046_v32  ;;  %v15097_v32 = vld [vmem:[%s16471_s7 + $0x338] sm:$0xff]  }
  0xce   : > { %13487 = vmatprep.subr.bf16.mxu1 %v15048_v34  ;;  %v15098_v33 = vld [vmem:[%s16471_s7 + $0x3b8] sm:$0xff]   ;;  %v2512_v34 = vrot.slane %v16619_v54, %v16545_v42  ;;  %v15117_v54 = vld [vmem:[%s16471_s7 + $0x4e0] sm:$0xff]  }
  0xd0   : > { %13466 = vmatpush3.bf16.msra.mxu0 %v15049_v35  ;;  %v15100_v35 = vld [vmem:[%s16471_s7 + $0x440] sm:$0xff]  }
  0xd1   : > { %13467 = vmatprep.subr.bf16.mxu0 %v15051_v37  ;;  %13488 = vmatpush3.bf16.msra.mxu1 %v15050_v36  ;;  %v15101_v36 = vld [vmem:[%s16471_s7 + $0x4c0] sm:$0xff]  }
  0xd2   : > { %13489 = vmatprep.subr.bf16.mxu1 %v15052_v38  ;;  %v15102_v37 = vld [vmem:[%s16471_s7 + $0x400] sm:$0xff]  }
  0xd3   : > { %v15103_v38 = vld [vmem:[%s16471_s7 + $0x480] sm:$0xff]  }
  0xd4   : > { %13468 = vmatpush3.bf16.msra.mxu0 %v15053_v39  ;;  %v2528_v39 = vcombine.high %v2512_v34, %v2512_v34 }
  0xd5   : > { %13469 = vmatprep.subr.bf16.mxu0 %v15055_v41  ;;  %13490 = vmatpush3.bf16.msra.mxu1 %v15054_v40  ;;  %v15104_v40 = vld [vmem:[%s16471_s7 + $0x448] sm:$0xff]  }
  0xd6   : > { %13491 = vmatprep.subr.bf16.mxu1 %v15056_v43  ;;  %v15105_v41 = vld [vmem:[%s16471_s7 + $0x4c8] sm:$0xff]  }
  0xd7   : > { %v15106_v43 = vld [vmem:[%s16471_s7 + $0x408] sm:$0xff]  }
  0xd8   : > { %13470 = vmatpush3.bf16.msra.mxu0 %v15057_v44  ;;  %v15107_v44 = vld [vmem:[%s16471_s7 + $0x488] sm:$0xff]  }
  0xd9   : > { %13471 = vmatprep.subr.bf16.mxu0 %v15059_v46  ;;  %13492 = vmatpush3.bf16.msra.mxu1 %v15058_v45  ;;  %v15108_v45 = vld [vmem:[%s16471_s7 + $0x450] sm:$0xff]  }
  0xda   : > { %13493 = vmatprep.subr.bf16.mxu1 %v15060_v48  ;;  %v15109_v46 = vld [vmem:[%s16471_s7 + $0x4d0] sm:$0xff]  }
  0xdb   : > { %v15111_v48 = vld [vmem:[%s16471_s7 + $0x490] sm:$0xff]  }
  0xdc   : > { %13472 = vmatpush3.bf16.msra.mxu0 %v15061_v51  ;;  %v15114_v51 = vld [vmem:[%s16471_s7 + $0x418] sm:$0xff]  }
  0xdd   : > { %13473 = vmatprep.subr.bf16.mxu0 %v15063_v55  ;;  %13494 = vmatpush3.bf16.msra.mxu1 %v15062_v52  ;;  %v15115_v52 = vld [vmem:[%s16471_s7 + $0x498] sm:$0xff]   ;;  %v15118_v55 = vld [vmem:[%s16471_s7 + $0x420] sm:$0xff]  }
  0xde   : > { %13495 = vmatprep.subr.bf16.mxu1 %v15064_v56  ;;  %v15119_v56 = vld [vmem:[%s16471_s7 + $0x4a0] sm:$0xff]  }
  0xe0   : > { %13474 = vmatpush3.bf16.msra.mxu0 %v15065_v59  ;;  %v15122_v59 = vld [vmem:[%s16471_s7 + $0x428] sm:$0xff]  }
  0xe1   : > { %13503 = vmatprep.subr.bf16.mxu0 %v15067_v63  ;;  %13496 = vmatpush3.bf16.msra.mxu1 %v15066_v60  ;;  %v15123_v60 = vld [vmem:[%s16471_s7 + $0x4a8] sm:$0xff]   ;;  %v15125_v63 = vld [vmem:[%s16471_s7 + $0x4f0] sm:$0xff]  }
  0xe2   : > { %13525 = vmatprep.subr.bf16.mxu1 %v15068_v0 }
  0xe3   : > { %9682 = vmatmul.mubr.bf16.vlgmr.msra.gmra.mrb[8].mxu0 %v2505_v62  ;;  %v355_v62 = vld [vmem:[%s16493_s26 + $0x10] sm:$0xff] }
  0xe4   : > { %13504 = vmatpush3.bf16.msra.mxu0 %v15069_v2  ;;  %9761 = vmatprep.mubr.bf16.mxu0 %v2526_v1  ;;  %v2538_v0 = vrot.slane %v355_v62, %v16545_v42  ;;  %v2531_v1 = vcombine.high %v355_v62, %v355_v62  ;;  %v15126_v2 = vld [vmem:[%s16471_s7 + $0x430] sm:$0xff]  }
  0xe5   : > { %9722 = vmatmul.mubr.bf16.vlgmr.msra.gmra.mrb[8].mxu1 %v2527_v4  ;;  %13505 = vmatprep.subr.bf16.mxu0 %v15071_v5  ;;  %v15175_v62 = vld [vmem:[%s16471_s7 + $0x610] sm:$0xff]  }
  0xe6   : > { %13526 = vmatpush3.bf16.msra.mxu1 %v15070_v3  ;;  %9801 = vmatprep.mubr.bf16.mxu1 %v2530_v7  ;;  %v15127_v3 = vld [vmem:[%s16471_s7 + $0x4b0] sm:$0xff]   ;;  %v2546_v4 = vcombine.high %v2538_v0, %v2538_v0  ;;  %v16695_v5 = vrot.slane %v2531_v1, %v16545_v42  ;;  %v15129_v7 = vld [vmem:[%s16471_s7 + $0x4f8] sm:$0xff]  }
  0xe7   : > { %13527 = vmatprep.subr.bf16.mxu1 %v15072_v6  ;;  %v15128_v6 = vld [vmem:[%s16471_s7 + $0x478] sm:$0xff]  }
  0xe8   : > { %13506 = vmatpush3.bf16.msra.mxu0 %v15073_v8  ;;  %v2568_v8 = vrot.slane %v2546_v4, %v16545_v42  ;;  %v15178_v1 = vld [vmem:[%s16471_s7 + $0x6d8] sm:$0xff]   ;;  %v15181_v4 = vld [vmem:[%s16471_s7 + $0x660] sm:$0xff]  }
  0xe9   : > { %13507 = vmatprep.subr.bf16.mxu0 %v15075_v10  ;;  %v15130_v10 = vld [vmem:[%s16471_s7 + $0x438] sm:$0xff]  }
  0xea   : > { %13528 = vmatpush3.bf16.msra.mxu1 %v15074_v9  ;;  %v2547_v9 = vcombine.high %v16695_v5, %v16695_v5 }
  0xeb   : > { %13529 = vmatprep.subr.bf16.mxu1 %v15076_v11  ;;  %v15131_v11 = vld [vmem:[%s16471_s7 + $0x4b8] sm:$0xff]  }
  0xec   : > { %13508 = vmatpush3.bf16.msra.mxu0 %v15077_v12  ;;  %v2578_v12 = vcombine.high %v2568_v8, %v2568_v8 }
  0xed   : > { %13509 = vmatprep.subr.bf16.mxu0 %v15079_v14  ;;  %v15132_v14 = vld [vmem:[%s16471_s7 + $0x540] sm:$0xff]  }
  0xee   : > { %13530 = vmatpush3.bf16.msra.mxu1 %v15078_v13  ;;  %v2554_v13 = vrot.slane %v2538_v0, %v16545_v42  ;;  %v15177_v0 = vld [vmem:[%s16471_s7 + $0x658] sm:$0xff]  }
  0xef   : > { %13531 = vmatprep.subr.bf16.mxu1 %v15080_v15  ;;  %v15133_v15 = vld [vmem:[%s16471_s7 + $0x5c0] sm:$0xff]  }
  0xf0   : > { %13510 = vmatpush3.bf16.msra.mxu0 %v15081_v16  ;;  %v2575_v16 = vrot.slane %v2547_v9, %v16545_v42  ;;  %v15186_v9 = vld [vmem:[%s16471_s7 + $0x6e8] sm:$0xff]  }
  0xf1   : > { %13511 = vmatprep.subr.bf16.mxu0 %v15083_v18  ;;  %v15135_v18 = vld [vmem:[%s16471_s7 + $0x580] sm:$0xff]  }
  0xf2   : > { %13532 = vmatpush3.bf16.msra.mxu1 %v15082_v17  ;;  %v15134_v17 = vld [vmem:[%s16471_s7 + $0x500] sm:$0xff]  }
  0xf3   : > { %13533 = vmatprep.subr.bf16.mxu1 %v15084_v19  ;;  %v2576_v19 = vcombine.high %v2554_v13, %v2554_v13 }
  0xf4   : > { %13512 = vmatpush3.bf16.msra.mxu0 %v15085_v20  ;;  %v15136_v20 = vld [vmem:[%s16471_s7 + $0x548] sm:$0xff]  }
  0xf5   : > { %13513 = vmatprep.subr.bf16.mxu0 %v15087_v22  ;;  %v2579_v22 = vcombine.high %v2575_v16, %v2575_v16 }
  0xf6   : > { %13534 = vmatpush3.bf16.msra.mxu1 %v15086_v21  ;;  %v15137_v21 = vld [vmem:[%s16471_s7 + $0x5c8] sm:$0xff]  }
  0xf7   : > { %13535 = vmatprep.subr.bf16.mxu1 %v15088_v23  ;;  %v15138_v23 = vld [vmem:[%s16471_s7 + $0x508] sm:$0xff]  }
  0xf8   : > { %13514 = vmatpush3.bf16.msra.mxu0 %v15089_v24  ;;  %v15139_v24 = vld [vmem:[%s16471_s7 + $0x588] sm:$0xff]  }
  0xf9   : > { %13515 = vmatprep.subr.bf16.mxu0 %v15091_v26  ;;  %v15141_v26 = vld [vmem:[%s16471_s7 + $0x5d0] sm:$0xff]  }
  0xfa   : > { %13536 = vmatpush3.bf16.msra.mxu1 %v15090_v25  ;;  %v15140_v25 = vld [vmem:[%s16471_s7 + $0x550] sm:$0xff]  }
  0xfb   : > { %13537 = vmatprep.subr.bf16.mxu1 %v15092_v27  ;;  %v15142_v27 = vld [vmem:[%s16471_s7 + $0x510] sm:$0xff]  }
  0xfc   : > { %13516 = vmatpush3.bf16.msra.mxu0 %v15093_v28  ;;  %v15143_v28 = vld [vmem:[%s16471_s7 + $0x590] sm:$0xff]  }
  0xfd   : > { %13517 = vmatprep.subr.bf16.mxu0 %v15095_v30  ;;  %v15145_v30 = vld [vmem:[%s16471_s7 + $0x5d8] sm:$0xff]  }
  0xfe   : > { %13538 = vmatpush3.bf16.msra.mxu1 %v15094_v29  ;;  %v15144_v29 = vld [vmem:[%s16471_s7 + $0x558] sm:$0xff]  }
  0xff   : > { %13539 = vmatprep.subr.bf16.mxu1 %v15096_v31  ;;  %v15146_v31 = vld [vmem:[%s16471_s7 + $0x518] sm:$0xff]  }
 0x100   : > { %13518 = vmatpush3.bf16.msra.mxu0 %v15097_v32  ;;  %v15147_v32 = vld [vmem:[%s16471_s7 + $0x598] sm:$0xff]  }
 0x101   : > { %13547 = vmatprep.subr.bf16.mxu0 %v15100_v35  ;;  %v15150_v35 = vld [vmem:[%s16471_s7 + $0x520] sm:$0xff]  }
 0x102   : > { %13540 = vmatpush3.bf16.msra.mxu1 %v15098_v33  ;;  %v15148_v33 = vld [vmem:[%s16471_s7 + $0x560] sm:$0xff]  }
 0x103   : > { %9762 = vmatmul.mubr.bf16.vlgmr.msra.gmra.mrb[12].mxu0 %v2512_v34  ;;  %13569 = vmatprep.subr.bf16.mxu1 %v15101_v36  ;;  %v15149_v34 = vld [vmem:[%s16471_s7 + $0x5e0] sm:$0xff]  }
 0x104   : > { %13548 = vmatpush3.bf16.msra.mxu0 %v15102_v37  ;;  %9841 = vmatprep.mubr.bf16.mxu0 %v2568_v8  ;;  %v15151_v36 = vld [vmem:[%s16471_s7 + $0x5a0] sm:$0xff]   ;;  %v15152_v37 = vld [vmem:[%s16471_s7 + $0x568] sm:$0xff]  }
 0x105   : > { %9802 = vmatmul.mubr.bf16.vlgmr.msra.gmra.mrb[12].mxu1 %v2528_v39  ;;  %13549 = vmatprep.subr.bf16.mxu0 %v15104_v40  ;;  %v15154_v39 = vld [vmem:[%s16471_s7 + $0x528] sm:$0xff]  }
 0x106   : > { %13570 = vmatpush3.bf16.msra.mxu1 %v15103_v38  ;;  %9881 = vmatprep.mubr.bf16.mxu1 %v2578_v12  ;;  %v15153_v38 = vld [vmem:[%s16471_s7 + $0x5e8] sm:$0xff]   ;;  %v15189_v12 = vld [vmem:[%s16471_s7 + $0x670] sm:$0xff]  }
 0x107   : > { %13571 = vmatprep.subr.bf16.mxu1 %v15105_v41  ;;  %v15155_v40 = vld [vmem:[%s16471_s7 + $0x5a8] sm:$0xff]   ;;  %v15156_v41 = vld [vmem:[%s16471_s7 + $0x570] sm:$0xff]  }
 0x108   : > { %13550 = vmatpush3.bf16.msra.mxu0 %v15106_v43  ;;  %v15157_v43 = vld [vmem:[%s16471_s7 + $0x5f0] sm:$0xff]   ;;  %v15185_v8 = vld [vmem:[%s16471_s7 + $0x668] sm:$0xff]  }
 0x109   : > { %13551 = vmatprep.subr.bf16.mxu0 %v15108_v45  ;;  %v15159_v45 = vld [vmem:[%s16471_s7 + $0x5b0] sm:$0xff]  }
 0x10a   : > { %13572 = vmatpush3.bf16.msra.mxu1 %v15107_v44  ;;  %v15158_v44 = vld [vmem:[%s16471_s7 + $0x530] sm:$0xff]  }
 0x10b   : > { %13573 = vmatprep.subr.bf16.mxu1 %v15109_v46  ;;  %v15160_v46 = vld [vmem:[%s16471_s7 + $0x578] sm:$0xff]  }
 0x10c   : > { %13552 = vmatpush3.bf16.msra.mxu0 %v15110_v47  ;;  %v15161_v47 = vld [vmem:[%s16471_s7 + $0x5f8] sm:$0xff]  }
 0x10d   : > { %13553 = vmatprep.subr.bf16.mxu0 %v15112_v49  ;;  %v15163_v49 = vld [vmem:[%s16471_s7 + $0x5b8] sm:$0xff]  }
 0x10e   : > { %13574 = vmatpush3.bf16.msra.mxu1 %v15111_v48  ;;  %v15162_v48 = vld [vmem:[%s16471_s7 + $0x538] sm:$0xff]  }
 0x10f   : > { %13575 = vmatprep.subr.bf16.mxu1 %v15113_v50  ;;  %v2561_v50 = vrot.slane %v16695_v5, %v16545_v42  ;;  %v15182_v5 = vld [vmem:[%s16471_s7 + $0x6e0] sm:$0xff]  }
 0x110   : > { %13554 = vmatpush3.bf16.msra.mxu0 %v15114_v51  ;;  %v15165_v51 = vld [vmem:[%s16471_s7 + $0x640] sm:$0xff]  }
 0x111   : > { %13555 = vmatprep.subr.bf16.mxu0 %v15116_v53  ;;  %v15167_v53 = vld [vmem:[%s16471_s7 + $0x600] sm:$0xff]  }
 0x112   : > { %13576 = vmatpush3.bf16.msra.mxu1 %v15115_v52  ;;  %v15166_v52 = vld [vmem:[%s16471_s7 + $0x6c0] sm:$0xff]  }
 0x113   : > { %13577 = vmatprep.subr.bf16.mxu1 %v15117_v54  ;;  %v15168_v54 = vld [vmem:[%s16471_s7 + $0x680] sm:$0xff]  }
 0x114   : > { %13556 = vmatpush3.bf16.msra.mxu0 %v15118_v55  ;;  %v2577_v55 = vcombine.high %v2561_v50, %v2561_v50 }
 0x115   : > { %13557 = vmatprep.subr.bf16.mxu0 %v15120_v57  ;;  %v15170_v57 = vld [vmem:[%s16471_s7 + $0x6c8] sm:$0xff]  }
 0x116   : > { %13578 = vmatpush3.bf16.msra.mxu1 %v15119_v56  ;;  %v15169_v56 = vld [vmem:[%s16471_s7 + $0x648] sm:$0xff]  }
 0x117   : > { %13579 = vmatprep.subr.bf16.mxu1 %v15121_v58  ;;  %v15171_v58 = vld [vmem:[%s16471_s7 + $0x608] sm:$0xff]  }
 0x118   : > { %13558 = vmatpush3.bf16.msra.mxu0 %v15122_v59  ;;  %v15172_v59 = vld [vmem:[%s16471_s7 + $0x688] sm:$0xff]  }
 0x119   : > { %13559 = vmatprep.subr.bf16.mxu0 %v15124_v61  ;;  %v15174_v61 = vld [vmem:[%s16471_s7 + $0x6d0] sm:$0xff]  }
 0x11a   : > { %13580 = vmatpush3.bf16.msra.mxu1 %v15123_v60  ;;  %v15173_v60 = vld [vmem:[%s16471_s7 + $0x650] sm:$0xff]  }
 0x11b   : > { %13581 = vmatprep.subr.bf16.mxu1 %v15125_v63  ;;  %v15176_v63 = vld [vmem:[%s16471_s7 + $0x690] sm:$0xff]  }
 0x11c   : > { %13560 = vmatpush3.bf16.msra.mxu0 %v15126_v2  ;;  %v15179_v2 = vld [vmem:[%s16471_s7 + $0x618] sm:$0xff]  }
 0x11d   : > { %13561 = vmatprep.subr.bf16.mxu0 %v15128_v6  ;;  %v15183_v6 = vld [vmem:[%s16471_s7 + $0x620] sm:$0xff]  }
 0x11e   : > { %13582 = vmatpush3.bf16.msra.mxu1 %v15127_v3  ;;  %v15180_v3 = vld [vmem:[%s16471_s7 + $0x698] sm:$0xff]  }
 0x11f   : > { %13583 = vmatprep.subr.bf16.mxu1 %v15129_v7  ;;  %v15184_v7 = vld [vmem:[%s16471_s7 + $0x6a0] sm:$0xff]  }
 0x120   : > { %13562 = vmatpush3.bf16.msra.mxu0 %v15130_v10  ;;  %v15187_v10 = vld [vmem:[%s16471_s7 + $0x628] sm:$0xff]  }
 0x121   : > { %13591 = vmatprep.subr.bf16.mxu0 %v15132_v14  ;;  %v356_v14 = vld [vmem:[%s16493_s26 + $0x18] sm:$0xff] }
 0x122   : > { %13584 = vmatpush3.bf16.msra.mxu1 %v15131_v11  ;;  %v15188_v11 = vld [vmem:[%s16471_s7 + $0x6a8] sm:$0xff]  }
 0x123   : > { %9842 = vmatmul.mubr.bf16.vlgmr.msra.gmra.mrb[16].mxu0 %v2554_v13  ;;  %13613 = vmatprep.subr.bf16.mxu1 %v15133_v15  ;;  %v15190_v13 = vld [vmem:[%s16471_s7 + $0x6f0] sm:$0xff]  }
 0x124   : > { %13592 = vmatpush3.bf16.msra.mxu0 %v15134_v17  ;;  %9921 = vmatprep.mubr.bf16.mxu0 %v2575_v16  ;;  %v15191_v15 = vld [vmem:[%s16471_s7 + $0x630] sm:$0xff]   ;;  %v2587_v16 = vrot.slane %v356_v14, %v16545_v42  ;;  %v2580_v17 = vcombine.high %v356_v14, %v356_v14  ;;  %v15231_v14 = vld [vmem:[%s16471_s7 + $0x8c0] sm:$0xff]  }
 0x125   : > { %9882 = vmatmul.mubr.bf16.vlgmr.msra.gmra.mrb[16].mxu1 %v2576_v19  ;;  %13593 = vmatprep.subr.bf16.mxu0 %v15136_v20  ;;  %v15193_v19 = vld [vmem:[%s16471_s7 + $0x678] sm:$0xff]  }
 0x126   : > { %13614 = vmatpush3.bf16.msra.mxu1 %v15135_v18  ;;  %9961 = vmatprep.mubr.bf16.mxu1 %v2579_v22  ;;  %v15192_v18 = vld [vmem:[%s16471_s7 + $0x6b0] sm:$0xff]   ;;  %v2595_v20 = vcombine.high %v2587_v16, %v2587_v16  ;;  %v15194_v22 = vld [vmem:[%s16471_s7 + $0x6f8] sm:$0xff]  }
 0x127   : > { %13615 = vmatprep.subr.bf16.mxu1 %v15137_v21  ;;  %v16772_v21 = vrot.slane %v2580_v17, %v16545_v42 }
 0x128   : > { %13594 = vmatpush3.bf16.msra.mxu0 %v15138_v23  ;;  %v15195_v23 = vld [vmem:[%s16471_s7 + $0x638] sm:$0xff]  }
 0x129   : > { %13595 = vmatprep.subr.bf16.mxu0 %v15140_v25  ;;  %v2596_v25 = vcombine.high %v16772_v21, %v16772_v21 }
 0x12a   : > { %13616 = vmatpush3.bf16.msra.mxu1 %v15139_v24  ;;  %v2617_v24 = vrot.slane %v2595_v20, %v16545_v42  ;;  %v15236_v20 = vld [vmem:[%s16471_s7 + $0x808] sm:$0xff]  }
 0x12b   : > { %13617 = vmatprep.subr.bf16.mxu1 %v15141_v26  ;;  %v15196_v26 = vld [vmem:[%s16471_s7 + $0x6b8] sm:$0xff]  }
 0x12c   : > { %13596 = vmatpush3.bf16.msra.mxu0 %v15142_v27  ;;  %v2627_v27 = vcombine.high %v2617_v24, %v2617_v24 }
 0x12d   : > { %13597 = vmatprep.subr.bf16.mxu0 %v15144_v29  ;;  %v15197_v29 = vld [vmem:[%s16471_s7 + $0x740] sm:$0xff]  }
 0x12e   : > { %13618 = vmatpush3.bf16.msra.mxu1 %v15143_v28  ;;  %v2603_v28 = vrot.slane %v2587_v16, %v16545_v42  ;;  %v15233_v16 = vld [vmem:[%s16471_s7 + $0x880] sm:$0xff]  }
 0x12f   : > { %13619 = vmatprep.subr.bf16.mxu1 %v15145_v30  ;;  %v15198_v30 = vld [vmem:[%s16471_s7 + $0x7c0] sm:$0xff]  }
 0x130   : > { %13598 = vmatpush3.bf16.msra.mxu0 %v15146_v31  ;;  %v2624_v31 = vrot.slane %v2596_v25, %v16545_v42  ;;  %v15241_v25 = vld [vmem:[%s16471_s7 + $0x890] sm:$0xff]  }
 0x131   : > { %13599 = vmatprep.subr.bf16.mxu0 %v15148_v33  ;;  %v15200_v33 = vld [vmem:[%s16471_s7 + $0x780] sm:$0xff]  }
 0x132   : > { %13620 = vmatpush3.bf16.msra.mxu1 %v15147_v32  ;;  %v15199_v32 = vld [vmem:[%s16471_s7 + $0x700] sm:$0xff]  }
 0x133   : > { %13621 = vmatprep.subr.bf16.mxu1 %v15149_v34  ;;  %v2625_v34 = vcombine.high %v2603_v28, %v2603_v28 }
 0x134   : > { %13600 = vmatpush3.bf16.msra.mxu0 %v15150_v35  ;;  %v15201_v35 = vld [vmem:[%s16471_s7 + $0x748] sm:$0xff]  }
 0x135   : > { %13601 = vmatprep.subr.bf16.mxu0 %v15152_v37  ;;  %v2628_v37 = vcombine.high %v2624_v31, %v2624_v31 }
 0x136   : > { %13622 = vmatpush3.bf16.msra.mxu1 %v15151_v36  ;;  %v15202_v36 = vld [vmem:[%s16471_s7 + $0x7c8] sm:$0xff]  }
 0x137   : > { %13623 = vmatprep.subr.bf16.mxu1 %v15153_v38  ;;  %v15203_v38 = vld [vmem:[%s16471_s7 + $0x708] sm:$0xff]  }
 0x138   : > { %13602 = vmatpush3.bf16.msra.mxu0 %v15154_v39  ;;  %v15204_v39 = vld [vmem:[%s16471_s7 + $0x788] sm:$0xff]  }
 0x139   : > { %13603 = vmatprep.subr.bf16.mxu0 %v15156_v41  ;;  %v15206_v41 = vld [vmem:[%s16471_s7 + $0x7d0] sm:$0xff]  }
 0x13a   : > { %13624 = vmatpush3.bf16.msra.mxu1 %v15155_v40  ;;  %v15205_v40 = vld [vmem:[%s16471_s7 + $0x750] sm:$0xff]  }
 0x13b   : > { %13625 = vmatprep.subr.bf16.mxu1 %v15157_v43  ;;  %v15207_v43 = vld [vmem:[%s16471_s7 + $0x710] sm:$0xff]  }
 0x13c   : > { %13604 = vmatpush3.bf16.msra.mxu0 %v15158_v44  ;;  %v15208_v44 = vld [vmem:[%s16471_s7 + $0x790] sm:$0xff]  }
 0x13d   : > { %13605 = vmatprep.subr.bf16.mxu0 %v15160_v46  ;;  %v15210_v46 = vld [vmem:[%s16471_s7 + $0x7d8] sm:$0xff]  }
 0x13e   : > { %13626 = vmatpush3.bf16.msra.mxu1 %v15159_v45  ;;  %v15209_v45 = vld [vmem:[%s16471_s7 + $0x758] sm:$0xff]  }
 0x13f   : > { %13627 = vmatprep.subr.bf16.mxu1 %v15161_v47  ;;  %v15211_v47 = vld [vmem:[%s16471_s7 + $0x718] sm:$0xff]  }
 0x140   : > { %13606 = vmatpush3.bf16.msra.mxu0 %v15162_v48  ;;  %v15212_v48 = vld [vmem:[%s16471_s7 + $0x798] sm:$0xff]  }
 0x141   : > { %13635 = vmatprep.subr.bf16.mxu0 %v15165_v51  ;;  %v15215_v51 = vld [vmem:[%s16471_s7 + $0x720] sm:$0xff]  }
 0x142   : > { %13628 = vmatpush3.bf16.msra.mxu1 %v15163_v49  ;;  %v15213_v49 = vld [vmem:[%s16471_s7 + $0x760] sm:$0xff]  }
 0x143   : > { %9922 = vmatmul.mubr.bf16.vlgmr.msra.gmra.mrb[20].mxu0 %v2561_v50  ;;  %13657 = vmatprep.subr.bf16.mxu1 %v15166_v52  ;;  %v15214_v50 = vld [vmem:[%s16471_s7 + $0x7e0] sm:$0xff]  }
 0x144   : > { %13636 = vmatpush3.bf16.msra.mxu0 %v15167_v53  ;;  %10001 = vmatprep.mubr.bf16.mxu0 %v2617_v24  ;;  %v15216_v52 = vld [vmem:[%s16471_s7 + $0x7a0] sm:$0xff]   ;;  %v15217_v53 = vld [vmem:[%s16471_s7 + $0x768] sm:$0xff]   ;;  %v15240_v24 = vld [vmem:[%s16471_s7 + $0x810] sm:$0xff]  }
 0x145   : > { %9962 = vmatmul.mubr.bf16.vlgmr.msra.gmra.mrb[20].mxu1 %v2577_v55  ;;  %13637 = vmatprep.subr.bf16.mxu0 %v15169_v56  ;;  %v15219_v55 = vld [vmem:[%s16471_s7 + $0x728] sm:$0xff]  }
 0x146   : > { %13658 = vmatpush3.bf16.msra.mxu1 %v15168_v54  ;;  %10041 = vmatprep.mubr.bf16.mxu1 %v2627_v27  ;;  %v15218_v54 = vld [vmem:[%s16471_s7 + $0x7e8] sm:$0xff]   ;;  %v15243_v27 = vld [vmem:[%s16471_s7 + $0x8d8] sm:$0xff]  }
 0x147   : > { %13659 = vmatprep.subr.bf16.mxu1 %v15170_v57  ;;  %v15220_v56 = vld [vmem:[%s16471_s7 + $0x7a8] sm:$0xff]   ;;  %v15221_v57 = vld [vmem:[%s16471_s7 + $0x770] sm:$0xff]  }
 0x148   : > { %13638 = vmatpush3.bf16.msra.mxu0 %v15171_v58 }
 0x149   : > { %13639 = vmatprep.subr.bf16.mxu0 %v15173_v60 }
 0x14a   : > { %13660 = vmatpush3.bf16.msra.mxu1 %v15172_v59  ;;  %v15222_v59 = vld [vmem:[%s16471_s7 + $0x7f0] sm:$0xff]  }
 0x14b   : > { %13661 = vmatprep.subr.bf16.mxu1 %v15174_v61  ;;  %v15223_v61 = vld [vmem:[%s16471_s7 + $0x730] sm:$0xff]  }
 0x14c   : > { %13640 = vmatpush3.bf16.msra.mxu0 %v15175_v62 }
 0x14d   : > { %13641 = vmatprep.subr.bf16.mxu0 %v15177_v0 }
 0x14e   : > { %13662 = vmatpush3.bf16.msra.mxu1 %v15176_v63 }
 0x14f   : > { %13663 = vmatprep.subr.bf16.mxu1 %v15178_v1  ;;  %v15224_v1 = vld [vmem:[%s16471_s7 + $0x7b0] sm:$0xff]  }
 0x150   : > { %13642 = vmatpush3.bf16.msra.mxu0 %v15179_v2  ;;  %v15225_v2 = vld [vmem:[%s16471_s7 + $0x778] sm:$0xff]  }
 0x151   : > { %13643 = vmatprep.subr.bf16.mxu0 %v15181_v4 }
 0x152   : > { %13664 = vmatpush3.bf16.msra.mxu1 %v15180_v3 }
 0x153   : > { %13665 = vmatprep.subr.bf16.mxu1 %v15182_v5 }
 0x154   : > { %13644 = vmatpush3.bf16.msra.mxu0 %v15183_v6 }
 0x155   : > { %13645 = vmatprep.subr.bf16.mxu0 %v15185_v8 }
 0x156   : > { %13666 = vmatpush3.bf16.msra.mxu1 %v15184_v7  ;;  %v15226_v7 = vld [vmem:[%s16471_s7 + $0x7f8] sm:$0xff]  }
 0x157   : > { %13667 = vmatprep.subr.bf16.mxu1 %v15186_v9  ;;  %v15227_v9 = vld [vmem:[%s16471_s7 + $0x738] sm:$0xff]  }
 0x158   : > { %13646 = vmatpush3.bf16.msra.mxu0 %v15187_v10 }
 0x159   : > { %13647 = vmatprep.subr.bf16.mxu0 %v15189_v12  ;;  %v2610_v12 = vrot.slane %v16772_v21, %v16545_v42  ;;  %v15237_v21 = vld [vmem:[%s16471_s7 + $0x888] sm:$0xff]  }
 0x15a   : > { %13668 = vmatpush3.bf16.msra.mxu1 %v15188_v11  ;;  %v15228_v11 = vld [vmem:[%s16471_s7 + $0x7b8] sm:$0xff]  }
 0x15b   : > { %13669 = vmatprep.subr.bf16.mxu1 %v15190_v13  ;;  %v15230_v13 = vld [vmem:[%s16471_s7 + $0x840] sm:$0xff]   ;;  %v2626_v17 = vcombine.high %v2610_v12, %v2610_v12 }
 0x15c   : > { %13648 = vmatpush3.bf16.msra.mxu0 %v15191_v15  ;;  %v15232_v15 = vld [vmem:[%s16471_s7 + $0x800] sm:$0xff]  }
 0x15d   : > { %13649 = vmatprep.subr.bf16.mxu0 %v15193_v19  ;;  %v15235_v19 = vld [vmem:[%s16471_s7 + $0x8c8] sm:$0xff]  }
 0x15e   : > { %13670 = vmatpush3.bf16.msra.mxu1 %v15192_v18  ;;  %v15234_v18 = vld [vmem:[%s16471_s7 + $0x848] sm:$0xff]  }
 0x15f   : > { %13671 = vmatprep.subr.bf16.mxu1 %v15194_v22  ;;  %v15238_v22 = vld [vmem:[%s16471_s7 + $0x850] sm:$0xff]  }
 0x160   : > { %13650 = vmatpush3.bf16.msra.mxu0 %v15195_v23  ;;  %v15239_v23 = vld [vmem:[%s16471_s7 + $0x8d0] sm:$0xff]  }
 0x161   : > { %13679 = vmatprep.subr.bf16.mxu0 %v15197_v29  ;;  %v15245_v29 = vld [vmem:[%s16471_s7 + $0x898] sm:$0xff]  }
 0x162   : > { %13672 = vmatpush3.bf16.msra.mxu1 %v15196_v26  ;;  %v15242_v26 = vld [vmem:[%s16471_s7 + $0x858] sm:$0xff]  }
 0x163   : > { %10002 = vmatmul.mubr.bf16.vlgmr.msra.gmra.mrb[24].mxu0 %v2603_v28  ;;  %13701 = vmatprep.subr.bf16.mxu1 %v15198_v30  ;;  %v15244_v28 = vld [vmem:[%s16471_s7 + $0x818] sm:$0xff]   ;;  %v15246_v30 = vld [vmem:[%s16471_s7 + $0x860] sm:$0xff]  }
 0x164   : > { %13680 = vmatpush3.bf16.msra.mxu0 %v15199_v32  ;;  %10081 = vmatprep.mubr.bf16.mxu0 %v2624_v31  ;;  %v15247_v31 = vld [vmem:[%s16471_s7 + $0x8e0] sm:$0xff]  }
 0x165   : > { %10042 = vmatmul.mubr.bf16.vlgmr.msra.gmra.mrb[24].mxu1 %v2625_v34  ;;  %13681 = vmatprep.subr.bf16.mxu0 %v15201_v35  ;;  %v15248_v32 = vld [vmem:[%s16471_s7 + $0x820] sm:$0xff]   ;;  %v15250_v34 = vld [vmem:[%s16471_s7 + $0x868] sm:$0xff]  }
 0x166   : > { %13702 = vmatpush3.bf16.msra.mxu1 %v15200_v33  ;;  %10121 = vmatprep.mubr.bf16.mxu1 %v2628_v37  ;;  %v15249_v33 = vld [vmem:[%s16471_s7 + $0x8a0] sm:$0xff]   ;;  %v15251_v35 = vld [vmem:[%s16471_s7 + $0x8e8] sm:$0xff]  }
 0x167   : > { %13703 = vmatprep.subr.bf16.mxu1 %v15202_v36  ;;  %v15252_v36 = vld [vmem:[%s16471_s7 + $0x828] sm:$0xff]  }
 0x168   : > { %13682 = vmatpush3.bf16.msra.mxu0 %v15203_v38  ;;  %v15253_v37 = vld [vmem:[%s16471_s7 + $0x8a8] sm:$0xff]   ;;  %v15254_v38 = vld [vmem:[%s16471_s7 + $0x870] sm:$0xff]  }
 0x169   : > { %13683 = vmatprep.subr.bf16.mxu0 %v15205_v40  ;;  %v15255_v40 = vld [vmem:[%s16471_s7 + $0x8f0] sm:$0xff]  }
 0x16a   : > { %13704 = vmatpush3.bf16.msra.mxu1 %v15204_v39 }
 0x16b   : > { %13705 = vmatprep.subr.bf16.mxu1 %v15206_v41  ;;  %v357_v41 = vld [vmem:[%s16493_s26 + $0x20] sm:$0xff] }
 0x16c   : > { %13684 = vmatpush3.bf16.msra.mxu0 %v15207_v43 }
 0x16d   : > { %13685 = vmatprep.subr.bf16.mxu0 %v15209_v45  ;;  %v2636_v45 = vrot.slane %v357_v41, %v16545_v42 }
 0x16e   : > { %13706 = vmatpush3.bf16.msra.mxu1 %v15208_v44  ;;  %v15256_v44 = vld [vmem:[%s16471_s7 + $0x830] sm:$0xff]  }
 0x16f   : > { %13707 = vmatprep.subr.bf16.mxu1 %v15210_v46  ;;  %v2629_v46 = vcombine.high %v357_v41, %v357_v41 }
 0x170   : > { %13686 = vmatpush3.bf16.msra.mxu0 %v15211_v47 }
 0x171   : > { %13687 = vmatprep.subr.bf16.mxu0 %v15213_v49 }
 0x172   : > { %13708 = vmatpush3.bf16.msra.mxu1 %v15212_v48 }
 0x173   : > { %13709 = vmatprep.subr.bf16.mxu1 %v15214_v50 }
 0x174   : > { %13688 = vmatpush3.bf16.msra.mxu0 %v15215_v51 }
 0x175   : > { %13689 = vmatprep.subr.bf16.mxu0 %v15217_v53  ;;  %v15258_v53 = vld [vmem:[%s16471_s7 + $0x878] sm:$0xff]  }
 0x176   : > { %13710 = vmatpush3.bf16.msra.mxu1 %v15216_v52  ;;  %v13387_v58 = vpop.f32.mrb[0].mxu0  ;;  %v15257_v52 = vld [vmem:[%s16471_s7 + $0x8b0] sm:$0xff]  }
 0x177   : > { %v13388_v60 = vpop.f32.mrb[1].mxu0  ;;  %13711 = vmatprep.subr.bf16.mxu1 %v15218_v54  ;;  %v13409_v62 = vpop.f32.mrb[0].mxu1  ;;  %v2644_v54 = vcombine.high %v2636_v45, %v2636_v45 }
 0x178   : > { %v13389_v63 = vadd.f32 %v13388_v60, %v13387_v58  ;;  %v13390_v0 = vpop.f32.mrb[2].mxu0  ;;  %13690 = vmatpush3.bf16.msra.mxu0 %v15219_v55  ;;  %v13410_v3 = vpop.f32.mrb[1].mxu1  ;;  %v16850_v55 = vrot.slane %v2629_v46, %v16545_v42 }
 0x179   : > { %v13391_v4 = vpop.f32.mrb[3].mxu0  ;;  %13691 = vmatprep.subr.bf16.mxu0 %v15221_v57  ;;  %v13411_v5 = vadd.f32 %v13410_v3, %v13409_v62  ;;  %v13412_v6 = vpop.f32.mrb[2].mxu1  ;;  %v2666_v62 = vrot.slane %v2644_v54, %v16545_v42  ;;  %v2652_v3 = vrot.slane %v2636_v45, %v16545_v42  ;;  %v15296_v54 = vld [vmem:[%s16471_s7 + $0xac0] sm:$0xff]  }
 0x17a   : > { %13712 = vmatpush3.bf16.msra.mxu1 %v15220_v56  ;;  %v13413_v8 = vpop.f32.mrb[3].mxu1  ;;  %v15262_v4 = vld [vmem:[%s16471_s7 + $0x940] sm:$0xff]  }
 0x17b   : > { %13713 = vmatprep.subr.bf16.mxu1 %v15222_v59  ;;  %v16813_v10 = vadd.f32 %v13411_v5, %v13389_v63  ;;  %v15259_v59 = vld [vmem:[%s16471_s7 + $0x8f8] sm:$0xff]   ;;  %v2645_v63 = vcombine.high %v16850_v55, %v16850_v55  ;;  %v15263_v5 = vld [vmem:[%s16471_s7 + $0x9c0] sm:$0xff]  }
 0x17c   : > { %13692 = vmatpush3.bf16.msra.mxu0 %v15223_v61  ;;  %v15260_v61 = vld [vmem:[%s16471_s7 + $0x838] sm:$0xff]   ;;  %v15265_v8 = vld [vmem:[%s16471_s7 + $0x980] sm:$0xff]  }
 0x17d   : > { %13693 = vmatprep.subr.bf16.mxu0 %v15225_v2  ;;  %v2676_v2 = vcombine.high %v2666_v62, %v2666_v62  ;;  %v2673_v6 = vrot.slane %v2645_v63, %v16545_v42  ;;  %v15304_v63 = vld [vmem:[%s16471_s7 + $0xad0] sm:$0xff]  }
 0x17e   : > { %13714 = vmatpush3.bf16.msra.mxu1 %v15224_v1  ;;  %v15261_v1 = vld [vmem:[%s16471_s7 + $0x8b8] sm:$0xff]  }
 0x17f   : > { %13715 = vmatprep.subr.bf16.mxu1 %v15226_v7  ;;  %v15264_v7 = vld [vmem:[%s16471_s7 + $0x900] sm:$0xff]  }
 0x180   : > { %13694 = vmatpush3.bf16.msra.mxu0 %v15227_v9  ;;  %v2674_v9 = vcombine.high %v2652_v3, %v2652_v3 }
 0x181   : > { %13723 = vmatprep.subr.bf16.mxu0 %v15230_v13  ;;  %v15268_v13 = vld [vmem:[%s16471_s7 + $0x908] sm:$0xff]  }
 0x182   : > { %13716 = vmatpush3.bf16.msra.mxu1 %v15228_v11  ;;  %v15267_v11 = vld [vmem:[%s16471_s7 + $0x9c8] sm:$0xff]  }
 0x183   : > { %10082 = vmatmul.mubr.bf16.vlgmr.msra.gmra.mrb[28].mxu0 %v2610_v12  ;;  %13745 = vmatprep.subr.bf16.mxu1 %v15231_v14  ;;  %v2677_v12 = vcombine.high %v2673_v6, %v2673_v6  ;;  %v15269_v14 = vld [vmem:[%s16471_s7 + $0x988] sm:$0xff]  }
 0x184   : > { %13724 = vmatpush3.bf16.msra.mxu0 %v15232_v15  ;;  %10161 = vmatprep.mubr.bf16.mxu0 %v2666_v62  ;;  %v15270_v15 = vld [vmem:[%s16471_s7 + $0x950] sm:$0xff]  }
 0x185   : > { %10122 = vmatmul.mubr.bf16.vlgmr.msra.gmra.mrb[28].mxu1 %v2626_v17  ;;  %13725 = vmatprep.subr.bf16.mxu0 %v15234_v18  ;;  %v15272_v17 = vld [vmem:[%s16471_s7 + $0x910] sm:$0xff]  }
 0x186   : > { %13746 = vmatpush3.bf16.msra.mxu1 %v15233_v16  ;;  %10201 = vmatprep.mubr.bf16.mxu1 %v2676_v2  ;;  %v15271_v16 = vld [vmem:[%s16471_s7 + $0x9d0] sm:$0xff]   ;;  %v15307_v2 = vld [vmem:[%s16471_s7 + $0xa58] sm:$0xff]  }
 0x187   : > { %13747 = vmatprep.subr.bf16.mxu1 %v15235_v19  ;;  %v15273_v18 = vld [vmem:[%s16471_s7 + $0x990] sm:$0xff]   ;;  %v15274_v19 = vld [vmem:[%s16471_s7 + $0x958] sm:$0xff]  }
 0x188   : > { %13726 = vmatpush3.bf16.msra.mxu0 %v15236_v20  ;;  %v15275_v20 = vld [vmem:[%s16471_s7 + $0x9d8] sm:$0xff]   ;;  %v15303_v62 = vld [vmem:[%s16471_s7 + $0xa50] sm:$0xff]  }
 0x189   : > { %13727 = vmatprep.subr.bf16.mxu0 %v15238_v22  ;;  %v15277_v22 = vld [vmem:[%s16471_s7 + $0x998] sm:$0xff]  }
 0x18a   : > { %13748 = vmatpush3.bf16.msra.mxu1 %v15237_v21  ;;  %v15276_v21 = vld [vmem:[%s16471_s7 + $0x918] sm:$0xff]  }
 0x18b   : > { %13749 = vmatprep.subr.bf16.mxu1 %v15239_v23  ;;  %v15278_v23 = vld [vmem:[%s16471_s7 + $0x960] sm:$0xff]  }
 0x18c   : > { %13728 = vmatpush3.bf16.msra.mxu0 %v15240_v24  ;;  %v15279_v24 = vld [vmem:[%s16471_s7 + $0x9e0] sm:$0xff]  }
 0x18d   : > { %13729 = vmatprep.subr.bf16.mxu0 %v15242_v26  ;;  %v15281_v26 = vld [vmem:[%s16471_s7 + $0x9a0] sm:$0xff]  }
 0x18e   : > { %13750 = vmatpush3.bf16.msra.mxu1 %v15241_v25  ;;  %v15280_v25 = vld [vmem:[%s16471_s7 + $0x920] sm:$0xff]  }
 0x18f   : > { %13751 = vmatprep.subr.bf16.mxu1 %v15243_v27  ;;  %v15282_v27 = vld [vmem:[%s16471_s7 + $0x968] sm:$0xff]  }
 0x190   : > { %13730 = vmatpush3.bf16.msra.mxu0 %v15244_v28  ;;  %v15283_v28 = vld [vmem:[%s16471_s7 + $0x9e8] sm:$0xff]  }
 0x191   : > { %13731 = vmatprep.subr.bf16.mxu0 %v15246_v30  ;;  %v15285_v30 = vld [vmem:[%s16471_s7 + $0x9a8] sm:$0xff]  }
 0x192   : > { %13752 = vmatpush3.bf16.msra.mxu1 %v15245_v29  ;;  %v15284_v29 = vld [vmem:[%s16471_s7 + $0x928] sm:$0xff]  }
 0x193   : > { %13753 = vmatprep.subr.bf16.mxu1 %v15247_v31  ;;  %v15286_v31 = vld [vmem:[%s16471_s7 + $0x970] sm:$0xff]  }
 0x194   : > { %13732 = vmatpush3.bf16.msra.mxu0 %v15248_v32 }
 0x195   : > { %13733 = vmatprep.subr.bf16.mxu0 %v15250_v34 }
 0x196   : > { %13754 = vmatpush3.bf16.msra.mxu1 %v15249_v33  ;;  %v13431_v39 = vpop.f32.mrb[4].mxu0  ;;  %v15287_v33 = vld [vmem:[%s16471_s7 + $0x9f0] sm:$0xff]  }
 0x197   : > { %v13432_v43 = vpop.f32.mrb[5].mxu0  ;;  %13755 = vmatprep.subr.bf16.mxu1 %v15251_v35  ;;  %v13453_v47 = vpop.f32.mrb[4].mxu1  ;;  %v15288_v35 = vld [vmem:[%s16471_s7 + $0x930] sm:$0xff]  }
 0x198   : > { %v13433_v48 = vadd.f32 %v13432_v43, %v13431_v39  ;;  %v13434_v49 = vpop.f32.mrb[6].mxu0  ;;  %13734 = vmatpush3.bf16.msra.mxu0 %v15252_v36  ;;  %v13454_v50 = vpop.f32.mrb[5].mxu1  ;;  %v15289_v39 = vld [vmem:[%s16471_s7 + $0x9b0] sm:$0xff]  }
 0x199   : > { %v13435_v51 = vpop.f32.mrb[7].mxu0  ;;  %13735 = vmatprep.subr.bf16.mxu0 %v15254_v38  ;;  %v13455_v57 = vadd.f32 %v13454_v50, %v13453_v47  ;;  %v13456_v58 = vpop.f32.mrb[6].mxu1  ;;  %v15291_v47 = vld [vmem:[%s16471_s7 + $0x9f8] sm:$0xff]  }
 0x19a   : > { %v9604_v56 = vadd.f32 %v13433_v48, %v16813_v10  ;;  %13756 = vmatpush3.bf16.msra.mxu1 %v15253_v37  ;;  %v13457_v60 = vpop.f32.mrb[7].mxu1  ;;  %v15266_v10 = vld [vmem:[%s16471_s7 + $0x948] sm:$0xff]   ;;  %v15292_v49 = vld [vmem:[%s16471_s7 + $0x938] sm:$0xff]  }
 0x19b   : > { %13757 = vmatprep.subr.bf16.mxu1 %v15255_v40  ;;  %v15290_v40 = vld [vmem:[%s16471_s7 + $0x978] sm:$0xff]   ;;  %v15300_v60 = vld [vmem:[%s16471_s7 + $0xac8] sm:$0xff]  }
 0x19c   : > { %v16858_v0 = vadd.f32 %v13455_v57, %v9604_v56  ;;  %13736 = vmatpush3.bf16.msra.mxu0 %v15256_v44  ;;  %v15293_v51 = vld [vmem:[%s16471_s7 + $0x9b8] sm:$0xff]   ;;  %v15297_v56 = vld [vmem:[%s16471_s7 + $0xa00] sm:$0xff]  }
 0x19d   : > { %13737 = vmatprep.subr.bf16.mxu0 %v15258_v53  ;;  %v15295_v53 = vld [vmem:[%s16471_s7 + $0xa40] sm:$0xff]  }
 0x19e   : > { %13758 = vmatpush3.bf16.msra.mxu1 %v15257_v52  ;;  %v2659_v52 = vrot.slane %v16850_v55, %v16545_v42  ;;  %v15298_v57 = vld [vmem:[%s16471_s7 + $0xa80] sm:$0xff]   ;;  %v15301_v55 = vld [vmem:[%s16471_s7 + $0xa08] sm:$0xff]  }
 0x19f   : > { %13759 = vmatprep.subr.bf16.mxu1 %v15259_v59  ;;  %v15299_v59 = vld [vmem:[%s16471_s7 + $0xa48] sm:$0xff]  }
 0x1a0   : > { %13738 = vmatpush3.bf16.msra.mxu0 %v15260_v61  ;;  %v2675_v58 = vcombine.high %v2659_v52, %v2659_v52  ;;  %v15302_v61 = vld [vmem:[%s16471_s7 + $0xa88] sm:$0xff]  }
 0x1a1   : > { %13767 = vmatprep.subr.bf16.mxu0 %v15262_v4  ;;  %v15309_v4 = vld [vmem:[%s16471_s7 + $0xa18] sm:$0xff]  }
 0x1a2   : > { %13760 = vmatpush3.bf16.msra.mxu1 %v15261_v1  ;;  %v15306_v1 = vld [vmem:[%s16471_s7 + $0xa90] sm:$0xff]  }
 0x1a3   : > { %10162 = vmatmul.mubr.bf16.vlgmr.msra.gmra.mrb[32].mxu0 %v2652_v3  ;;  %13789 = vmatprep.subr.bf16.mxu1 %v15263_v5  ;;  %v15308_v3 = vld [vmem:[%s16471_s7 + $0xad8] sm:$0xff]  }
 0x1a4   : > { %13768 = vmatpush3.bf16.msra.mxu0 %v15264_v7  ;;  %10241 = vmatprep.mubr.bf16.mxu0 %v2673_v6  ;;  %v15310_v5 = vld [vmem:[%s16471_s7 + $0xa98] sm:$0xff]   ;;  %v15311_v6 = vld [vmem:[%s16471_s7 + $0xa60] sm:$0xff]  }
 0x1a5   : > { %10202 = vmatmul.mubr.bf16.vlgmr.msra.gmra.mrb[32].mxu1 %v2674_v9  ;;  %13769 = vmatprep.subr.bf16.mxu0 %v15266_v10  ;;  %v15312_v7 = vld [vmem:[%s16471_s7 + $0xae0] sm:$0xff]   ;;  %v15315_v10 = vld [vmem:[%s16471_s7 + $0xa68] sm:$0xff]  }
 0x1a6   : > { %13790 = vmatpush3.bf16.msra.mxu1 %v15265_v8  ;;  %10281 = vmatprep.mubr.bf16.mxu1 %v2677_v12  ;;  %v15313_v8 = vld [vmem:[%s16471_s7 + $0xa20] sm:$0xff]   ;;  %v15317_v12 = vld [vmem:[%s16471_s7 + $0xa28] sm:$0xff]  }
 0x1a7   : > { %13791 = vmatprep.subr.bf16.mxu1 %v15267_v11  ;;  %v15314_v9 = vld [vmem:[%s16471_s7 + $0xaa0] sm:$0xff]   ;;  %v15316_v11 = vld [vmem:[%s16471_s7 + $0xae8] sm:$0xff]  }
 0x1a8   : > { %13770 = vmatpush3.bf16.msra.mxu0 %v15268_v13  ;;  %v15318_v13 = vld [vmem:[%s16471_s7 + $0xaa8] sm:$0xff]  }
 0x1a9   : > { %13771 = vmatprep.subr.bf16.mxu0 %v15270_v15 }
 0x1aa   : > { %13792 = vmatpush3.bf16.msra.mxu1 %v15269_v14  ;;  %v15319_v14 = vld [vmem:[%s16471_s7 + $0xa70] sm:$0xff]  }
 0x1ab   : > { %13793 = vmatprep.subr.bf16.mxu1 %v15271_v16  ;;  %v15320_v16 = vld [vmem:[%s16471_s7 + $0xaf0] sm:$0xff]  }
 0x1ac   : > { %13772 = vmatpush3.bf16.msra.mxu0 %v15272_v17 }
 0x1ad   : > { %13773 = vmatprep.subr.bf16.mxu0 %v15274_v19  ;;  %v358_v19 = vld [vmem:[%s16493_s26 + $0x28] sm:$0xff] }
 0x1ae   : > { %13794 = vmatpush3.bf16.msra.mxu1 %v15273_v18  ;;  %v15321_v18 = vld [vmem:[%s16471_s7 + $0xa30] sm:$0xff]  }
 0x1af   : > { %13795 = vmatprep.subr.bf16.mxu1 %v15275_v20 }
 0x1b0   : > { %13774 = vmatpush3.bf16.msra.mxu0 %v15276_v21 }
 0x1b1   : > { %13775 = vmatprep.subr.bf16.mxu0 %v15278_v23  ;;  %v2685_v23 = vrot.slane %v358_v19, %v16545_v42 }
 0x1b2   : > { %13796 = vmatpush3.bf16.msra.mxu1 %v15277_v22 }
 0x1b3   : > { %13797 = vmatprep.subr.bf16.mxu1 %v15279_v24  ;;  %v2678_v24 = vcombine.high %v358_v19, %v358_v19 }
 0x1b4   : > { %13776 = vmatpush3.bf16.msra.mxu0 %v15280_v25 }
 0x1b5   : > { %13777 = vmatprep.subr.bf16.mxu0 %v15282_v27  ;;  %v15322_v27 = vld [vmem:[%s16471_s7 + $0xab0] sm:$0xff]  }
 0x1b6   : > { %13798 = vmatpush3.bf16.msra.mxu1 %v15281_v26  ;;  %v13475_v32 = vpop.f32.mrb[8].mxu0 }
 0x1b7   : > { %v13476_v34 = vpop.f32.mrb[9].mxu0  ;;  %13799 = vmatprep.subr.bf16.mxu1 %v15283_v28  ;;  %v15323_v28 = vld [vmem:[%s16471_s7 + $0xa78] sm:$0xff]  }
 0x1b8   : > { %v13497_v36 = vpop.f32.mrb[8].mxu1  ;;  %v13477_v37 = vadd.f32 %v13476_v34, %v13475_v32  ;;  %v13478_v38 = vpop.f32.mrb[10].mxu0  ;;  %13778 = vmatpush3.bf16.msra.mxu0 %v15284_v29  ;;  %v15324_v32 = vld [vmem:[%s16471_s7 + $0xaf8] sm:$0xff]  }
 0x1b9   : > { %v13498_v41 = vpop.f32.mrb[9].mxu1  ;;  %v13479_v43 = vpop.f32.mrb[11].mxu0  ;;  %13779 = vmatprep.subr.bf16.mxu0 %v15286_v31  ;;  %v15326_v38 = vld [vmem:[%s16471_s7 + $0xab8] sm:$0xff]  }
 0x1ba   : > { %v9684_v44 = vadd.f32 %v13477_v37, %v16858_v0  ;;  %v13499_v45 = vadd.f32 %v13498_v41, %v13497_v36  ;;  %v13500_v46 = vpop.f32.mrb[10].mxu1  ;;  %13800 = vmatpush3.bf16.msra.mxu1 %v15285_v30  ;;  %v15305_v0 = vld [vmem:[%s16471_s7 + $0xa10] sm:$0xff]   ;;  %v16935_v36 = vrot.slane %v2678_v24, %v16545_v42  ;;  %v15327_v41 = vld [vmem:[%s16471_s7 + $0xb40] sm:$0xff]   ;;  %v15357_v24 = vld [vmem:[%s16471_s7 + $0xb38] sm:$0xff]  }
 0x1bb   : > { %v13501_v48 = vpop.f32.mrb[11].mxu1  ;;  %13801 = vmatprep.subr.bf16.mxu1 %v15287_v33  ;;  %v2693_v33 = vcombine.high %v2685_v23, %v2685_v23  ;;  %v15329_v46 = vld [vmem:[%s16471_s7 + $0xb00] sm:$0xff]  }
 0x1bc   : > { %v16895_v50 = vadd.f32 %v13499_v45, %v9684_v44  ;;  %13780 = vmatpush3.bf16.msra.mxu0 %v15288_v35  ;;  %v15325_v35 = vld [vmem:[%s16471_s7 + $0xa38] sm:$0xff]   ;;  %v2694_v43 = vcombine.high %v16935_v36, %v16935_v36  ;;  %v15328_v45 = vld [vmem:[%s16471_s7 + $0xbc0] sm:$0xff]  }
 0x1bd   : > { %13781 = vmatprep.subr.bf16.mxu0 %v15290_v40  ;;  %v2701_v40 = vrot.slane %v2685_v23, %v16545_v42  ;;  %v15330_v48 = vld [vmem:[%s16471_s7 + $0xb80] sm:$0xff]  }
 0x1be   : > { %13802 = vmatpush3.bf16.msra.mxu1 %v15289_v39  ;;  %v2715_v39 = vrot.slane %v2693_v33, %v16545_v42  ;;  %v15364_v33 = vld [vmem:[%s16471_s7 + $0xc48] sm:$0xff]  }
 0x1bf   : > { %13803 = vmatprep.subr.bf16.mxu1 %v15291_v47  ;;  %v2722_v47 = vrot.slane %v2694_v43, %v16545_v42  ;;  %v15373_v43 = vld [vmem:[%s16471_s7 + $0xcd8] sm:$0xff]  }
 0x1c0   : > { %13782 = vmatpush3.bf16.msra.mxu0 %v15292_v49  ;;  %v2725_v44 = vcombine.high %v2715_v39, %v2715_v39  ;;  %v2723_v49 = vcombine.high %v2701_v40, %v2701_v40 }
 0x1c1   : > { %13811 = vmatprep.subr.bf16.mxu0 %v15295_v53  ;;  %v15333_v53 = vld [vmem:[%s16471_s7 + $0xb08] sm:$0xff]  }
 0x1c2   : > { %13804 = vmatpush3.bf16.msra.mxu1 %v15293_v51  ;;  %v15332_v51 = vld [vmem:[%s16471_s7 + $0xbc8] sm:$0xff]  }
 0x1c3   : > { %10242 = vmatmul.mubr.bf16.vlgmr.msra.gmra.mrb[36].mxu0 %v2659_v52  ;;  %13833 = vmatprep.subr.bf16.mxu1 %v15296_v54  ;;  %v2726_v52 = vcombine.high %v2722_v47, %v2722_v47  ;;  %v15334_v54 = vld [vmem:[%s16471_s7 + $0xb88] sm:$0xff]  }
 0x1c4   : > { %13812 = vmatpush3.bf16.msra.mxu0 %v15297_v56  ;;  %10321 = vmatprep.mubr.bf16.mxu0 %v2715_v39  ;;  %v15335_v56 = vld [vmem:[%s16471_s7 + $0xb50] sm:$0xff]  }
 0x1c5   : > { %10282 = vmatmul.mubr.bf16.vlgmr.msra.gmra.mrb[36].mxu1 %v2675_v58  ;;  %13813 = vmatprep.subr.bf16.mxu0 %v15299_v59  ;;  %v15337_v58 = vld [vmem:[%s16471_s7 + $0xb10] sm:$0xff]  }
 0x1c6   : > { %13834 = vmatpush3.bf16.msra.mxu1 %v15298_v57  ;;  %10361 = vmatprep.mubr.bf16.mxu1 %v2725_v44  ;;  %v15336_v57 = vld [vmem:[%s16471_s7 + $0xbd0] sm:$0xff]   ;;  %v15374_v44 = vld [vmem:[%s16471_s7 + $0xc18] sm:$0xff]  }
 0x1c7   : > { %13835 = vmatprep.subr.bf16.mxu1 %v15300_v60  ;;  %v15338_v59 = vld [vmem:[%s16471_s7 + $0xb90] sm:$0xff]   ;;  %v15339_v60 = vld [vmem:[%s16471_s7 + $0xb58] sm:$0xff]  }
 0x1c8   : > { %13814 = vmatpush3.bf16.msra.mxu0 %v15301_v55  ;;  %v15340_v55 = vld [vmem:[%s16471_s7 + $0xbd8] sm:$0xff]   ;;  %v15370_v39 = vld [vmem:[%s16471_s7 + $0xc10] sm:$0xff]  }
 0x1c9   : > { %13815 = vmatprep.subr.bf16.mxu0 %v15303_v62  ;;  %v15342_v62 = vld [vmem:[%s16471_s7 + $0xb98] sm:$0xff]  }
 0x1ca   : > { %13836 = vmatpush3.bf16.msra.mxu1 %v15302_v61  ;;  %v15341_v61 = vld [vmem:[%s16471_s7 + $0xb18] sm:$0xff]  }
 0x1cb   : > { %13837 = vmatprep.subr.bf16.mxu1 %v15304_v63  ;;  %v15343_v63 = vld [vmem:[%s16471_s7 + $0xb60] sm:$0xff]  }
 0x1cc   : > { %13816 = vmatpush3.bf16.msra.mxu0 %v15305_v0  ;;  %v15344_v0 = vld [vmem:[%s16471_s7 + $0xbe0] sm:$0xff]  }
 0x1cd   : > { %13817 = vmatprep.subr.bf16.mxu0 %v15307_v2  ;;  %v15346_v2 = vld [vmem:[%s16471_s7 + $0xba0] sm:$0xff]  }
 0x1ce   : > { %13838 = vmatpush3.bf16.msra.mxu1 %v15306_v1  ;;  %v15345_v1 = vld [vmem:[%s16471_s7 + $0xb20] sm:$0xff]  }
 0x1cf   : > { %13839 = vmatprep.subr.bf16.mxu1 %v15308_v3  ;;  %v15347_v3 = vld [vmem:[%s16471_s7 + $0xb68] sm:$0xff]  }
 0x1d0   : > { %13818 = vmatpush3.bf16.msra.mxu0 %v15309_v4  ;;  %v15348_v4 = vld [vmem:[%s16471_s7 + $0xbe8] sm:$0xff]  }
 0x1d1   : > { %13819 = vmatprep.subr.bf16.mxu0 %v15311_v6  ;;  %v15350_v6 = vld [vmem:[%s16471_s7 + $0xba8] sm:$0xff]  }
 0x1d2   : > { %13840 = vmatpush3.bf16.msra.mxu1 %v15310_v5  ;;  %v15349_v5 = vld [vmem:[%s16471_s7 + $0xb28] sm:$0xff]  }
 0x1d3   : > { %13841 = vmatprep.subr.bf16.mxu1 %v15312_v7  ;;  %v15351_v7 = vld [vmem:[%s16471_s7 + $0xb70] sm:$0xff]  }
 0x1d4   : > { %13820 = vmatpush3.bf16.msra.mxu0 %v15313_v8 }
 0x1d5   : > { %13821 = vmatprep.subr.bf16.mxu0 %v15315_v10 }
 0x1d6   : > { %13842 = vmatpush3.bf16.msra.mxu1 %v15314_v9  ;;  %v13519_v15 = vpop.f32.mrb[12].mxu0  ;;  %v15352_v9 = vld [vmem:[%s16471_s7 + $0xbf0] sm:$0xff]  }
 0x1d7   : > { %v13520_v17 = vpop.f32.mrb[13].mxu0  ;;  %13843 = vmatprep.subr.bf16.mxu1 %v15316_v11  ;;  %v15353_v11 = vld [vmem:[%s16471_s7 + $0xb30] sm:$0xff]  }
 0x1d8   : > { %v13541_v20 = vpop.f32.mrb[12].mxu1  ;;  %v13521_v21 = vadd.f32 %v13520_v17, %v13519_v15  ;;  %v13522_v22 = vpop.f32.mrb[14].mxu0  ;;  %13822 = vmatpush3.bf16.msra.mxu0 %v15317_v12  ;;  %v15354_v15 = vld [vmem:[%s16471_s7 + $0xbb0] sm:$0xff]  }
 0x1d9   : > { %v13542_v25 = vpop.f32.mrb[13].mxu1  ;;  %v13523_v26 = vpop.f32.mrb[15].mxu0  ;;  %13823 = vmatprep.subr.bf16.mxu0 %v15319_v14  ;;  %v15356_v22 = vld [vmem:[%s16471_s7 + $0xbf8] sm:$0xff]  }
 0x1da   : > { %v9764_v29 = vadd.f32 %v13521_v21, %v16895_v50  ;;  %v13543_v30 = vadd.f32 %v13542_v25, %v13541_v20  ;;  %v13544_v31 = vpop.f32.mrb[14].mxu1  ;;  %13844 = vmatpush3.bf16.msra.mxu1 %v15318_v13  ;;  %v15331_v50 = vld [vmem:[%s16471_s7 + $0xb48] sm:$0xff]   ;;  %v15358_v26 = vld [vmem:[%s16471_s7 + $0xbb8] sm:$0xff]  }
 0x1db   : > { %v13545_v34 = vpop.f32.mrb[15].mxu1  ;;  %13845 = vmatprep.subr.bf16.mxu1 %v15320_v16  ;;  %v15355_v16 = vld [vmem:[%s16471_s7 + $0xb78] sm:$0xff]   ;;  %v15363_v31 = vld [vmem:[%s16471_s7 + $0xc80] sm:$0xff]  }
 0x1dc   : > { %v16937_v37 = vadd.f32 %v13543_v30, %v9764_v29  ;;  %13824 = vmatpush3.bf16.msra.mxu0 %v15321_v18  ;;  %v15361_v29 = vld [vmem:[%s16471_s7 + $0xcc0] sm:$0xff]   ;;  %v15365_v34 = vld [vmem:[%s16471_s7 + $0xcc8] sm:$0xff]  }
 0x1dd   : > { %13825 = vmatprep.subr.bf16.mxu0 %v15323_v28  ;;  %v15360_v28 = vld [vmem:[%s16471_s7 + $0xc40] sm:$0xff]  }
 0x1de   : > { %13846 = vmatpush3.bf16.msra.mxu1 %v15322_v27  ;;  %v2708_v27 = vrot.slane %v16935_v36, %v16545_v42  ;;  %v15362_v30 = vld [vmem:[%s16471_s7 + $0xc00] sm:$0xff]   ;;  %v15367_v36 = vld [vmem:[%s16471_s7 + $0xc88] sm:$0xff]  }
 0x1df   : > { %13847 = vmatprep.subr.bf16.mxu1 %v15324_v32 }
 0x1e0   : > { %13826 = vmatpush3.bf16.msra.mxu0 %v15325_v35  ;;  %v2724_v32 = vcombine.high %v2708_v27, %v2708_v27  ;;  %v15366_v35 = vld [vmem:[%s16471_s7 + $0xc08] sm:$0xff]  }
 0x1e1   : > { %13855 = vmatprep.subr.bf16.mxu0 %v15327_v41  ;;  %v15372_v41 = vld [vmem:[%s16471_s7 + $0xc58] sm:$0xff]  }
 0x1e2   : > { %13848 = vmatpush3.bf16.msra.mxu1 %v15326_v38  ;;  %v15369_v38 = vld [vmem:[%s16471_s7 + $0xcd0] sm:$0xff]  }
 0x1e3   : > { %10322 = vmatmul.mubr.bf16.vlgmr.msra.gmra.mrb[40].mxu0 %v2701_v40  ;;  %13877 = vmatprep.subr.bf16.mxu1 %v15328_v45  ;;  %v15371_v40 = vld [vmem:[%s16471_s7 + $0xc90] sm:$0xff]   ;;  %v15375_v45 = vld [vmem:[%s16471_s7 + $0xc98] sm:$0xff]  }
 0x1e4   : > { %13856 = vmatpush3.bf16.msra.mxu0 %v15329_v46  ;;  %10401 = vmatprep.mubr.bf16.mxu0 %v2722_v47  ;;  %v15376_v46 = vld [vmem:[%s16471_s7 + $0xc60] sm:$0xff]  }
 0x1e5   : > { %10362 = vmatmul.mubr.bf16.vlgmr.msra.gmra.mrb[40].mxu1 %v2723_v49  ;;  %13857 = vmatprep.subr.bf16.mxu0 %v15331_v50  ;;  %v15377_v47 = vld [vmem:[%s16471_s7 + $0xce0] sm:$0xff]   ;;  %v15380_v50 = vld [vmem:[%s16471_s7 + $0xc68] sm:$0xff]  }
 0x1e6   : > { %13878 = vmatpush3.bf16.msra.mxu1 %v15330_v48  ;;  %10441 = vmatprep.mubr.bf16.mxu1 %v2726_v52  ;;  %v15378_v48 = vld [vmem:[%s16471_s7 + $0xc20] sm:$0xff]   ;;  %v15382_v52 = vld [vmem:[%s16471_s7 + $0xc28] sm:$0xff]  }
 0x1e7   : > { %13879 = vmatprep.subr.bf16.mxu1 %v15332_v51  ;;  %v15379_v49 = vld [vmem:[%s16471_s7 + $0xca0] sm:$0xff]   ;;  %v15381_v51 = vld [vmem:[%s16471_s7 + $0xce8] sm:$0xff]  }
 0x1e8   : > { %13858 = vmatpush3.bf16.msra.mxu0 %v15333_v53  ;;  %v15383_v53 = vld [vmem:[%s16471_s7 + $0xca8] sm:$0xff]  }
 0x1e9   : > { %13859 = vmatprep.subr.bf16.mxu0 %v15335_v56 }
 0x1ea   : > { %13880 = vmatpush3.bf16.msra.mxu1 %v15334_v54  ;;  %v15384_v54 = vld [vmem:[%s16471_s7 + $0xc70] sm:$0xff]  }
 0x1eb   : > { %13881 = vmatprep.subr.bf16.mxu1 %v15336_v57  ;;  %v15385_v57 = vld [vmem:[%s16471_s7 + $0xcf0] sm:$0xff]  }
 0x1ec   : > { %13860 = vmatpush3.bf16.msra.mxu0 %v15337_v58 }
 0x1ed   : > { %13861 = vmatprep.subr.bf16.mxu0 %v15339_v60 }
 0x1ee   : > { %13882 = vmatpush3.bf16.msra.mxu1 %v15338_v59  ;;  %v15386_v59 = vld [vmem:[%s16471_s7 + $0xc30] sm:$0xff]  }
 0x1ef   : > { %13883 = vmatprep.subr.bf16.mxu1 %v15340_v55 }
 0x1f0   : > { %13862 = vmatpush3.bf16.msra.mxu0 %v15341_v61 }
 0x1f1   : > { %13863 = vmatprep.subr.bf16.mxu0 %v15343_v63  ;;  %v15388_v63 = vld [vmem:[%s16471_s7 + $0xc78] sm:$0xff]  }
 0x1f2   : > { %13884 = vmatpush3.bf16.msra.mxu1 %v15342_v62  ;;  %v15387_v62 = vld [vmem:[%s16471_s7 + $0xcb0] sm:$0xff]  }
 0x1f3   : > { %13885 = vmatprep.subr.bf16.mxu1 %v15344_v0  ;;  %v359_v0 = vld [vmem:[%s16493_s26 + $0x30] sm:$0xff] }
 0x1f4   : > { %13864 = vmatpush3.bf16.msra.mxu0 %v15345_v1 }
 0x1f5   : > { %13865 = vmatprep.subr.bf16.mxu0 %v15347_v3  ;;  %v2734_v3 = vrot.slane %v359_v0, %v16545_v42 }
 0x1f6   : > { %13886 = vmatpush3.bf16.msra.mxu1 %v15346_v2  ;;  %v13563_v8 = vpop.f32.mrb[16].mxu0 }
 0x1f7   : > { %v13564_v10 = vpop.f32.mrb[17].mxu0  ;;  %13887 = vmatprep.subr.bf16.mxu1 %v15348_v4  ;;  %v2727_v4 = vcombine.high %v359_v0, %v359_v0  ;;  %v15422_v0 = vld [vmem:[%s16471_s7 + $0xd38] sm:$0xff]  }
 0x1f8   : > { %v13585_v12 = vpop.f32.mrb[16].mxu1  ;;  %v13565_v13 = vadd.f32 %v13564_v10, %v13563_v8  ;;  %v13566_v14 = vpop.f32.mrb[18].mxu0  ;;  %13866 = vmatpush3.bf16.msra.mxu0 %v15349_v5  ;;  %v15389_v8 = vld [vmem:[%s16471_s7 + $0xcf8] sm:$0xff]  }
 0x1f9   : > { %v13586_v17 = vpop.f32.mrb[17].mxu1  ;;  %v13567_v18 = vpop.f32.mrb[19].mxu0  ;;  %13867 = vmatprep.subr.bf16.mxu0 %v15351_v7  ;;  %v15390_v10 = vld [vmem:[%s16471_s7 + $0xc38] sm:$0xff]  }
 0x1fa   : > { %v9844_v19 = vadd.f32 %v13565_v13, %v16937_v37  ;;  %v13587_v20 = vadd.f32 %v13586_v17, %v13585_v12  ;;  %v13588_v21 = vpop.f32.mrb[18].mxu1  ;;  %13888 = vmatpush3.bf16.msra.mxu1 %v15350_v6  ;;  %v15368_v37 = vld [vmem:[%s16471_s7 + $0xc50] sm:$0xff]   ;;  %v17017_v12 = vrot.slane %v2727_v4, %v16545_v42  ;;  %v15391_v14 = vld [vmem:[%s16471_s7 + $0xcb8] sm:$0xff]   ;;  %v15392_v17 = vld [vmem:[%s16471_s7 + $0xd40] sm:$0xff]  }
 0x1fb   : > { %v13589_v23 = vpop.f32.mrb[19].mxu1  ;;  %13889 = vmatprep.subr.bf16.mxu1 %v15352_v9  ;;  %v15394_v21 = vld [vmem:[%s16471_s7 + $0xd00] sm:$0xff]  }
 0x1fc   : > { %v16977_v25 = vadd.f32 %v13587_v20, %v9844_v19  ;;  %13868 = vmatpush3.bf16.msra.mxu0 %v15353_v11  ;;  %v2742_v11 = vcombine.high %v2734_v3, %v2734_v3  ;;  %v2743_v18 = vcombine.high %v17017_v12, %v17017_v12  ;;  %v15393_v19 = vld [vmem:[%s16471_s7 + $0xdc0] sm:$0xff]  }
 0x1fd   : > { %13869 = vmatprep.subr.bf16.mxu0 %v15355_v16  ;;  %v2750_v16 = vrot.slane %v2734_v3, %v16545_v42  ;;  %v15395_v23 = vld [vmem:[%s16471_s7 + $0xd80] sm:$0xff]   ;;  %v2757_v3 = vrot.slane %v17017_v12, %v16545_v42  ;;  %v15432_v12 = vld [vmem:[%s16471_s7 + $0xe88] sm:$0xff]  }
 0x1fe   : > { %13890 = vmatpush3.bf16.msra.mxu1 %v15354_v15  ;;  %v2764_v15 = vrot.slane %v2742_v11, %v16545_v42  ;;  %v15425_v4 = vld [vmem:[%s16471_s7 + $0xe40] sm:$0xff]   ;;  %v15431_v11 = vld [vmem:[%s16471_s7 + $0xe08] sm:$0xff]  }
 0x1ff   : > { %13891 = vmatprep.subr.bf16.mxu1 %v15356_v22  ;;  %v2771_v22 = vrot.slane %v2743_v18, %v16545_v42  ;;  %v15438_v18 = vld [vmem:[%s16471_s7 + $0xed8] sm:$0xff]  }
 0x200   : > { %13870 = vmatpush3.bf16.msra.mxu0 %v15357_v24  ;;  %v2774_v20 = vcombine.high %v2764_v15, %v2764_v15  ;;  %v2772_v24 = vcombine.high %v2750_v16, %v2750_v16 }
 0x201   : > { %13899 = vmatprep.subr.bf16.mxu0 %v15360_v28  ;;  %v15398_v28 = vld [vmem:[%s16471_s7 + $0xd08] sm:$0xff]  }
 0x202   : > { %13892 = vmatpush3.bf16.msra.mxu1 %v15358_v26  ;;  %v15397_v26 = vld [vmem:[%s16471_s7 + $0xdc8] sm:$0xff]  }
 0x203   : > { %10402 = vmatmul.mubr.bf16.vlgmr.msra.gmra.mrb[44].mxu0 %v2708_v27  ;;  %13921 = vmatprep.subr.bf16.mxu1 %v15361_v29  ;;  %v2775_v27 = vcombine.high %v2771_v22, %v2771_v22  ;;  %v15399_v29 = vld [vmem:[%s16471_s7 + $0xd88] sm:$0xff]  }
 0x204   : > { %13900 = vmatpush3.bf16.msra.mxu0 %v15362_v30  ;;  %10481 = vmatprep.mubr.bf16.mxu0 %v2764_v15  ;;  %v15400_v30 = vld [vmem:[%s16471_s7 + $0xd50] sm:$0xff]  }
 0x205   : > { %10442 = vmatmul.mubr.bf16.vlgmr.msra.gmra.mrb[44].mxu1 %v2724_v32  ;;  %13901 = vmatprep.subr.bf16.mxu0 %v15364_v33  ;;  %v15402_v32 = vld [vmem:[%s16471_s7 + $0xd10] sm:$0xff]  }
 0x206   : > { %13922 = vmatpush3.bf16.msra.mxu1 %v15363_v31  ;;  %10521 = vmatprep.mubr.bf16.mxu1 %v2774_v20  ;;  %v15401_v31 = vld [vmem:[%s16471_s7 + $0xdd0] sm:$0xff]   ;;  %v15440_v20 = vld [vmem:[%s16471_s7 + $0xe98] sm:$0xff]  }
 0x207   : > { %13923 = vmatprep.subr.bf16.mxu1 %v15365_v34  ;;  %v15403_v33 = vld [vmem:[%s16471_s7 + $0xd90] sm:$0xff]   ;;  %v15404_v34 = vld [vmem:[%s16471_s7 + $0xd58] sm:$0xff]  }
 0x208   : > { %13902 = vmatpush3.bf16.msra.mxu0 %v15366_v35  ;;  %v15405_v35 = vld [vmem:[%s16471_s7 + $0xdd8] sm:$0xff]   ;;  %v15435_v15 = vld [vmem:[%s16471_s7 + $0xe10] sm:$0xff]  }
 0x209   : > { %13903 = vmatprep.subr.bf16.mxu0 %v15368_v37  ;;  %v15407_v37 = vld [vmem:[%s16471_s7 + $0xd98] sm:$0xff]  }
 0x20a   : > { %13924 = vmatpush3.bf16.msra.mxu1 %v15367_v36  ;;  %v15406_v36 = vld [vmem:[%s16471_s7 + $0xd18] sm:$0xff]  }
 0x20b   : > { %13925 = vmatprep.subr.bf16.mxu1 %v15369_v38  ;;  %v15408_v38 = vld [vmem:[%s16471_s7 + $0xd60] sm:$0xff]  }
 0x20c   : > { %13904 = vmatpush3.bf16.msra.mxu0 %v15370_v39  ;;  %v15409_v39 = vld [vmem:[%s16471_s7 + $0xde0] sm:$0xff]  }
 0x20d   : > { %13905 = vmatprep.subr.bf16.mxu0 %v15372_v41  ;;  %v15411_v41 = vld [vmem:[%s16471_s7 + $0xda0] sm:$0xff]  }
 0x20e   : > { %13926 = vmatpush3.bf16.msra.mxu1 %v15371_v40  ;;  %v15410_v40 = vld [vmem:[%s16471_s7 + $0xd20] sm:$0xff]  }
 0x20f   : > { %13927 = vmatprep.subr.bf16.mxu1 %v15373_v43  ;;  %v15412_v43 = vld [vmem:[%s16471_s7 + $0xd68] sm:$0xff]  }
 0x210   : > { %13906 = vmatpush3.bf16.msra.mxu0 %v15374_v44  ;;  %v15413_v44 = vld [vmem:[%s16471_s7 + $0xde8] sm:$0xff]  }
 0x211   : > { %13907 = vmatprep.subr.bf16.mxu0 %v15376_v46  ;;  %v15415_v46 = vld [vmem:[%s16471_s7 + $0xda8] sm:$0xff]  }
 0x212   : > { %13928 = vmatpush3.bf16.msra.mxu1 %v15375_v45  ;;  %v15414_v45 = vld [vmem:[%s16471_s7 + $0xd28] sm:$0xff]  }
 0x213   : > { %13929 = vmatprep.subr.bf16.mxu1 %v15377_v47  ;;  %v15416_v47 = vld [vmem:[%s16471_s7 + $0xd70] sm:$0xff]  }
 0x214   : > { %13908 = vmatpush3.bf16.msra.mxu0 %v15378_v48 }
 0x215   : > { %13909 = vmatprep.subr.bf16.mxu0 %v15380_v50 }
 0x216   : > { %13930 = vmatpush3.bf16.msra.mxu1 %v15379_v49  ;;  %v13607_v56 = vpop.f32.mrb[20].mxu0  ;;  %v15417_v49 = vld [vmem:[%s16471_s7 + $0xdf0] sm:$0xff]  }
 0x217   : > { %v13608_v58 = vpop.f32.mrb[21].mxu0  ;;  %13931 = vmatprep.subr.bf16.mxu1 %v15381_v51  ;;  %v15418_v51 = vld [vmem:[%s16471_s7 + $0xd30] sm:$0xff]  }
 0x218   : > { %v13629_v60 = vpop.f32.mrb[20].mxu1  ;;  %v13609_v55 = vadd.f32 %v13608_v58, %v13607_v56  ;;  %v13610_v61 = vpop.f32.mrb[22].mxu0  ;;  %13910 = vmatpush3.bf16.msra.mxu0 %v15382_v52  ;;  %v15419_v56 = vld [vmem:[%s16471_s7 + $0xdb0] sm:$0xff]  }
 0x219   : > { %v13630_v1 = vpop.f32.mrb[21].mxu1  ;;  %v13611_v2 = vpop.f32.mrb[23].mxu0  ;;  %13911 = vmatprep.subr.bf16.mxu0 %v15384_v54 }
 0x21a   : > { %v9924_v5 = vadd.f32 %v13609_v55, %v16977_v25  ;;  %v13631_v6 = vadd.f32 %v13630_v1, %v13629_v60  ;;  %v13632_v7 = vpop.f32.mrb[22].mxu1  ;;  %13932 = vmatpush3.bf16.msra.mxu1 %v15383_v53  ;;  %v15396_v25 = vld [vmem:[%s16471_s7 + $0xd48] sm:$0xff]   ;;  %v15423_v2 = vld [vmem:[%s16471_s7 + $0xdb8] sm:$0xff]  }
 0x21b   : > { %v13633_v9 = vpop.f32.mrb[23].mxu1  ;;  %13933 = vmatprep.subr.bf16.mxu1 %v15385_v57  ;;  %v15420_v57 = vld [vmem:[%s16471_s7 + $0xd78] sm:$0xff]   ;;  %v15428_v7 = vld [vmem:[%s16471_s7 + $0xe80] sm:$0xff]  }
 0x21c   : > { %v17019_v13 = vadd.f32 %v13631_v6, %v9924_v5  ;;  %13912 = vmatpush3.bf16.msra.mxu0 %v15386_v59  ;;  %v15426_v5 = vld [vmem:[%s16471_s7 + $0xec0] sm:$0xff]   ;;  %v15429_v9 = vld [vmem:[%s16471_s7 + $0xe48] sm:$0xff]  }
 0x21d   : > { %13913 = vmatprep.subr.bf16.mxu0 %v15388_v63  ;;  %v15427_v6 = vld [vmem:[%s16471_s7 + $0xe00] sm:$0xff]  }
 0x21e   : > { %13934 = vmatpush3.bf16.msra.mxu1 %v15387_v62  ;;  %v15421_v62 = vld [vmem:[%s16471_s7 + $0xdf8] sm:$0xff]  }
 0x21f   : > { %13935 = vmatprep.subr.bf16.mxu1 %v15389_v8  ;;  %v2773_v8 = vcombine.high %v2757_v3, %v2757_v3 }
 0x220   : > { %13914 = vmatpush3.bf16.msra.mxu0 %v15390_v10  ;;  %v15430_v10 = vld [vmem:[%s16471_s7 + $0xec8] sm:$0xff]  }
 0x221   : > { %13943 = vmatprep.subr.bf16.mxu0 %v15392_v17  ;;  %v15437_v17 = vld [vmem:[%s16471_s7 + $0xe58] sm:$0xff]  }
 0x222   : > { %13936 = vmatpush3.bf16.msra.mxu1 %v15391_v14  ;;  %v15434_v14 = vld [vmem:[%s16471_s7 + $0xed0] sm:$0xff]  }
 0x223   : > { %10482 = vmatmul.mubr.bf16.vlgmr.msra.gmra.mrb[48].mxu0 %v2750_v16  ;;  %13965 = vmatprep.subr.bf16.mxu1 %v15393_v19  ;;  %v15436_v16 = vld [vmem:[%s16471_s7 + $0xe90] sm:$0xff]   ;;  %v15439_v19 = vld [vmem:[%s16471_s7 + $0xe18] sm:$0xff]  }
 0x224   : > { %13944 = vmatpush3.bf16.msra.mxu0 %v15394_v21  ;;  %10561 = vmatprep.mubr.bf16.mxu0 %v2771_v22  ;;  %v15441_v21 = vld [vmem:[%s16471_s7 + $0xe60] sm:$0xff]  }
 0x225   : > { %10522 = vmatmul.mubr.bf16.vlgmr.msra.gmra.mrb[48].mxu1 %v2772_v24  ;;  %13945 = vmatprep.subr.bf16.mxu0 %v15396_v25  ;;  %v15442_v22 = vld [vmem:[%s16471_s7 + $0xee0] sm:$0xff]   ;;  %v15445_v25 = vld [vmem:[%s16471_s7 + $0xe68] sm:$0xff]  }
 0x226   : > { %13966 = vmatpush3.bf16.msra.mxu1 %v15395_v23  ;;  %10601 = vmatprep.mubr.bf16.mxu1 %v2775_v27  ;;  %v15443_v23 = vld [vmem:[%s16471_s7 + $0xe20] sm:$0xff]   ;;  %v15447_v27 = vld [vmem:[%s16471_s7 + $0xe28] sm:$0xff]  }
 0x227   : > { %13967 = vmatprep.subr.bf16.mxu1 %v15397_v26  ;;  %v15444_v24 = vld [vmem:[%s16471_s7 + $0xea0] sm:$0xff]   ;;  %v15446_v26 = vld [vmem:[%s16471_s7 + $0xee8] sm:$0xff]  }
 0x228   : > { %13946 = vmatpush3.bf16.msra.mxu0 %v15398_v28  ;;  %v15448_v28 = vld [vmem:[%s16471_s7 + $0xea8] sm:$0xff]  }
 0x229   : > { %13947 = vmatprep.subr.bf16.mxu0 %v15400_v30 }
 0x22a   : > { %13968 = vmatpush3.bf16.msra.mxu1 %v15399_v29  ;;  %v15449_v29 = vld [vmem:[%s16471_s7 + $0xe70] sm:$0xff]  }
 0x22b   : > { %13969 = vmatprep.subr.bf16.mxu1 %v15401_v31  ;;  %v15450_v31 = vld [vmem:[%s16471_s7 + $0xef0] sm:$0xff]  }
 0x22c   : > { %13948 = vmatpush3.bf16.msra.mxu0 %v15402_v32 }
 0x22d   : > { %13949 = vmatprep.subr.bf16.mxu0 %v15404_v34 }
 0x22e   : > { %13970 = vmatpush3.bf16.msra.mxu1 %v15403_v33  ;;  %v15451_v33 = vld [vmem:[%s16471_s7 + $0xe30] sm:$0xff]  }
 0x22f   : > { %13971 = vmatprep.subr.bf16.mxu1 %v15405_v35 }
 0x230   : > { %13950 = vmatpush3.bf16.msra.mxu0 %v15406_v36 }
 0x231   : > { %13951 = vmatprep.subr.bf16.mxu0 %v15408_v38  ;;  %v15453_v38 = vld [vmem:[%s16471_s7 + $0xe78] sm:$0xff]  }
 0x232   : > { %13972 = vmatpush3.bf16.msra.mxu1 %v15407_v37  ;;  %v15452_v37 = vld [vmem:[%s16471_s7 + $0xeb0] sm:$0xff]  }
 0x233   : > { %13973 = vmatprep.subr.bf16.mxu1 %v15409_v39 }
 0x234   : > { %13952 = vmatpush3.bf16.msra.mxu0 %v15410_v40 }
 0x235   : > { %13953 = vmatprep.subr.bf16.mxu0 %v15412_v43 }
 0x236   : > { %13974 = vmatpush3.bf16.msra.mxu1 %v15411_v41  ;;  %v13651_v48 = vpop.f32.mrb[24].mxu0  ;;  %v15454_v41 = vld [vmem:[%s16471_s7 + $0xef8] sm:$0xff]  }
 0x237   : > { %v13652_v50 = vpop.f32.mrb[25].mxu0  ;;  %13975 = vmatprep.subr.bf16.mxu1 %v15413_v44 }
 0x238   : > { %v13673_v52 = vpop.f32.mrb[24].mxu1  ;;  %v13653_v53 = vadd.f32 %v13652_v50, %v13651_v48  ;;  %v13654_v54 = vpop.f32.mrb[26].mxu0  ;;  %13954 = vmatpush3.bf16.msra.mxu0 %v15414_v45  ;;  %v15455_v48 = vld [vmem:[%s16471_s7 + $0xe38] sm:$0xff]  }
 0x239   : > { %v13674_v58 = vpop.f32.mrb[25].mxu1  ;;  %v13655_v59 = vpop.f32.mrb[27].mxu0  ;;  %13955 = vmatprep.subr.bf16.mxu0 %v15416_v47 }
 0x23a   : > { %v10004_v60 = vadd.f32 %v13653_v53, %v17019_v13  ;;  %v13675_v55 = vadd.f32 %v13674_v58, %v13673_v52  ;;  %v13676_v61 = vpop.f32.mrb[26].mxu1  ;;  %13976 = vmatpush3.bf16.msra.mxu1 %v15415_v46  ;;  %v15433_v13 = vld [vmem:[%s16471_s7 + $0xe50] sm:$0xff]   ;;  %v360_v46 = vld [vmem:[%s16493_s26 + $0x38] sm:$0xff]  ;;  %v15458_v58 = vld [vmem:[%s16471_s7 + $0xfc0] sm:$0xff]  }
 0x23b   : > { %v13677_v63 = vpop.f32.mrb[27].mxu1  ;;  %13977 = vmatprep.subr.bf16.mxu1 %v15417_v49  ;;  %v2783_v49 = vrot.slane %v360_v46, %v16545_v42  ;;  %v2776_v50 = vcombine.high %v360_v46, %v360_v46  ;;  %v15456_v52 = vld [vmem:[%s16471_s7 + $0xeb8] sm:$0xff]   ;;  %v15460_v61 = vld [vmem:[%s16471_s7 + $0xf80] sm:$0xff]  }
 0x23c   : > { %v17059_v1 = vadd.f32 %v13675_v55, %v10004_v60  ;;  %13956 = vmatpush3.bf16.msra.mxu0 %v15418_v51  ;;  %v15459_v60 = vld [vmem:[%s16471_s7 + $0xf00] sm:$0xff]  }
 0x23d   : > { %13957 = vmatprep.subr.bf16.mxu0 %v15420_v57  ;;  %v2791_v53 = vcombine.high %v2783_v49, %v2783_v49  ;;  %v2799_v54 = vrot.slane %v2783_v49, %v16545_v42  ;;  %v17104_v57 = vrot.slane %v2776_v50, %v16545_v42  ;;  %v15492_v46 = vld [vmem:[%s16471_s7 + $0x1000] sm:$0xff]   ;;  %v15494_v49 = vld [vmem:[%s16471_s7 + $0x1048] sm:$0xff]  }
 0x23e   : > { %13978 = vmatpush3.bf16.msra.mxu1 %v15419_v56  ;;  %v15457_v56 = vld [vmem:[%s16471_s7 + $0xf40] sm:$0xff]   ;;  %v15495_v50 = vld [vmem:[%s16471_s7 + $0x10c8] sm:$0xff]  }
 0x23f   : > { %13979 = vmatprep.subr.bf16.mxu1 %v15421_v62  ;;  %v2813_v59 = vrot.slane %v2791_v53, %v16545_v42  ;;  %v2792_v55 = vcombine.high %v17104_v57, %v17104_v57  ;;  %v2821_v63 = vcombine.high %v2799_v54, %v2799_v54  ;;  %v15498_v53 = vld [vmem:[%s16471_s7 + $0x1050] sm:$0xff]  }
 0x240   : > { %13958 = vmatpush3.bf16.msra.mxu0 %v15422_v0  ;;  %v15461_v0 = vld [vmem:[%s16471_s7 + $0xf48] sm:$0xff]  }
 0x241   : > { %13987 = vmatprep.subr.bf16.mxu0 %v15425_v4  ;;  %v2823_v62 = vcombine.high %v2813_v59, %v2813_v59 }
 0x242   : > { %13980 = vmatpush3.bf16.msra.mxu1 %v15423_v2  ;;  %v15462_v2 = vld [vmem:[%s16471_s7 + $0xfc8] sm:$0xff]  }
 0x243   : > { %10562 = vmatmul.mubr.bf16.vlgmr.msra.gmra.mrb[52].mxu0 %v2757_v3  ;;  %14009 = vmatprep.subr.bf16.mxu1 %v15426_v5  ;;  %v15463_v3 = vld [vmem:[%s16471_s7 + $0xf08] sm:$0xff]  }
 0x244   : > { %13988 = vmatpush3.bf16.msra.mxu0 %v15427_v6  ;;  %10641 = vmatprep.mubr.bf16.mxu0 %v2813_v59  ;;  %v15464_v5 = vld [vmem:[%s16471_s7 + $0xf88] sm:$0xff]   ;;  %v15465_v6 = vld [vmem:[%s16471_s7 + $0xf50] sm:$0xff]   ;;  %v15503_v59 = vld [vmem:[%s16471_s7 + $0x10d8] sm:$0xff]  }
 0x245   : > { %10602 = vmatmul.mubr.bf16.vlgmr.msra.gmra.mrb[52].mxu1 %v2773_v8  ;;  %13989 = vmatprep.subr.bf16.mxu0 %v15429_v9  ;;  %v15467_v8 = vld [vmem:[%s16471_s7 + $0xf10] sm:$0xff]  }
 0x246   : > { %14010 = vmatpush3.bf16.msra.mxu1 %v15428_v7  ;;  %10681 = vmatprep.mubr.bf16.mxu1 %v2823_v62  ;;  %v15466_v7 = vld [vmem:[%s16471_s7 + $0xfd0] sm:$0xff]   ;;  %v15507_v62 = vld [vmem:[%s16471_s7 + $0x10e0] sm:$0xff]  }
 0x247   : > { %14011 = vmatprep.subr.bf16.mxu1 %v15430_v10  ;;  %v15468_v9 = vld [vmem:[%s16471_s7 + $0xf90] sm:$0xff]   ;;  %v15469_v10 = vld [vmem:[%s16471_s7 + $0xf58] sm:$0xff]  }
 0x248   : > { %13990 = vmatpush3.bf16.msra.mxu0 %v15431_v11  ;;  %v15470_v11 = vld [vmem:[%s16471_s7 + $0xfd8] sm:$0xff]  }
 0x249   : > { %13991 = vmatprep.subr.bf16.mxu0 %v15433_v13  ;;  %v15472_v13 = vld [vmem:[%s16471_s7 + $0xf98] sm:$0xff]  }
 0x24a   : > { %14012 = vmatpush3.bf16.msra.mxu1 %v15432_v12  ;;  %v15471_v12 = vld [vmem:[%s16471_s7 + $0xf18] sm:$0xff]  }
 0x24b   : > { %14013 = vmatprep.subr.bf16.mxu1 %v15434_v14  ;;  %v15473_v14 = vld [vmem:[%s16471_s7 + $0xf60] sm:$0xff]  }
 0x24c   : > { %13992 = vmatpush3.bf16.msra.mxu0 %v15435_v15  ;;  %v15474_v15 = vld [vmem:[%s16471_s7 + $0xfe0] sm:$0xff]  }
 0x24d   : > { %13993 = vmatprep.subr.bf16.mxu0 %v15437_v17  ;;  %v15476_v17 = vld [vmem:[%s16471_s7 + $0xfa0] sm:$0xff]  }
 0x24e   : > { %14014 = vmatpush3.bf16.msra.mxu1 %v15436_v16  ;;  %v15475_v16 = vld [vmem:[%s16471_s7 + $0xf20] sm:$0xff]  }
 0x24f   : > { %14015 = vmatprep.subr.bf16.mxu1 %v15438_v18  ;;  %v15477_v18 = vld [vmem:[%s16471_s7 + $0xf68] sm:$0xff]  }
 0x250   : > { %13994 = vmatpush3.bf16.msra.mxu0 %v15439_v19  ;;  %v15478_v19 = vld [vmem:[%s16471_s7 + $0xfe8] sm:$0xff]  }
 0x251   : > { %13995 = vmatprep.subr.bf16.mxu0 %v15441_v21  ;;  %v15480_v21 = vld [vmem:[%s16471_s7 + $0xfa8] sm:$0xff]  }
 0x252   : > { %14016 = vmatpush3.bf16.msra.mxu1 %v15440_v20  ;;  %v15479_v20 = vld [vmem:[%s16471_s7 + $0xf28] sm:$0xff]  }
 0x253   : > { %14017 = vmatprep.subr.bf16.mxu1 %v15442_v22  ;;  %v15481_v22 = vld [vmem:[%s16471_s7 + $0xf70] sm:$0xff]  }
 0x254   : > { %13996 = vmatpush3.bf16.msra.mxu0 %v15443_v23 }
 0x255   : > { %13997 = vmatprep.subr.bf16.mxu0 %v15445_v25 }
 0x256   : > { %14018 = vmatpush3.bf16.msra.mxu1 %v15444_v24  ;;  %v13695_v30 = vpop.f32.mrb[28].mxu0  ;;  %v15482_v24 = vld [vmem:[%s16471_s7 + $0xff0] sm:$0xff]  }
 0x257   : > { %v13696_v32 = vpop.f32.mrb[29].mxu0  ;;  %14019 = vmatprep.subr.bf16.mxu1 %v15446_v26  ;;  %v15483_v26 = vld [vmem:[%s16471_s7 + $0xf30] sm:$0xff]  }
 0x258   : > { %v13717_v34 = vpop.f32.mrb[28].mxu1  ;;  %v13697_v35 = vadd.f32 %v13696_v32, %v13695_v30  ;;  %v13698_v36 = vpop.f32.mrb[30].mxu0  ;;  %13998 = vmatpush3.bf16.msra.mxu0 %v15447_v27  ;;  %v15484_v30 = vld [vmem:[%s16471_s7 + $0xfb0] sm:$0xff]  }
 0x259   : > { %v13718_v39 = vpop.f32.mrb[29].mxu1  ;;  %v13699_v40 = vpop.f32.mrb[31].mxu0  ;;  %13999 = vmatprep.subr.bf16.mxu0 %v15449_v29 }
 0x25a   : > { %v10084_v43 = vadd.f32 %v13697_v35, %v17059_v1  ;;  %v13719_v44 = vadd.f32 %v13718_v39, %v13717_v34  ;;  %v13720_v45 = vpop.f32.mrb[30].mxu1  ;;  %14020 = vmatpush3.bf16.msra.mxu1 %v15448_v28  ;;  %v2820_v1 = vrot.slane %v2792_v55, %v16545_v42  ;;  %v15487_v39 = vld [vmem:[%s16471_s7 + $0xf38] sm:$0xff]  }
 0x25b   : > { %v13721_v47 = vpop.f32.mrb[31].mxu1  ;;  %14021 = vmatprep.subr.bf16.mxu1 %v15450_v31  ;;  %v15485_v31 = vld [vmem:[%s16471_s7 + $0xf78] sm:$0xff]   ;;  %v15491_v45 = vld [vmem:[%s16471_s7 + $0x10c0] sm:$0xff]  }
 0x25c   : > { %v17098_v51 = vadd.f32 %v13719_v44, %v10084_v43  ;;  %14000 = vmatpush3.bf16.msra.mxu0 %v15451_v33  ;;  %v2824_v4 = vcombine.high %v2820_v1, %v2820_v1  ;;  %v2806_v43 = vrot.slane %v17104_v57, %v16545_v42  ;;  %v15490_v44 = vld [vmem:[%s16471_s7 + $0x1040] sm:$0xff]   ;;  %v15501_v57 = vld [vmem:[%s16471_s7 + $0x1090] sm:$0xff]   ;;  %v15505_v55 = vld [vmem:[%s16471_s7 + $0x1098] sm:$0xff]  }
 0x25d   : > { %14001 = vmatprep.subr.bf16.mxu0 %v15453_v38  ;;  %v15493_v47 = vld [vmem:[%s16471_s7 + $0x1080] sm:$0xff]  }
 0x25e   : > { %14022 = vmatpush3.bf16.msra.mxu1 %v15452_v37  ;;  %v15486_v37 = vld [vmem:[%s16471_s7 + $0xff8] sm:$0xff]  }
 0x25f   : > { %14023 = vmatprep.subr.bf16.mxu1 %v15454_v41  ;;  %v15488_v41 = vld [vmem:[%s16471_s7 + $0xfb8] sm:$0xff]  }
 0x260   : > { %14002 = vmatpush3.bf16.msra.mxu0 %v15455_v48  ;;  %v2822_v48 = vcombine.high %v2806_v43, %v2806_v43 }
 0x261   : > { %14031 = vmatprep.subr.bf16.mxu0 %v15457_v56  ;;  %v15500_v56 = vld [vmem:[%s16471_s7 + $0x1010] sm:$0xff]  }
 0x262   : > { %14024 = vmatpush3.bf16.msra.mxu1 %v15456_v52  ;;  %v15497_v52 = vld [vmem:[%s16471_s7 + $0x1088] sm:$0xff]  }
 0x263   : > { %10642 = vmatmul.mubr.bf16.vlgmr.msra.gmra.mrb[56].mxu0 %v2799_v54  ;;  %14053 = vmatprep.subr.bf16.mxu1 %v15458_v58  ;;  %v15499_v54 = vld [vmem:[%s16471_s7 + $0x10d0] sm:$0xff]   ;;  %v15502_v58 = vld [vmem:[%s16471_s7 + $0x1058] sm:$0xff]  }
 0x264   : > { %14032 = vmatpush3.bf16.msra.mxu0 %v15459_v60  ;;  %10721 = vmatprep.mubr.bf16.mxu0 %v2820_v1  ;;  %v15504_v60 = vld [vmem:[%s16471_s7 + $0x1018] sm:$0xff]   ;;  %v15510_v1 = vld [vmem:[%s16471_s7 + $0x1068] sm:$0xff]  }
 0x265   : > { %10682 = vmatmul.mubr.bf16.vlgmr.msra.gmra.mrb[56].mxu1 %v2821_v63  ;;  %14033 = vmatprep.subr.bf16.mxu0 %v15461_v0  ;;  %v15508_v63 = vld [vmem:[%s16471_s7 + $0x1020] sm:$0xff]  }
 0x266   : > { %14054 = vmatpush3.bf16.msra.mxu1 %v15460_v61  ;;  %10761 = vmatprep.mubr.bf16.mxu1 %v2824_v4  ;;  %v15506_v61 = vld [vmem:[%s16471_s7 + $0x1060] sm:$0xff]   ;;  %v15513_v4 = vld [vmem:[%s16471_s7 + $0x10a8] sm:$0xff]  }
 0x267   : > { %14055 = vmatprep.subr.bf16.mxu1 %v15462_v2  ;;  %v15509_v0 = vld [vmem:[%s16471_s7 + $0x10a0] sm:$0xff]   ;;  %v15511_v2 = vld [vmem:[%s16471_s7 + $0x10e8] sm:$0xff]  }
 0x268   : > { %14034 = vmatpush3.bf16.msra.mxu0 %v15463_v3  ;;  %v15512_v3 = vld [vmem:[%s16471_s7 + $0x1028] sm:$0xff]  }
 0x269   : > { %14035 = vmatprep.subr.bf16.mxu0 %v15465_v6 }
 0x26a   : > { %14056 = vmatpush3.bf16.msra.mxu1 %v15464_v5  ;;  %v15514_v5 = vld [vmem:[%s16471_s7 + $0x1070] sm:$0xff]  }
 0x26b   : > { %14057 = vmatprep.subr.bf16.mxu1 %v15466_v7  ;;  %v15515_v7 = vld [vmem:[%s16471_s7 + $0x10f0] sm:$0xff]  }
 0x26c   : > { %14036 = vmatpush3.bf16.msra.mxu0 %v15467_v8 }
 0x26d   : > { %14037 = vmatprep.subr.bf16.mxu0 %v15469_v10 }
 0x26e   : > { %14058 = vmatpush3.bf16.msra.mxu1 %v15468_v9  ;;  %v15516_v9 = vld [vmem:[%s16471_s7 + $0x1030] sm:$0xff]  }
 0x26f   : > { %14059 = vmatprep.subr.bf16.mxu1 %v15470_v11 }
 0x270   : > { %14038 = vmatpush3.bf16.msra.mxu0 %v15471_v12 }
 0x271   : > { %14039 = vmatprep.subr.bf16.mxu0 %v15473_v14  ;;  %v15518_v14 = vld [vmem:[%s16471_s7 + $0x1078] sm:$0xff]  }
 0x272   : > { %14060 = vmatpush3.bf16.msra.mxu1 %v15472_v13  ;;  %v15517_v13 = vld [vmem:[%s16471_s7 + $0x10b0] sm:$0xff]  }
 0x273   : > { %14061 = vmatprep.subr.bf16.mxu1 %v15474_v15 }
 0x274   : > { %14040 = vmatpush3.bf16.msra.mxu0 %v15475_v16 }
 0x275   : > { %14041 = vmatprep.subr.bf16.mxu0 %v15477_v18 }
 0x276   : > { %14062 = vmatpush3.bf16.msra.mxu1 %v15476_v17  ;;  %v13739_v23 = vpop.f32.mrb[32].mxu0  ;;  %v15519_v17 = vld [vmem:[%s16471_s7 + $0x10f8] sm:$0xff]  }
 0x277   : > { %v13740_v25 = vpop.f32.mrb[33].mxu0  ;;  %14063 = vmatprep.subr.bf16.mxu1 %v15478_v19 }
 0x278   : > { %v13761_v27 = vpop.f32.mrb[32].mxu1  ;;  %v13741_v28 = vadd.f32 %v13740_v25, %v13739_v23  ;;  %v13742_v29 = vpop.f32.mrb[34].mxu0  ;;  %14042 = vmatpush3.bf16.msra.mxu0 %v15479_v20  ;;  %v361_v23 = vld [vmem:[%s16493_s26 + $0x40] sm:$0xff]  ;;  %v15521_v25 = vld [vmem:[%s16471_s7 + $0x10b8] sm:$0xff]  }
 0x279   : > { %v13762_v32 = vpop.f32.mrb[33].mxu1  ;;  %v13743_v33 = vpop.f32.mrb[35].mxu0  ;;  %14043 = vmatprep.subr.bf16.mxu0 %v15481_v22 }
 0x27a   : > { %v10164_v34 = vadd.f32 %v13741_v28, %v17098_v51  ;;  %v13763_v35 = vadd.f32 %v13762_v32, %v13761_v27  ;;  %v13764_v36 = vpop.f32.mrb[34].mxu1  ;;  %14064 = vmatpush3.bf16.msra.mxu1 %v15480_v21  ;;  %v15496_v51 = vld [vmem:[%s16471_s7 + $0x1008] sm:$0xff]   ;;  %v15520_v21 = vld [vmem:[%s16471_s7 + $0x1038] sm:$0xff]   ;;  %v2825_v27 = vcombine.high %v361_v23, %v361_v23  ;;  %v15522_v28 = vld [vmem:[%s16471_s7 + $0x1140] sm:$0xff]  }
 0x27b   : > { %v13765_v38 = vpop.f32.mrb[35].mxu1  ;;  %14065 = vmatprep.subr.bf16.mxu1 %v15482_v24  ;;  %v15524_v33 = vld [vmem:[%s16471_s7 + $0x1100] sm:$0xff]  }
 0x27c   : > { %v17141_v40 = vadd.f32 %v13763_v35, %v10164_v34  ;;  %14044 = vmatpush3.bf16.msra.mxu0 %v15483_v26  ;;  %v2832_v26 = vrot.slane %v361_v23, %v16545_v42  ;;  %v17187_v32 = vrot.slane %v2825_v27, %v16545_v42  ;;  %v15525_v35 = vld [vmem:[%s16471_s7 + $0x1180] sm:$0xff]   ;;  %v15526_v38 = vld [vmem:[%s16471_s7 + $0x1148] sm:$0xff]  }
 0x27d   : > { %14045 = vmatprep.subr.bf16.mxu0 %v15485_v31  ;;  %v15523_v31 = vld [vmem:[%s16471_s7 + $0x11c0] sm:$0xff]   ;;  %v15562_v27 = vld [vmem:[%s16471_s7 + $0x1288] sm:$0xff]  }
 0x27e   : > { %14066 = vmatpush3.bf16.msra.mxu1 %v15484_v30  ;;  %v2840_v29 = vcombine.high %v2832_v26, %v2832_v26  ;;  %v2848_v30 = vrot.slane %v2832_v26, %v16545_v42  ;;  %v2841_v36 = vcombine.high %v17187_v32, %v17187_v32  ;;  %v15561_v26 = vld [vmem:[%s16471_s7 + $0x1208] sm:$0xff]  }
 0x27f   : > { %14067 = vmatprep.subr.bf16.mxu1 %v15486_v37 }
 0x280   : > { %14046 = vmatpush3.bf16.msra.mxu0 %v15487_v39  ;;  %v2862_v34 = vrot.slane %v2840_v29, %v16545_v42  ;;  %v2870_v37 = vcombine.high %v2848_v30, %v2848_v30  ;;  %v15564_v29 = vld [vmem:[%s16471_s7 + $0x12d0] sm:$0xff]  }
 0x281   : > { %14075 = vmatprep.subr.bf16.mxu0 %v15490_v44  ;;  %v15529_v44 = vld [vmem:[%s16471_s7 + $0x1188] sm:$0xff]  }
 0x282   : > { %14068 = vmatpush3.bf16.msra.mxu1 %v15488_v41  ;;  %v2872_v39 = vcombine.high %v2862_v34, %v2862_v34  ;;  %v2869_v41 = vrot.slane %v2841_v36, %v16545_v42  ;;  %v15571_v36 = vld [vmem:[%s16471_s7 + $0x1260] sm:$0xff]  }
 0x283   : > { %10722 = vmatmul.mubr.bf16.vlgmr.msra.gmra.mrb[60].mxu0 %v2806_v43  ;;  %14097 = vmatprep.subr.bf16.mxu1 %v15491_v45  ;;  %v15528_v43 = vld [vmem:[%s16471_s7 + $0x1108] sm:$0xff]  }
 0x284   : > { %14076 = vmatpush3.bf16.msra.mxu0 %v15492_v46  ;;  %10801 = vmatprep.mubr.bf16.mxu0 %v2862_v34  ;;  %v2873_v45 = vcombine.high %v2869_v41, %v2869_v41  ;;  %v15530_v46 = vld [vmem:[%s16471_s7 + $0x1150] sm:$0xff]   ;;  %v15569_v34 = vld [vmem:[%s16471_s7 + $0x1218] sm:$0xff]  }
 0x285   : > { %10762 = vmatmul.mubr.bf16.vlgmr.msra.gmra.mrb[60].mxu1 %v2822_v48  ;;  %14077 = vmatprep.subr.bf16.mxu0 %v15494_v49  ;;  %v15532_v48 = vld [vmem:[%s16471_s7 + $0x1110] sm:$0xff]  }
 0x286   : > { %14098 = vmatpush3.bf16.msra.mxu1 %v15493_v47  ;;  %10841 = vmatprep.mubr.bf16.mxu1 %v2872_v39  ;;  %v15531_v47 = vld [vmem:[%s16471_s7 + $0x11d0] sm:$0xff]   ;;  %v15574_v39 = vld [vmem:[%s16471_s7 + $0x12a0] sm:$0xff]  }
 0x287   : > { %14099 = vmatprep.subr.bf16.mxu1 %v15495_v50  ;;  %v15533_v49 = vld [vmem:[%s16471_s7 + $0x1190] sm:$0xff]   ;;  %v15534_v50 = vld [vmem:[%s16471_s7 + $0x1158] sm:$0xff]  }
 0x288   : > { %14078 = vmatpush3.bf16.msra.mxu0 %v15496_v51  ;;  %v15535_v51 = vld [vmem:[%s16471_s7 + $0x11d8] sm:$0xff]  }
 0x289   : > { %14079 = vmatprep.subr.bf16.mxu0 %v15498_v53  ;;  %v15537_v53 = vld [vmem:[%s16471_s7 + $0x1198] sm:$0xff]  }
 0x28a   : > { %14100 = vmatpush3.bf16.msra.mxu1 %v15497_v52  ;;  %v15536_v52 = vld [vmem:[%s16471_s7 + $0x1118] sm:$0xff]  }
 0x28b   : > { %14101 = vmatprep.subr.bf16.mxu1 %v15499_v54  ;;  %v15538_v54 = vld [vmem:[%s16471_s7 + $0x1160] sm:$0xff]  }
 0x28c   : > { %14080 = vmatpush3.bf16.msra.mxu0 %v15500_v56  ;;  %v15539_v56 = vld [vmem:[%s16471_s7 + $0x11e0] sm:$0xff]  }
 0x28d   : > { %14081 = vmatprep.subr.bf16.mxu0 %v15502_v58  ;;  %v15541_v58 = vld [vmem:[%s16471_s7 + $0x11a0] sm:$0xff]  }
 0x28e   : > { %14102 = vmatpush3.bf16.msra.mxu1 %v15501_v57  ;;  %v15540_v57 = vld [vmem:[%s16471_s7 + $0x1120] sm:$0xff]  }
 0x28f   : > { %14103 = vmatprep.subr.bf16.mxu1 %v15503_v59  ;;  %v15542_v59 = vld [vmem:[%s16471_s7 + $0x1168] sm:$0xff]  }
 0x290   : > { %14082 = vmatpush3.bf16.msra.mxu0 %v15504_v60  ;;  %v15543_v60 = vld [vmem:[%s16471_s7 + $0x11e8] sm:$0xff]  }
 0x291   : > { %14083 = vmatprep.subr.bf16.mxu0 %v15506_v61  ;;  %v15545_v61 = vld [vmem:[%s16471_s7 + $0x11a8] sm:$0xff]  }
 0x292   : > { %14104 = vmatpush3.bf16.msra.mxu1 %v15505_v55  ;;  %v15544_v55 = vld [vmem:[%s16471_s7 + $0x1128] sm:$0xff]  }
 0x293   : > { %14105 = vmatprep.subr.bf16.mxu1 %v15507_v62  ;;  %v15546_v62 = vld [vmem:[%s16471_s7 + $0x1170] sm:$0xff]  }
 0x294   : > { %14084 = vmatpush3.bf16.msra.mxu0 %v15508_v63 }
 0x295   : > { %14085 = vmatprep.subr.bf16.mxu0 %v15510_v1 }
 0x296   : > { %14106 = vmatpush3.bf16.msra.mxu1 %v15509_v0  ;;  %v13783_v6 = vpop.f32.mrb[36].mxu0  ;;  %v15547_v0 = vld [vmem:[%s16471_s7 + $0x11f0] sm:$0xff]  }
 0x297   : > { %v13784_v8 = vpop.f32.mrb[37].mxu0  ;;  %14107 = vmatprep.subr.bf16.mxu1 %v15511_v2  ;;  %v15548_v2 = vld [vmem:[%s16471_s7 + $0x1130] sm:$0xff]  }
 0x298   : > { %v13805_v10 = vpop.f32.mrb[36].mxu1  ;;  %v13785_v11 = vadd.f32 %v13784_v8, %v13783_v6  ;;  %v13786_v12 = vpop.f32.mrb[38].mxu0  ;;  %14086 = vmatpush3.bf16.msra.mxu0 %v15512_v3  ;;  %v15549_v6 = vld [vmem:[%s16471_s7 + $0x11b0] sm:$0xff]  }
 0x299   : > { %v13806_v15 = vpop.f32.mrb[37].mxu1  ;;  %v13787_v16 = vpop.f32.mrb[39].mxu0  ;;  %14087 = vmatprep.subr.bf16.mxu0 %v15514_v5 }
 0x29a   : > { %v10244_v18 = vadd.f32 %v13785_v11, %v17141_v40  ;;  %v13807_v19 = vadd.f32 %v13806_v15, %v13805_v10  ;;  %v13808_v20 = vpop.f32.mrb[38].mxu1  ;;  %14108 = vmatpush3.bf16.msra.mxu1 %v15513_v4  ;;  %v15527_v40 = vld [vmem:[%s16471_s7 + $0x11c8] sm:$0xff]   ;;  %v15552_v15 = vld [vmem:[%s16471_s7 + $0x1138] sm:$0xff]  }
 0x29b   : > { %v13809_v22 = vpop.f32.mrb[39].mxu1  ;;  %14109 = vmatprep.subr.bf16.mxu1 %v15515_v7  ;;  %v15550_v7 = vld [vmem:[%s16471_s7 + $0x1178] sm:$0xff]   ;;  %v15556_v20 = vld [vmem:[%s16471_s7 + $0x12c0] sm:$0xff]  }
 0x29c   : > { %v17179_v24 = vadd.f32 %v13807_v19, %v10244_v18  ;;  %14088 = vmatpush3.bf16.msra.mxu0 %v15516_v9  ;;  %v2855_v18 = vrot.slane %v17187_v32, %v16545_v42  ;;  %v15555_v19 = vld [vmem:[%s16471_s7 + $0x1240] sm:$0xff]   ;;  %v15567_v32 = vld [vmem:[%s16471_s7 + $0x1258] sm:$0xff]  }
 0x29d   : > { %14089 = vmatprep.subr.bf16.mxu0 %v15518_v14  ;;  %v15558_v22 = vld [vmem:[%s16471_s7 + $0x1280] sm:$0xff]  }
 0x29e   : > { %14110 = vmatpush3.bf16.msra.mxu1 %v15517_v13  ;;  %v15551_v13 = vld [vmem:[%s16471_s7 + $0x11f8] sm:$0xff]   ;;  %v2871_v23 = vcombine.high %v2855_v18, %v2855_v18 }
 0x29f   : > { %14111 = vmatprep.subr.bf16.mxu1 %v15519_v17  ;;  %v15553_v17 = vld [vmem:[%s16471_s7 + $0x11b8] sm:$0xff]  }
 0x2a0   : > { %14090 = vmatpush3.bf16.msra.mxu0 %v15520_v21  ;;  %v15557_v21 = vld [vmem:[%s16471_s7 + $0x1200] sm:$0xff]  }
 0x2a1   : > { %14119 = vmatprep.subr.bf16.mxu0 %v15522_v28  ;;  %v15563_v28 = vld [vmem:[%s16471_s7 + $0x1250] sm:$0xff]  }
 0x2a2   : > { %14112 = vmatpush3.bf16.msra.mxu1 %v15521_v25  ;;  %v15560_v25 = vld [vmem:[%s16471_s7 + $0x12c8] sm:$0xff]  }
 0x2a3   : > { %10802 = vmatmul.mubr.bf16.vlgmr.msra.gmra.mrb[64].mxu0 %v2848_v30  ;;  %14141 = vmatprep.subr.bf16.mxu1 %v15523_v31  ;;  %v15565_v30 = vld [vmem:[%s16471_s7 + $0x1210] sm:$0xff]  }
 0x2a4   : > { %14120 = vmatpush3.bf16.msra.mxu0 %v15524_v33  ;;  %10881 = vmatprep.mubr.bf16.mxu0 %v2869_v41  ;;  %v15566_v31 = vld [vmem:[%s16471_s7 + $0x1290] sm:$0xff]   ;;  %v15568_v33 = vld [vmem:[%s16471_s7 + $0x12d8] sm:$0xff]   ;;  %v15576_v41 = vld [vmem:[%s16471_s7 + $0x12e8] sm:$0xff]  }
 0x2a5   : > { %10842 = vmatmul.mubr.bf16.vlgmr.msra.gmra.mrb[64].mxu1 %v2870_v37  ;;  %14121 = vmatprep.subr.bf16.mxu0 %v15526_v38  ;;  %v15572_v37 = vld [vmem:[%s16471_s7 + $0x12e0] sm:$0xff]  }
 0x2a6   : > { %14142 = vmatpush3.bf16.msra.mxu1 %v15525_v35  ;;  %10921 = vmatprep.mubr.bf16.mxu1 %v2873_v45  ;;  %v15570_v35 = vld [vmem:[%s16471_s7 + $0x1298] sm:$0xff]   ;;  %v15573_v38 = vld [vmem:[%s16471_s7 + $0x1220] sm:$0xff]   ;;  %v15579_v45 = vld [vmem:[%s16471_s7 + $0x1270] sm:$0xff]  }
 0x2a7   : > { %14143 = vmatprep.subr.bf16.mxu1 %v15527_v40  ;;  %v15575_v40 = vld [vmem:[%s16471_s7 + $0x1268] sm:$0xff]  }
 0x2a8   : > { %14122 = vmatpush3.bf16.msra.mxu0 %v15528_v43  ;;  %v15577_v43 = vld [vmem:[%s16471_s7 + $0x1228] sm:$0xff]  }
 0x2a9   : > { %14123 = vmatprep.subr.bf16.mxu0 %v15530_v46 }
 0x2aa   : > { %14144 = vmatpush3.bf16.msra.mxu1 %v15529_v44  ;;  %v15578_v44 = vld [vmem:[%s16471_s7 + $0x12a8] sm:$0xff]  }
 0x2ab   : > { %14145 = vmatprep.subr.bf16.mxu1 %v15531_v47  ;;  %v15580_v47 = vld [vmem:[%s16471_s7 + $0x12f0] sm:$0xff]  }
 0x2ac   : > { %14124 = vmatpush3.bf16.msra.mxu0 %v15532_v48 }
 0x2ad   : > { %14125 = vmatprep.subr.bf16.mxu0 %v15534_v50 }
 0x2ae   : > { %14146 = vmatpush3.bf16.msra.mxu1 %v15533_v49  ;;  %v15581_v49 = vld [vmem:[%s16471_s7 + $0x1230] sm:$0xff]  }
 0x2af   : > { %14147 = vmatprep.subr.bf16.mxu1 %v15535_v51 }
 0x2b0   : > { %14126 = vmatpush3.bf16.msra.mxu0 %v15536_v52 }
 0x2b1   : > { %14127 = vmatprep.subr.bf16.mxu0 %v15538_v54  ;;  %v15583_v54 = vld [vmem:[%s16471_s7 + $0x1278] sm:$0xff]  }
 0x2b2   : > { %14148 = vmatpush3.bf16.msra.mxu1 %v15537_v53  ;;  %v15582_v53 = vld [vmem:[%s16471_s7 + $0x12b0] sm:$0xff]  }
 0x2b3   : > { %14149 = vmatprep.subr.bf16.mxu1 %v15539_v56 }
 0x2b4   : > { %14128 = vmatpush3.bf16.msra.mxu0 %v15540_v57 }
 0x2b5   : > { %14129 = vmatprep.subr.bf16.mxu0 %v15542_v59 }
 0x2b6   : > { %14150 = vmatpush3.bf16.msra.mxu1 %v15541_v58  ;;  %v13827_v63 = vpop.f32.mrb[40].mxu0 }
 0x2b7   : > { %v13828_v1 = vpop.f32.mrb[41].mxu0  ;;  %14151 = vmatprep.subr.bf16.mxu1 %v15543_v60 }
 0x2b8   : > { %v13849_v3 = vpop.f32.mrb[40].mxu1  ;;  %v13829_v4 = vadd.f32 %v13828_v1, %v13827_v63  ;;  %v13830_v5 = vpop.f32.mrb[42].mxu0  ;;  %14130 = vmatpush3.bf16.msra.mxu0 %v15544_v55  ;;  %v15584_v55 = vld [vmem:[%s16471_s7 + $0x12f8] sm:$0xff]  }
 0x2b9   : > { %v13850_v8 = vpop.f32.mrb[41].mxu1  ;;  %v13831_v9 = vpop.f32.mrb[43].mxu0  ;;  %14131 = vmatprep.subr.bf16.mxu0 %v15546_v62  ;;  %v15585_v62 = vld [vmem:[%s16471_s7 + $0x1238] sm:$0xff]  }
 0x2ba   : > { %v10324_v10 = vadd.f32 %v13829_v4, %v17179_v24  ;;  %v13851_v11 = vadd.f32 %v13850_v8, %v13849_v3  ;;  %v13852_v12 = vpop.f32.mrb[42].mxu1  ;;  %14152 = vmatpush3.bf16.msra.mxu1 %v15545_v61  ;;  %v15559_v24 = vld [vmem:[%s16471_s7 + $0x1248] sm:$0xff]   ;;  %v15586_v4 = vld [vmem:[%s16471_s7 + $0x12b8] sm:$0xff]  }
 0x2bb   : > { %v13853_v14 = vpop.f32.mrb[43].mxu1  ;;  %14153 = vmatprep.subr.bf16.mxu1 %v15547_v0  ;;  %v362_v0 = vld [vmem:[%s16493_s26 + $0x48] sm:$0xff] }
 0x2bc   : > { %v17223_v16 = vadd.f32 %v13851_v11, %v10324_v10  ;;  %14132 = vmatpush3.bf16.msra.mxu0 %v15548_v2  ;;  %v2881_v1 = vrot.slane %v362_v0, %v16545_v42  ;;  %v15587_v2 = vld [vmem:[%s16471_s7 + $0x1340] sm:$0xff]   ;;  %v2874_v3 = vcombine.high %v362_v0, %v362_v0 }
 0x2bd   : > { %14133 = vmatprep.subr.bf16.mxu0 %v15550_v7  ;;  %v15588_v7 = vld [vmem:[%s16471_s7 + $0x13c0] sm:$0xff]  }
 0x2be   : > { %14154 = vmatpush3.bf16.msra.mxu1 %v15549_v6  ;;  %v2889_v5 = vcombine.high %v2881_v1, %v2881_v1  ;;  %v2897_v6 = vrot.slane %v2881_v1, %v16545_v42  ;;  %v17269_v8 = vrot.slane %v2874_v3, %v16545_v42  ;;  %v15589_v10 = vld [vmem:[%s16471_s7 + $0x1300] sm:$0xff]   ;;  %v15625_v1 = vld [vmem:[%s16471_s7 + $0x14c8] sm:$0xff]   ;;  %v15628_v3 = vld [vmem:[%s16471_s7 + $0x1450] sm:$0xff]  }
 0x2bf   : > { %14155 = vmatprep.subr.bf16.mxu1 %v15551_v13  ;;  %v15591_v13 = vld [vmem:[%s16471_s7 + $0x1348] sm:$0xff]   ;;  %v15623_v0 = vld [vmem:[%s16471_s7 + $0x1480] sm:$0xff]  }
 0x2c0   : > { %14134 = vmatpush3.bf16.msra.mxu0 %v15552_v15  ;;  %v2911_v9 = vrot.slane %v2889_v5, %v16545_v42  ;;  %v2890_v11 = vcombine.high %v17269_v8, %v17269_v8  ;;  %v2919_v12 = vcombine.high %v2897_v6, %v2897_v6  ;;  %v15590_v15 = vld [vmem:[%s16471_s7 + $0x1380] sm:$0xff]   ;;  %v15629_v5 = vld [vmem:[%s16471_s7 + $0x14d0] sm:$0xff]  }
 0x2c1   : > { %14163 = vmatprep.subr.bf16.mxu0 %v15555_v19 }
 0x2c2   : > { %14156 = vmatpush3.bf16.msra.mxu1 %v15553_v17  ;;  %v2921_v14 = vcombine.high %v2911_v9, %v2911_v9  ;;  %v15592_v17 = vld [vmem:[%s16471_s7 + $0x13c8] sm:$0xff]  }
 0x2c3   : > { %10882 = vmatmul.mubr.bf16.vlgmr.msra.gmra.mrb[68].mxu0 %v2855_v18  ;;  %14185 = vmatprep.subr.bf16.mxu1 %v15556_v20  ;;  %v15593_v18 = vld [vmem:[%s16471_s7 + $0x1308] sm:$0xff]   ;;  %v15595_v20 = vld [vmem:[%s16471_s7 + $0x1350] sm:$0xff]  }
 0x2c4   : > { %14164 = vmatpush3.bf16.msra.mxu0 %v15557_v21  ;;  %10961 = vmatprep.mubr.bf16.mxu0 %v2911_v9  ;;  %v15594_v21 = vld [vmem:[%s16471_s7 + $0x1388] sm:$0xff]   ;;  %v15633_v9 = vld [vmem:[%s16471_s7 + $0x14d8] sm:$0xff]  }
 0x2c5   : > { %10922 = vmatmul.mubr.bf16.vlgmr.msra.gmra.mrb[68].mxu1 %v2871_v23  ;;  %14165 = vmatprep.subr.bf16.mxu0 %v15559_v24  ;;  %v15597_v23 = vld [vmem:[%s16471_s7 + $0x1310] sm:$0xff]   ;;  %v15599_v24 = vld [vmem:[%s16471_s7 + $0x1358] sm:$0xff]  }
 0x2c6   : > { %14186 = vmatpush3.bf16.msra.mxu1 %v15558_v22  ;;  %11001 = vmatprep.mubr.bf16.mxu1 %v2921_v14  ;;  %v15596_v22 = vld [vmem:[%s16471_s7 + $0x13d0] sm:$0xff]   ;;  %v15638_v14 = vld [vmem:[%s16471_s7 + $0x1420] sm:$0xff]  }
 0x2c7   : > { %14187 = vmatprep.subr.bf16.mxu1 %v15560_v25  ;;  %v15598_v25 = vld [vmem:[%s16471_s7 + $0x1390] sm:$0xff]  }
 0x2c8   : > { %14166 = vmatpush3.bf16.msra.mxu0 %v15561_v26  ;;  %v15600_v26 = vld [vmem:[%s16471_s7 + $0x13d8] sm:$0xff]  }
 0x2c9   : > { %14167 = vmatprep.subr.bf16.mxu0 %v15563_v28  ;;  %v15603_v28 = vld [vmem:[%s16471_s7 + $0x1360] sm:$0xff]  }
 0x2ca   : > { %14188 = vmatpush3.bf16.msra.mxu1 %v15562_v27  ;;  %v15601_v27 = vld [vmem:[%s16471_s7 + $0x1318] sm:$0xff]  }
 0x2cb   : > { %14189 = vmatprep.subr.bf16.mxu1 %v15564_v29  ;;  %v15602_v29 = vld [vmem:[%s16471_s7 + $0x1398] sm:$0xff]  }
 0x2cc   : > { %14168 = vmatpush3.bf16.msra.mxu0 %v15565_v30  ;;  %v15604_v30 = vld [vmem:[%s16471_s7 + $0x13e0] sm:$0xff]  }
 0x2cd   : > { %14169 = vmatprep.subr.bf16.mxu0 %v15567_v32  ;;  %v15607_v32 = vld [vmem:[%s16471_s7 + $0x1368] sm:$0xff]  }
 0x2ce   : > { %14190 = vmatpush3.bf16.msra.mxu1 %v15566_v31  ;;  %v15605_v31 = vld [vmem:[%s16471_s7 + $0x1320] sm:$0xff]  }
 0x2cf   : > { %14191 = vmatprep.subr.bf16.mxu1 %v15568_v33  ;;  %v15606_v33 = vld [vmem:[%s16471_s7 + $0x13a0] sm:$0xff]  }
 0x2d0   : > { %14170 = vmatpush3.bf16.msra.mxu0 %v15569_v34  ;;  %v15608_v34 = vld [vmem:[%s16471_s7 + $0x13e8] sm:$0xff]  }
 0x2d1   : > { %14171 = vmatprep.subr.bf16.mxu0 %v15571_v36 }
 0x2d2   : > { %14192 = vmatpush3.bf16.msra.mxu1 %v15570_v35  ;;  %v15609_v35 = vld [vmem:[%s16471_s7 + $0x1328] sm:$0xff]  }
 0x2d3   : > { %14193 = vmatprep.subr.bf16.mxu1 %v15572_v37  ;;  %v15611_v37 = vld [vmem:[%s16471_s7 + $0x1370] sm:$0xff]  }
 0x2d4   : > { %14172 = vmatpush3.bf16.msra.mxu0 %v15573_v38 }
 0x2d5   : > { %14173 = vmatprep.subr.bf16.mxu0 %v15575_v40 }
 0x2d6   : > { %14194 = vmatpush3.bf16.msra.mxu1 %v15574_v39  ;;  %v13871_v46 = vpop.f32.mrb[44].mxu0  ;;  %v15610_v39 = vld [vmem:[%s16471_s7 + $0x13a8] sm:$0xff]  }
 0x2d7   : > { %v13872_v48 = vpop.f32.mrb[45].mxu0  ;;  %14195 = vmatprep.subr.bf16.mxu1 %v15576_v41 }
 0x2d8   : > { %v13893_v50 = vpop.f32.mrb[44].mxu1  ;;  %v13873_v51 = vadd.f32 %v13872_v48, %v13871_v46  ;;  %v13874_v52 = vpop.f32.mrb[46].mxu0  ;;  %14174 = vmatpush3.bf16.msra.mxu0 %v15577_v43 }
 0x2d9   : > { %v13894_v56 = vpop.f32.mrb[45].mxu1  ;;  %v13875_v57 = vpop.f32.mrb[47].mxu0  ;;  %14175 = vmatprep.subr.bf16.mxu0 %v15579_v45  ;;  %v15613_v45 = vld [vmem:[%s16471_s7 + $0x1330] sm:$0xff]  }
 0x2da   : > { %v10404_v58 = vadd.f32 %v13873_v51, %v17223_v16  ;;  %v13895_v59 = vadd.f32 %v13894_v56, %v13893_v50  ;;  %v13896_v60 = vpop.f32.mrb[46].mxu1  ;;  %14196 = vmatpush3.bf16.msra.mxu1 %v15578_v44  ;;  %v2918_v16 = vrot.slane %v2890_v11, %v16545_v42  ;;  %v15612_v44 = vld [vmem:[%s16471_s7 + $0x13f0] sm:$0xff]   ;;  %v15615_v51 = vld [vmem:[%s16471_s7 + $0x1378] sm:$0xff]   ;;  %v15636_v11 = vld [vmem:[%s16471_s7 + $0x1460] sm:$0xff]  }
 0x2db   : > { %v13897_v61 = vpop.f32.mrb[47].mxu1  ;;  %14197 = vmatprep.subr.bf16.mxu1 %v15580_v47  ;;  %v15616_v56 = vld [vmem:[%s16471_s7 + $0x13f8] sm:$0xff]  }
 0x2dc   : > { %v17260_v63 = vadd.f32 %v13895_v59, %v10404_v58  ;;  %14176 = vmatpush3.bf16.msra.mxu0 %v15581_v49  ;;  %v2922_v19 = vcombine.high %v2918_v16, %v2918_v16  ;;  %v15617_v57 = vld [vmem:[%s16471_s7 + $0x1338] sm:$0xff]   ;;  %v2904_v58 = vrot.slane %v17269_v8, %v16545_v42  ;;  %v15620_v59 = vld [vmem:[%s16471_s7 + $0x1440] sm:$0xff]   ;;  %v15631_v8 = vld [vmem:[%s16471_s7 + $0x1490] sm:$0xff]  }
 0x2dd   : > { %14177 = vmatprep.subr.bf16.mxu0 %v15583_v54  ;;  %v15618_v60 = vld [vmem:[%s16471_s7 + $0x13b8] sm:$0xff]   ;;  %v15622_v61 = vld [vmem:[%s16471_s7 + $0x1400] sm:$0xff]  }
 0x2de   : > { %14198 = vmatpush3.bf16.msra.mxu1 %v15582_v53  ;;  %v15614_v53 = vld [vmem:[%s16471_s7 + $0x13b0] sm:$0xff]  }
 0x2df   : > { %14199 = vmatprep.subr.bf16.mxu1 %v15584_v55  ;;  %v15621_v55 = vld [vmem:[%s16471_s7 + $0x14c0] sm:$0xff]  }
 0x2e0   : > { %14178 = vmatpush3.bf16.msra.mxu0 %v15585_v62  ;;  %v2920_v62 = vcombine.high %v2904_v58, %v2904_v58 }
 0x2e1   : > { %14207 = vmatprep.subr.bf16.mxu0 %v15587_v2  ;;  %v15626_v2 = vld [vmem:[%s16471_s7 + $0x1408] sm:$0xff]  }
 0x2e2   : > { %14200 = vmatpush3.bf16.msra.mxu1 %v15586_v4  ;;  %v15627_v4 = vld [vmem:[%s16471_s7 + $0x1488] sm:$0xff]  }
 0x2e3   : > { %14229 = vmatprep.subr.bf16.mxu1 %v15588_v7  ;;  %10962 = vmatmul.mubr.bf16.vlgmr.msra.gmra.mrb[72].mxu0 %v2897_v6  ;;  %v15630_v6 = vld [vmem:[%s16471_s7 + $0x1410] sm:$0xff]   ;;  %v15632_v7 = vld [vmem:[%s16471_s7 + $0x1458] sm:$0xff]  }
 0x2e4   : > { %14208 = vmatpush3.bf16.msra.mxu0 %v15589_v10  ;;  %11041 = vmatprep.mubr.bf16.mxu0 %v2918_v16  ;;  %v15634_v10 = vld [vmem:[%s16471_s7 + $0x1418] sm:$0xff]   ;;  %v15639_v16 = vld [vmem:[%s16471_s7 + $0x14a0] sm:$0xff]  }
 0x2e5   : > { %11002 = vmatmul.mubr.bf16.vlgmr.msra.gmra.mrb[72].mxu1 %v2919_v12  ;;  %14209 = vmatprep.subr.bf16.mxu0 %v15591_v13  ;;  %v15635_v12 = vld [vmem:[%s16471_s7 + $0x1498] sm:$0xff]   ;;  %v15637_v13 = vld [vmem:[%s16471_s7 + $0x14e0] sm:$0xff]  }
 0x2e6   : > { %14230 = vmatpush3.bf16.msra.mxu1 %v15590_v15  ;;  %11081 = vmatprep.mubr.bf16.mxu1 %v2922_v19  ;;  %v15640_v15 = vld [vmem:[%s16471_s7 + $0x1468] sm:$0xff]  }
 0x2e7   : > { %14231 = vmatprep.subr.bf16.mxu1 %v15592_v17  ;;  %v15641_v17 = vld [vmem:[%s16471_s7 + $0x14e8] sm:$0xff]  }
 0x2e8   : > { %14210 = vmatpush3.bf16.msra.mxu0 %v15593_v18  ;;  %v15642_v18 = vld [vmem:[%s16471_s7 + $0x1428] sm:$0xff]  }
 0x2e9   : > { %14211 = vmatprep.subr.bf16.mxu0 %v15595_v20  ;;  %v15644_v20 = vld [vmem:[%s16471_s7 + $0x1470] sm:$0xff]  }
 0x2ea   : > { %14232 = vmatpush3.bf16.msra.mxu1 %v15594_v21 }
 0x2eb   : > { %14233 = vmatprep.subr.bf16.mxu1 %v15596_v22  ;;  %v15643_v22 = vld [vmem:[%s16471_s7 + $0x14a8] sm:$0xff]  }
 0x2ec   : > { %14212 = vmatpush3.bf16.msra.mxu0 %v15597_v23 }
 0x2ed   : > { %14213 = vmatprep.subr.bf16.mxu0 %v15599_v24 }
 0x2ee   : > { %14234 = vmatpush3.bf16.msra.mxu1 %v15598_v25 }
 0x2ef   : > { %14235 = vmatprep.subr.bf16.mxu1 %v15600_v26  ;;  %v15645_v26 = vld [vmem:[%s16471_s7 + $0x14f0] sm:$0xff]  }
 0x2f0   : > { %14214 = vmatpush3.bf16.msra.mxu0 %v15601_v27  ;;  %v15646_v27 = vld [vmem:[%s16471_s7 + $0x1430] sm:$0xff]  }
 0x2f1   : > { %14215 = vmatprep.subr.bf16.mxu0 %v15603_v28 }
 0x2f2   : > { %14236 = vmatpush3.bf16.msra.mxu1 %v15602_v29 }
 0x2f3   : > { %14237 = vmatprep.subr.bf16.mxu1 %v15604_v30  ;;  %v15647_v30 = vld [vmem:[%s16471_s7 + $0x14b0] sm:$0xff]  }
 0x2f4   : > { %14216 = vmatpush3.bf16.msra.mxu0 %v15605_v31 }
 0x2f5   : > { %14217 = vmatprep.subr.bf16.mxu0 %v15607_v32 }
 0x2f6   : > { %v13915_v36 = vpop.f32.mrb[48].mxu0  ;;  %14238 = vmatpush3.bf16.msra.mxu1 %v15606_v33 }
 0x2f7   : > { %v13916_v38 = vpop.f32.mrb[49].mxu0  ;;  %14239 = vmatprep.subr.bf16.mxu1 %v15608_v34  ;;  %v15648_v34 = vld [vmem:[%s16471_s7 + $0x1478] sm:$0xff]  }
 0x2f8   : > { %v13937_v40 = vpop.f32.mrb[48].mxu1  ;;  %v13917_v41 = vadd.f32 %v13916_v38, %v13915_v36  ;;  %v13918_v43 = vpop.f32.mrb[50].mxu0  ;;  %14218 = vmatpush3.bf16.msra.mxu0 %v15609_v35  ;;  %v15649_v36 = vld [vmem:[%s16471_s7 + $0x14f8] sm:$0xff]  }
 0x2f9   : > { %v13938_v46 = vpop.f32.mrb[49].mxu1  ;;  %v13919_v47 = vpop.f32.mrb[51].mxu0  ;;  %14219 = vmatprep.subr.bf16.mxu0 %v15611_v37  ;;  %v15650_v38 = vld [vmem:[%s16471_s7 + $0x1438] sm:$0xff]  }
 0x2fa   : > { %v10484_v48 = vadd.f32 %v13917_v41, %v17260_v63  ;;  %v13939_v49 = vadd.f32 %v13938_v46, %v13937_v40  ;;  %v13940_v50 = vpop.f32.mrb[50].mxu1  ;;  %14240 = vmatpush3.bf16.msra.mxu1 %v15610_v39  ;;  %v15624_v63 = vld [vmem:[%s16471_s7 + $0x1448] sm:$0xff]   ;;  %v363_v39 = vld [vmem:[%s16493_s26 + $0x50] sm:$0xff]  ;;  %v15652_v41 = vld [vmem:[%s16471_s7 + $0x1540] sm:$0xff]  }
 0x2fb   : > { %v13941_v52 = vpop.f32.mrb[51].mxu1  ;;  %14241 = vmatprep.subr.bf16.mxu1 %v15612_v44  ;;  %v2930_v40 = vrot.slane %v363_v39, %v16545_v42  ;;  %v2923_v43 = vcombine.high %v363_v39, %v363_v39  ;;  %v15651_v44 = vld [vmem:[%s16471_s7 + $0x14b8] sm:$0xff]   ;;  %v15653_v47 = vld [vmem:[%s16471_s7 + $0x15c0] sm:$0xff]   ;;  %v15689_v39 = vld [vmem:[%s16471_s7 + $0x1648] sm:$0xff]  }
 0x2fc   : > { %v17303_v54 = vadd.f32 %v13939_v49, %v10484_v48  ;;  %14220 = vmatpush3.bf16.msra.mxu0 %v15613_v45  ;;  %v15654_v49 = vld [vmem:[%s16471_s7 + $0x1500] sm:$0xff]  }
 0x2fd   : > { %14221 = vmatprep.subr.bf16.mxu0 %v15615_v51  ;;  %v2938_v45 = vcombine.high %v2930_v40, %v2930_v40  ;;  %v2946_v46 = vrot.slane %v2930_v40, %v16545_v42  ;;  %v17351_v48 = vrot.slane %v2923_v43, %v16545_v42  ;;  %v15655_v51 = vld [vmem:[%s16471_s7 + $0x1580] sm:$0xff]   ;;  %v15690_v40 = vld [vmem:[%s16471_s7 + $0x16c8] sm:$0xff]  }
 0x2fe   : > { %14242 = vmatpush3.bf16.msra.mxu1 %v15614_v53  ;;  %v15692_v43 = vld [vmem:[%s16471_s7 + $0x1688] sm:$0xff]  }
 0x2ff   : > { %14243 = vmatprep.subr.bf16.mxu1 %v15616_v56  ;;  %v2960_v50 = vrot.slane %v2938_v45, %v16545_v42  ;;  %v2939_v52 = vcombine.high %v17351_v48, %v17351_v48  ;;  %v2968_v53 = vcombine.high %v2946_v46, %v2946_v46  ;;  %v15694_v45 = vld [vmem:[%s16471_s7 + $0x16d0] sm:$0xff]  }
 0x300   : > { %14222 = vmatpush3.bf16.msra.mxu0 %v15617_v57  ;;  %v15657_v57 = vld [vmem:[%s16471_s7 + $0x15c8] sm:$0xff]  }
 0x301   : > { %14251 = vmatprep.subr.bf16.mxu0 %v15620_v59  ;;  %v2970_v56 = vcombine.high %v2960_v50, %v2960_v50  ;;  %v15658_v59 = vld [vmem:[%s16471_s7 + $0x1508] sm:$0xff]  }
 0x302   : > { %14244 = vmatpush3.bf16.msra.mxu1 %v15618_v60  ;;  %v15659_v60 = vld [vmem:[%s16471_s7 + $0x1588] sm:$0xff]  }
 0x303   : > { %11042 = vmatmul.mubr.bf16.vlgmr.msra.gmra.mrb[76].mxu0 %v2904_v58  ;;  %14273 = vmatprep.subr.bf16.mxu1 %v15621_v55  ;;  %v2967_v58 = vrot.slane %v2939_v52, %v16545_v42  ;;  %v15701_v52 = vld [vmem:[%s16471_s7 + $0x1660] sm:$0xff]  }
 0x304   : > { %14252 = vmatpush3.bf16.msra.mxu0 %v15622_v61  ;;  %11121 = vmatprep.mubr.bf16.mxu0 %v2960_v50  ;;  %v15660_v61 = vld [vmem:[%s16471_s7 + $0x1550] sm:$0xff]   ;;  %v15699_v50 = vld [vmem:[%s16471_s7 + $0x1618] sm:$0xff]  }
 0x305   : > { %11082 = vmatmul.mubr.bf16.vlgmr.msra.gmra.mrb[76].mxu1 %v2920_v62  ;;  %14253 = vmatprep.subr.bf16.mxu0 %v15624_v63  ;;  %v2971_v55 = vcombine.high %v2967_v58, %v2967_v58  ;;  %v15661_v62 = vld [vmem:[%s16471_s7 + $0x15d0] sm:$0xff]  }
 0x306   : > { %14274 = vmatpush3.bf16.msra.mxu1 %v15623_v0  ;;  %11161 = vmatprep.mubr.bf16.mxu1 %v2970_v56  ;;  %v15662_v63 = vld [vmem:[%s16471_s7 + $0x1510] sm:$0xff]   ;;  %v15704_v56 = vld [vmem:[%s16471_s7 + $0x16a0] sm:$0xff]  }
 0x307   : > { %14275 = vmatprep.subr.bf16.mxu1 %v15625_v1  ;;  %v15663_v0 = vld [vmem:[%s16471_s7 + $0x1590] sm:$0xff]   ;;  %v15664_v1 = vld [vmem:[%s16471_s7 + $0x1558] sm:$0xff]  }
 0x308   : > { %14254 = vmatpush3.bf16.msra.mxu0 %v15626_v2  ;;  %v15665_v2 = vld [vmem:[%s16471_s7 + $0x15d8] sm:$0xff]  }
 0x309   : > { %14255 = vmatprep.subr.bf16.mxu0 %v15628_v3  ;;  %v15666_v3 = vld [vmem:[%s16471_s7 + $0x1518] sm:$0xff]  }
 0x30a   : > { %14276 = vmatpush3.bf16.msra.mxu1 %v15627_v4  ;;  %v15667_v4 = vld [vmem:[%s16471_s7 + $0x1598] sm:$0xff]  }
 0x30b   : > { %14277 = vmatprep.subr.bf16.mxu1 %v15629_v5  ;;  %v15668_v5 = vld [vmem:[%s16471_s7 + $0x1560] sm:$0xff]  }
 0x30c   : > { %14256 = vmatpush3.bf16.msra.mxu0 %v15630_v6  ;;  %v15669_v6 = vld [vmem:[%s16471_s7 + $0x15e0] sm:$0xff]  }
 0x30d   : > { %14257 = vmatprep.subr.bf16.mxu0 %v15632_v7  ;;  %v15670_v7 = vld [vmem:[%s16471_s7 + $0x1520] sm:$0xff]  }
 0x30e   : > { %14278 = vmatpush3.bf16.msra.mxu1 %v15631_v8  ;;  %v15671_v8 = vld [vmem:[%s16471_s7 + $0x15a0] sm:$0xff]  }
 0x30f   : > { %14279 = vmatprep.subr.bf16.mxu1 %v15633_v9  ;;  %v15672_v9 = vld [vmem:[%s16471_s7 + $0x1568] sm:$0xff]  }
 0x310   : > { %14258 = vmatpush3.bf16.msra.mxu0 %v15634_v10  ;;  %v15673_v10 = vld [vmem:[%s16471_s7 + $0x15e8] sm:$0xff]  }
 0x311   : > { %14259 = vmatprep.subr.bf16.mxu0 %v15636_v11  ;;  %v15674_v11 = vld [vmem:[%s16471_s7 + $0x1528] sm:$0xff]  }
 0x312   : > { %14280 = vmatpush3.bf16.msra.mxu1 %v15635_v12 }
 0x313   : > { %14281 = vmatprep.subr.bf16.mxu1 %v15637_v13  ;;  %v15675_v13 = vld [vmem:[%s16471_s7 + $0x15a8] sm:$0xff]  }
 0x314   : > { %14260 = vmatpush3.bf16.msra.mxu0 %v15638_v14 }
 0x315   : > { %14261 = vmatprep.subr.bf16.mxu0 %v15640_v15  ;;  %v15676_v15 = vld [vmem:[%s16471_s7 + $0x1570] sm:$0xff]  }
 0x316   : > { %v13959_v19 = vpop.f32.mrb[52].mxu0  ;;  %14282 = vmatpush3.bf16.msra.mxu1 %v15639_v16 }
 0x317   : > { %v13960_v21 = vpop.f32.mrb[53].mxu0  ;;  %14283 = vmatprep.subr.bf16.mxu1 %v15641_v17 }
 0x318   : > { %v13981_v23 = vpop.f32.mrb[52].mxu1  ;;  %v13961_v24 = vadd.f32 %v13960_v21, %v13959_v19  ;;  %v13962_v25 = vpop.f32.mrb[54].mxu0  ;;  %14262 = vmatpush3.bf16.msra.mxu0 %v15642_v18  ;;  %v15677_v19 = vld [vmem:[%s16471_s7 + $0x15f0] sm:$0xff]  }
 0x319   : > { %v13982_v28 = vpop.f32.mrb[53].mxu1  ;;  %v13963_v29 = vpop.f32.mrb[55].mxu0  ;;  %14263 = vmatprep.subr.bf16.mxu0 %v15644_v20  ;;  %v15678_v20 = vld [vmem:[%s16471_s7 + $0x1530] sm:$0xff]  }
 0x31a   : > { %v10564_v31 = vadd.f32 %v13961_v24, %v17303_v54  ;;  %v13983_v32 = vadd.f32 %v13982_v28, %v13981_v23  ;;  %v13984_v33 = vpop.f32.mrb[54].mxu1  ;;  %14284 = vmatpush3.bf16.msra.mxu1 %v15643_v22  ;;  %v15656_v54 = vld [vmem:[%s16471_s7 + $0x1548] sm:$0xff]   ;;  %v15680_v28 = vld [vmem:[%s16471_s7 + $0x1578] sm:$0xff]  }
 0x31b   : > { %v13985_v35 = vpop.f32.mrb[55].mxu1  ;;  %14285 = vmatprep.subr.bf16.mxu1 %v15645_v26  ;;  %v15679_v26 = vld [vmem:[%s16471_s7 + $0x15b0] sm:$0xff]   ;;  %v2953_v33 = vrot.slane %v17351_v48, %v16545_v42  ;;  %v15697_v48 = vld [vmem:[%s16471_s7 + $0x1658] sm:$0xff]  }
 0x31c   : > { %v17341_v37 = vadd.f32 %v13983_v32, %v10564_v31  ;;  %14264 = vmatpush3.bf16.msra.mxu0 %v15646_v27  ;;  %v15682_v31 = vld [vmem:[%s16471_s7 + $0x1538] sm:$0xff]   ;;  %v15686_v35 = vld [vmem:[%s16471_s7 + $0x16c0] sm:$0xff]  }
 0x31d   : > { %14265 = vmatprep.subr.bf16.mxu0 %v15648_v34  ;;  %v15683_v32 = vld [vmem:[%s16471_s7 + $0x15b8] sm:$0xff]   ;;  %v15685_v34 = vld [vmem:[%s16471_s7 + $0x1640] sm:$0xff]  }
 0x31e   : > { %14286 = vmatpush3.bf16.msra.mxu1 %v15647_v30  ;;  %v15681_v30 = vld [vmem:[%s16471_s7 + $0x15f8] sm:$0xff]  }
 0x31f   : > { %14287 = vmatprep.subr.bf16.mxu1 %v15649_v36  ;;  %v15687_v36 = vld [vmem:[%s16471_s7 + $0x1600] sm:$0xff]  }
 0x320   : > { %14266 = vmatpush3.bf16.msra.mxu0 %v15650_v38  ;;  %v2969_v38 = vcombine.high %v2953_v33, %v2953_v33 }
 0x321   : > { %14295 = vmatprep.subr.bf16.mxu0 %v15652_v41  ;;  %v15691_v41 = vld [vmem:[%s16471_s7 + $0x1608] sm:$0xff]  }
 0x322   : > { %14288 = vmatpush3.bf16.msra.mxu1 %v15651_v44  ;;  %v15693_v44 = vld [vmem:[%s16471_s7 + $0x1650] sm:$0xff]  }
 0x323   : > { %14317 = vmatprep.subr.bf16.mxu1 %v15653_v47  ;;  %11122 = vmatmul.mubr.bf16.vlgmr.msra.gmra.mrb[80].mxu0 %v2946_v46  ;;  %v15695_v46 = vld [vmem:[%s16471_s7 + $0x1610] sm:$0xff]  }
 0x324   : > { %14296 = vmatpush3.bf16.msra.mxu0 %v15654_v49  ;;  %11201 = vmatprep.mubr.bf16.mxu0 %v2967_v58  ;;  %v15696_v47 = vld [vmem:[%s16471_s7 + $0x1690] sm:$0xff]   ;;  %v15698_v49 = vld [vmem:[%s16471_s7 + $0x16d8] sm:$0xff]   ;;  %v15706_v58 = vld [vmem:[%s16471_s7 + $0x16e8] sm:$0xff]  }
 0x325   : > { %11162 = vmatmul.mubr.bf16.vlgmr.msra.gmra.mrb[80].mxu1 %v2968_v53  ;;  %14297 = vmatprep.subr.bf16.mxu0 %v15656_v54  ;;  %v15702_v53 = vld [vmem:[%s16471_s7 + $0x16e0] sm:$0xff]  }
 0x326   : > { %14318 = vmatpush3.bf16.msra.mxu1 %v15655_v51  ;;  %11241 = vmatprep.mubr.bf16.mxu1 %v2971_v55  ;;  %v15700_v51 = vld [vmem:[%s16471_s7 + $0x1698] sm:$0xff]   ;;  %v15703_v54 = vld [vmem:[%s16471_s7 + $0x1620] sm:$0xff]   ;;  %v15708_v55 = vld [vmem:[%s16471_s7 + $0x16a8] sm:$0xff]  }
 0x327   : > { %14319 = vmatprep.subr.bf16.mxu1 %v15657_v57  ;;  %v15705_v57 = vld [vmem:[%s16471_s7 + $0x1668] sm:$0xff]  }
 0x328   : > { %14298 = vmatpush3.bf16.msra.mxu0 %v15658_v59  ;;  %v15707_v59 = vld [vmem:[%s16471_s7 + $0x1628] sm:$0xff]  }
 0x329   : > { %14299 = vmatprep.subr.bf16.mxu0 %v15660_v61 }
 0x32a   : > { %14320 = vmatpush3.bf16.msra.mxu1 %v15659_v60 }
 0x32b   : > { %14321 = vmatprep.subr.bf16.mxu1 %v15661_v62  ;;  %v15709_v62 = vld [vmem:[%s16471_s7 + $0x1670] sm:$0xff]  }
 0x32c   : > { %14300 = vmatpush3.bf16.msra.mxu0 %v15662_v63 }
 0x32d   : > { %14301 = vmatprep.subr.bf16.mxu0 %v15664_v1 }
 0x32e   : > { %14322 = vmatpush3.bf16.msra.mxu1 %v15663_v0 }
 0x32f   : > { %14323 = vmatprep.subr.bf16.mxu1 %v15665_v2  ;;  %v15710_v2 = vld [vmem:[%s16471_s7 + $0x16f0] sm:$0xff]  }
 0x330   : > { %14302 = vmatpush3.bf16.msra.mxu0 %v15666_v3  ;;  %v15711_v3 = vld [vmem:[%s16471_s7 + $0x1630] sm:$0xff]  }
 0x331   : > { %14303 = vmatprep.subr.bf16.mxu0 %v15668_v5 }
 0x332   : > { %14324 = vmatpush3.bf16.msra.mxu1 %v15667_v4 }
 0x333   : > { %14325 = vmatprep.subr.bf16.mxu1 %v15669_v6 }
 0x334   : > { %14304 = vmatpush3.bf16.msra.mxu0 %v15670_v7 }
 0x335   : > { %14305 = vmatprep.subr.bf16.mxu0 %v15672_v9  ;;  %v15712_v9 = vld [vmem:[%s16471_s7 + $0x16b0] sm:$0xff]  }
 0x336   : > { %v14003_v12 = vpop.f32.mrb[56].mxu0  ;;  %14326 = vmatpush3.bf16.msra.mxu1 %v15671_v8 }
 0x337   : > { %v14004_v14 = vpop.f32.mrb[57].mxu0  ;;  %14327 = vmatprep.subr.bf16.mxu1 %v15673_v10 }
 0x338   : > { %v14025_v16 = vpop.f32.mrb[56].mxu1  ;;  %v14005_v17 = vadd.f32 %v14004_v14, %v14003_v12  ;;  %v14006_v18 = vpop.f32.mrb[58].mxu0  ;;  %14306 = vmatpush3.bf16.msra.mxu0 %v15674_v11  ;;  %v15713_v11 = vld [vmem:[%s16471_s7 + $0x1678] sm:$0xff]  }
 0x339   : > { %v14026_v21 = vpop.f32.mrb[57].mxu1  ;;  %v14007_v22 = vpop.f32.mrb[59].mxu0  ;;  %14307 = vmatprep.subr.bf16.mxu0 %v15676_v15  ;;  %v15715_v14 = vld [vmem:[%s16471_s7 + $0x1638] sm:$0xff]  }
 0x33a   : > { %v10644_v23 = vadd.f32 %v14005_v17, %v17341_v37  ;;  %v14027_v24 = vadd.f32 %v14026_v21, %v14025_v16  ;;  %v14028_v25 = vpop.f32.mrb[58].mxu1  ;;  %14328 = vmatpush3.bf16.msra.mxu1 %v15675_v13  ;;  %v15688_v37 = vld [vmem:[%s16471_s7 + $0x1680] sm:$0xff]   ;;  %v15714_v13 = vld [vmem:[%s16471_s7 + $0x16f8] sm:$0xff]  }
 0x33b   : > { %v14029_v27 = vpop.f32.mrb[59].mxu1  ;;  %14329 = vmatprep.subr.bf16.mxu1 %v15677_v19  ;;  %v364_v15 = vld [vmem:[%s16493_s26 + $0x58] sm:$0xff]  ;;  %v15717_v17 = vld [vmem:[%s16471_s7 + $0x1740] sm:$0xff]  }
 0x33c   : > { %v17385_v29 = vadd.f32 %v14027_v24, %v10644_v23  ;;  %14308 = vmatpush3.bf16.msra.mxu0 %v15678_v20  ;;  %v2979_v16 = vrot.slane %v364_v15, %v16545_v42  ;;  %v2972_v18 = vcombine.high %v364_v15, %v364_v15  ;;  %v15716_v19 = vld [vmem:[%s16471_s7 + $0x16b8] sm:$0xff]   ;;  %v15718_v22 = vld [vmem:[%s16471_s7 + $0x17c0] sm:$0xff]   ;;  %v15754_v15 = vld [vmem:[%s16471_s7 + $0x1848] sm:$0xff]  }
 0x33d   : > { %14309 = vmatprep.subr.bf16.mxu0 %v15680_v28  ;;  %v15719_v24 = vld [vmem:[%s16471_s7 + $0x1700] sm:$0xff]  }
 0x33e   : > { %14330 = vmatpush3.bf16.msra.mxu1 %v15679_v26  ;;  %v2987_v20 = vcombine.high %v2979_v16, %v2979_v16  ;;  %v2995_v21 = vrot.slane %v2979_v16, %v16545_v42  ;;  %v17433_v23 = vrot.slane %v2972_v18, %v16545_v42  ;;  %v15720_v26 = vld [vmem:[%s16471_s7 + $0x1780] sm:$0xff]   ;;  %v15755_v16 = vld [vmem:[%s16471_s7 + $0x18c8] sm:$0xff]  }
 0x33f   : > { %14331 = vmatprep.subr.bf16.mxu1 %v15681_v30  ;;  %v15757_v18 = vld [vmem:[%s16471_s7 + $0x1888] sm:$0xff]  }
 0x340   : > { %14310 = vmatpush3.bf16.msra.mxu0 %v15682_v31  ;;  %v3009_v25 = vrot.slane %v2987_v20, %v16545_v42  ;;  %v2988_v27 = vcombine.high %v17433_v23, %v17433_v23  ;;  %v3017_v28 = vcombine.high %v2995_v21, %v2995_v21  ;;  %v15722_v31 = vld [vmem:[%s16471_s7 + $0x17c8] sm:$0xff]   ;;  %v15759_v20 = vld [vmem:[%s16471_s7 + $0x18d0] sm:$0xff]  }
 0x341   : > { %14339 = vmatprep.subr.bf16.mxu0 %v15685_v34  ;;  %v15724_v34 = vld [vmem:[%s16471_s7 + $0x1788] sm:$0xff]  }
 0x342   : > { %14332 = vmatpush3.bf16.msra.mxu1 %v15683_v32  ;;  %v3019_v30 = vcombine.high %v3009_v25, %v3009_v25  ;;  %v3016_v32 = vrot.slane %v2988_v27, %v16545_v42  ;;  %v15766_v27 = vld [vmem:[%s16471_s7 + $0x1860] sm:$0xff]  }
 0x343   : > { %11202 = vmatmul.mubr.bf16.vlgmr.msra.gmra.mrb[84].mxu0 %v2953_v33  ;;  %14361 = vmatprep.subr.bf16.mxu1 %v15686_v35  ;;  %v15723_v33 = vld [vmem:[%s16471_s7 + $0x1708] sm:$0xff]  }
 0x344   : > { %14340 = vmatpush3.bf16.msra.mxu0 %v15687_v36  ;;  %11281 = vmatprep.mubr.bf16.mxu0 %v3009_v25  ;;  %v3020_v35 = vcombine.high %v3016_v32, %v3016_v32  ;;  %v15725_v36 = vld [vmem:[%s16471_s7 + $0x1750] sm:$0xff]   ;;  %v15764_v25 = vld [vmem:[%s16471_s7 + $0x1818] sm:$0xff]  }
 0x345   : > { %11242 = vmatmul.mubr.bf16.vlgmr.msra.gmra.mrb[84].mxu1 %v2969_v38  ;;  %14341 = vmatprep.subr.bf16.mxu0 %v15689_v39  ;;  %v15727_v38 = vld [vmem:[%s16471_s7 + $0x1710] sm:$0xff]  }
 0x346   : > { %14362 = vmatpush3.bf16.msra.mxu1 %v15688_v37  ;;  %11321 = vmatprep.mubr.bf16.mxu1 %v3019_v30  ;;  %v15726_v37 = vld [vmem:[%s16471_s7 + $0x17d0] sm:$0xff]   ;;  %v15769_v30 = vld [vmem:[%s16471_s7 + $0x18a0] sm:$0xff]  }
 0x347   : > { %14363 = vmatprep.subr.bf16.mxu1 %v15690_v40  ;;  %v15728_v39 = vld [vmem:[%s16471_s7 + $0x1790] sm:$0xff]   ;;  %v15729_v40 = vld [vmem:[%s16471_s7 + $0x1758] sm:$0xff]  }
 0x348   : > { %14342 = vmatpush3.bf16.msra.mxu0 %v15691_v41  ;;  %v15730_v41 = vld [vmem:[%s16471_s7 + $0x17d8] sm:$0xff]  }
 0x349   : > { %14343 = vmatprep.subr.bf16.mxu0 %v15693_v44  ;;  %v15732_v44 = vld [vmem:[%s16471_s7 + $0x1798] sm:$0xff]  }
 0x34a   : > { %14364 = vmatpush3.bf16.msra.mxu1 %v15692_v43  ;;  %v15731_v43 = vld [vmem:[%s16471_s7 + $0x1718] sm:$0xff]  }
 0x34b   : > { %14365 = vmatprep.subr.bf16.mxu1 %v15694_v45  ;;  %v15733_v45 = vld [vmem:[%s16471_s7 + $0x1760] sm:$0xff]  }
 0x34c   : > { %14344 = vmatpush3.bf16.msra.mxu0 %v15695_v46  ;;  %v15734_v46 = vld [vmem:[%s16471_s7 + $0x17e0] sm:$0xff]  }
 0x34d   : > { %14345 = vmatprep.subr.bf16.mxu0 %v15697_v48  ;;  %v15736_v48 = vld [vmem:[%s16471_s7 + $0x17a0] sm:$0xff]  }
 0x34e   : > { %14366 = vmatpush3.bf16.msra.mxu1 %v15696_v47  ;;  %v15735_v47 = vld [vmem:[%s16471_s7 + $0x1720] sm:$0xff]  }
 0x34f   : > { %14367 = vmatprep.subr.bf16.mxu1 %v15698_v49  ;;  %v15737_v49 = vld [vmem:[%s16471_s7 + $0x1768] sm:$0xff]  }
 0x350   : > { %14346 = vmatpush3.bf16.msra.mxu0 %v15699_v50  ;;  %v15738_v50 = vld [vmem:[%s16471_s7 + $0x17e8] sm:$0xff]  }
 0x351   : > { %14347 = vmatprep.subr.bf16.mxu0 %v15701_v52  ;;  %v15739_v52 = vld [vmem:[%s16471_s7 + $0x1728] sm:$0xff]  }
 0x352   : > { %14368 = vmatpush3.bf16.msra.mxu1 %v15700_v51 }
 0x353   : > { %14369 = vmatprep.subr.bf16.mxu1 %v15702_v53 }
 0x354   : > { %14348 = vmatpush3.bf16.msra.mxu0 %v15703_v54  ;;  %v15740_v54 = vld [vmem:[%s16471_s7 + $0x17a8] sm:$0xff]  }
 0x355   : > { %14349 = vmatprep.subr.bf16.mxu0 %v15705_v57 }
 0x356   : > { %v14047_v60 = vpop.f32.mrb[60].mxu0  ;;  %14370 = vmatpush3.bf16.msra.mxu1 %v15704_v56 }
 0x357   : > { %v14048_v61 = vpop.f32.mrb[61].mxu0  ;;  %14371 = vmatprep.subr.bf16.mxu1 %v15706_v58 }
 0x358   : > { %v14069_v63 = vpop.f32.mrb[60].mxu1  ;;  %v14049_v0 = vadd.f32 %v14048_v61, %v14047_v60  ;;  %v14050_v1 = vpop.f32.mrb[62].mxu0  ;;  %14350 = vmatpush3.bf16.msra.mxu0 %v15707_v59  ;;  %v15741_v59 = vld [vmem:[%s16471_s7 + $0x1770] sm:$0xff]  }
 0x359   : > { %v14070_v4 = vpop.f32.mrb[61].mxu1  ;;  %v14051_v5 = vpop.f32.mrb[63].mxu0  ;;  %14351 = vmatprep.subr.bf16.mxu0 %v15709_v62  ;;  %v15742_v60 = vld [vmem:[%s16471_s7 + $0x17f0] sm:$0xff]  }
 0x35a   : > { %v10724_v6 = vadd.f32 %v14049_v0, %v17385_v29  ;;  %v14071_v7 = vadd.f32 %v14070_v4, %v14069_v63  ;;  %v14072_v8 = vpop.f32.mrb[62].mxu1  ;;  %14372 = vmatpush3.bf16.msra.mxu1 %v15708_v55  ;;  %v15721_v29 = vld [vmem:[%s16471_s7 + $0x1748] sm:$0xff]   ;;  %v15743_v1 = vld [vmem:[%s16471_s7 + $0x1730] sm:$0xff]   ;;  %v15745_v5 = vld [vmem:[%s16471_s7 + $0x1778] sm:$0xff]  }
 0x35b   : > { %v14073_v10 = vpop.f32.mrb[63].mxu1  ;;  %14373 = vmatprep.subr.bf16.mxu1 %v15710_v2  ;;  %v15748_v8 = vld [vmem:[%s16471_s7 + $0x17b8] sm:$0xff]  }
 0x35c   : > { %v17422_v12 = vadd.f32 %v14071_v7, %v10724_v6  ;;  %14352 = vmatpush3.bf16.msra.mxu0 %v15711_v3  ;;  %v15744_v3 = vld [vmem:[%s16471_s7 + $0x17b0] sm:$0xff]   ;;  %v15746_v6 = vld [vmem:[%s16471_s7 + $0x17f8] sm:$0xff]   ;;  %v15750_v10 = vld [vmem:[%s16471_s7 + $0x1840] sm:$0xff]  }
 0x35d   : > { %14353 = vmatprep.subr.bf16.mxu0 %v15713_v11  ;;  %v15747_v7 = vld [vmem:[%s16471_s7 + $0x1738] sm:$0xff]   ;;  %v15751_v11 = vld [vmem:[%s16471_s7 + $0x18c0] sm:$0xff]  }
 0x35e   : > { %14374 = vmatpush3.bf16.msra.mxu1 %v15712_v9  ;;  %v3002_v9 = vrot.slane %v17433_v23, %v16545_v42  ;;  %v15762_v23 = vld [vmem:[%s16471_s7 + $0x1858] sm:$0xff]  }
 0x35f   : > { %14375 = vmatprep.subr.bf16.mxu1 %v15714_v13  ;;  %v15753_v13 = vld [vmem:[%s16471_s7 + $0x1880] sm:$0xff]  }
 0x360   : > { %14354 = vmatpush3.bf16.msra.mxu0 %v15715_v14  ;;  %v3018_v14 = vcombine.high %v3002_v9, %v3002_v9 }
 0x361   : > { %14383 = vmatprep.subr.bf16.mxu0 %v15717_v17  ;;  %v15756_v17 = vld [vmem:[%s16471_s7 + $0x1808] sm:$0xff]  }
 0x362   : > { %14376 = vmatpush3.bf16.msra.mxu1 %v15716_v19  ;;  %v15758_v19 = vld [vmem:[%s16471_s7 + $0x1850] sm:$0xff]  }
 0x363   : > { %14405 = vmatprep.subr.bf16.mxu1 %v15718_v22  ;;  %11282 = vmatmul.mubr.bf16.vlgmr.msra.gmra.mrb[88].mxu0 %v2995_v21  ;;  %v15760_v21 = vld [vmem:[%s16471_s7 + $0x1810] sm:$0xff]  }
 0x364   : > { %14384 = vmatpush3.bf16.msra.mxu0 %v15719_v24  ;;  %11361 = vmatprep.mubr.bf16.mxu0 %v3016_v32  ;;  %v15761_v22 = vld [vmem:[%s16471_s7 + $0x1890] sm:$0xff]   ;;  %v15763_v24 = vld [vmem:[%s16471_s7 + $0x18d8] sm:$0xff]   ;;  %v15771_v32 = vld [vmem:[%s16471_s7 + $0x18e8] sm:$0xff]  }
 0x365   : > { %11322 = vmatmul.mubr.bf16.vlgmr.msra.gmra.mrb[88].mxu1 %v3017_v28  ;;  %14385 = vmatprep.subr.bf16.mxu0 %v15721_v29  ;;  %v15767_v28 = vld [vmem:[%s16471_s7 + $0x18e0] sm:$0xff]  }
 0x366   : > { %14406 = vmatpush3.bf16.msra.mxu1 %v15720_v26  ;;  %11401 = vmatprep.mubr.bf16.mxu1 %v3020_v35  ;;  %v15765_v26 = vld [vmem:[%s16471_s7 + $0x1898] sm:$0xff]   ;;  %v15768_v29 = vld [vmem:[%s16471_s7 + $0x1820] sm:$0xff]  }
 0x367   : > { %14407 = vmatprep.subr.bf16.mxu1 %v15722_v31  ;;  %v15770_v31 = vld [vmem:[%s16471_s7 + $0x1868] sm:$0xff]  }
 0x368   : > { %14386 = vmatpush3.bf16.msra.mxu0 %v15723_v33 }
 0x369   : > { %14387 = vmatprep.subr.bf16.mxu0 %v15725_v36  ;;  %v15773_v36 = vld [vmem:[%s16471_s7 + $0x18a8] sm:$0xff]  }
 0x36a   : > { %14408 = vmatpush3.bf16.msra.mxu1 %v15724_v34  ;;  %v15772_v34 = vld [vmem:[%s16471_s7 + $0x1828] sm:$0xff]  }
 0x36b   : > { %14409 = vmatprep.subr.bf16.mxu1 %v15726_v37 }
 0x36c   : > { %14388 = vmatpush3.bf16.msra.mxu0 %v15727_v38 }
 0x36d   : > { %14389 = vmatprep.subr.bf16.mxu0 %v15729_v40  ;;  %v15774_v40 = vld [vmem:[%s16471_s7 + $0x1870] sm:$0xff]  }
 0x36e   : > { %14410 = vmatpush3.bf16.msra.mxu1 %v15728_v39 }
 0x36f   : > { %14411 = vmatprep.subr.bf16.mxu1 %v15730_v41  ;;  %v15775_v41 = vld [vmem:[%s16471_s7 + $0x18f0] sm:$0xff]  }
 0x370   : > { %14390 = vmatpush3.bf16.msra.mxu0 %v15731_v43 }
 0x371   : > { %14391 = vmatprep.subr.bf16.mxu0 %v15733_v45 }
 0x372   : > { %14412 = vmatpush3.bf16.msra.mxu1 %v15732_v44 }
 0x373   : > { %14413 = vmatprep.subr.bf16.mxu1 %v15734_v46 }
 0x374   : > { %14392 = vmatpush3.bf16.msra.mxu0 %v15735_v47 }
 0x375   : > { %14393 = vmatprep.subr.bf16.mxu0 %v15737_v49 }
 0x376   : > { %v14091_v51 = vpop.f32.mrb[64].mxu0  ;;  %14414 = vmatpush3.bf16.msra.mxu1 %v15736_v48  ;;  %v15776_v48 = vld [vmem:[%s16471_s7 + $0x1830] sm:$0xff]  }
 0x377   : > { %v14092_v53 = vpop.f32.mrb[65].mxu0  ;;  %14415 = vmatprep.subr.bf16.mxu1 %v15738_v50  ;;  %v15777_v50 = vld [vmem:[%s16471_s7 + $0x18b0] sm:$0xff]  }
 0x378   : > { %v14113_v56 = vpop.f32.mrb[64].mxu1  ;;  %v14093_v57 = vadd.f32 %v14092_v53, %v14091_v51  ;;  %v14094_v58 = vpop.f32.mrb[66].mxu0  ;;  %14394 = vmatpush3.bf16.msra.mxu0 %v15739_v52  ;;  %v15778_v52 = vld [vmem:[%s16471_s7 + $0x1878] sm:$0xff]  }
 0x379   : > { %v14114_v55 = vpop.f32.mrb[65].mxu1  ;;  %v14095_v61 = vpop.f32.mrb[67].mxu0  ;;  %14395 = vmatprep.subr.bf16.mxu0 %v15741_v59  ;;  %v15779_v53 = vld [vmem:[%s16471_s7 + $0x18f8] sm:$0xff]   ;;  %v15782_v58 = vld [vmem:[%s16471_s7 + $0x1940] sm:$0xff]  }
 0x37a   : > { %v10804_v62 = vadd.f32 %v14093_v57, %v17422_v12  ;;  %v14115_v63 = vadd.f32 %v14114_v55, %v14113_v56  ;;  %v14116_v0 = vpop.f32.mrb[66].mxu1  ;;  %14416 = vmatpush3.bf16.msra.mxu1 %v15740_v54  ;;  %v15752_v12 = vld [vmem:[%s16471_s7 + $0x1800] sm:$0xff]   ;;  %v15780_v54 = vld [vmem:[%s16471_s7 + $0x1838] sm:$0xff]  }
 0x37b   : > { %v14117_v2 = vpop.f32.mrb[67].mxu1  ;;  %14417 = vmatprep.subr.bf16.mxu1 %v15742_v60  ;;  %v365_v56 = vld [vmem:[%s16493_s26 + $0x60] sm:$0xff]  ;;  %v15781_v60 = vld [vmem:[%s16471_s7 + $0x18b8] sm:$0xff]  }
 0x37c   : > { %v17466_v4 = vadd.f32 %v14115_v63, %v10804_v62  ;;  %14396 = vmatpush3.bf16.msra.mxu0 %v15743_v1  ;;  %v3028_v57 = vrot.slane %v365_v56, %v16545_v42  ;;  %v3021_v59 = vcombine.high %v365_v56, %v365_v56  ;;  %v15783_v62 = vld [vmem:[%s16471_s7 + $0x19c0] sm:$0xff]   ;;  %v15819_v56 = vld [vmem:[%s16471_s7 + $0x1a48] sm:$0xff]  }
 0x37d   : > { %14397 = vmatprep.subr.bf16.mxu0 %v15745_v5  ;;  %v15784_v0 = vld [vmem:[%s16471_s7 + $0x1900] sm:$0xff]   ;;  %v15786_v5 = vld [vmem:[%s16471_s7 + $0x1948] sm:$0xff]  }
 0x37e   : > { %14418 = vmatpush3.bf16.msra.mxu1 %v15744_v3  ;;  %v3036_v55 = vcombine.high %v3028_v57, %v3028_v57  ;;  %v3044_v61 = vrot.slane %v3028_v57, %v16545_v42  ;;  %v17515_v63 = vrot.slane %v3021_v59, %v16545_v42  ;;  %v15785_v2 = vld [vmem:[%s16471_s7 + $0x1980] sm:$0xff]   ;;  %v15820_v57 = vld [vmem:[%s16471_s7 + $0x1ac8] sm:$0xff]  }
 0x37f   : > { %14419 = vmatprep.subr.bf16.mxu1 %v15746_v6  ;;  %v15822_v59 = vld [vmem:[%s16471_s7 + $0x1a88] sm:$0xff]  }
 0x380   : > { %14398 = vmatpush3.bf16.msra.mxu0 %v15747_v7  ;;  %v3058_v1 = vrot.slane %v3036_v55, %v16545_v42  ;;  %v3037_v3 = vcombine.high %v17515_v63, %v17515_v63  ;;  %v15787_v7 = vld [vmem:[%s16471_s7 + $0x19c8] sm:$0xff]   ;;  %v15824_v55 = vld [vmem:[%s16471_s7 + $0x1ad0] sm:$0xff]  }
 0x381   : > { %14427 = vmatprep.subr.bf16.mxu0 %v15750_v10  ;;  %v15789_v10 = vld [vmem:[%s16471_s7 + $0x1988] sm:$0xff]  }
 0x382   : > { %14420 = vmatpush3.bf16.msra.mxu1 %v15748_v8  ;;  %v3068_v6 = vcombine.high %v3058_v1, %v3058_v1  ;;  %v3065_v8 = vrot.slane %v3037_v3, %v16545_v42  ;;  %v15831_v3 = vld [vmem:[%s16471_s7 + $0x1a60] sm:$0xff]  }
 0x383   : > { %11362 = vmatmul.mubr.bf16.vlgmr.msra.gmra.mrb[92].mxu0 %v3002_v9  ;;  %14449 = vmatprep.subr.bf16.mxu1 %v15751_v11  ;;  %v15788_v9 = vld [vmem:[%s16471_s7 + $0x1908] sm:$0xff]  }
 0x384   : > { %14428 = vmatpush3.bf16.msra.mxu0 %v15752_v12  ;;  %11441 = vmatprep.mubr.bf16.mxu0 %v3058_v1  ;;  %v3069_v11 = vcombine.high %v3065_v8, %v3065_v8  ;;  %v15790_v12 = vld [vmem:[%s16471_s7 + $0x1950] sm:$0xff]   ;;  %v15829_v1 = vld [vmem:[%s16471_s7 + $0x1a18] sm:$0xff]  }
 0x385   : > { %11402 = vmatmul.mubr.bf16.vlgmr.msra.gmra.mrb[92].mxu1 %v3018_v14  ;;  %14429 = vmatprep.subr.bf16.mxu0 %v15754_v15  ;;  %v15792_v14 = vld [vmem:[%s16471_s7 + $0x1910] sm:$0xff]  }
 0x386   : > { %14450 = vmatpush3.bf16.msra.mxu1 %v15753_v13  ;;  %11481 = vmatprep.mubr.bf16.mxu1 %v3068_v6  ;;  %v15791_v13 = vld [vmem:[%s16471_s7 + $0x19d0] sm:$0xff]   ;;  %v15834_v6 = vld [vmem:[%s16471_s7 + $0x1aa0] sm:$0xff]  }
 0x387   : > { %14451 = vmatprep.subr.bf16.mxu1 %v15755_v16  ;;  %v15793_v15 = vld [vmem:[%s16471_s7 + $0x1990] sm:$0xff]   ;;  %v15794_v16 = vld [vmem:[%s16471_s7 + $0x1958] sm:$0xff]  }
 0x388   : > { %14430 = vmatpush3.bf16.msra.mxu0 %v15756_v17  ;;  %v15795_v17 = vld [vmem:[%s16471_s7 + $0x19d8] sm:$0xff]  }
 0x389   : > { %14431 = vmatprep.subr.bf16.mxu0 %v15758_v19  ;;  %v15797_v19 = vld [vmem:[%s16471_s7 + $0x1998] sm:$0xff]  }
 0x38a   : > { %14452 = vmatpush3.bf16.msra.mxu1 %v15757_v18  ;;  %v15796_v18 = vld [vmem:[%s16471_s7 + $0x1918] sm:$0xff]  }
 0x38b   : > { %14453 = vmatprep.subr.bf16.mxu1 %v15759_v20  ;;  %v15798_v20 = vld [vmem:[%s16471_s7 + $0x1960] sm:$0xff]  }
 0x38c   : > { %14432 = vmatpush3.bf16.msra.mxu0 %v15760_v21  ;;  %v15799_v21 = vld [vmem:[%s16471_s7 + $0x19e0] sm:$0xff]  }
 0x38d   : > { %14433 = vmatprep.subr.bf16.mxu0 %v15762_v23  ;;  %v15801_v23 = vld [vmem:[%s16471_s7 + $0x19a0] sm:$0xff]  }
 0x38e   : > { %14454 = vmatpush3.bf16.msra.mxu1 %v15761_v22  ;;  %v15800_v22 = vld [vmem:[%s16471_s7 + $0x1920] sm:$0xff]  }
 0x38f   : > { %14455 = vmatprep.subr.bf16.mxu1 %v15763_v24  ;;  %v15802_v24 = vld [vmem:[%s16471_s7 + $0x1968] sm:$0xff]  }
 0x390   : > { %14434 = vmatpush3.bf16.msra.mxu0 %v15764_v25  ;;  %v15803_v25 = vld [vmem:[%s16471_s7 + $0x19e8] sm:$0xff]  }
 0x391   : > { %14435 = vmatprep.subr.bf16.mxu0 %v15766_v27  ;;  %v15804_v27 = vld [vmem:[%s16471_s7 + $0x1928] sm:$0xff]  }
 0x392   : > { %14456 = vmatpush3.bf16.msra.mxu1 %v15765_v26 }
 0x393   : > { %14457 = vmatprep.subr.bf16.mxu1 %v15767_v28 }
 0x394   : > { %14436 = vmatpush3.bf16.msra.mxu0 %v15768_v29  ;;  %v15805_v29 = vld [vmem:[%s16471_s7 + $0x19a8] sm:$0xff]  }
 0x395   : > { %14437 = vmatprep.subr.bf16.mxu0 %v15770_v31 }
 0x396   : > { %v14135_v33 = vpop.f32.mrb[68].mxu0  ;;  %14458 = vmatpush3.bf16.msra.mxu1 %v15769_v30 }
 0x397   : > { %v14136_v35 = vpop.f32.mrb[69].mxu0  ;;  %14459 = vmatprep.subr.bf16.mxu1 %v15771_v32 }
 0x398   : > { %v14157_v37 = vpop.f32.mrb[68].mxu1  ;;  %v14137_v38 = vadd.f32 %v14136_v35, %v14135_v33  ;;  %v14138_v39 = vpop.f32.mrb[70].mxu0  ;;  %14438 = vmatpush3.bf16.msra.mxu0 %v15772_v34  ;;  %v15806_v33 = vld [vmem:[%s16471_s7 + $0x1970] sm:$0xff]  }
 0x399   : > { %v14158_v43 = vpop.f32.mrb[69].mxu1  ;;  %v14139_v44 = vpop.f32.mrb[71].mxu0  ;;  %14439 = vmatprep.subr.bf16.mxu0 %v15774_v40  ;;  %v15807_v34 = vld [vmem:[%s16471_s7 + $0x19f0] sm:$0xff]  }
 0x39a   : > { %v10884_v45 = vadd.f32 %v14137_v38, %v17466_v4  ;;  %v14159_v46 = vadd.f32 %v14158_v43, %v14157_v37  ;;  %v14160_v47 = vpop.f32.mrb[70].mxu1  ;;  %14460 = vmatpush3.bf16.msra.mxu1 %v15773_v36  ;;  %v3066_v4 = vcombine.high %v3044_v61, %v3044_v61  ;;  %v15808_v40 = vld [vmem:[%s16471_s7 + $0x1930] sm:$0xff]  }
 0x39b   : > { %v14161_v49 = vpop.f32.mrb[71].mxu1  ;;  %14461 = vmatprep.subr.bf16.mxu1 %v15775_v41  ;;  %v15809_v43 = vld [vmem:[%s16471_s7 + $0x19b0] sm:$0xff]   ;;  %v15812_v47 = vld [vmem:[%s16471_s7 + $0x1938] sm:$0xff]  }
 0x39c   : > { %v17503_v51 = vadd.f32 %v14159_v46, %v10884_v45  ;;  %14440 = vmatpush3.bf16.msra.mxu0 %v15776_v48  ;;  %v15810_v45 = vld [vmem:[%s16471_s7 + $0x1978] sm:$0xff]   ;;  %v3051_v49 = vrot.slane %v17515_v63, %v16545_v42 }
 0x39d   : > { %14441 = vmatprep.subr.bf16.mxu0 %v15778_v52  ;;  %v15811_v46 = vld [vmem:[%s16471_s7 + $0x19f8] sm:$0xff]   ;;  %v15817_v52 = vld [vmem:[%s16471_s7 + $0x1a00] sm:$0xff]  }
 0x39e   : > { %14462 = vmatpush3.bf16.msra.mxu1 %v15777_v50  ;;  %v15813_v48 = vld [vmem:[%s16471_s7 + $0x19b8] sm:$0xff]   ;;  %v15815_v50 = vld [vmem:[%s16471_s7 + $0x1a40] sm:$0xff]  }
 0x39f   : > { %14463 = vmatprep.subr.bf16.mxu1 %v15779_v53  ;;  %v15818_v53 = vld [vmem:[%s16471_s7 + $0x1a80] sm:$0xff]   ;;  %v15827_v63 = vld [vmem:[%s16471_s7 + $0x1a58] sm:$0xff]  }
 0x3a0   : > { %14442 = vmatpush3.bf16.msra.mxu0 %v15780_v54  ;;  %v3067_v54 = vcombine.high %v3051_v49, %v3051_v49 }
 0x3a1   : > { %14471 = vmatprep.subr.bf16.mxu0 %v15782_v58  ;;  %v15821_v58 = vld [vmem:[%s16471_s7 + $0x1a08] sm:$0xff]  }
 0x3a2   : > { %14464 = vmatpush3.bf16.msra.mxu1 %v15781_v60  ;;  %v15823_v60 = vld [vmem:[%s16471_s7 + $0x1a50] sm:$0xff]  }
 0x3a3   : > { %14493 = vmatprep.subr.bf16.mxu1 %v15783_v62  ;;  %11442 = vmatmul.mubr.bf16.vlgmr.msra.gmra.mrb[96].mxu0 %v3044_v61  ;;  %v15825_v61 = vld [vmem:[%s16471_s7 + $0x1a10] sm:$0xff]  }
 0x3a4   : > { %14472 = vmatpush3.bf16.msra.mxu0 %v15784_v0  ;;  %11521 = vmatprep.mubr.bf16.mxu0 %v3065_v8  ;;  %v15826_v62 = vld [vmem:[%s16471_s7 + $0x1a90] sm:$0xff]   ;;  %v15828_v0 = vld [vmem:[%s16471_s7 + $0x1ad8] sm:$0xff]   ;;  %v15836_v8 = vld [vmem:[%s16471_s7 + $0x1ae8] sm:$0xff]  }
 0x3a5   : > { %11482 = vmatmul.mubr.bf16.vlgmr.msra.gmra.mrb[96].mxu1 %v3066_v4  ;;  %14473 = vmatprep.subr.bf16.mxu0 %v15786_v5  ;;  %v15832_v4 = vld [vmem:[%s16471_s7 + $0x1ae0] sm:$0xff]  }
 0x3a6   : > { %14494 = vmatpush3.bf16.msra.mxu1 %v15785_v2  ;;  %11561 = vmatprep.mubr.bf16.mxu1 %v3069_v11  ;;  %v15830_v2 = vld [vmem:[%s16471_s7 + $0x1a98] sm:$0xff]   ;;  %v15833_v5 = vld [vmem:[%s16471_s7 + $0x1a20] sm:$0xff]  }
 0x3a7   : > { %14495 = vmatprep.subr.bf16.mxu1 %v15787_v7  ;;  %v15835_v7 = vld [vmem:[%s16471_s7 + $0x1a68] sm:$0xff]  }
 0x3a8   : > { %14474 = vmatpush3.bf16.msra.mxu0 %v15788_v9 }
 0x3a9   : > { %14475 = vmatprep.subr.bf16.mxu0 %v15790_v12  ;;  %v15838_v12 = vld [vmem:[%s16471_s7 + $0x1aa8] sm:$0xff]  }
 0x3aa   : > { %14496 = vmatpush3.bf16.msra.mxu1 %v15789_v10  ;;  %v15837_v10 = vld [vmem:[%s16471_s7 + $0x1a28] sm:$0xff]  }
 0x3ab   : > { %14497 = vmatprep.subr.bf16.mxu1 %v15791_v13 }
 0x3ac   : > { %14476 = vmatpush3.bf16.msra.mxu0 %v15792_v14 }
 0x3ad   : > { %14477 = vmatprep.subr.bf16.mxu0 %v15794_v16  ;;  %v15839_v16 = vld [vmem:[%s16471_s7 + $0x1a70] sm:$0xff]  }
 0x3ae   : > { %14498 = vmatpush3.bf16.msra.mxu1 %v15793_v15 }
 0x3af   : > { %14499 = vmatprep.subr.bf16.mxu1 %v15795_v17  ;;  %v15840_v17 = vld [vmem:[%s16471_s7 + $0x1af0] sm:$0xff]  }
 0x3b0   : > { %14478 = vmatpush3.bf16.msra.mxu0 %v15796_v18 }
 0x3b1   : > { %14479 = vmatprep.subr.bf16.mxu0 %v15798_v20 }
 0x3b2   : > { %14500 = vmatpush3.bf16.msra.mxu1 %v15797_v19 }
 0x3b3   : > { %14501 = vmatprep.subr.bf16.mxu1 %v15799_v21 }
 0x3b4   : > { %14480 = vmatpush3.bf16.msra.mxu0 %v15800_v22 }
 0x3b5   : > { %14481 = vmatprep.subr.bf16.mxu0 %v15802_v24 }
 0x3b6   : > { %v14179_v26 = vpop.f32.mrb[72].mxu0  ;;  %14502 = vmatpush3.bf16.msra.mxu1 %v15801_v23  ;;  %v15841_v23 = vld [vmem:[%s16471_s7 + $0x1a30] sm:$0xff]  }
 0x3b7   : > { %v14180_v28 = vpop.f32.mrb[73].mxu0  ;;  %14503 = vmatprep.subr.bf16.mxu1 %v15803_v25  ;;  %v15842_v25 = vld [vmem:[%s16471_s7 + $0x1ab0] sm:$0xff]  }
 0x3b8   : > { %v14201_v30 = vpop.f32.mrb[72].mxu1  ;;  %v14181_v31 = vadd.f32 %v14180_v28, %v14179_v26  ;;  %v14182_v32 = vpop.f32.mrb[74].mxu0  ;;  %14482 = vmatpush3.bf16.msra.mxu0 %v15804_v27  ;;  %v15843_v27 = vld [vmem:[%s16471_s7 + $0x1a78] sm:$0xff]  }
 0x3b9   : > { %v14202_v35 = vpop.f32.mrb[73].mxu1  ;;  %v14183_v36 = vpop.f32.mrb[75].mxu0  ;;  %14483 = vmatprep.subr.bf16.mxu0 %v15806_v33  ;;  %v15844_v28 = vld [vmem:[%s16471_s7 + $0x1af8] sm:$0xff]   ;;  %v15847_v32 = vld [vmem:[%s16471_s7 + $0x1b40] sm:$0xff]  }
 0x3ba   : > { %v10964_v37 = vadd.f32 %v14181_v31, %v17503_v51  ;;  %v14203_v38 = vadd.f32 %v14202_v35, %v14201_v30  ;;  %v14204_v39 = vpop.f32.mrb[74].mxu1  ;;  %14504 = vmatpush3.bf16.msra.mxu1 %v15805_v29  ;;  %v15816_v51 = vld [vmem:[%s16471_s7 + $0x1ac0] sm:$0xff]   ;;  %v15845_v29 = vld [vmem:[%s16471_s7 + $0x1a38] sm:$0xff]   ;;  %v366_v30 = vld [vmem:[%s16493_s26 + $0x68] sm:$0xff] }
 0x3bb   : > { %v14205_v41 = vpop.f32.mrb[75].mxu1  ;;  %14505 = vmatprep.subr.bf16.mxu1 %v15807_v34  ;;  %v3077_v31 = vrot.slane %v366_v30, %v16545_v42  ;;  %v3070_v33 = vcombine.high %v366_v30, %v366_v30  ;;  %v15846_v34 = vld [vmem:[%s16471_s7 + $0x1ab8] sm:$0xff]   ;;  %v15849_v39 = vld [vmem:[%s16471_s7 + $0x1b00] sm:$0xff]   ;;  %v15884_v30 = vld [vmem:[%s16471_s7 + $0x1c48] sm:$0xff]  }
 0x3bc   : > { %v17548_v44 = vadd.f32 %v14203_v38, %v10964_v37  ;;  %14484 = vmatpush3.bf16.msra.mxu0 %v15808_v40  ;;  %v15848_v37 = vld [vmem:[%s16471_s7 + $0x1bc0] sm:$0xff]  }
 0x3bd   : > { %14485 = vmatprep.subr.bf16.mxu0 %v15810_v45  ;;  %v3085_v35 = vcombine.high %v3077_v31, %v3077_v31  ;;  %v3093_v36 = vrot.slane %v3077_v31, %v16545_v42  ;;  %v17597_v38 = vrot.slane %v3070_v33, %v16545_v42  ;;  %v15850_v41 = vld [vmem:[%s16471_s7 + $0x1b80] sm:$0xff]   ;;  %v15851_v45 = vld [vmem:[%s16471_s7 + $0x1b48] sm:$0xff]  }
 0x3be   : > { %14506 = vmatpush3.bf16.msra.mxu1 %v15809_v43  ;;  %v15885_v31 = vld [vmem:[%s16471_s7 + $0x1cc8] sm:$0xff]  }
 0x3bf   : > { %14507 = vmatprep.subr.bf16.mxu1 %v15811_v46  ;;  %v3107_v40 = vrot.slane %v3085_v35, %v16545_v42  ;;  %v3086_v43 = vcombine.high %v17597_v38, %v17597_v38  ;;  %v15887_v33 = vld [vmem:[%s16471_s7 + $0x1c88] sm:$0xff]   ;;  %v15889_v35 = vld [vmem:[%s16471_s7 + $0x1cd0] sm:$0xff]  }
 0x3c0   : > { %14486 = vmatpush3.bf16.msra.mxu0 %v15812_v47  ;;  %v15852_v47 = vld [vmem:[%s16471_s7 + $0x1bc8] sm:$0xff]  }
 0x3c1   : > { %14515 = vmatprep.subr.bf16.mxu0 %v15815_v50  ;;  %v3117_v46 = vcombine.high %v3107_v40, %v3107_v40  ;;  %v15854_v50 = vld [vmem:[%s16471_s7 + $0x1b88] sm:$0xff]  }
 0x3c2   : > { %14508 = vmatpush3.bf16.msra.mxu1 %v15813_v48  ;;  %v3114_v48 = vrot.slane %v3086_v43, %v16545_v42  ;;  %v15896_v43 = vld [vmem:[%s16471_s7 + $0x1c60] sm:$0xff]  }
 0x3c3   : > { %11522 = vmatmul.mubr.bf16.vlgmr.msra.gmra.mrb[100].mxu0 %v3051_v49  ;;  %14537 = vmatprep.subr.bf16.mxu1 %v15816_v51  ;;  %v15853_v49 = vld [vmem:[%s16471_s7 + $0x1b08] sm:$0xff]  }
 0x3c4   : > { %14516 = vmatpush3.bf16.msra.mxu0 %v15817_v52  ;;  %11601 = vmatprep.mubr.bf16.mxu0 %v3107_v40  ;;  %v3118_v51 = vcombine.high %v3114_v48, %v3114_v48  ;;  %v15855_v52 = vld [vmem:[%s16471_s7 + $0x1b50] sm:$0xff]   ;;  %v15894_v40 = vld [vmem:[%s16471_s7 + $0x1c18] sm:$0xff]  }
 0x3c5   : > { %11562 = vmatmul.mubr.bf16.vlgmr.msra.gmra.mrb[100].mxu1 %v3067_v54  ;;  %14517 = vmatprep.subr.bf16.mxu0 %v15819_v56  ;;  %v15857_v54 = vld [vmem:[%s16471_s7 + $0x1b10] sm:$0xff]  }
 0x3c6   : > { %14538 = vmatpush3.bf16.msra.mxu1 %v15818_v53  ;;  %11641 = vmatprep.mubr.bf16.mxu1 %v3117_v46  ;;  %v15856_v53 = vld [vmem:[%s16471_s7 + $0x1bd0] sm:$0xff]   ;;  %v15899_v46 = vld [vmem:[%s16471_s7 + $0x1ca0] sm:$0xff]  }
 0x3c7   : > { %14539 = vmatprep.subr.bf16.mxu1 %v15820_v57  ;;  %v15858_v56 = vld [vmem:[%s16471_s7 + $0x1b90] sm:$0xff]   ;;  %v15859_v57 = vld [vmem:[%s16471_s7 + $0x1b58] sm:$0xff]  }
 0x3c8   : > { %14518 = vmatpush3.bf16.msra.mxu0 %v15821_v58  ;;  %v15860_v58 = vld [vmem:[%s16471_s7 + $0x1bd8] sm:$0xff]  }
 0x3c9   : > { %14519 = vmatprep.subr.bf16.mxu0 %v15823_v60  ;;  %v15862_v60 = vld [vmem:[%s16471_s7 + $0x1b98] sm:$0xff]  }
 0x3ca   : > { %14540 = vmatpush3.bf16.msra.mxu1 %v15822_v59  ;;  %v15861_v59 = vld [vmem:[%s16471_s7 + $0x1b18] sm:$0xff]  }
 0x3cb   : > { %14541 = vmatprep.subr.bf16.mxu1 %v15824_v55  ;;  %v15863_v55 = vld [vmem:[%s16471_s7 + $0x1b60] sm:$0xff]  }
 0x3cc   : > { %14520 = vmatpush3.bf16.msra.mxu0 %v15825_v61  ;;  %v15864_v61 = vld [vmem:[%s16471_s7 + $0x1be0] sm:$0xff]  }
 0x3cd   : > { %14521 = vmatprep.subr.bf16.mxu0 %v15827_v63  ;;  %v15866_v63 = vld [vmem:[%s16471_s7 + $0x1ba0] sm:$0xff]  }
 0x3ce   : > { %14542 = vmatpush3.bf16.msra.mxu1 %v15826_v62  ;;  %v15865_v62 = vld [vmem:[%s16471_s7 + $0x1b20] sm:$0xff]  }
 0x3cf   : > { %14543 = vmatprep.subr.bf16.mxu1 %v15828_v0  ;;  %v15867_v0 = vld [vmem:[%s16471_s7 + $0x1b68] sm:$0xff]  }
 0x3d0   : > { %14522 = vmatpush3.bf16.msra.mxu0 %v15829_v1  ;;  %v15868_v1 = vld [vmem:[%s16471_s7 + $0x1be8] sm:$0xff]  }
 0x3d1   : > { %14523 = vmatprep.subr.bf16.mxu0 %v15831_v3  ;;  %v15869_v3 = vld [vmem:[%s16471_s7 + $0x1b28] sm:$0xff]  }
 0x3d2   : > { %14544 = vmatpush3.bf16.msra.mxu1 %v15830_v2 }
 0x3d3   : > { %14545 = vmatprep.subr.bf16.mxu1 %v15832_v4 }
 0x3d4   : > { %14524 = vmatpush3.bf16.msra.mxu0 %v15833_v5  ;;  %v15870_v5 = vld [vmem:[%s16471_s7 + $0x1ba8] sm:$0xff]  }
 0x3d5   : > { %14525 = vmatprep.subr.bf16.mxu0 %v15835_v7 }
 0x3d6   : > { %v14223_v9 = vpop.f32.mrb[76].mxu0  ;;  %14546 = vmatpush3.bf16.msra.mxu1 %v15834_v6 }
 0x3d7   : > { %v14224_v11 = vpop.f32.mrb[77].mxu0  ;;  %14547 = vmatprep.subr.bf16.mxu1 %v15836_v8 }
 0x3d8   : > { %v14245_v13 = vpop.f32.mrb[76].mxu1  ;;  %v14225_v14 = vadd.f32 %v14224_v11, %v14223_v9  ;;  %v14226_v15 = vpop.f32.mrb[78].mxu0  ;;  %14526 = vmatpush3.bf16.msra.mxu0 %v15837_v10  ;;  %v15871_v9 = vld [vmem:[%s16471_s7 + $0x1b70] sm:$0xff]  }
 0x3d9   : > { %v14246_v18 = vpop.f32.mrb[77].mxu1  ;;  %v14227_v19 = vpop.f32.mrb[79].mxu0  ;;  %14527 = vmatprep.subr.bf16.mxu0 %v15839_v16  ;;  %v15872_v10 = vld [vmem:[%s16471_s7 + $0x1bf0] sm:$0xff]  }
 0x3da   : > { %v11044_v20 = vadd.f32 %v14225_v14, %v17548_v44  ;;  %v14247_v21 = vadd.f32 %v14246_v18, %v14245_v13  ;;  %v14248_v22 = vpop.f32.mrb[78].mxu1  ;;  %14548 = vmatpush3.bf16.msra.mxu1 %v15838_v12  ;;  %v3115_v44 = vcombine.high %v3093_v36, %v3093_v36  ;;  %v15873_v16 = vld [vmem:[%s16471_s7 + $0x1b30] sm:$0xff]  }
 0x3db   : > { %v14249_v24 = vpop.f32.mrb[79].mxu1  ;;  %14549 = vmatprep.subr.bf16.mxu1 %v15840_v17  ;;  %v15874_v18 = vld [vmem:[%s16471_s7 + $0x1bb0] sm:$0xff]   ;;  %v15877_v22 = vld [vmem:[%s16471_s7 + $0x1b38] sm:$0xff]  }
 0x3dc   : > { %v17585_v26 = vadd.f32 %v14247_v21, %v11044_v20  ;;  %14528 = vmatpush3.bf16.msra.mxu0 %v15841_v23  ;;  %v15875_v20 = vld [vmem:[%s16471_s7 + $0x1b78] sm:$0xff]   ;;  %v3100_v24 = vrot.slane %v17597_v38, %v16545_v42 }
 0x3dd   : > { %14529 = vmatprep.subr.bf16.mxu0 %v15843_v27  ;;  %v15876_v21 = vld [vmem:[%s16471_s7 + $0x1bf8] sm:$0xff]   ;;  %v15882_v27 = vld [vmem:[%s16471_s7 + $0x1c00] sm:$0xff]  }
 0x3de   : > { %14550 = vmatpush3.bf16.msra.mxu1 %v15842_v25  ;;  %v15878_v23 = vld [vmem:[%s16471_s7 + $0x1bb8] sm:$0xff]   ;;  %v15880_v25 = vld [vmem:[%s16471_s7 + $0x1c40] sm:$0xff]  }
 0x3df   : > { %14551 = vmatprep.subr.bf16.mxu1 %v15844_v28  ;;  %v15883_v28 = vld [vmem:[%s16471_s7 + $0x1c80] sm:$0xff]   ;;  %v15892_v38 = vld [vmem:[%s16471_s7 + $0x1c58] sm:$0xff]  }
 0x3e0   : > { %14530 = vmatpush3.bf16.msra.mxu0 %v15845_v29  ;;  %v3116_v29 = vcombine.high %v3100_v24, %v3100_v24 }
 0x3e1   : > { %14559 = vmatprep.subr.bf16.mxu0 %v15847_v32  ;;  %v15886_v32 = vld [vmem:[%s16471_s7 + $0x1c08] sm:$0xff]  }
 0x3e2   : > { %14552 = vmatpush3.bf16.msra.mxu1 %v15846_v34  ;;  %v15888_v34 = vld [vmem:[%s16471_s7 + $0x1c50] sm:$0xff]  }
 0x3e3   : > { %14581 = vmatprep.subr.bf16.mxu1 %v15848_v37  ;;  %11602 = vmatmul.mubr.bf16.vlgmr.msra.gmra.mrb[104].mxu0 %v3093_v36  ;;  %v15890_v36 = vld [vmem:[%s16471_s7 + $0x1c10] sm:$0xff]  }
 0x3e4   : > { %14560 = vmatpush3.bf16.msra.mxu0 %v15849_v39  ;;  %11681 = vmatprep.mubr.bf16.mxu0 %v3114_v48  ;;  %v15891_v37 = vld [vmem:[%s16471_s7 + $0x1c90] sm:$0xff]   ;;  %v15893_v39 = vld [vmem:[%s16471_s7 + $0x1cd8] sm:$0xff]   ;;  %v15901_v48 = vld [vmem:[%s16471_s7 + $0x1ce8] sm:$0xff]  }
 0x3e5   : > { %11642 = vmatmul.mubr.bf16.vlgmr.msra.gmra.mrb[104].mxu1 %v3115_v44  ;;  %14561 = vmatprep.subr.bf16.mxu0 %v15851_v45  ;;  %v15897_v44 = vld [vmem:[%s16471_s7 + $0x1ce0] sm:$0xff]  }
 0x3e6   : > { %14582 = vmatpush3.bf16.msra.mxu1 %v15850_v41  ;;  %11721 = vmatprep.mubr.bf16.mxu1 %v3118_v51  ;;  %v15895_v41 = vld [vmem:[%s16471_s7 + $0x1c98] sm:$0xff]   ;;  %v15898_v45 = vld [vmem:[%s16471_s7 + $0x1c20] sm:$0xff]  }
 0x3e7   : > { %14583 = vmatprep.subr.bf16.mxu1 %v15852_v47  ;;  %v15900_v47 = vld [vmem:[%s16471_s7 + $0x1c68] sm:$0xff]  }
 0x3e8   : > { %14562 = vmatpush3.bf16.msra.mxu0 %v15853_v49 }
 0x3e9   : > { %14563 = vmatprep.subr.bf16.mxu0 %v15855_v52  ;;  %v15903_v52 = vld [vmem:[%s16471_s7 + $0x1ca8] sm:$0xff]  }
 0x3ea   : > { %14584 = vmatpush3.bf16.msra.mxu1 %v15854_v50  ;;  %v15902_v50 = vld [vmem:[%s16471_s7 + $0x1c28] sm:$0xff]  }
 0x3eb   : > { %14585 = vmatprep.subr.bf16.mxu1 %v15856_v53 }
 0x3ec   : > { %14564 = vmatpush3.bf16.msra.mxu0 %v15857_v54 }
 0x3ed   : > { %14565 = vmatprep.subr.bf16.mxu0 %v15859_v57  ;;  %v15904_v57 = vld [vmem:[%s16471_s7 + $0x1c70] sm:$0xff]  }
 0x3ee   : > { %14586 = vmatpush3.bf16.msra.mxu1 %v15858_v56 }
 0x3ef   : > { %14587 = vmatprep.subr.bf16.mxu1 %v15860_v58  ;;  %v15905_v58 = vld [vmem:[%s16471_s7 + $0x1cf0] sm:$0xff]  }
 0x3f0   : > { %14566 = vmatpush3.bf16.msra.mxu0 %v15861_v59 }
 0x3f1   : > { %14567 = vmatprep.subr.bf16.mxu0 %v15863_v55 }
 0x3f2   : > { %14588 = vmatpush3.bf16.msra.mxu1 %v15862_v60 }
 0x3f3   : > { %14589 = vmatprep.subr.bf16.mxu1 %v15864_v61 }
 0x3f4   : > { %14568 = vmatpush3.bf16.msra.mxu0 %v15865_v62 }
 0x3f5   : > { %14569 = vmatprep.subr.bf16.mxu0 %v15867_v0 }
 0x3f6   : > { %v14267_v2 = vpop.f32.mrb[80].mxu0  ;;  %14590 = vmatpush3.bf16.msra.mxu1 %v15866_v63  ;;  %v15906_v63 = vld [vmem:[%s16471_s7 + $0x1c30] sm:$0xff]  }
 0x3f7   : > { %v14268_v4 = vpop.f32.mrb[81].mxu0  ;;  %14591 = vmatprep.subr.bf16.mxu1 %v15868_v1  ;;  %v15907_v1 = vld [vmem:[%s16471_s7 + $0x1cb0] sm:$0xff]  }
 0x3f8   : > { %v14289_v6 = vpop.f32.mrb[80].mxu1  ;;  %v14269_v7 = vadd.f32 %v14268_v4, %v14267_v2  ;;  %v14270_v8 = vpop.f32.mrb[82].mxu0  ;;  %14570 = vmatpush3.bf16.msra.mxu0 %v15869_v3  ;;  %v15908_v3 = vld [vmem:[%s16471_s7 + $0x1c78] sm:$0xff]  }
 0x3f9   : > { %v14290_v11 = vpop.f32.mrb[81].mxu1  ;;  %v14271_v12 = vpop.f32.mrb[83].mxu0  ;;  %14571 = vmatprep.subr.bf16.mxu0 %v15871_v9  ;;  %v15909_v4 = vld [vmem:[%s16471_s7 + $0x1cf8] sm:$0xff]   ;;  %v15912_v8 = vld [vmem:[%s16471_s7 + $0x1d40] sm:$0xff]  }
 0x3fa   : > { %v11124_v13 = vadd.f32 %v14269_v7, %v17585_v26  ;;  %v14291_v14 = vadd.f32 %v14290_v11, %v14289_v6  ;;  %v14292_v15 = vpop.f32.mrb[82].mxu1  ;;  %14592 = vmatpush3.bf16.msra.mxu1 %v15870_v5  ;;  %v15881_v26 = vld [vmem:[%s16471_s7 + $0x1cc0] sm:$0xff]   ;;  %v15910_v5 = vld [vmem:[%s16471_s7 + $0x1c38] sm:$0xff]   ;;  %v367_v6 = vld [vmem:[%s16493_s26 + $0x70] sm:$0xff] }
 0x3fb   : > { %v14293_v17 = vpop.f32.mrb[83].mxu1  ;;  %14593 = vmatprep.subr.bf16.mxu1 %v15872_v10  ;;  %v3126_v7 = vrot.slane %v367_v6, %v16545_v42  ;;  %v3119_v9 = vcombine.high %v367_v6, %v367_v6  ;;  %v15911_v10 = vld [vmem:[%s16471_s7 + $0x1cb8] sm:$0xff]   ;;  %v15914_v15 = vld [vmem:[%s16471_s7 + $0x1d00] sm:$0xff]   ;;  %v15949_v6 = vld [vmem:[%s16471_s7 + $0x1e48] sm:$0xff]  }
 0x3fc   : > { %v17630_v19 = vadd.f32 %v14291_v14, %v11124_v13  ;;  %14572 = vmatpush3.bf16.msra.mxu0 %v15873_v16  ;;  %v15913_v13 = vld [vmem:[%s16471_s7 + $0x1dc0] sm:$0xff]  }
 0x3fd   : > { %14573 = vmatprep.subr.bf16.mxu0 %v15875_v20  ;;  %v3134_v11 = vcombine.high %v3126_v7, %v3126_v7  ;;  %v3142_v12 = vrot.slane %v3126_v7, %v16545_v42  ;;  %v17679_v14 = vrot.slane %v3119_v9, %v16545_v42  ;;  %v15915_v17 = vld [vmem:[%s16471_s7 + $0x1d80] sm:$0xff]   ;;  %v15916_v20 = vld [vmem:[%s16471_s7 + $0x1d48] sm:$0xff]  }
 0x3fe   : > { %14594 = vmatpush3.bf16.msra.mxu1 %v15874_v18  ;;  %v15950_v7 = vld [vmem:[%s16471_s7 + $0x1ec8] sm:$0xff]  }
 0x3ff   : > { %14595 = vmatprep.subr.bf16.mxu1 %v15876_v21  ;;  %v3156_v16 = vrot.slane %v3134_v11, %v16545_v42  ;;  %v3135_v18 = vcombine.high %v17679_v14, %v17679_v14  ;;  %v15952_v9 = vld [vmem:[%s16471_s7 + $0x1e88] sm:$0xff]   ;;  %v15954_v11 = vld [vmem:[%s16471_s7 + $0x1ed0] sm:$0xff]  }
 0x400   : > { %14574 = vmatpush3.bf16.msra.mxu0 %v15877_v22  ;;  %v15917_v22 = vld [vmem:[%s16471_s7 + $0x1dc8] sm:$0xff]  }
 0x401   : > { %14603 = vmatprep.subr.bf16.mxu0 %v15880_v25  ;;  %v3166_v21 = vcombine.high %v3156_v16, %v3156_v16  ;;  %v15919_v25 = vld [vmem:[%s16471_s7 + $0x1d88] sm:$0xff]  }
 0x402   : > { %14596 = vmatpush3.bf16.msra.mxu1 %v15878_v23  ;;  %v3163_v23 = vrot.slane %v3135_v18, %v16545_v42  ;;  %v15961_v18 = vld [vmem:[%s16471_s7 + $0x1e60] sm:$0xff]  }
 0x403   : > { %11682 = vmatmul.mubr.bf16.vlgmr.msra.gmra.mrb[108].mxu0 %v3100_v24  ;;  %14625 = vmatprep.subr.bf16.mxu1 %v15881_v26  ;;  %v15918_v24 = vld [vmem:[%s16471_s7 + $0x1d08] sm:$0xff]  }
 0x404   : > { %14604 = vmatpush3.bf16.msra.mxu0 %v15882_v27  ;;  %11761 = vmatprep.mubr.bf16.mxu0 %v3156_v16  ;;  %v3167_v26 = vcombine.high %v3163_v23, %v3163_v23  ;;  %v15920_v27 = vld [vmem:[%s16471_s7 + $0x1d50] sm:$0xff]   ;;  %v15959_v16 = vld [vmem:[%s16471_s7 + $0x1e18] sm:$0xff]  }
 0x405   : > { %11722 = vmatmul.mubr.bf16.vlgmr.msra.gmra.mrb[108].mxu1 %v3116_v29  ;;  %14605 = vmatprep.subr.bf16.mxu0 %v15884_v30  ;;  %v15922_v29 = vld [vmem:[%s16471_s7 + $0x1d10] sm:$0xff]  }
 0x406   : > { %14626 = vmatpush3.bf16.msra.mxu1 %v15883_v28  ;;  %11801 = vmatprep.mubr.bf16.mxu1 %v3166_v21  ;;  %v15921_v28 = vld [vmem:[%s16471_s7 + $0x1dd0] sm:$0xff]   ;;  %v15964_v21 = vld [vmem:[%s16471_s7 + $0x1ea0] sm:$0xff]  }
 0x407   : > { %14627 = vmatprep.subr.bf16.mxu1 %v15885_v31  ;;  %v15923_v30 = vld [vmem:[%s16471_s7 + $0x1d90] sm:$0xff]   ;;  %v15924_v31 = vld [vmem:[%s16471_s7 + $0x1d58] sm:$0xff]  }
 0x408   : > { %14606 = vmatpush3.bf16.msra.mxu0 %v15886_v32  ;;  %v15925_v32 = vld [vmem:[%s16471_s7 + $0x1dd8] sm:$0xff]  }
 0x409   : > { %14607 = vmatprep.subr.bf16.mxu0 %v15888_v34  ;;  %v15927_v34 = vld [vmem:[%s16471_s7 + $0x1d98] sm:$0xff]  }
 0x40a   : > { %14628 = vmatpush3.bf16.msra.mxu1 %v15887_v33  ;;  %v15926_v33 = vld [vmem:[%s16471_s7 + $0x1d18] sm:$0xff]  }
 0x40b   : > { %14629 = vmatprep.subr.bf16.mxu1 %v15889_v35  ;;  %v15928_v35 = vld [vmem:[%s16471_s7 + $0x1d60] sm:$0xff]  }
 0x40c   : > { %14608 = vmatpush3.bf16.msra.mxu0 %v15890_v36  ;;  %v15929_v36 = vld [vmem:[%s16471_s7 + $0x1de0] sm:$0xff]  }
 0x40d   : > { %14609 = vmatprep.subr.bf16.mxu0 %v15892_v38  ;;  %v15931_v38 = vld [vmem:[%s16471_s7 + $0x1da0] sm:$0xff]  }
 0x40e   : > { %14630 = vmatpush3.bf16.msra.mxu1 %v15891_v37  ;;  %v15930_v37 = vld [vmem:[%s16471_s7 + $0x1d20] sm:$0xff]  }
 0x40f   : > { %14631 = vmatprep.subr.bf16.mxu1 %v15893_v39  ;;  %v15932_v39 = vld [vmem:[%s16471_s7 + $0x1d68] sm:$0xff]  }
 0x410   : > { %14610 = vmatpush3.bf16.msra.mxu0 %v15894_v40  ;;  %v15933_v40 = vld [vmem:[%s16471_s7 + $0x1de8] sm:$0xff]  }
 0x411   : > { %14611 = vmatprep.subr.bf16.mxu0 %v15896_v43  ;;  %v15934_v43 = vld [vmem:[%s16471_s7 + $0x1d28] sm:$0xff]  }
 0x412   : > { %14632 = vmatpush3.bf16.msra.mxu1 %v15895_v41 }
 0x413   : > { %14633 = vmatprep.subr.bf16.mxu1 %v15897_v44 }
 0x414   : > { %14612 = vmatpush3.bf16.msra.mxu0 %v15898_v45  ;;  %v15935_v45 = vld [vmem:[%s16471_s7 + $0x1da8] sm:$0xff]  }
 0x415   : > { %14613 = vmatprep.subr.bf16.mxu0 %v15900_v47 }
 0x416   : > { %v14311_v49 = vpop.f32.mrb[84].mxu0  ;;  %14634 = vmatpush3.bf16.msra.mxu1 %v15899_v46 }
 0x417   : > { %v14312_v51 = vpop.f32.mrb[85].mxu0  ;;  %14635 = vmatprep.subr.bf16.mxu1 %v15901_v48 }
 0x418   : > { %v14333_v53 = vpop.f32.mrb[84].mxu1  ;;  %v14313_v54 = vadd.f32 %v14312_v51, %v14311_v49  ;;  %v14314_v56 = vpop.f32.mrb[86].mxu0  ;;  %14614 = vmatpush3.bf16.msra.mxu0 %v15902_v50  ;;  %v15936_v49 = vld [vmem:[%s16471_s7 + $0x1d70] sm:$0xff]  }
 0x419   : > { %v14334_v59 = vpop.f32.mrb[85].mxu1  ;;  %v14315_v60 = vpop.f32.mrb[87].mxu0  ;;  %14615 = vmatprep.subr.bf16.mxu0 %v15904_v57  ;;  %v15937_v50 = vld [vmem:[%s16471_s7 + $0x1df0] sm:$0xff]  }
 0x41a   : > { %v11204_v55 = vadd.f32 %v14313_v54, %v17630_v19  ;;  %v14335_v61 = vadd.f32 %v14334_v59, %v14333_v53  ;;  %v14336_v62 = vpop.f32.mrb[86].mxu1  ;;  %14636 = vmatpush3.bf16.msra.mxu1 %v15903_v52  ;;  %v3164_v19 = vcombine.high %v3142_v12, %v3142_v12  ;;  %v15938_v57 = vld [vmem:[%s16471_s7 + $0x1d30] sm:$0xff]  }
 0x41b   : > { %v14337_v0 = vpop.f32.mrb[87].mxu1  ;;  %14637 = vmatprep.subr.bf16.mxu1 %v15905_v58  ;;  %v15939_v59 = vld [vmem:[%s16471_s7 + $0x1db0] sm:$0xff]   ;;  %v15942_v62 = vld [vmem:[%s16471_s7 + $0x1d38] sm:$0xff]  }
 0x41c   : > { %v17667_v2 = vadd.f32 %v14335_v61, %v11204_v55  ;;  %14616 = vmatpush3.bf16.msra.mxu0 %v15906_v63  ;;  %v15940_v55 = vld [vmem:[%s16471_s7 + $0x1d78] sm:$0xff]   ;;  %v3149_v0 = vrot.slane %v17679_v14, %v16545_v42 }
 0x41d   : > { %14617 = vmatprep.subr.bf16.mxu0 %v15908_v3  ;;  %v15941_v61 = vld [vmem:[%s16471_s7 + $0x1df8] sm:$0xff]   ;;  %v15947_v3 = vld [vmem:[%s16471_s7 + $0x1e00] sm:$0xff]  }
 0x41e   : > { %14638 = vmatpush3.bf16.msra.mxu1 %v15907_v1  ;;  %v15943_v63 = vld [vmem:[%s16471_s7 + $0x1db8] sm:$0xff]   ;;  %v15945_v1 = vld [vmem:[%s16471_s7 + $0x1e40] sm:$0xff]  }
 0x41f   : > { %14639 = vmatprep.subr.bf16.mxu1 %v15909_v4  ;;  %v15948_v4 = vld [vmem:[%s16471_s7 + $0x1e80] sm:$0xff]   ;;  %v15957_v14 = vld [vmem:[%s16471_s7 + $0x1e58] sm:$0xff]  }
 0x420   : > { %14618 = vmatpush3.bf16.msra.mxu0 %v15910_v5  ;;  %v3165_v5 = vcombine.high %v3149_v0, %v3149_v0 }
 0x421   : > { %14647 = vmatprep.subr.bf16.mxu0 %v15912_v8  ;;  %v15951_v8 = vld [vmem:[%s16471_s7 + $0x1e08] sm:$0xff]  }
 0x422   : > { %14640 = vmatpush3.bf16.msra.mxu1 %v15911_v10  ;;  %v15953_v10 = vld [vmem:[%s16471_s7 + $0x1e50] sm:$0xff]  }
 0x423   : > { %14669 = vmatprep.subr.bf16.mxu1 %v15913_v13  ;;  %11762 = vmatmul.mubr.bf16.vlgmr.msra.gmra.mrb[112].mxu0 %v3142_v12  ;;  %v15955_v12 = vld [vmem:[%s16471_s7 + $0x1e10] sm:$0xff]  }
 0x424   : > { %14648 = vmatpush3.bf16.msra.mxu0 %v15914_v15  ;;  %11841 = vmatprep.mubr.bf16.mxu0 %v3163_v23  ;;  %v15956_v13 = vld [vmem:[%s16471_s7 + $0x1e90] sm:$0xff]   ;;  %v15958_v15 = vld [vmem:[%s16471_s7 + $0x1ed8] sm:$0xff]   ;;  %v15966_v23 = vld [vmem:[%s16471_s7 + $0x1ee8] sm:$0xff]  }
 0x425   : > { %11802 = vmatmul.mubr.bf16.vlgmr.msra.gmra.mrb[112].mxu1 %v3164_v19  ;;  %14649 = vmatprep.subr.bf16.mxu0 %v15916_v20  ;;  %v15962_v19 = vld [vmem:[%s16471_s7 + $0x1ee0] sm:$0xff]  }
 0x426   : > { %14670 = vmatpush3.bf16.msra.mxu1 %v15915_v17  ;;  %11881 = vmatprep.mubr.bf16.mxu1 %v3167_v26  ;;  %v15960_v17 = vld [vmem:[%s16471_s7 + $0x1e98] sm:$0xff]   ;;  %v15963_v20 = vld [vmem:[%s16471_s7 + $0x1e20] sm:$0xff]  }
 0x427   : > { %14671 = vmatprep.subr.bf16.mxu1 %v15917_v22  ;;  %v15965_v22 = vld [vmem:[%s16471_s7 + $0x1e68] sm:$0xff]  }
 0x428   : > { %14650 = vmatpush3.bf16.msra.mxu0 %v15918_v24 }
 0x429   : > { %14651 = vmatprep.subr.bf16.mxu0 %v15920_v27  ;;  %v15968_v27 = vld [vmem:[%s16471_s7 + $0x1ea8] sm:$0xff]  }
 0x42a   : > { %14672 = vmatpush3.bf16.msra.mxu1 %v15919_v25  ;;  %v15967_v25 = vld [vmem:[%s16471_s7 + $0x1e28] sm:$0xff]  }
 0x42b   : > { %14673 = vmatprep.subr.bf16.mxu1 %v15921_v28 }
 0x42c   : > { %14652 = vmatpush3.bf16.msra.mxu0 %v15922_v29 }
 0x42d   : > { %14653 = vmatprep.subr.bf16.mxu0 %v15924_v31  ;;  %v15969_v31 = vld [vmem:[%s16471_s7 + $0x1e70] sm:$0xff]  }
 0x42e   : > { %14674 = vmatpush3.bf16.msra.mxu1 %v15923_v30 }
 0x42f   : > { %14675 = vmatprep.subr.bf16.mxu1 %v15925_v32  ;;  %v15970_v32 = vld [vmem:[%s16471_s7 + $0x1ef0] sm:$0xff]  }
 0x430   : > { %14654 = vmatpush3.bf16.msra.mxu0 %v15926_v33 }
 0x431   : > { %14655 = vmatprep.subr.bf16.mxu0 %v15928_v35 }
 0x432   : > { %14676 = vmatpush3.bf16.msra.mxu1 %v15927_v34 }
 0x433   : > { %14677 = vmatprep.subr.bf16.mxu1 %v15929_v36 }
 0x434   : > { %14656 = vmatpush3.bf16.msra.mxu0 %v15930_v37 }
 0x435   : > { %14657 = vmatprep.subr.bf16.mxu0 %v15932_v39 }
 0x436   : > { %v14355_v41 = vpop.f32.mrb[88].mxu0  ;;  %14678 = vmatpush3.bf16.msra.mxu1 %v15931_v38  ;;  %v15971_v38 = vld [vmem:[%s16471_s7 + $0x1e30] sm:$0xff]  }
 0x437   : > { %v14356_v44 = vpop.f32.mrb[89].mxu0  ;;  %14679 = vmatprep.subr.bf16.mxu1 %v15933_v40  ;;  %v15972_v40 = vld [vmem:[%s16471_s7 + $0x1eb0] sm:$0xff]  }
 0x438   : > { %v14377_v46 = vpop.f32.mrb[88].mxu1  ;;  %v14357_v47 = vadd.f32 %v14356_v44, %v14355_v41  ;;  %v14358_v48 = vpop.f32.mrb[90].mxu0  ;;  %14658 = vmatpush3.bf16.msra.mxu0 %v15934_v43  ;;  %v15973_v43 = vld [vmem:[%s16471_s7 + $0x1e78] sm:$0xff]  }
 0x439   : > { %v14378_v51 = vpop.f32.mrb[89].mxu1  ;;  %v14359_v52 = vpop.f32.mrb[91].mxu0  ;;  %14659 = vmatprep.subr.bf16.mxu0 %v15936_v49  ;;  %v15974_v44 = vld [vmem:[%s16471_s7 + $0x1ef8] sm:$0xff]   ;;  %v15977_v48 = vld [vmem:[%s16471_s7 + $0x1f40] sm:$0xff]  }
 0x43a   : > { %v11284_v53 = vadd.f32 %v14357_v47, %v17667_v2  ;;  %v14379_v54 = vadd.f32 %v14378_v51, %v14377_v46  ;;  %v14380_v56 = vpop.f32.mrb[90].mxu1  ;;  %14680 = vmatpush3.bf16.msra.mxu1 %v15935_v45  ;;  %v15946_v2 = vld [vmem:[%s16471_s7 + $0x1ec0] sm:$0xff]   ;;  %v15975_v45 = vld [vmem:[%s16471_s7 + $0x1e38] sm:$0xff]  }
 0x43b   : > { %v14381_v58 = vpop.f32.mrb[91].mxu1  ;;  %14681 = vmatprep.subr.bf16.mxu1 %v15937_v50  ;;  %v368_v46 = vld [vmem:[%s16493_s26 + $0x78] sm:$0xff] }
 0x43c   : > { %v17712_v60 = vadd.f32 %v14379_v54, %v11284_v53  ;;  %14660 = vmatpush3.bf16.msra.mxu0 %v15938_v57  ;;  %v3175_v47 = vrot.slane %v368_v46, %v16545_v42  ;;  %v3168_v49 = vcombine.high %v368_v46, %v368_v46  ;;  %v15976_v50 = vld [vmem:[%s16471_s7 + $0x1eb8] sm:$0xff]   ;;  %v15978_v53 = vld [vmem:[%s16471_s7 + $0x1fc0] sm:$0xff]  }
 0x43d   : > { %14661 = vmatprep.subr.bf16.mxu0 %v15940_v55  ;;  %v15979_v57 = vld [vmem:[%s16471_s7 + $0x1f00] sm:$0xff]  }
 0x43e   : > { %14682 = vmatpush3.bf16.msra.mxu1 %v15939_v59  ;;  %v3183_v51 = vcombine.high %v3175_v47, %v3175_v47  ;;  %v3191_v52 = vrot.slane %v3175_v47, %v16545_v42  ;;  %v17761_v54 = vrot.slane %v3168_v49, %v16545_v42 }
 0x43f   : > { %14683 = vmatprep.subr.bf16.mxu1 %v15941_v61  ;;  %v15980_v61 = vld [vmem:[%s16471_s7 + $0x1f80] sm:$0xff]  }
 0x440   : > { %14662 = vmatpush3.bf16.msra.mxu0 %v15942_v62  ;;  %v3205_v56 = vrot.slane %v3183_v51, %v16545_v42  ;;  %v3184_v58 = vcombine.high %v17761_v54, %v17761_v54  ;;  %v3213_v59 = vcombine.high %v3191_v52, %v3191_v52 }
 0x441   : > { %14691 = vmatprep.subr.bf16.mxu0 %v15945_v1 }
 0x442   : > { %14684 = vmatpush3.bf16.msra.mxu1 %v15943_v63  ;;  %v3215_v55 = vcombine.high %v3205_v56, %v3205_v56  ;;  %v3212_v62 = vrot.slane %v3184_v58, %v16545_v42  ;;  %v15982_v63 = vld [vmem:[%s16471_s7 + $0x1fc8] sm:$0xff]  }
 0x443   : > { %11842 = vmatmul.mubr.bf16.vlgmr.msra.gmra.mrb[116].mxu0 %v3149_v0  ;;  %14713 = vmatprep.subr.bf16.mxu1 %v15946_v2  ;;  %v15983_v0 = vld [vmem:[%s16471_s7 + $0x1f08] sm:$0xff]   ;;  %v15985_v2 = vld [vmem:[%s16471_s7 + $0x1f50] sm:$0xff]  }
 0x444   : > { %14692 = vmatpush3.bf16.msra.mxu0 %v15947_v3  ;;  %11921 = vmatprep.mubr.bf16.mxu0 %v3205_v56  ;;  %v3216_v1 = vcombine.high %v3212_v62, %v3212_v62  ;;  %v15984_v3 = vld [vmem:[%s16471_s7 + $0x1f88] sm:$0xff]  }
 0x445   : > { %11882 = vmatmul.mubr.bf16.vlgmr.msra.gmra.mrb[116].mxu1 %v3165_v5  ;;  %14693 = vmatprep.subr.bf16.mxu0 %v15949_v6  ;;  %v15987_v5 = vld [vmem:[%s16471_s7 + $0x1f10] sm:$0xff]   ;;  %v15989_v6 = vld [vmem:[%s16471_s7 + $0x1f58] sm:$0xff]  }
 0x446   : > { %14714 = vmatpush3.bf16.msra.mxu1 %v15948_v4  ;;  %11961 = vmatprep.mubr.bf16.mxu1 %v3215_v55  ;;  %v15986_v4 = vld [vmem:[%s16471_s7 + $0x1fd0] sm:$0xff]  }
 0x447   : > { %14715 = vmatprep.subr.bf16.mxu1 %v15950_v7  ;;  %v15988_v7 = vld [vmem:[%s16471_s7 + $0x1f90] sm:$0xff]  }
 0x448   : > { %14694 = vmatpush3.bf16.msra.mxu0 %v15951_v8  ;;  %v15990_v8 = vld [vmem:[%s16471_s7 + $0x1fd8] sm:$0xff]  }
 0x449   : > { %14695 = vmatprep.subr.bf16.mxu0 %v15953_v10  ;;  %v15993_v10 = vld [vmem:[%s16471_s7 + $0x1f60] sm:$0xff]  }
 0x44a   : > { %14716 = vmatpush3.bf16.msra.mxu1 %v15952_v9  ;;  %v15991_v9 = vld [vmem:[%s16471_s7 + $0x1f18] sm:$0xff]  }
 0x44b   : > { %14717 = vmatprep.subr.bf16.mxu1 %v15954_v11  ;;  %v15992_v11 = vld [vmem:[%s16471_s7 + $0x1f98] sm:$0xff]  }
 0x44c   : > { %14696 = vmatpush3.bf16.msra.mxu0 %v15955_v12  ;;  %v15994_v12 = vld [vmem:[%s16471_s7 + $0x1fe0] sm:$0xff]  }
 0x44d   : > { %14697 = vmatprep.subr.bf16.mxu0 %v15957_v14  ;;  %v15997_v14 = vld [vmem:[%s16471_s7 + $0x1f68] sm:$0xff]  }
 0x44e   : > { %14718 = vmatpush3.bf16.msra.mxu1 %v15956_v13  ;;  %v15995_v13 = vld [vmem:[%s16471_s7 + $0x1f20] sm:$0xff]  }
 0x44f   : > { %14719 = vmatprep.subr.bf16.mxu1 %v15958_v15  ;;  %v15996_v15 = vld [vmem:[%s16471_s7 + $0x1fa0] sm:$0xff]  }
 0x450   : > { %14698 = vmatpush3.bf16.msra.mxu0 %v15959_v16 }
 0x451   : > { %14699 = vmatprep.subr.bf16.mxu0 %v15961_v18 }
 0x452   : > { %14720 = vmatpush3.bf16.msra.mxu1 %v15960_v17  ;;  %v15998_v17 = vld [vmem:[%s16471_s7 + $0x1fe8] sm:$0xff]  }
 0x453   : > { %14721 = vmatprep.subr.bf16.mxu1 %v15962_v19  ;;  %v15999_v19 = vld [vmem:[%s16471_s7 + $0x1f28] sm:$0xff]  }
 0x454   : > { %14700 = vmatpush3.bf16.msra.mxu0 %v15963_v20 }
 0x455   : > { %14701 = vmatprep.subr.bf16.mxu0 %v15965_v22 }
 0x456   : > { %v14399_v24 = vpop.f32.mrb[92].mxu0  ;;  %14722 = vmatpush3.bf16.msra.mxu1 %v15964_v21 }
 0x457   : > { %v14400_v26 = vpop.f32.mrb[93].mxu0  ;;  %14723 = vmatprep.subr.bf16.mxu1 %v15966_v23  ;;  %v16000_v23 = vld [vmem:[%s16471_s7 + $0x1fa8] sm:$0xff]  }
 0x458   : > { %v14421_v28 = vpop.f32.mrb[92].mxu1  ;;  %v14401_v29 = vadd.f32 %v14400_v26, %v14399_v24  ;;  %v14402_v30 = vpop.f32.mrb[94].mxu0  ;;  %14702 = vmatpush3.bf16.msra.mxu0 %v15967_v25  ;;  %v16001_v24 = vld [vmem:[%s16471_s7 + $0x1f70] sm:$0xff]  }
 0x459   : > { %v14422_v33 = vpop.f32.mrb[93].mxu1  ;;  %v14403_v34 = vpop.f32.mrb[95].mxu0  ;;  %14703 = vmatprep.subr.bf16.mxu0 %v15969_v31  ;;  %v16002_v30 = vld [vmem:[%s16471_s7 + $0x1ff0] sm:$0xff]  }
 0x45a   : > { %v11364_v35 = vadd.f32 %v14401_v29, %v17712_v60  ;;  %v14423_v36 = vadd.f32 %v14422_v33, %v14421_v28  ;;  %v14424_v37 = vpop.f32.mrb[94].mxu1  ;;  %14724 = vmatpush3.bf16.msra.mxu1 %v15968_v27  ;;  %v15981_v60 = vld [vmem:[%s16471_s7 + $0x1f48] sm:$0xff]   ;;  %v16005_v34 = vld [vmem:[%s16471_s7 + $0x1f78] sm:$0xff]  }
 0x45b   : > { %v14425_v39 = vpop.f32.mrb[95].mxu1  ;;  %14725 = vmatprep.subr.bf16.mxu1 %v15970_v32  ;;  %v16003_v32 = vld [vmem:[%s16471_s7 + $0x1f30] sm:$0xff]   ;;  %v16007_v37 = vld [vmem:[%s16471_s7 + $0x1f38] sm:$0xff]  }
 0x45c   : > { %v17749_v41 = vadd.f32 %v14423_v36, %v11364_v35  ;;  %14704 = vmatpush3.bf16.msra.mxu0 %v15971_v38  ;;  %v16004_v35 = vld [vmem:[%s16471_s7 + $0x1fb0] sm:$0xff]   ;;  %v16006_v36 = vld [vmem:[%s16471_s7 + $0x1ff8] sm:$0xff]   ;;  %v3198_v38 = vrot.slane %v17761_v54, %v16545_v42 }
 0x45d   : > { %14705 = vmatprep.subr.bf16.mxu0 %v15973_v43  ;;  %v16008_v39 = vld [vmem:[%s16471_s7 + $0x1fb8] sm:$0xff]  }
 0x45e   : > { %14726 = vmatpush3.bf16.msra.mxu1 %v15972_v40  ;;  %v3214_v40 = vcombine.high %v3198_v38, %v3198_v38 }
 0x45f   : > { %14727 = vmatprep.subr.bf16.mxu1 %v15974_v44 }
 0x460   : > { %14706 = vmatpush3.bf16.msra.mxu0 %v15975_v45 }
 0x461   : > { %14735 = vmatprep.subr.bf16.mxu0 %v15977_v48 }
 0x462   : > { %14728 = vmatpush3.bf16.msra.mxu1 %v15976_v50 }
 0x463   : > { %14757 = vmatprep.subr.bf16.mxu1 %v15978_v53  ;;  %11922 = vmatmul.mubr.bf16.vlgmr.msra.gmra.mrb[120].mxu0 %v3191_v52 }
 0x464   : > { %14736 = vmatpush3.bf16.msra.mxu0 %v15979_v57  ;;  %12001 = vmatprep.mubr.bf16.mxu0 %v3212_v62 }
 0x465   : > { %11962 = vmatmul.mubr.bf16.vlgmr.msra.gmra.mrb[120].mxu1 %v3213_v59  ;;  %14737 = vmatprep.subr.bf16.mxu0 %v15981_v60 }
 0x466   : > { %14758 = vmatpush3.bf16.msra.mxu1 %v15980_v61  ;;  %12041 = vmatprep.mubr.bf16.mxu1 %v3216_v1 }
 0x467   : > { %14759 = vmatprep.subr.bf16.mxu1 %v15982_v63 }
 0x468   : > { %14738 = vmatpush3.bf16.msra.mxu0 %v15983_v0 }
 0x469   : > { %14739 = vmatprep.subr.bf16.mxu0 %v15985_v2 }
 0x46a   : > { %14760 = vmatpush3.bf16.msra.mxu1 %v15984_v3 }
 0x46b   : > { %14761 = vmatprep.subr.bf16.mxu1 %v15986_v4 }
 0x46c   : > { %14740 = vmatpush3.bf16.msra.mxu0 %v15987_v5 }
 0x46d   : > { %14741 = vmatprep.subr.bf16.mxu0 %v15989_v6 }
 0x46e   : > { %14762 = vmatpush3.bf16.msra.mxu1 %v15988_v7 }
 0x46f   : > { %14763 = vmatprep.subr.bf16.mxu1 %v15990_v8 }
 0x470   : > { %14742 = vmatpush3.bf16.msra.mxu0 %v15991_v9 }
 0x471   : > { %14743 = vmatprep.subr.bf16.mxu0 %v15993_v10 }
 0x472   : > { %14764 = vmatpush3.bf16.msra.mxu1 %v15992_v11 }
 0x473   : > { %14765 = vmatprep.subr.bf16.mxu1 %v15994_v12 }
 0x474   : > { %14744 = vmatpush3.bf16.msra.mxu0 %v15995_v13 }
 0x475   : > { %14745 = vmatprep.subr.bf16.mxu0 %v15997_v14 }
 0x476   : > { %v14443_v16 = vpop.f32.mrb[96].mxu0  ;;  %14766 = vmatpush3.bf16.msra.mxu1 %v15996_v15 }
 0x477   : > { %v14444_v18 = vpop.f32.mrb[97].mxu0  ;;  %14767 = vmatprep.subr.bf16.mxu1 %v15998_v17 }
 0x478   : > { %v14465_v20 = vpop.f32.mrb[96].mxu1  ;;  %v14445_v21 = vadd.f32 %v14444_v18, %v14443_v16  ;;  %v14446_v22 = vpop.f32.mrb[98].mxu0  ;;  %14746 = vmatpush3.bf16.msra.mxu0 %v15999_v19 }
 0x479   : > { %v14466_v25 = vpop.f32.mrb[97].mxu1  ;;  %v14447_v26 = vpop.f32.mrb[99].mxu0  ;;  %14747 = vmatprep.subr.bf16.mxu0 %v16001_v24 }
 0x47a   : > { %v11444_v27 = vadd.f32 %v14445_v21, %v17749_v41  ;;  %v14467_v28 = vadd.f32 %v14466_v25, %v14465_v20  ;;  %v14468_v29 = vpop.f32.mrb[98].mxu1  ;;  %14768 = vmatpush3.bf16.msra.mxu1 %v16000_v23 }
 0x47b   : > { %v14469_v31 = vpop.f32.mrb[99].mxu1  ;;  %14769 = vmatprep.subr.bf16.mxu1 %v16002_v30 }
 0x47c   : > { %v11484_v33 = vadd.f32 %v14467_v28, %v11444_v27  ;;  %14748 = vmatpush3.bf16.msra.mxu0 %v16003_v32 }
 0x47d   : > { %14749 = vmatprep.subr.bf16.mxu0 %v16005_v34 }
 0x47e   : > { %14770 = vmatpush3.bf16.msra.mxu1 %v16004_v35 }
 0x47f   : > { %14771 = vmatprep.subr.bf16.mxu1 %v16006_v36 }
 0x480   : > { %14750 = vmatpush3.bf16.msra.mxu0 %v16007_v37 }
 0x482   : > { %14772 = vmatpush3.bf16.msra.mxu1 %v16008_v39 }
 0x483   : > { %12002 = vmatmul.mubr.bf16.vlgmr.msra.gmra.mrb[124].mxu0 %v3198_v38 }
 0x485   : > { %12042 = vmatmul.mubr.bf16.vlgmr.msra.gmra.mrb[124].mxu1 %v3214_v40 }
 0x496   : > { %v14487_v41 = vpop.f32.mrb[100].mxu0 }
 0x497   : > { %v14488_v43 = vpop.f32.mrb[101].mxu0 }
 0x498   : > { %v14509_v44 = vpop.f32.mrb[100].mxu1  ;;  %v14489_v45 = vadd.f32 %v14488_v43, %v14487_v41  ;;  %v14490_v46 = vpop.f32.mrb[102].mxu0 }
 0x499   : > { %v14510_v47 = vpop.f32.mrb[101].mxu1  ;;  %v14491_v48 = vpop.f32.mrb[103].mxu0 }
 0x49a   : > { %v11524_v49 = vadd.f32 %v14489_v45, %v11484_v33  ;;  %v14511_v50 = vadd.f32 %v14510_v47, %v14509_v44  ;;  %v14512_v51 = vpop.f32.mrb[102].mxu1 }
 0x49b   : > { %v14513_v52 = vpop.f32.mrb[103].mxu1 }
 0x49c   : > { %v11564_v42 = vadd.f32 %v14511_v50, %v11524_v49 }
 0x4b6   : > { %v14531_v53 = vpop.f32.mrb[104].mxu0 }
 0x4b7   : > { %v14532_v54 = vpop.f32.mrb[105].mxu0 }
 0x4b8   : > { %v14553_v56 = vpop.f32.mrb[104].mxu1  ;;  %v14533_v57 = vadd.f32 %v14532_v54, %v14531_v53  ;;  %v14534_v58 = vpop.f32.mrb[106].mxu0 }
 0x4b9   : > { %v14554_v59 = vpop.f32.mrb[105].mxu1  ;;  %v14535_v60 = vpop.f32.mrb[107].mxu0 }
 0x4ba   : > { %v11604_v55 = vadd.f32 %v14533_v57, %v11564_v42  ;;  %v14555_v61 = vadd.f32 %v14554_v59, %v14553_v56  ;;  %v14556_v62 = vpop.f32.mrb[106].mxu1  ;;  %v352_v60 = vld [vmem:[%s16506_s22] sm:$0x3] }
 0x4bb   : > { %v14557_v63 = vpop.f32.mrb[107].mxu1 }
 0x4bc   : > { %v11644_v0 = vadd.f32 %v14555_v61, %v11604_v55  ;;  %v12066_v63 = vld [vmem:[%s16499_s27] sm:$0xff] (!%p13364_p8) }
 0x4d6   : > { %v14575_v1 = vpop.f32.mrb[108].mxu0 }
 0x4d7   : > { %v14576_v2 = vpop.f32.mrb[109].mxu0 }
 0x4d8   : > { %v14597_v3 = vpop.f32.mrb[108].mxu1  ;;  %v14577_v4 = vadd.f32 %v14576_v2, %v14575_v1  ;;  %v14578_v5 = vpop.f32.mrb[110].mxu0  ;;  %v12068_v1 = vld [vmem:[%s16499_s27 + $0x10] sm:$0xff] (!%p13364_p8)  ;;  %v16205_v2 = vmov (!%p13364_p8), 0.0|0.0  }
 0x4d9   : > { %v14598_v6 = vpop.f32.mrb[109].mxu1  ;;  %v14579_v7 = vpop.f32.mrb[111].mxu0  ;;  %14831 = vmatprep.subr.bf16.mxu0 (!%p13364_p8), %v16205_v2  ;;  %v16207_v5 = vmov (!%p13364_p8), 0.0  }
 0x4da   : > { %v11684_v8 = vadd.f32 %v14577_v4, %v11644_v0  ;;  %v14599_v9 = vadd.f32 %v14598_v6, %v14597_v3  ;;  %v14600_v10 = vpop.f32.mrb[110].mxu1  ;;  %v12067_v0 = vld [vmem:[%s16499_s27 + $0x8] sm:$0xff] (!%p13364_p8)  ;;  %v12069_v4 = vld [vmem:[%s16499_s27 + $0x18] sm:$0xff] (!%p13364_p8)  ;;  %14828 = vmatprep.mubr.msk.f32.mxu0 (!%p13364_p8), %vm16206_vm0, %v16207_v5  ;;  %v12070_v7 = vld [vmem:[%s16499_s27 + $0x20] sm:$0xff] (!%p13364_p8) }
 0x4db   : > { %v14601_v11 = vpop.f32.mrb[111].mxu1  ;;  %v14832_v3 = vpack.c.bf16 (!%p13364_p8), %v12067_v0, %v12066_v63  ;;  %v14835_v6 = vpack.c.bf16 (!%p13364_p8), %v12069_v4, %v12068_v1  ;;  %v13365_v10 = vld [vmem:[%s17929_s1] ss:$0 sm:$0xff] (!%p13364_p8) }
 0x4dc   : > { %v11724_v12 = vadd.f32 %v14599_v9, %v11684_v8  ;;  %v12071_v8 = vld [vmem:[%s16499_s27 + $0x28] sm:$0xff] (!%p13364_p8) }
 0x4dd   : > { %14833 = vmatpush3.bf16.msra.mxu0 (!%p13364_p8), %v14832_v3 }
 0x4de   : > { %14834 = vmatprep.subr.bf16.mxu0 (!%p13364_p8), %v16205_v2 }
 0x4e1   : > { %14836 = vmatpush3.bf16.msra.mxu0 (!%p13364_p8), %v14835_v6 }
 0x4e2   : > { %14837 = vmatprep.subr.bf16.mxu0 (!%p13364_p8), %v16205_v2 }
 0x4f6   : > { %v14619_v13 = vpop.f32.mrb[112].mxu0 }
 0x4f7   : > { %v14620_v14 = vpop.f32.mrb[113].mxu0 }
 0x4f8   : > { %v14641_v15 = vpop.f32.mrb[112].mxu1  ;;  %v14621_v16 = vadd.f32 %v14620_v14, %v14619_v13  ;;  %v14622_v17 = vpop.f32.mrb[114].mxu0  ;;  %v12072_v13 = vld [vmem:[%s16499_s27 + $0x30] sm:$0xff] (!%p13364_p8)  ;;  %v12073_v14 = vld [vmem:[%s16499_s27 + $0x38] sm:$0xff] (!%p13364_p8) }
 0x4f9   : > { %v14642_v18 = vpop.f32.mrb[113].mxu1  ;;  %v14623_v19 = vpop.f32.mrb[115].mxu0  ;;  %v12074_v17 = vld [vmem:[%s16499_s27 + $0x40] sm:$0xff] (!%p13364_p8) }
 0x4fa   : > { %v11764_v20 = vadd.f32 %v14621_v16, %v11724_v12  ;;  %v14643_v21 = vadd.f32 %v14642_v18, %v14641_v15  ;;  %v14644_v22 = vpop.f32.mrb[114].mxu1  ;;  %v14838_v12 = vpack.c.bf16 (!%p13364_p8), %v12071_v8, %v12070_v7  ;;  %v14841_v16 = vpack.c.bf16 (!%p13364_p8), %v12073_v14, %v12072_v13  ;;  %v12075_v18 = vld [vmem:[%s16499_s27 + $0x48] sm:$0xff] (!%p13364_p8) }
 0x4fb   : > { %v14645_v23 = vpop.f32.mrb[115].mxu1  ;;  %v14844_v19 = vpack.c.bf16 (!%p13364_p8), %v12075_v18, %v12074_v17 }
 0x4fc   : > { %v11804_v24 = vadd.f32 %v14643_v21, %v11764_v20  ;;  %14839 = vmatpush3.bf16.msra.mxu0 (!%p13364_p8), %v14838_v12  ;;  %v12076_v20 = vld [vmem:[%s16499_s27 + $0x50] sm:$0xff] (!%p13364_p8)  ;;  %v12077_v21 = vld [vmem:[%s16499_s27 + $0x58] sm:$0xff] (!%p13364_p8)  ;;  %v12078_v23 = vld [vmem:[%s16499_s27 + $0x60] sm:$0xff] (!%p13364_p8) }
 0x4fd   : > { %14840 = vmatprep.subr.bf16.mxu0 (!%p13364_p8), %v16205_v2  ;;  %v14847_v22 = vpack.c.bf16 (!%p13364_p8), %v12077_v21, %v12076_v20 }
 0x500   : > { %14842 = vmatpush3.bf16.msra.mxu0 (!%p13364_p8), %v14841_v16 }
 0x501   : > { %14843 = vmatprep.subr.bf16.mxu0 (!%p13364_p8), %v16205_v2 }
 0x504   : > { %14845 = vmatpush3.bf16.msra.mxu0 (!%p13364_p8), %v14844_v19 }
 0x505   : > { %14846 = vmatprep.subr.bf16.mxu0 (!%p13364_p8), %v16205_v2 }
 0x508   : > { %14848 = vmatpush3.bf16.msra.mxu0 (!%p13364_p8), %v14847_v22 }
 0x509   : > { %14849 = vmatprep.subr.bf16.mxu0 (!%p13364_p8), %v16205_v2 }
 0x516   : > { %v14663_v25 = vpop.f32.mrb[116].mxu0 }
 0x517   : > { %v14664_v26 = vpop.f32.mrb[117].mxu0 }
 0x518   : > { %v14685_v27 = vpop.f32.mrb[116].mxu1  ;;  %v14665_v28 = vadd.f32 %v14664_v26, %v14663_v25  ;;  %v14666_v29 = vpop.f32.mrb[118].mxu0  ;;  %v12080_v26 = vld [vmem:[%s16499_s27 + $0x70] sm:$0xff] (!%p13364_p8) }
 0x519   : > { %v14686_v30 = vpop.f32.mrb[117].mxu1  ;;  %v14667_v31 = vpop.f32.mrb[119].mxu0 }
 0x51a   : > { %v11844_v32 = vadd.f32 %v14665_v28, %v11804_v24  ;;  %v14687_v33 = vadd.f32 %v14686_v30, %v14685_v27  ;;  %v14688_v34 = vpop.f32.mrb[118].mxu1  ;;  %v12079_v24 = vld [vmem:[%s16499_s27 + $0x68] sm:$0xff] (!%p13364_p8)  ;;  %v12081_v27 = vld [vmem:[%s16499_s27 + $0x78] sm:$0xff] (!%p13364_p8) }
 0x51b   : > { %v14689_v35 = vpop.f32.mrb[119].mxu1  ;;  %v14850_v25 = vpack.c.bf16 (!%p13364_p8), %v12079_v24, %v12078_v23  ;;  %v14853_v28 = vpack.c.bf16 (!%p13364_p8), %v12081_v27, %v12080_v26 }
 0x51c   : > { %v11884_v36 = vadd.f32 %v14687_v33, %v11844_v32 }
 0x51d   : > { %14851 = vmatpush3.bf16.msra.mxu0 (!%p13364_p8), %v14850_v25 }
 0x51e   : > { %14852 = vmatprep.subr.bf16.mxu0 (!%p13364_p8), %v16205_v2 }
 0x521   : > { %14854 = vmatpush3.bf16.msra.mxu0 (!%p13364_p8), %v14853_v28 }
 0x536   : > { %v14707_v37 = vpop.f32.mrb[120].mxu0 }
 0x537   : > { %v14708_v38 = vpop.f32.mrb[121].mxu0 }
 0x538   : > { %v14729_v39 = vpop.f32.mrb[120].mxu1  ;;  %v14709_v40 = vadd.f32 %v14708_v38, %v14707_v37  ;;  %v14710_v41 = vpop.f32.mrb[122].mxu0 }
 0x539   : > { %v14730_v43 = vpop.f32.mrb[121].mxu1  ;;  %v14711_v44 = vpop.f32.mrb[123].mxu0 }
 0x53a   : > { %v11924_v45 = vadd.f32 %v14709_v40, %v11884_v36  ;;  %v14731_v46 = vadd.f32 %v14730_v43, %v14729_v39  ;;  %v14732_v47 = vpop.f32.mrb[122].mxu1 }
 0x53b   : > { %v14733_v48 = vpop.f32.mrb[123].mxu1 }
 0x53c   : > { %v11964_v49 = vadd.f32 %v14731_v46, %v11924_v45 }
 0x556   : > { %v14751_v50 = vpop.f32.mrb[124].mxu0 }
 0x557   : > { %v14752_v51 = vpop.f32.mrb[125].mxu0 }
 0x558   : > { %v14773_v52 = vpop.f32.mrb[124].mxu1  ;;  %v14753_v42 = vadd.f32 %v14752_v51, %v14751_v50  ;;  %v14754_v53 = vpop.f32.mrb[126].mxu0 }
 0x559   : > { %v14774_v54 = vpop.f32.mrb[125].mxu1  ;;  %v14755_v56 = vpop.f32.mrb[127].mxu0 }
 0x55a   : > { %v12004_v57 = vadd.f32 %v14753_v42, %v11964_v49  ;;  %v14775_v58 = vadd.f32 %v14774_v54, %v14773_v52  ;;  %v14776_v59 = vpop.f32.mrb[126].mxu1  ;;  %12054 = sbr.rel (%p13364_p8) target bundleno = 1601 (0x641), region = 52 }
 0x55b   : > { %v14777_v55 = vpop.f32.mrb[127].mxu1 }
 0x55c   : > { %v12044_v61 = vadd.f32 %v14775_v58, %v12004_v57 }
 0x55e   : > { %v12049_v62 = vadd.f32 %v12044_v61, %v352_v60 }
 0x560   : > { %12050 = vst [vmem:[%s16506_s22] sm:$0x3] %v12049_v62 }
 0x567   : > { %v12055_v9 = vld [vmem:[%s16506_s22] sm:$0x3] }
 0x568   : > { %v12063_v11 = vadd.f32 %v13365_v10, %v12055_v9 }
 0x56a   : > { %v12064_v15 = vmax.f32 %v12063_v11, 0.0 }
 0x56c   : > { %12065 = vst [vmem:[%s16506_s22] sm:$0x3] %v12064_v15  ;;  %14829 = vmatmul.mubr.f32.vlgmr.msra.gmra.mrb[0].mxu0 %v12064_v15 }
 0x63f   : > { %v12148_v29 = vpop.f32.mrb[0].mxu0 }
 0x640   : > { %12153 = vst.msk [vmem:[%s16504_s23] sm:$0x3] %vm12152_vm1, %v12148_v29  ;;  %v14830_v30 = vpop.f32.mrb[1].mxu0 }
 0x641 PF: > { %s13367_s2 = sshll.u32 %s16184_s25, 5  ;;  %s12172_s8 = sshll.u32 %s16506_s22, 4  ;;  %s12173_s8 = int_to_ptr.vmem [resolvable:$true] %s12172_s8 }
 0x642   : > { %s17828_s29 = scalar_lea.hbm %s17890_s4, %s13367_s2  ;;  %s12155_s17 = scalar_lea.sflag [#allocation4], %s16478_s12 }
 0x643   : > { %s16070_s13 = scalar_lea.vmem %s12173_s8, 32  ;;  %p17930_p9 = scmp.ne.s32.totalorder %s17922_s15, 0 }
 0x644   : > { %p16071_p11 = scmp.ne.s32.totalorder %s12173_s8, %s16070_s13  ;;  %s16208_s23 = smov [#allocation7]  }
 0x645   : > { %s16074_s11 = sshll.u32 %s16208_s23, 4  ;;  %s16075_s11 = int_to_ptr.vmem [resolvable:$false] %s16074_s11 }
 0x646   : > { %p16072_p3 = pnand %p16071_p11, %p17930_p9  ;;  %s16076_s21 = scalar_lea.vmem %s16075_s11, 64 }
 0x647   : > { %p16077_p6 = scmp.lt.s32.totalorder %s12173_s8, %s16075_s11  ;;  %p16078_p12 = scmp.lt.s32.totalorder %s16076_s21, %s16070_s13 }
 0x648   : > { %p16073_p10 = pneg %p16072_p3 }
 0x649   : > { %p16079_p5 = por %p16078_p12, %p16077_p6 }
 0x64b   : > { %p16080_p4 = pnand %p16079_p5, %p16073_p10 }
 0x64d   : > { %16083 = shalt.err (!%p16080_p4)
}
 0x64e   : > { %s16084_s22 = scalar_lea.hbm %s17828_s29, 32  ;;  %s16088_s26 = scalar_lea.hbm %s17890_s4, 64 }
 0x64f   : > { %p16085_p7 = scmp.ne.s32.totalorder %s17828_s29, %s16084_s22  ;;  %p16089_p13 = scmp.lt.u32.totalorder %s17828_s29, %s17890_s4 }
 0x650   : > { %p16090_p0 = scmp.lt.u32.totalorder %s16088_s26, %s16084_s22  ;;  %p16092_p11 = scmp.lt.u32.totalorder %s16084_s22, %s17828_s29 }
 0x651   : > { %p16086_p1 = pnand %p16085_p7, %p17930_p9 }
 0x652   : > { %p16091_p8 = por %p16090_p0, %p16089_p13 }
 0x653   : > { %p16087_p2 = pneg %p16086_p1 }
 0x654   : > { %p16093_p3 = por %p16092_p11, %p16091_p8 }
 0x656   : > { %p16094_p10 = pnand %p16093_p3, %p16087_p2 }
 0x658   : > { %16097 = shalt.err (!%p16094_p10)
}
 0x659   : > { %14859 = dma.vmem_to_hbm [thread:$0]  (%p17930_p9), %s12173_s8, 32, %s17828_s29, %s12155_s17  }
 0x65a PF: > { %p14873_p6 = scmp.ge.s32.totalorder %s16196_s28, 2  ;;  %s12187_s9 = sand.u32 1, %s16156_s18  }
 0x65b   : > { %p17931_p12 = scmp.ne.s32.totalorder %s17923_s30, 0  ;;  %s12188_s16 = scalar_lea.sflag [#allocation4], %s12187_s9 }
 0x65d   : > { %p14869_p5 = pnand %p14873_p6, %p17931_p12 }
 0x65f   : > { %16151 = dma.done.wait (!%p14869_p5), %s12188_s16, 32  }
 0x660   : > { %16153 = vsyncadd (!%p14869_p5), %s12188_s16, 4294967264  ;;  %s25_s28 = sadd.s32 1, %s16196_s28   ;;  %s17932_s21 = sld [smem:[#allocation11_spill]] }
 0x661   : > { %p22_p4 = scmp.ge.s32.totalorder %s25_s28, 6   ;;  %s17933_s22 = sld [smem:[#allocation12_spill]] }
 0x662   : > { %s17934_s23 = sld [smem:[#allocation17_spill]]  ;;  %s17935_s24 = sld [smem:[#allocation13_spill]] }
 0x663   : > { %s17936_s25 = sld [smem:[#allocation14_spill]]  ;;  %s17937_s26 = sld [smem:[#allocation15_spill]] }
 0x664   : > { %s17938_s27 = sld [smem:[#allocation16_spill]]  ;;  %s17939_s18 = smov %s16160_s19 }
 0x665   : > { %s17940_s19 = smov %s16164_s20  ;;  %s17941_s20 = smov %s16408_s14 }
 0x666   :  { %24 = sbr.rel (!%p22_p4) target bundleno = 14 (0xe), region = 120 }
 0x66d   :  { %12200 = vsyncpa [#allocation3], 1 }
 0x66e   :  { %12202 = vsyncpa [#allocation3 + $0x1], 1 }
 0x66f   :  { %12203 = vsyncpa [#allocation6], 1 }
 0x670   :  { %12205 = vsyncpa [#allocation6 + $0x1], 1 }
 0x671   :  { %12206 = vsyncpa [#allocation4], 1 }
 0x672   :  { %12208 = vsyncpa [#allocation4 + $0x1], 1 }

</bundles_post_ra>
